<compile_context>
chip_gen: v7x
topology: tpu7x:2x2x1
jax: 0.10.0
libtpu: 0.0.40
codegen_flags: <defaults>
</compile_context>

<pallas_src>
import math
import jax
import jax.numpy as jnp
from jax.experimental import pallas as pl
from jax.experimental.pallas import tpu as pltpu

LRELU_SLOPE = 0.1            # modules.LRELU_SLOPE in the reference repo
PERIODS = [2, 3, 5, 7, 11]

_ROW_TILE_MAX = 512          # TM: rows per grid step
_VMEM_LIMIT = 48 * 1024 * 1024   # safe on v7x (64 MiB), plenty on v5e/v6e


def get_padding(kernel_size, dilation=1):
    return int((kernel_size * dilation - dilation) / 2)


def _round_up(x, m):
    return ((x + m - 1) // m) * m


# ----------------------------------------------------------------------------
# Static per-layer tiling plans
# ----------------------------------------------------------------------------
def _pick_group_tco(Cout, Cout_g, Cin, Cin_g):
    """Output-tile width for grouped convs: lane-dense (>=128) while keeping
    the matching input-channel block either == Cin or a multiple of 128."""
    for tco in (128, 256, 512):
        if Cout % tco == 0 and tco % Cout_g == 0:
            cin_blk = (tco // Cout_g) * Cin_g
            if cin_blk == Cin or cin_blk % 128 == 0:
                return tco
    return Cout


def _plan_conv(spec):
    Cout, Cin, K, stride, padding, groups = spec
    G = groups
    Cin_g = Cin // G
    Cout_g = Cout // G
    small_cin = (G == 1 and Cin == 1)
    if G == 1:
        if Cout % 512 == 0:
            tco = 512
        elif Cout % 256 == 0:
            tco = 256
        elif Cout % 128 == 0:
            tco = 128
        else:
            tco = Cout               # Cout < 128 layers: masked stores, tiny layers
        cin_blk = Cin
    else:
        tco = _pick_group_tco(Cout, Cout_g, Cin, Cin_g)
        cin_blk = (tco // Cout_g) * Cin_g
    Nco = Cout // tco
    return dict(Cout=Cout, Cin=Cin, K=K, stride=stride, padding=padding,
                groups=G, Cin_g=Cin_g, Cout_g=Cout_g, tco=tco, cin_blk=cin_blk,
                Nco=Nco, small_cin=small_cin)


_DISC_S_SPECS = [  # (Cout, Cin, K, stride, padding, groups)
    (16, 1, 15, 1, 7, 1),
    (64, 16, 41, 4, 20, 4),
    (256, 64, 41, 4, 20, 16),
    (1024, 256, 41, 4, 20, 64),
    (1024, 1024, 41, 4, 20, 256),
    (1024, 1024, 5, 1, 2, 1),
]
_DISC_S_POST_SPEC = (1, 1024, 3, 1, 1, 1)

_DISC_P_SPECS = [  # Conv2d (k,1): width folded into batch, 1-D conv over H
    (32, 1, 5, 3, get_padding(5), 1),
    (128, 32, 5, 3, get_padding(5), 1),
    (512, 128, 5, 3, get_padding(5), 1),
    (1024, 512, 5, 3, get_padding(5), 1),
    (1024, 1024, 5, 1, get_padding(5), 1),
]
_DISC_P_POST_SPEC = (1, 1024, 3, 1, 1, 1)

_DISC_S_PLANS = [_plan_conv(s) for s in _DISC_S_SPECS]
_DISC_S_POST_PLAN = _plan_conv(_DISC_S_POST_SPEC)
_DISC_P_PLANS = [_plan_conv(s) for s in _DISC_P_SPECS]
_DISC_P_POST_PLAN = _plan_conv(_DISC_P_POST_SPEC)


# ----------------------------------------------------------------------------
# Pallas kernels
# ----------------------------------------------------------------------------
def _make_mxu_kernel(K, stride, cin_blk, apply_act):
    """im2col-in-VMEM + single MXU dot; o_ref written exactly once."""
    def kernel(x_ref, w_ref, b_ref, o_ref, slab_ref):
        # x_ref: (1, stride, TP, cin_blk)   phase-split halo window (bf16)
        # w_ref: (1, K*cin_blk, tco)        flat / block-diagonal weight (bf16)
        # b_ref: (1, 1, tco)                f32
        # o_ref: (TM, tco)                  bf16 (hidden) or f32 (conv_post)
        # slab_ref: (TM, K*cin_blk)         VMEM scratch (im2col slab)
        TM = o_ref.shape[0]
        for k in range(K):                           # static unrolled copies
            ph, q = k % stride, k // stride
            slab_ref[:, k * cin_blk:(k + 1) * cin_blk] = (
                x_ref[0, ph, pl.ds(q, TM), :])
        acc = jnp.dot(slab_ref[...], w_ref[0],
                      preferred_element_type=jnp.float32)
        y = acc + b_ref[0]
        if apply_act:
            y = jnp.where(y >= 0.0, y, LRELU_SLOPE * y)
        o_ref[...] = y.astype(o_ref.dtype)
    return kernel


def _make_vpu_kernel(K, stride, apply_act):
    """Cin == 1 layers: broadcast FMA on the VPU, local accumulator (no o_ref
    read-modify-write), initialized from the bias."""
    def kernel(x_ref, w_ref, b_ref, o_ref):
        TM, tco = o_ref.shape
        acc = jnp.broadcast_to(b_ref[0], (TM, tco))          # f32, hoisted
        for k in range(K):
            ph, q = k % stride, k // stride
            xs = x_ref[0, ph, pl.ds(q, TM), :]               # (TM, 1) f32
            acc = acc + xs * w_ref[0, pl.ds(k, 1), :]        # (1, tco) f32
        if apply_act:
            acc = jnp.where(acc >= 0.0, acc, LRELU_SLOPE * acc)
        o_ref[...] = acc.astype(o_ref.dtype)
    return kernel


# ----------------------------------------------------------------------------
# Conv wrapper
# ----------------------------------------------------------------------------
def conv1d_pallas(x, w_flat, b_exp, *, plan, apply_act=True):
    """Grouped, strided 1-D conv + bias (+ LeakyReLU) as a Pallas kernel.

    x: (B, T, Cin) channels-last.  w_flat/b_exp: prepared kernel layouts
    (see _prepare_conv).  Returns (B, T_out, Cout), bf16 if apply_act else f32.
    """
    B, T, Cin = x.shape
    assert Cin == plan['Cin']
    K, stride, padding = plan['K'], plan['stride'], plan['padding']
    G, Cout = plan['groups'], plan['Cout']
    tco, cin_blk, Nco = plan['tco'], plan['cin_blk'], plan['Nco']
    small_cin = plan['small_cin']

    T_hpad = T + 2 * padding
    T_out = (T_hpad - K) // stride + 1
    assert T_out >= 1

    x_dtype = jnp.float32 if small_cin else jnp.bfloat16
    out_dtype = jnp.bfloat16 if apply_act else jnp.float32

    # ---- row tiling: per-tile halo window, stride folded into phases ----
    TM = min(_ROW_TILE_MAX, _round_up(T_out, 8))
    n_tiles = -(-T_out // TM)
    qmax = (K - 1) // stride
    TP = TM + qmax                       # phase rows per tile

    x = x.astype(x_dtype)                # no-op when fed by a previous layer
    xp = jnp.pad(x, ((0, 0), (padding, padding), (0, 0))) if padding else x
    need = (n_tiles - 1) * TM * stride + (TP - 1) * stride + (stride - 1) + 1
    if need > T_hpad:
        xp = jnp.pad(xp, ((0, 0), (0, need - T_hpad), (0, 0)))

    # halo gather: row = r*TM*s + ph + t2*s  (overlap overhead ~qmax rows/tile)
    row_idx = (jnp.arange(n_tiles)[:, None, None] * (TM * stride)
               + jnp.arange(stride)[None, :, None]
               + jnp.arange(TP)[None, None, :] * stride)     # (n_tiles, s, TP)
    x_halo = xp[:, row_idx, :].reshape(B * n_tiles, stride, TP, Cin)

    R = B * n_tiles
    if G == 1:
        x_map = lambda j, r: (r, 0, 0, 0)
    else:
        x_map = lambda j, r: (r, 0, 0, j)      # channel block j feeds out tile j

    if small_cin:
        kernel = _make_vpu_kernel(K, stride, apply_act)
        scratch = []
    else:
        kernel = _make_mxu_kernel(K, stride, cin_blk, apply_act)
        scratch = [pltpu.VMEM((TM, K * cin_blk), x_dtype)]

    out = pl.pallas_call(
        kernel,
        out_shape=jax.ShapeDtypeStruct((R * TM, Cout), out_dtype),
        grid_spec=pltpu.PrefetchScalarGridSpec(
            num_scalar_prefetch=0,
            grid=(Nco, R),                 # rows innermost -> weight tile is
            in_specs=[                     # loop-invariant (DMA'd once per j)
                pl.BlockSpec((1, stride, TP, cin_blk), x_map),
                pl.BlockSpec((1, K * cin_blk, tco), lambda j, r: (j, 0, 0)),
                pl.BlockSpec((1, 1, tco), lambda j, r: (j, 0, 0)),
            ],
            out_specs=pl.BlockSpec((TM, tco), lambda j, r: (r, j)),
            scratch_shapes=scratch,
        ),
        compiler_params=pltpu.CompilerParams(
            dimension_semantics=("parallel", "parallel"),
            vmem_limit_bytes=_VMEM_LIMIT),
    )(x_halo, w_flat, b_exp)

    # drop row padding; output is already channels-last (B, T_out, Cout)
    return out.reshape(B, n_tiles * TM, Cout)[:, :T_out, :]


# ----------------------------------------------------------------------------
# Parameter initialization + one-time kernel-layout preparation
# ----------------------------------------------------------------------------
def _init_conv(key, shape):
    kw, kb = jax.random.split(key)
    fan_in = 1
    for d in shape[1:]:
        fan_in *= d
    bound = 1.0 / math.sqrt(fan_in)
    w = jax.random.uniform(kw, shape, jnp.float32, -bound, bound)
    b = jax.random.uniform(kb, (shape[0],), jnp.float32, -bound, bound)
    return w, b


def _prepare_conv(w, b, plan):
    """(Cout, Cin//G, K) torch-layout weight -> (Nco, K*cin_blk, tco) kernel
    layout (block-diagonal for grouped convs).  Executed once at init."""
    Cout, Cin_g, K = w.shape
    G, tco, cin_blk, Nco = plan['groups'], plan['tco'], plan['cin_blk'], plan['Nco']
    dtype = jnp.float32 if plan['small_cin'] else jnp.bfloat16
    if G == 1:
        Cin = Cin_g
        wf = jnp.transpose(w, (2, 1, 0)).reshape(K * Cin, Nco, tco)
        wf = jnp.transpose(wf, (1, 0, 2)).astype(dtype)
    else:
        Cout_g = plan['Cout_g']
        Pg = tco // Cout_g
        w_r = w.reshape(Nco, Pg, Cout_g, Cin_g, K)
        eye = jnp.eye(Pg, dtype=w.dtype)
        wf = (jnp.einsum('jpock,pq->jkpcqo', w_r, eye)
              .reshape(Nco, K * cin_blk, tco).astype(dtype))
    bf = b.reshape(Nco, 1, tco).astype(jnp.float32)
    return wf, bf


def init_mpd_params(key):
    keys = jax.random.split(key, 1 + len(PERIODS))
    s_shapes = [(c, ci // g, k) for (c, ci, k, _s, _p, g) in _DISC_S_SPECS]
    ks = jax.random.split(keys[0], len(s_shapes) + 1)
    params = {
        'disc_s': {
            'convs': [_init_conv(k, s) for k, s in zip(ks[:-1], s_shapes)],
            'conv_post': _init_conv(ks[-1], (1, 1024, 3)),
        },
        'disc_p': [],
    }
    p_shapes = [(c, ci, k, 1) for (c, ci, k, _s, _p, _g) in _DISC_P_SPECS]
    for i in range(len(PERIODS)):
        kp = jax.random.split(keys[i + 1], len(p_shapes) + 1)
        params['disc_p'].append({
            'convs': [_init_conv(k, s) for k, s in zip(kp[:-1], p_shapes)],
            'conv_post': _init_conv(kp[-1], (1, 1024, 3, 1)),
        })
    return params


def prepare_mpd_params(raw):
    prep = {
        'disc_s': {
            'convs': [_prepare_conv(w, b, plan)
                      for (w, b), plan in zip(raw['disc_s']['convs'], _DISC_S_PLANS)],
            'conv_post': _prepare_conv(raw['disc_s']['conv_post'][0],
                                       raw['disc_s']['conv_post'][1],
                                       _DISC_S_POST_PLAN),
        },
        'disc_p': [],
    }
    for dp in raw['disc_p']:
        prep['disc_p'].append({
            'convs': [_prepare_conv(w[..., 0], b, plan)
                      for (w, b), plan in zip(dp['convs'], _DISC_P_PLANS)],
            'conv_post': _prepare_conv(dp['conv_post'][0][..., 0],
                                       dp['conv_post'][1], _DISC_P_POST_PLAN),
        })
    return prep


# ----------------------------------------------------------------------------
# Discriminator forward passes (thin glue around the Pallas conv)
# ----------------------------------------------------------------------------
def disc_s_forward(params, x_nct):
    B = x_nct.shape[0]
    x = jnp.transpose(x_nct, (0, 2, 1))            # channels-last (B, T, C)
    fmap = []
    for (wf, bf), plan in zip(params['convs'], _DISC_S_PLANS):
        x = conv1d_pallas(x, wf, bf, plan=plan, apply_act=True)
        # fmaps kept in torch (B, C, T) layout for semantic fidelity (the
        # transpose could be dropped if the FM loss accepted channels-last).
        fmap.append(jnp.transpose(x, (0, 2, 1)))
    wf, bf = params['conv_post']
    x = conv1d_pallas(x, wf, bf, plan=_DISC_S_POST_PLAN, apply_act=False)
    fmap.append(jnp.transpose(x, (0, 2, 1)))
    out = x.reshape(B, -1)                         # == torch.flatten(x, 1, -1)
    return out, fmap


def _to_nchw(x, B, W):
    # (B*W, H, C) channels-last, width folded into batch -> torch (B, C, H, W)
    BW, H, C = x.shape
    return jnp.transpose(x.reshape(B, W, H, C), (0, 3, 2, 1))


def disc_p_forward(params, x_nct, period):
    B, C, T = x_nct.shape
    if T % period != 0:
        n_pad = period - T % period
        x_nct = jnp.pad(x_nct, ((0, 0), (0, 0), (0, n_pad)), mode='reflect')
        T = T + n_pad
    H = T // period
    x4 = x_nct.reshape(B, C, H, period)            # torch .view -> NCHW
    # Conv2d((k,1),(s,1)) acts per width column: fold width into batch, 1-D conv over H
    x = jnp.transpose(x4, (0, 3, 2, 1)).reshape(B * period, H, C)
    fmap = []
    for (wf, bf), plan in zip(params['convs'], _DISC_P_PLANS):
        x = conv1d_pallas(x, wf, bf, plan=plan, apply_act=True)
        fmap.append(_to_nchw(x, B, period))
    wf, bf = params['conv_post']
    x = conv1d_pallas(x, wf, bf, plan=_DISC_P_POST_PLAN, apply_act=False)
    fmap.append(_to_nchw(x, B, period))
    out = _to_nchw(x, B, period).reshape(B, -1)    # == torch.flatten(x, 1, -1)
    return out, fmap


def mpd_forward(params, y, y_hat):
    """MultiPeriodDiscriminator.forward -> (y_d_rs, y_d_gs, fmap_rs, fmap_gs)."""
    B = y.shape[0]
    # every op is per-batch-element independent: run y and y_hat as one batch
    x = jnp.concatenate([y, y_hat], axis=0)

    y_d_rs, y_d_gs, fmap_rs, fmap_gs = [], [], [], []

    def collect(out, fmap):
        y_d_rs.append(out[:B])
        y_d_gs.append(out[B:])
        fmap_rs.append([f[:B] for f in fmap])
        fmap_gs.append([f[B:] for f in fmap])

    out, fmap = disc_s_forward(params['disc_s'], x)
    collect(out, fmap)
    for p_params, period in zip(params['disc_p'], PERIODS):
        out, fmap = disc_p_forward(p_params, x, period)
        collect(out, fmap)
    return y_d_rs, y_d_gs, fmap_rs, fmap_gs


# ----------------------------------------------------------------------------
# reference conv (XLA) used only for the numeric self-check in __main__
# ----------------------------------------------------------------------------
def _conv_ref(x, w, b, *, stride, padding, groups, apply_act):
    y = jax.lax.conv_general_dilated(
        x, jnp.transpose(w, (2, 1, 0)),
        window_strides=(stride,), padding=[(padding, padding)],
        dimension_numbers=('NHC', 'HIO', 'NHC'),
        feature_group_count=groups)
    y = y + b[None, None, :]
    if apply_act:
        y = jnp.where(y >= 0.0, y, LRELU_SLOPE * y)
    return y


def _check_conv(key, B, T, Cin, Cout, K, stride, padding, groups):
    kx, kw = jax.random.split(key)
    x = jax.random.normal(kx, (B, T, Cin), jnp.float32)
    w, b = _init_conv(kw, (Cout, Cin // groups, K))
    plan = _plan_conv((Cout, Cin, K, stride, padding, groups))
    wf, bf = _prepare_conv(w, b, plan)
    got = conv1d_pallas(x, wf, bf, plan=plan, apply_act=True).astype(jnp.float32)
    ref = _conv_ref(x, w, b, stride=stride, padding=padding,
                    groups=groups, apply_act=True)
    err = float(jnp.max(jnp.abs(got - ref)))
    scale = float(jnp.max(jnp.abs(ref))) + 1e-6
    assert err <= 6e-2 * scale + 1e-3, (err, scale)


# ----------------------------------------------------------------------------
if __name__ == "__main__":
    key = jax.random.PRNGKey(0)
    k_params, k_y, k_g, k_c1, k_c2, k_c3, k_c4 = jax.random.split(key, 7)

    # numeric self-checks of the conv kernel against lax.conv_general_dilated:
    # grouped block-diag (conv4-like), grouped fall-through tco=Cout (conv2-like),
    # dense strided bf16 MXU path, and the Cin==1 VPU path.
    _check_conv(k_c1, B=1, T=96, Cin=256, Cout=1024, K=41, stride=4,
                padding=20, groups=64)
    _check_conv(k_c4, B=2, T=70, Cin=16, Cout=64, K=41, stride=4,
                padding=20, groups=4)
    _check_conv(k_c2, B=3, T=50, Cin=32, Cout=128, K=5, stride=3,
                padding=2, groups=1)
    _check_conv(k_c3, B=2, T=40, Cin=1, Cout=16, K=15, stride=1,
                padding=7, groups=1)

    raw_params = init_mpd_params(k_params)
    params = prepare_mpd_params(raw_params)       # one-time kernel layouts

    B, T = 2, 64                      # (batch, 1 channel, seq) audio-like input
    y = jax.random.normal(k_y, (B, 1, T), jnp.float32)
    y_hat = jax.random.normal(k_g, (B, 1, T), jnp.float32)

    mpd = jax.jit(mpd_forward)
    result = mpd(params, y, y_hat)
    jax.block_until_ready(result)

    # sanity checks on structure (DiscriminatorS: 7 fmaps, DiscriminatorP: 6)
    y_d_rs, y_d_gs, fmap_rs, fmap_gs = result
    assert len(y_d_rs) == len(y_d_gs) == 6
    assert len(fmap_rs[0]) == 7 and len(fmap_gs[0]) == 7
    assert all(len(f) == 6 for f in fmap_rs[1:])
    assert all(len(f) == 6 for f in fmap_gs[1:])
    print("KERNEL_OK")
</pallas_src>

<mosaic_0001>
module attributes {stable_mosaic.version = 11 : i64} {
  func.func @kernel(%arg0: i32, %arg1: i32, %arg2: memref<1x4x34x128xbf16, #tpu.memory_space<vmem>>, %arg3: memref<1x5248x512xbf16, #tpu.memory_space<vmem>>, %arg4: memref<1x1x512xf32, #tpu.memory_space<vmem>>, %arg5: memref<24x512xbf16, #tpu.memory_space<vmem>>, %arg6: memref<24x5248xbf16, #tpu.memory_space<vmem>>) attributes {dimension_semantics = [#tpu.dimension_semantics<parallel>, #tpu.dimension_semantics<parallel>], iteration_bounds = array<i64: 2, 1>, scalar_prefetch = 0 : i64, scratch_operands = 1 : i64, tpu.core_type = #tpu.core_type<tc>, window_params = [{transform_indices = @transform_0, window_bounds = array<i64: 1, 4, 34, 128>}, {transform_indices = @transform_1, window_bounds = array<i64: 1, 5248, 512>}, {transform_indices = @transform_2, window_bounds = array<i64: 1, 1, 512>}, {transform_indices = @transform_3, window_bounds = array<i64: 24, 512>}]} {
    %c0 = arith.constant 0 : index
    %c0_0 = arith.constant 0 : index
    %c0_1 = arith.constant 0 : index
    %c0_2 = arith.constant 0 : index
    %0 = vector.load %arg2[%c0, %c0_0, %c0_1, %c0_2] : memref<1x4x34x128xbf16, #tpu.memory_space<vmem>>, vector<1x1x24x128xbf16>
    %1 = vector.shape_cast %0 : vector<1x1x24x128xbf16> to vector<24x128xbf16>
    %c0_3 = arith.constant 0 : index
    %c0_4 = arith.constant 0 : index
    %2 = vector.load %arg6[%c0_3, %c0_4] : memref<24x5248xbf16, #tpu.memory_space<vmem>>, vector<24x128xbf16>
    tpu.vector_store %arg6[%c0_3, %c0_4], %1 {strides = array<i32>} : memref<24x5248xbf16, #tpu.memory_space<vmem>>, vector<24x128xbf16>,
    %c0_5 = arith.constant 0 : index
    %c1 = arith.constant 1 : index
    %c0_6 = arith.constant 0 : index
    %c0_7 = arith.constant 0 : index
    %3 = vector.load %arg2[%c0_5, %c1, %c0_6, %c0_7] : memref<1x4x34x128xbf16, #tpu.memory_space<vmem>>, vector<1x1x24x128xbf16>
    %4 = vector.shape_cast %3 : vector<1x1x24x128xbf16> to vector<24x128xbf16>
    %c0_8 = arith.constant 0 : index
    %c128 = arith.constant 128 : index
    %5 = vector.load %arg6[%c0_8, %c128] : memref<24x5248xbf16, #tpu.memory_space<vmem>>, vector<24x128xbf16>
    tpu.vector_store %arg6[%c0_8, %c128], %4 {strides = array<i32>} : memref<24x5248xbf16, #tpu.memory_space<vmem>>, vector<24x128xbf16>,
    %c0_9 = arith.constant 0 : index
    %c2 = arith.constant 2 : index
    %c0_10 = arith.constant 0 : index
    %c0_11 = arith.constant 0 : index
    %6 = vector.load %arg2[%c0_9, %c2, %c0_10, %c0_11] : memref<1x4x34x128xbf16, #tpu.memory_space<vmem>>, vector<1x1x24x128xbf16>
    %7 = vector.shape_cast %6 : vector<1x1x24x128xbf16> to vector<24x128xbf16>
    %c0_12 = arith.constant 0 : index
    %c256 = arith.constant 256 : index
    %8 = vector.load %arg6[%c0_12, %c256] : memref<24x5248xbf16, #tpu.memory_space<vmem>>, vector<24x128xbf16>
    tpu.vector_store %arg6[%c0_12, %c256], %7 {strides = array<i32>} : memref<24x5248xbf16, #tpu.memory_space<vmem>>, vector<24x128xbf16>,
    %c0_13 = arith.constant 0 : index
    %c3 = arith.constant 3 : index
    %c0_14 = arith.constant 0 : index
    %c0_15 = arith.constant 0 : index
    %9 = vector.load %arg2[%c0_13, %c3, %c0_14, %c0_15] : memref<1x4x34x128xbf16, #tpu.memory_space<vmem>>, vector<1x1x24x128xbf16>
    %10 = vector.shape_cast %9 : vector<1x1x24x128xbf16> to vector<24x128xbf16>
    %c0_16 = arith.constant 0 : index
    %c384 = arith.constant 384 : index
    %11 = vector.load %arg6[%c0_16, %c384] : memref<24x5248xbf16, #tpu.memory_space<vmem>>, vector<24x128xbf16>
    tpu.vector_store %arg6[%c0_16, %c384], %10 {strides = array<i32>} : memref<24x5248xbf16, #tpu.memory_space<vmem>>, vector<24x128xbf16>,
    %c0_17 = arith.constant 0 : index
    %c0_18 = arith.constant 0 : index
    %c1_19 = arith.constant 1 : index
    %c0_20 = arith.constant 0 : index
    %12 = vector.load %arg2[%c0_17, %c0_18, %c1_19, %c0_20] : memref<1x4x34x128xbf16, #tpu.memory_space<vmem>>, vector<1x1x24x128xbf16>
    %13 = vector.shape_cast %12 : vector<1x1x24x128xbf16> to vector<24x128xbf16>
    %c0_21 = arith.constant 0 : index
    %c512 = arith.constant 512 : index
    %14 = vector.load %arg6[%c0_21, %c512] : memref<24x5248xbf16, #tpu.memory_space<vmem>>, vector<24x128xbf16>
    tpu.vector_store %arg6[%c0_21, %c512], %13 {strides = array<i32>} : memref<24x5248xbf16, #tpu.memory_space<vmem>>, vector<24x128xbf16>,
    %c0_22 = arith.constant 0 : index
    %c1_23 = arith.constant 1 : index
    %c1_24 = arith.constant 1 : index
    %c0_25 = arith.constant 0 : index
    %15 = vector.load %arg2[%c0_22, %c1_23, %c1_24, %c0_25] : memref<1x4x34x128xbf16, #tpu.memory_space<vmem>>, vector<1x1x24x128xbf16>
    %16 = vector.shape_cast %15 : vector<1x1x24x128xbf16> to vector<24x128xbf16>
    %c0_26 = arith.constant 0 : index
    %c640 = arith.constant 640 : index
    %17 = vector.load %arg6[%c0_26, %c640] : memref<24x5248xbf16, #tpu.memory_space<vmem>>, vector<24x128xbf16>
    tpu.vector_store %arg6[%c0_26, %c640], %16 {strides = array<i32>} : memref<24x5248xbf16, #tpu.memory_space<vmem>>, vector<24x128xbf16>,
    %c0_27 = arith.constant 0 : index
    %c2_28 = arith.constant 2 : index
    %c1_29 = arith.constant 1 : index
    %c0_30 = arith.constant 0 : index
    %18 = vector.load %arg2[%c0_27, %c2_28, %c1_29, %c0_30] : memref<1x4x34x128xbf16, #tpu.memory_space<vmem>>, vector<1x1x24x128xbf16>
    %19 = vector.shape_cast %18 : vector<1x1x24x128xbf16> to vector<24x128xbf16>
    %c0_31 = arith.constant 0 : index
    %c768 = arith.constant 768 : index
    %20 = vector.load %arg6[%c0_31, %c768] : memref<24x5248xbf16, #tpu.memory_space<vmem>>, vector<24x128xbf16>
    tpu.vector_store %arg6[%c0_31, %c768], %19 {strides = array<i32>} : memref<24x5248xbf16, #tpu.memory_space<vmem>>, vector<24x128xbf16>,
    %c0_32 = arith.constant 0 : index
    %c3_33 = arith.constant 3 : index
    %c1_34 = arith.constant 1 : index
    %c0_35 = arith.constant 0 : index
    %21 = vector.load %arg2[%c0_32, %c3_33, %c1_34, %c0_35] : memref<1x4x34x128xbf16, #tpu.memory_space<vmem>>, vector<1x1x24x128xbf16>
    %22 = vector.shape_cast %21 : vector<1x1x24x128xbf16> to vector<24x128xbf16>
    %c0_36 = arith.constant 0 : index
    %c896 = arith.constant 896 : index
    %23 = vector.load %arg6[%c0_36, %c896] : memref<24x5248xbf16, #tpu.memory_space<vmem>>, vector<24x128xbf16>
    tpu.vector_store %arg6[%c0_36, %c896], %22 {strides = array<i32>} : memref<24x5248xbf16, #tpu.memory_space<vmem>>, vector<24x128xbf16>,
    %c0_37 = arith.constant 0 : index
    %c0_38 = arith.constant 0 : index
    %c2_39 = arith.constant 2 : index
    %c0_40 = arith.constant 0 : index
    %24 = vector.load %arg2[%c0_37, %c0_38, %c2_39, %c0_40] : memref<1x4x34x128xbf16, #tpu.memory_space<vmem>>, vector<1x1x24x128xbf16>
    %25 = vector.shape_cast %24 : vector<1x1x24x128xbf16> to vector<24x128xbf16>
    %c0_41 = arith.constant 0 : index
    %c1024 = arith.constant 1024 : index
    %26 = vector.load %arg6[%c0_41, %c1024] : memref<24x5248xbf16, #tpu.memory_space<vmem>>, vector<24x128xbf16>
    tpu.vector_store %arg6[%c0_41, %c1024], %25 {strides = array<i32>} : memref<24x5248xbf16, #tpu.memory_space<vmem>>, vector<24x128xbf16>,
    %c0_42 = arith.constant 0 : index
    %c1_43 = arith.constant 1 : index
    %c2_44 = arith.constant 2 : index
    %c0_45 = arith.constant 0 : index
    %27 = vector.load %arg2[%c0_42, %c1_43, %c2_44, %c0_45] : memref<1x4x34x128xbf16, #tpu.memory_space<vmem>>, vector<1x1x24x128xbf16>
    %28 = vector.shape_cast %27 : vector<1x1x24x128xbf16> to vector<24x128xbf16>
    %c0_46 = arith.constant 0 : index
    %c1152 = arith.constant 1152 : index
    %29 = vector.load %arg6[%c0_46, %c1152] : memref<24x5248xbf16, #tpu.memory_space<vmem>>, vector<24x128xbf16>
    tpu.vector_store %arg6[%c0_46, %c1152], %28 {strides = array<i32>} : memref<24x5248xbf16, #tpu.memory_space<vmem>>, vector<24x128xbf16>,
    %c0_47 = arith.constant 0 : index
    %c2_48 = arith.constant 2 : index
    %c2_49 = arith.constant 2 : index
    %c0_50 = arith.constant 0 : index
    %30 = vector.load %arg2[%c0_47, %c2_48, %c2_49, %c0_50] : memref<1x4x34x128xbf16, #tpu.memory_space<vmem>>, vector<1x1x24x128xbf16>
    %31 = vector.shape_cast %30 : vector<1x1x24x128xbf16> to vector<24x128xbf16>
    %c0_51 = arith.constant 0 : index
    %c1280 = arith.constant 1280 : index
    %32 = vector.load %arg6[%c0_51, %c1280] : memref<24x5248xbf16, #tpu.memory_space<vmem>>, vector<24x128xbf16>
    tpu.vector_store %arg6[%c0_51, %c1280], %31 {strides = array<i32>} : memref<24x5248xbf16, #tpu.memory_space<vmem>>, vector<24x128xbf16>,
    %c0_52 = arith.constant 0 : index
    %c3_53 = arith.constant 3 : index
    %c2_54 = arith.constant 2 : index
    %c0_55 = arith.constant 0 : index
    %33 = vector.load %arg2[%c0_52, %c3_53, %c2_54, %c0_55] : memref<1x4x34x128xbf16, #tpu.memory_space<vmem>>, vector<1x1x24x128xbf16>
    %34 = vector.shape_cast %33 : vector<1x1x24x128xbf16> to vector<24x128xbf16>
    %c0_56 = arith.constant 0 : index
    %c1408 = arith.constant 1408 : index
    %35 = vector.load %arg6[%c0_56, %c1408] : memref<24x5248xbf16, #tpu.memory_space<vmem>>, vector<24x128xbf16>
    tpu.vector_store %arg6[%c0_56, %c1408], %34 {strides = array<i32>} : memref<24x5248xbf16, #tpu.memory_space<vmem>>, vector<24x128xbf16>,
    %c0_57 = arith.constant 0 : index
    %c0_58 = arith.constant 0 : index
    %c3_59 = arith.constant 3 : index
    %c0_60 = arith.constant 0 : index
    %36 = vector.load %arg2[%c0_57, %c0_58, %c3_59, %c0_60] : memref<1x4x34x128xbf16, #tpu.memory_space<vmem>>, vector<1x1x24x128xbf16>
    %37 = vector.shape_cast %36 : vector<1x1x24x128xbf16> to vector<24x128xbf16>
    %c0_61 = arith.constant 0 : index
    %c1536 = arith.constant 1536 : index
    %38 = vector.load %arg6[%c0_61, %c1536] : memref<24x5248xbf16, #tpu.memory_space<vmem>>, vector<24x128xbf16>
    tpu.vector_store %arg6[%c0_61, %c1536], %37 {strides = array<i32>} : memref<24x5248xbf16, #tpu.memory_space<vmem>>, vector<24x128xbf16>,
    %c0_62 = arith.constant 0 : index
    %c1_63 = arith.constant 1 : index
    %c3_64 = arith.constant 3 : index
    %c0_65 = arith.constant 0 : index
    %39 = vector.load %arg2[%c0_62, %c1_63, %c3_64, %c0_65] : memref<1x4x34x128xbf16, #tpu.memory_space<vmem>>, vector<1x1x24x128xbf16>
    %40 = vector.shape_cast %39 : vector<1x1x24x128xbf16> to vector<24x128xbf16>
    %c0_66 = arith.constant 0 : index
    %c1664 = arith.constant 1664 : index
    %41 = vector.load %arg6[%c0_66, %c1664] : memref<24x5248xbf16, #tpu.memory_space<vmem>>, vector<24x128xbf16>
    tpu.vector_store %arg6[%c0_66, %c1664], %40 {strides = array<i32>} : memref<24x5248xbf16, #tpu.memory_space<vmem>>, vector<24x128xbf16>,
    %c0_67 = arith.constant 0 : index
    %c2_68 = arith.constant 2 : index
    %c3_69 = arith.constant 3 : index
    %c0_70 = arith.constant 0 : index
    %42 = vector.load %arg2[%c0_67, %c2_68, %c3_69, %c0_70] : memref<1x4x34x128xbf16, #tpu.memory_space<vmem>>, vector<1x1x24x128xbf16>
    %43 = vector.shape_cast %42 : vector<1x1x24x128xbf16> to vector<24x128xbf16>
    %c0_71 = arith.constant 0 : index
    %c1792 = arith.constant 1792 : index
    %44 = vector.load %arg6[%c0_71, %c1792] : memref<24x5248xbf16, #tpu.memory_space<vmem>>, vector<24x128xbf16>
    tpu.vector_store %arg6[%c0_71, %c1792], %43 {strides = array<i32>} : memref<24x5248xbf16, #tpu.memory_space<vmem>>, vector<24x128xbf16>,
    %c0_72 = arith.constant 0 : index
    %c3_73 = arith.constant 3 : index
    %c3_74 = arith.constant 3 : index
    %c0_75 = arith.constant 0 : index
    %45 = vector.load %arg2[%c0_72, %c3_73, %c3_74, %c0_75] : memref<1x4x34x128xbf16, #tpu.memory_space<vmem>>, vector<1x1x24x128xbf16>
    %46 = vector.shape_cast %45 : vector<1x1x24x128xbf16> to vector<24x128xbf16>
    %c0_76 = arith.constant 0 : index
    %c1920 = arith.constant 1920 : index
    %47 = vector.load %arg6[%c0_76, %c1920] : memref<24x5248xbf16, #tpu.memory_space<vmem>>, vector<24x128xbf16>
    tpu.vector_store %arg6[%c0_76, %c1920], %46 {strides = array<i32>} : memref<24x5248xbf16, #tpu.memory_space<vmem>>, vector<24x128xbf16>,
    %c0_77 = arith.constant 0 : index
    %c0_78 = arith.constant 0 : index
    %c4 = arith.constant 4 : index
    %c0_79 = arith.constant 0 : index
    %48 = vector.load %arg2[%c0_77, %c0_78, %c4, %c0_79] : memref<1x4x34x128xbf16, #tpu.memory_space<vmem>>, vector<1x1x24x128xbf16>
    %49 = vector.shape_cast %48 : vector<1x1x24x128xbf16> to vector<24x128xbf16>
    %c0_80 = arith.constant 0 : index
    %c2048 = arith.constant 2048 : index
    %50 = vector.load %arg6[%c0_80, %c2048] : memref<24x5248xbf16, #tpu.memory_space<vmem>>, vector<24x128xbf16>
    tpu.vector_store %arg6[%c0_80, %c2048], %49 {strides = array<i32>} : memref<24x5248xbf16, #tpu.memory_space<vmem>>, vector<24x128xbf16>,
    %c0_81 = arith.constant 0 : index
    %c1_82 = arith.constant 1 : index
    %c4_83 = arith.constant 4 : index
    %c0_84 = arith.constant 0 : index
    %51 = vector.load %arg2[%c0_81, %c1_82, %c4_83, %c0_84] : memref<1x4x34x128xbf16, #tpu.memory_space<vmem>>, vector<1x1x24x128xbf16>
    %52 = vector.shape_cast %51 : vector<1x1x24x128xbf16> to vector<24x128xbf16>
    %c0_85 = arith.constant 0 : index
    %c2176 = arith.constant 2176 : index
    %53 = vector.load %arg6[%c0_85, %c2176] : memref<24x5248xbf16, #tpu.memory_space<vmem>>, vector<24x128xbf16>
    tpu.vector_store %arg6[%c0_85, %c2176], %52 {strides = array<i32>} : memref<24x5248xbf16, #tpu.memory_space<vmem>>, vector<24x128xbf16>,
    %c0_86 = arith.constant 0 : index
    %c2_87 = arith.constant 2 : index
    %c4_88 = arith.constant 4 : index
    %c0_89 = arith.constant 0 : index
    %54 = vector.load %arg2[%c0_86, %c2_87, %c4_88, %c0_89] : memref<1x4x34x128xbf16, #tpu.memory_space<vmem>>, vector<1x1x24x128xbf16>
    %55 = vector.shape_cast %54 : vector<1x1x24x128xbf16> to vector<24x128xbf16>
    %c0_90 = arith.constant 0 : index
    %c2304 = arith.constant 2304 : index
    %56 = vector.load %arg6[%c0_90, %c2304] : memref<24x5248xbf16, #tpu.memory_space<vmem>>, vector<24x128xbf16>
    tpu.vector_store %arg6[%c0_90, %c2304], %55 {strides = array<i32>} : memref<24x5248xbf16, #tpu.memory_space<vmem>>, vector<24x128xbf16>,
    %c0_91 = arith.constant 0 : index
    %c3_92 = arith.constant 3 : index
    %c4_93 = arith.constant 4 : index
    %c0_94 = arith.constant 0 : index
    %57 = vector.load %arg2[%c0_91, %c3_92, %c4_93, %c0_94] : memref<1x4x34x128xbf16, #tpu.memory_space<vmem>>, vector<1x1x24x128xbf16>
    %58 = vector.shape_cast %57 : vector<1x1x24x128xbf16> to vector<24x128xbf16>
    %c0_95 = arith.constant 0 : index
    %c2432 = arith.constant 2432 : index
    %59 = vector.load %arg6[%c0_95, %c2432] : memref<24x5248xbf16, #tpu.memory_space<vmem>>, vector<24x128xbf16>
    tpu.vector_store %arg6[%c0_95, %c2432], %58 {strides = array<i32>} : memref<24x5248xbf16, #tpu.memory_space<vmem>>, vector<24x128xbf16>,
    %c0_96 = arith.constant 0 : index
    %c0_97 = arith.constant 0 : index
    %c5 = arith.constant 5 : index
    %c0_98 = arith.constant 0 : index
    %60 = vector.load %arg2[%c0_96, %c0_97, %c5, %c0_98] : memref<1x4x34x128xbf16, #tpu.memory_space<vmem>>, vector<1x1x24x128xbf16>
    %61 = vector.shape_cast %60 : vector<1x1x24x128xbf16> to vector<24x128xbf16>
    %c0_99 = arith.constant 0 : index
    %c2560 = arith.constant 2560 : index
    %62 = vector.load %arg6[%c0_99, %c2560] : memref<24x5248xbf16, #tpu.memory_space<vmem>>, vector<24x128xbf16>
    tpu.vector_store %arg6[%c0_99, %c2560], %61 {strides = array<i32>} : memref<24x5248xbf16, #tpu.memory_space<vmem>>, vector<24x128xbf16>,
    %c0_100 = arith.constant 0 : index
    %c1_101 = arith.constant 1 : index
    %c5_102 = arith.constant 5 : index
    %c0_103 = arith.constant 0 : index
    %63 = vector.load %arg2[%c0_100, %c1_101, %c5_102, %c0_103] : memref<1x4x34x128xbf16, #tpu.memory_space<vmem>>, vector<1x1x24x128xbf16>
    %64 = vector.shape_cast %63 : vector<1x1x24x128xbf16> to vector<24x128xbf16>
    %c0_104 = arith.constant 0 : index
    %c2688 = arith.constant 2688 : index
    %65 = vector.load %arg6[%c0_104, %c2688] : memref<24x5248xbf16, #tpu.memory_space<vmem>>, vector<24x128xbf16>
    tpu.vector_store %arg6[%c0_104, %c2688], %64 {strides = array<i32>} : memref<24x5248xbf16, #tpu.memory_space<vmem>>, vector<24x128xbf16>,
    %c0_105 = arith.constant 0 : index
    %c2_106 = arith.constant 2 : index
    %c5_107 = arith.constant 5 : index
    %c0_108 = arith.constant 0 : index
    %66 = vector.load %arg2[%c0_105, %c2_106, %c5_107, %c0_108] : memref<1x4x34x128xbf16, #tpu.memory_space<vmem>>, vector<1x1x24x128xbf16>
    %67 = vector.shape_cast %66 : vector<1x1x24x128xbf16> to vector<24x128xbf16>
    %c0_109 = arith.constant 0 : index
    %c2816 = arith.constant 2816 : index
    %68 = vector.load %arg6[%c0_109, %c2816] : memref<24x5248xbf16, #tpu.memory_space<vmem>>, vector<24x128xbf16>
    tpu.vector_store %arg6[%c0_109, %c2816], %67 {strides = array<i32>} : memref<24x5248xbf16, #tpu.memory_space<vmem>>, vector<24x128xbf16>,
    %c0_110 = arith.constant 0 : index
    %c3_111 = arith.constant 3 : index
    %c5_112 = arith.constant 5 : index
    %c0_113 = arith.constant 0 : index
    %69 = vector.load %arg2[%c0_110, %c3_111, %c5_112, %c0_113] : memref<1x4x34x128xbf16, #tpu.memory_space<vmem>>, vector<1x1x24x128xbf16>
    %70 = vector.shape_cast %69 : vector<1x1x24x128xbf16> to vector<24x128xbf16>
    %c0_114 = arith.constant 0 : index
    %c2944 = arith.constant 2944 : index
    %71 = vector.load %arg6[%c0_114, %c2944] : memref<24x5248xbf16, #tpu.memory_space<vmem>>, vector<24x128xbf16>
    tpu.vector_store %arg6[%c0_114, %c2944], %70 {strides = array<i32>} : memref<24x5248xbf16, #tpu.memory_space<vmem>>, vector<24x128xbf16>,
    %c0_115 = arith.constant 0 : index
    %c0_116 = arith.constant 0 : index
    %c6 = arith.constant 6 : index
    %c0_117 = arith.constant 0 : index
    %72 = vector.load %arg2[%c0_115, %c0_116, %c6, %c0_117] : memref<1x4x34x128xbf16, #tpu.memory_space<vmem>>, vector<1x1x24x128xbf16>
    %73 = vector.shape_cast %72 : vector<1x1x24x128xbf16> to vector<24x128xbf16>
    %c0_118 = arith.constant 0 : index
    %c3072 = arith.constant 3072 : index
    %74 = vector.load %arg6[%c0_118, %c3072] : memref<24x5248xbf16, #tpu.memory_space<vmem>>, vector<24x128xbf16>
    tpu.vector_store %arg6[%c0_118, %c3072], %73 {strides = array<i32>} : memref<24x5248xbf16, #tpu.memory_space<vmem>>, vector<24x128xbf16>,
    %c0_119 = arith.constant 0 : index
    %c1_120 = arith.constant 1 : index
    %c6_121 = arith.constant 6 : index
    %c0_122 = arith.constant 0 : index
    %75 = vector.load %arg2[%c0_119, %c1_120, %c6_121, %c0_122] : memref<1x4x34x128xbf16, #tpu.memory_space<vmem>>, vector<1x1x24x128xbf16>
    %76 = vector.shape_cast %75 : vector<1x1x24x128xbf16> to vector<24x128xbf16>
    %c0_123 = arith.constant 0 : index
    %c3200 = arith.constant 3200 : index
    %77 = vector.load %arg6[%c0_123, %c3200] : memref<24x5248xbf16, #tpu.memory_space<vmem>>, vector<24x128xbf16>
    tpu.vector_store %arg6[%c0_123, %c3200], %76 {strides = array<i32>} : memref<24x5248xbf16, #tpu.memory_space<vmem>>, vector<24x128xbf16>,
    %c0_124 = arith.constant 0 : index
    %c2_125 = arith.constant 2 : index
    %c6_126 = arith.constant 6 : index
    %c0_127 = arith.constant 0 : index
    %78 = vector.load %arg2[%c0_124, %c2_125, %c6_126, %c0_127] : memref<1x4x34x128xbf16, #tpu.memory_space<vmem>>, vector<1x1x24x128xbf16>
    %79 = vector.shape_cast %78 : vector<1x1x24x128xbf16> to vector<24x128xbf16>
    %c0_128 = arith.constant 0 : index
    %c3328 = arith.constant 3328 : index
    %80 = vector.load %arg6[%c0_128, %c3328] : memref<24x5248xbf16, #tpu.memory_space<vmem>>, vector<24x128xbf16>
    tpu.vector_store %arg6[%c0_128, %c3328], %79 {strides = array<i32>} : memref<24x5248xbf16, #tpu.memory_space<vmem>>, vector<24x128xbf16>,
    %c0_129 = arith.constant 0 : index
    %c3_130 = arith.constant 3 : index
    %c6_131 = arith.constant 6 : index
    %c0_132 = arith.constant 0 : index
    %81 = vector.load %arg2[%c0_129, %c3_130, %c6_131, %c0_132] : memref<1x4x34x128xbf16, #tpu.memory_space<vmem>>, vector<1x1x24x128xbf16>
    %82 = vector.shape_cast %81 : vector<1x1x24x128xbf16> to vector<24x128xbf16>
    %c0_133 = arith.constant 0 : index
    %c3456 = arith.constant 3456 : index
    %83 = vector.load %arg6[%c0_133, %c3456] : memref<24x5248xbf16, #tpu.memory_space<vmem>>, vector<24x128xbf16>
    tpu.vector_store %arg6[%c0_133, %c3456], %82 {strides = array<i32>} : memref<24x5248xbf16, #tpu.memory_space<vmem>>, vector<24x128xbf16>,
    %c0_134 = arith.constant 0 : index
    %c0_135 = arith.constant 0 : index
    %c7 = arith.constant 7 : index
    %c0_136 = arith.constant 0 : index
    %84 = vector.load %arg2[%c0_134, %c0_135, %c7, %c0_136] : memref<1x4x34x128xbf16, #tpu.memory_space<vmem>>, vector<1x1x24x128xbf16>
    %85 = vector.shape_cast %84 : vector<1x1x24x128xbf16> to vector<24x128xbf16>
    %c0_137 = arith.constant 0 : index
    %c3584 = arith.constant 3584 : index
    %86 = vector.load %arg6[%c0_137, %c3584] : memref<24x5248xbf16, #tpu.memory_space<vmem>>, vector<24x128xbf16>
    tpu.vector_store %arg6[%c0_137, %c3584], %85 {strides = array<i32>} : memref<24x5248xbf16, #tpu.memory_space<vmem>>, vector<24x128xbf16>,
    %c0_138 = arith.constant 0 : index
    %c1_139 = arith.constant 1 : index
    %c7_140 = arith.constant 7 : index
    %c0_141 = arith.constant 0 : index
    %87 = vector.load %arg2[%c0_138, %c1_139, %c7_140, %c0_141] : memref<1x4x34x128xbf16, #tpu.memory_space<vmem>>, vector<1x1x24x128xbf16>
    %88 = vector.shape_cast %87 : vector<1x1x24x128xbf16> to vector<24x128xbf16>
    %c0_142 = arith.constant 0 : index
    %c3712 = arith.constant 3712 : index
    %89 = vector.load %arg6[%c0_142, %c3712] : memref<24x5248xbf16, #tpu.memory_space<vmem>>, vector<24x128xbf16>
    tpu.vector_store %arg6[%c0_142, %c3712], %88 {strides = array<i32>} : memref<24x5248xbf16, #tpu.memory_space<vmem>>, vector<24x128xbf16>,
    %c0_143 = arith.constant 0 : index
    %c2_144 = arith.constant 2 : index
    %c7_145 = arith.constant 7 : index
    %c0_146 = arith.constant 0 : index
    %90 = vector.load %arg2[%c0_143, %c2_144, %c7_145, %c0_146] : memref<1x4x34x128xbf16, #tpu.memory_space<vmem>>, vector<1x1x24x128xbf16>
    %91 = vector.shape_cast %90 : vector<1x1x24x128xbf16> to vector<24x128xbf16>
    %c0_147 = arith.constant 0 : index
    %c3840 = arith.constant 3840 : index
    %92 = vector.load %arg6[%c0_147, %c3840] : memref<24x5248xbf16, #tpu.memory_space<vmem>>, vector<24x128xbf16>
    tpu.vector_store %arg6[%c0_147, %c3840], %91 {strides = array<i32>} : memref<24x5248xbf16, #tpu.memory_space<vmem>>, vector<24x128xbf16>,
    %c0_148 = arith.constant 0 : index
    %c3_149 = arith.constant 3 : index
    %c7_150 = arith.constant 7 : index
    %c0_151 = arith.constant 0 : index
    %93 = vector.load %arg2[%c0_148, %c3_149, %c7_150, %c0_151] : memref<1x4x34x128xbf16, #tpu.memory_space<vmem>>, vector<1x1x24x128xbf16>
    %94 = vector.shape_cast %93 : vector<1x1x24x128xbf16> to vector<24x128xbf16>
    %c0_152 = arith.constant 0 : index
    %c3968 = arith.constant 3968 : index
    %95 = vector.load %arg6[%c0_152, %c3968] : memref<24x5248xbf16, #tpu.memory_space<vmem>>, vector<24x128xbf16>
    tpu.vector_store %arg6[%c0_152, %c3968], %94 {strides = array<i32>} : memref<24x5248xbf16, #tpu.memory_space<vmem>>, vector<24x128xbf16>,
    %c0_153 = arith.constant 0 : index
    %c0_154 = arith.constant 0 : index
    %c8 = arith.constant 8 : index
    %c0_155 = arith.constant 0 : index
    %96 = vector.load %arg2[%c0_153, %c0_154, %c8, %c0_155] : memref<1x4x34x128xbf16, #tpu.memory_space<vmem>>, vector<1x1x24x128xbf16>
    %97 = vector.shape_cast %96 : vector<1x1x24x128xbf16> to vector<24x128xbf16>
    %c0_156 = arith.constant 0 : index
    %c4096 = arith.constant 4096 : index
    %98 = vector.load %arg6[%c0_156, %c4096] : memref<24x5248xbf16, #tpu.memory_space<vmem>>, vector<24x128xbf16>
    tpu.vector_store %arg6[%c0_156, %c4096], %97 {strides = array<i32>} : memref<24x5248xbf16, #tpu.memory_space<vmem>>, vector<24x128xbf16>,
    %c0_157 = arith.constant 0 : index
    %c1_158 = arith.constant 1 : index
    %c8_159 = arith.constant 8 : index
    %c0_160 = arith.constant 0 : index
    %99 = vector.load %arg2[%c0_157, %c1_158, %c8_159, %c0_160] : memref<1x4x34x128xbf16, #tpu.memory_space<vmem>>, vector<1x1x24x128xbf16>
    %100 = vector.shape_cast %99 : vector<1x1x24x128xbf16> to vector<24x128xbf16>
    %c0_161 = arith.constant 0 : index
    %c4224 = arith.constant 4224 : index
    %101 = vector.load %arg6[%c0_161, %c4224] : memref<24x5248xbf16, #tpu.memory_space<vmem>>, vector<24x128xbf16>
    tpu.vector_store %arg6[%c0_161, %c4224], %100 {strides = array<i32>} : memref<24x5248xbf16, #tpu.memory_space<vmem>>, vector<24x128xbf16>,
    %c0_162 = arith.constant 0 : index
    %c2_163 = arith.constant 2 : index
    %c8_164 = arith.constant 8 : index
    %c0_165 = arith.constant 0 : index
    %102 = vector.load %arg2[%c0_162, %c2_163, %c8_164, %c0_165] : memref<1x4x34x128xbf16, #tpu.memory_space<vmem>>, vector<1x1x24x128xbf16>
    %103 = vector.shape_cast %102 : vector<1x1x24x128xbf16> to vector<24x128xbf16>
    %c0_166 = arith.constant 0 : index
    %c4352 = arith.constant 4352 : index
    %104 = vector.load %arg6[%c0_166, %c4352] : memref<24x5248xbf16, #tpu.memory_space<vmem>>, vector<24x128xbf16>
    tpu.vector_store %arg6[%c0_166, %c4352], %103 {strides = array<i32>} : memref<24x5248xbf16, #tpu.memory_space<vmem>>, vector<24x128xbf16>,
    %c0_167 = arith.constant 0 : index
    %c3_168 = arith.constant 3 : index
    %c8_169 = arith.constant 8 : index
    %c0_170 = arith.constant 0 : index
    %105 = vector.load %arg2[%c0_167, %c3_168, %c8_169, %c0_170] : memref<1x4x34x128xbf16, #tpu.memory_space<vmem>>, vector<1x1x24x128xbf16>
    %106 = vector.shape_cast %105 : vector<1x1x24x128xbf16> to vector<24x128xbf16>
    %c0_171 = arith.constant 0 : index
    %c4480 = arith.constant 4480 : index
    %107 = vector.load %arg6[%c0_171, %c4480] : memref<24x5248xbf16, #tpu.memory_space<vmem>>, vector<24x128xbf16>
    tpu.vector_store %arg6[%c0_171, %c4480], %106 {strides = array<i32>} : memref<24x5248xbf16, #tpu.memory_space<vmem>>, vector<24x128xbf16>,
    %c0_172 = arith.constant 0 : index
    %c0_173 = arith.constant 0 : index
    %c9 = arith.constant 9 : index
    %c0_174 = arith.constant 0 : index
    %108 = vector.load %arg2[%c0_172, %c0_173, %c9, %c0_174] : memref<1x4x34x128xbf16, #tpu.memory_space<vmem>>, vector<1x1x24x128xbf16>
    %109 = vector.shape_cast %108 : vector<1x1x24x128xbf16> to vector<24x128xbf16>
    %c0_175 = arith.constant 0 : index
    %c4608 = arith.constant 4608 : index
    %110 = vector.load %arg6[%c0_175, %c4608] : memref<24x5248xbf16, #tpu.memory_space<vmem>>, vector<24x128xbf16>
    tpu.vector_store %arg6[%c0_175, %c4608], %109 {strides = array<i32>} : memref<24x5248xbf16, #tpu.memory_space<vmem>>, vector<24x128xbf16>,
    %c0_176 = arith.constant 0 : index
    %c1_177 = arith.constant 1 : index
    %c9_178 = arith.constant 9 : index
    %c0_179 = arith.constant 0 : index
    %111 = vector.load %arg2[%c0_176, %c1_177, %c9_178, %c0_179] : memref<1x4x34x128xbf16, #tpu.memory_space<vmem>>, vector<1x1x24x128xbf16>
    %112 = vector.shape_cast %111 : vector<1x1x24x128xbf16> to vector<24x128xbf16>
    %c0_180 = arith.constant 0 : index
    %c4736 = arith.constant 4736 : index
    %113 = vector.load %arg6[%c0_180, %c4736] : memref<24x5248xbf16, #tpu.memory_space<vmem>>, vector<24x128xbf16>
    tpu.vector_store %arg6[%c0_180, %c4736], %112 {strides = array<i32>} : memref<24x5248xbf16, #tpu.memory_space<vmem>>, vector<24x128xbf16>,
    %c0_181 = arith.constant 0 : index
    %c2_182 = arith.constant 2 : index
    %c9_183 = arith.constant 9 : index
    %c0_184 = arith.constant 0 : index
    %114 = vector.load %arg2[%c0_181, %c2_182, %c9_183, %c0_184] : memref<1x4x34x128xbf16, #tpu.memory_space<vmem>>, vector<1x1x24x128xbf16>
    %115 = vector.shape_cast %114 : vector<1x1x24x128xbf16> to vector<24x128xbf16>
    %c0_185 = arith.constant 0 : index
    %c4864 = arith.constant 4864 : index
    %116 = vector.load %arg6[%c0_185, %c4864] : memref<24x5248xbf16, #tpu.memory_space<vmem>>, vector<24x128xbf16>
    tpu.vector_store %arg6[%c0_185, %c4864], %115 {strides = array<i32>} : memref<24x5248xbf16, #tpu.memory_space<vmem>>, vector<24x128xbf16>,
    %c0_186 = arith.constant 0 : index
    %c3_187 = arith.constant 3 : index
    %c9_188 = arith.constant 9 : index
    %c0_189 = arith.constant 0 : index
    %117 = vector.load %arg2[%c0_186, %c3_187, %c9_188, %c0_189] : memref<1x4x34x128xbf16, #tpu.memory_space<vmem>>, vector<1x1x24x128xbf16>
    %118 = vector.shape_cast %117 : vector<1x1x24x128xbf16> to vector<24x128xbf16>
    %c0_190 = arith.constant 0 : index
    %c4992 = arith.constant 4992 : index
    %119 = vector.load %arg6[%c0_190, %c4992] : memref<24x5248xbf16, #tpu.memory_space<vmem>>, vector<24x128xbf16>
    tpu.vector_store %arg6[%c0_190, %c4992], %118 {strides = array<i32>} : memref<24x5248xbf16, #tpu.memory_space<vmem>>, vector<24x128xbf16>,
    %c0_191 = arith.constant 0 : index
    %c0_192 = arith.constant 0 : index
    %c10 = arith.constant 10 : index
    %c0_193 = arith.constant 0 : index
    %120 = vector.load %arg2[%c0_191, %c0_192, %c10, %c0_193] : memref<1x4x34x128xbf16, #tpu.memory_space<vmem>>, vector<1x1x24x128xbf16>
    %121 = vector.shape_cast %120 : vector<1x1x24x128xbf16> to vector<24x128xbf16>
    %c0_194 = arith.constant 0 : index
    %c5120 = arith.constant 5120 : index
    %122 = vector.load %arg6[%c0_194, %c5120] : memref<24x5248xbf16, #tpu.memory_space<vmem>>, vector<24x128xbf16>
    tpu.vector_store %arg6[%c0_194, %c5120], %121 {strides = array<i32>} : memref<24x5248xbf16, #tpu.memory_space<vmem>>, vector<24x128xbf16>,
    %c0_195 = arith.constant 0 : index
    %c0_196 = arith.constant 0 : index
    %123 = vector.load %arg6[%c0_195, %c0_196] : memref<24x5248xbf16, #tpu.memory_space<vmem>>, vector<24x5248xbf16>
    %c0_197 = arith.constant 0 : index
    %c0_198 = arith.constant 0 : index
    %c0_199 = arith.constant 0 : index
    %124 = vector.load %arg3[%c0_197, %c0_198, %c0_199] : memref<1x5248x512xbf16, #tpu.memory_space<vmem>>, vector<1x5248x512xbf16>
    %125 = vector.shape_cast %124 : vector<1x5248x512xbf16> to vector<5248x512xbf16>
    %cst = arith.constant dense<0.000000e+00> : vector<24x512xf32>
    %126 = tpu.matmul %123, %125, %cst {dimension_numbers = #tpu.dot_dimension_numbers<[1], [0], [0], [1], [0, 0, 1, 1], [], []>} : vector<24x5248xbf16>, vector<5248x512xbf16>, vector<24x512xf32> -> vector<24x512xf32>
    %c0_200 = arith.constant 0 : index
    %c0_201 = arith.constant 0 : index
    %c0_202 = arith.constant 0 : index
    %127 = vector.load %arg4[%c0_200, %c0_201, %c0_202] : memref<1x1x512xf32, #tpu.memory_space<vmem>>, vector<1x1x512xf32>
    %128 = vector.shape_cast %127 : vector<1x1x512xf32> to vector<1x512xf32>
    %129 = vector.broadcast %128 : vector<1x512xf32> to vector<24x512xf32>
    %130 = arith.addf %126, %129 : vector<24x512xf32>
    %cst_203 = arith.constant 0.000000e+00 : f32
    %131 = vector.broadcast %cst_203 : f32 to vector<24x512xf32>
    %132 = arith.cmpf oge, %130, %131 : vector<24x512xf32>
    %cst_204 = arith.constant 1.000000e-01 : f32
    %133 = vector.broadcast %cst_204 : f32 to vector<24x512xf32>
    %134 = arith.mulf %133, %130 : vector<24x512xf32>
    %135 = arith.select %132, %130, %134 : vector<24x512xi1>, vector<24x512xf32>
    %136 = arith.truncf %135 : vector<24x512xf32> to vector<24x512xbf16>
    %c0_205 = arith.constant 0 : index
    %c0_206 = arith.constant 0 : index
    %137 = vector.load %arg5[%c0_205, %c0_206] : memref<24x512xbf16, #tpu.memory_space<vmem>>, vector<24x512xbf16>
    tpu.vector_store %arg5[%c0_205, %c0_206], %136 {strides = array<i32>} : memref<24x512xbf16, #tpu.memory_space<vmem>>, vector<24x512xbf16>,
    return
  }
  func.func @transform_0(%arg0: i32, %arg1: i32) -> (i32, i32, i32, i32) {
    %c0_i32 = arith.constant 0 : i32
    %c0_i32_0 = arith.constant 0 : i32
    %c0_i32_1 = arith.constant 0 : i32
    return %arg1, %c0_i32, %c0_i32_0, %arg0 : i32, i32, i32, i32
  }
  func.func @transform_1(%arg0: i32, %arg1: i32) -> (i32, i32, i32) {
    %c0_i32 = arith.constant 0 : i32
    %c0_i32_0 = arith.constant 0 : i32
    %c0_i32_1 = arith.constant 0 : i32
    return %arg0, %c0_i32, %c0_i32_0 : i32, i32, i32
  }
  func.func @transform_2(%arg0: i32, %arg1: i32) -> (i32, i32, i32) {
    %c0_i32 = arith.constant 0 : i32
    %c0_i32_0 = arith.constant 0 : i32
    %c0_i32_1 = arith.constant 0 : i32
    return %arg0, %c0_i32, %c0_i32_0 : i32, i32, i32
  }
  func.func @transform_3(%arg0: i32, %arg1: i32) -> (i32, i32) {
    %c0_i32 = arith.constant 0 : i32
    return %arg1, %arg0 : i32, i32
  }
}

</mosaic_0001>

<bundles_post_ra>
// kernel: tpu_custom_call.1
= control target key start
LH: loop header
LB: loop body
LE: loop exit
PB: predicated region body
PF: predicated region fallthrough
CT: control target
= control target key end

     0   :  { %8 = vsyncpa [#allocation5], 0  ;;  %s18716_s0 = inlined_call_operand.vmem [shape: bf16[1,4,34,256], index: 0, kind: input, shape index: {}]   ;;  %s18717_s1 = inlined_call_operand.hbm [shape: bf16[2,5248,512], index: 1, kind: input, shape index: {}]   ;;  %s18718_s2 = inlined_call_operand.hbm [shape: f32[2,1,512], index: 2, kind: input, shape index: {}]   ;;  %s18719_s3 = inlined_call_operand.hbm [shape: bf16[24,1024], index: 3, kind: output, shape index: {}]  }
   0x1   :  { %10 = vsyncpa [#allocation5 + $0x1], 0 }
   0x2   :  { %11 = vsyncpa [#allocation8], 0 }
   0x3   :  { %13 = vsyncpa [#allocation8 + $0x1], 0 }
   0x4   :  { %14 = vsyncpa [#allocation6], 0 }
   0x5   :  { %16 = vsyncpa [#allocation6 + $0x1], 0  ;;  %s16544_s12 = smov 0   ;;  %s16546_s13 = smov 0  }
   0x6   :  { %s16548_s14 = smov 0   ;;  %s16550_s15 = smov 0  }
   0x7   :  { %s16552_s16 = smov 0   ;;  %s16554_s17 = smov 0  }
   0x8 LB: > { %s12344_s18 = sadd.s32 4294967295, %s16513_s17   ;;  %s12345_s19 = sadd.s32 4294967294, %s16513_s17   ;;  %s16513_s17 = sphi %s16554_s17, %s22_s17   ;;  %s16509_s16 = sphi %s16552_s16, %s18749_s16   ;;  %s16505_s15 = sphi %s16550_s15, %s18748_s15   ;;  %s16501_s14 = sphi %s16548_s14, %s18747_s14   ;;  %s16497_s13 = sphi %s16546_s13, %s18746_s13   ;;  %s16493_s12 = sphi %s16544_s12, %s18745_s12  }
   0x9   : > { %s34_s20 = sadd.s32 1, %s16509_s16  ;;  %s43_s21 = sadd.s32 1, %s16501_s14 }
   0xa   : > { %p36_p0 = scmp.ge.s32.totalorder %s34_s20, 2  ;;  %p50_p1 = scmp.ne.s32.totalorder %s16501_s14, %s16497_s13 }
   0xb   : > { %p51_p2 = scmp.eq.s32.totalorder %s16513_s17, 0  ;;  %p82_p3 = scmp.ne.s32.totalorder %s16497_s13, %s16493_s12 }
   0xc   : > { %s18751_s20 = smov (%p36_p0, %s34_s20), 0  ;;  %p83_p5 = scmp.eq.s32.totalorder %s12344_s18, 0 }
   0xd   : > { %p16585_p4 = por %p51_p2, %p50_p1  ;;  %s39_s23 = ssub.s32 %s16509_s16, %s18751_s20 }
   0xe   : > { %p134_p6 = scmp.eq.s32.totalorder %s12344_s18, 1  ;;  %p41_p7 = scmp.eq.s32.totalorder %s39_s23, 0 }
   0xf   : > { %p16591_p8 = por %p83_p5, %p82_p3  ;;  %p140_p10 = scmp.eq.s32.totalorder %s12345_s19, 1 }
  0x10   : > { %p16595_p9 = por %p134_p6, %p50_p1  ;;  %p18720_p12 = scmp.ge.s32.totalorder %s16513_s17, 2 }
  0x11   : > { %s18724_s24 = scalar_select %p16591_p8, 1, 0 }
  0x12   : > { %s18725_s25 = scalar_select %p16595_p9, 1, 0 }
  0x13   : > { %s16600_s26 = scalar_select %p41_p7, %s16501_s14, %s43_s21  }
  0x14   : > { %p16602_p11 = por %p140_p10, %p82_p3  ;;  %156 = sbr.rel (%p18720_p12) target bundleno = 95 (0x5f), region = 16 }
  0x16   : > { %s18726_s27 = scalar_select %p16602_p11, 1, 0 }
  0x1b   : > { %159 = sbr.rel (!%p16585_p4) target bundleno = 44 (0x2c), region = 20  ;;  %s161_s28 = sand.u32 (%p16585_p4), 1, %s16501_s14  }
  0x1c   : > { %s12348_s29 = sshll.u32 (%p16585_p4), %s16509_s16, 2  ;;  %s14230_s30 = smul.u32 (%p16585_p4), 80, %s161_s28 }
  0x1d   : > { %s16616_s6 = scalar_lea.vmem (%p16585_p4), %s18716_s0, %s12348_s29 }
  0x1e   : > { %v183_v0 = vld [vmem:[%s16616_s6] sm:$0xf] (%p16585_p4)  ;;  %v185_v1 = vld [vmem:[%s16616_s6 + $0x8] sm:$0xf] (%p16585_p4)  ;;  %v187_v2 = vld [vmem:[%s16616_s6 + $0x10] sm:$0xf] (%p16585_p4) }
  0x1f   : > { %v189_v3 = vld [vmem:[%s16616_s6 + $0x18] sm:$0xf] (%p16585_p4)  ;;  %v191_v4 = vld [vmem:[%s16616_s6 + $0x20] sm:$0xf] (%p16585_p4)  ;;  %s16623_s7 = scalar_lea.vmem (%p16585_p4), [#allocation3], %s14230_s30 }
  0x20   : > { %184 = vst [vmem:[%s16623_s7] sm:$0xf] (%p16585_p4), %v183_v0  ;;  %186 = vst [vmem:[%s16623_s7 + $0x4] sm:$0xf] (%p16585_p4), %v185_v1  ;;  %v193_v5 = vld [vmem:[%s16616_s6 + $0x28] sm:$0xf] (%p16585_p4) }
  0x21   : > { %188 = vst [vmem:[%s16623_s7 + $0x8] sm:$0xf] (%p16585_p4), %v187_v2  ;;  %190 = vst [vmem:[%s16623_s7 + $0xc] sm:$0xf] (%p16585_p4), %v189_v3  ;;  %v195_v6 = vld [vmem:[%s16616_s6 + $0x30] sm:$0xf] (%p16585_p4) }
  0x22   : > { %192 = vst [vmem:[%s16623_s7 + $0x10] sm:$0xf] %v191_v4  ;;  %v197_v7 = vld [vmem:[%s16616_s6 + $0x38] sm:$0xf]  ;;  %194 = vst [vmem:[%s16623_s7 + $0x14] sm:$0xf] %v193_v5 }
  0x23   : > { %196 = vst [vmem:[%s16623_s7 + $0x18] sm:$0xf] %v195_v6  ;;  %198 = vst [vmem:[%s16623_s7 + $0x1c] sm:$0xf] %v197_v7  ;;  %v199_v8 = vld [vmem:[%s16616_s6 + $0x40] sm:$0xf] }
  0x24   : > { %v201_v9 = vld [vmem:[%s16616_s6 + $0x48] sm:$0xf]  ;;  %v203_v10 = vld [vmem:[%s16616_s6 + $0x50] sm:$0xf]  ;;  %200 = vst [vmem:[%s16623_s7 + $0x20] sm:$0xf] %v199_v8 }
  0x25   : > { %202 = vst [vmem:[%s16623_s7 + $0x24] sm:$0xf] %v201_v9  ;;  %204 = vst [vmem:[%s16623_s7 + $0x28] sm:$0xf] %v203_v10  ;;  %v205_v11 = vld [vmem:[%s16616_s6 + $0x58] sm:$0xf] }
  0x26   : > { %v207_v12 = vld [vmem:[%s16616_s6 + $0x60] sm:$0xf]  ;;  %v209_v13 = vld [vmem:[%s16616_s6 + $0x68] sm:$0xf]  ;;  %206 = vst [vmem:[%s16623_s7 + $0x2c] sm:$0xf] %v205_v11 }
  0x27   : > { %208 = vst [vmem:[%s16623_s7 + $0x30] sm:$0xf] %v207_v12  ;;  %210 = vst [vmem:[%s16623_s7 + $0x34] sm:$0xf] %v209_v13  ;;  %v211_v14 = vld [vmem:[%s16616_s6 + $0x70] sm:$0xf] }
  0x28   : > { %v213_v15 = vld [vmem:[%s16616_s6 + $0x78] sm:$0xf]  ;;  %v215_v16 = vld [vmem:[%s16616_s6 + $0x80] sm:$0xf]  ;;  %212 = vst [vmem:[%s16623_s7 + $0x38] sm:$0xf] %v211_v14 }
  0x29   : > { %214 = vst [vmem:[%s16623_s7 + $0x3c] sm:$0xf] %v213_v15  ;;  %216 = vst [vmem:[%s16623_s7 + $0x40] sm:$0xf] %v215_v16  ;;  %v217_v17 = vld [vmem:[%s16616_s6 + $0x88] sm:$0xf] }
  0x2a   : > { %v219_v18 = vld [vmem:[%s16616_s6 + $0x90] sm:$0xf]  ;;  %v221_v19 = vld [vmem:[%s16616_s6 + $0x98] sm:$0xf]  ;;  %218 = vst [vmem:[%s16623_s7 + $0x44] sm:$0xf] %v217_v17 }
  0x2b   : > { %220 = vst [vmem:[%s16623_s7 + $0x48] sm:$0xf] %v219_v18  ;;  %222 = vst [vmem:[%s16623_s7 + $0x4c] sm:$0xf] %v221_v19 }
  0x2c PF: > { %s16661_s8 = sand.u32 1, %s16501_s14   ;;  %s14232_s9 = smul.u32 167936, %s16509_s16 }
  0x2d   : > { %s14231_s10 = smul.u32 10496, %s16661_s8  ;;  %s12350_s28 = sshll.u32 %s16661_s8, 2 }
  0x2e   : > { %s16668_s19 = scalar_lea.hbm %s18717_s1, %s14232_s9  ;;  %s287_s29 = scalar_lea.sflag [#allocation5], %s16661_s8 }
  0x2f   : > { %s290_s21 = scalar_lea.vmem [#allocation4], %s14231_s10  ;;  %s16371_s30 = scalar_lea.hbm %s16668_s19, 167936 }
  0x30   : > { %s297_s23 = sshll.u32 %s290_s21, 4  ;;  %p16372_p13 = scmp.ne.s32.totalorder %s16668_s19, %s16371_s30  ;;  %s16670_s23 = int_to_ptr.vmem [resolvable:$true] %s297_s23 }
  0x31   : > { %s16375_s6 = scalar_lea.hbm %s18717_s1, 335872  ;;  %p16376_p2 = scmp.lt.u32.totalorder %s16668_s19, %s18717_s1 }
  0x32   : > { %p16373_p0 = pnand %p16372_p13, %p16585_p4  ;;  %p16377_p3 = scmp.lt.u32.totalorder %s16375_s6, %s16371_s30 }
  0x33   : > { %p16379_p6 = scmp.lt.u32.totalorder %s16371_s30, %s16668_s19 }
  0x34   : > { %p16374_p1 = pneg %p16373_p0  ;;  %p16378_p5 = por %p16377_p3, %p16376_p2 }
  0x36   : > { %p16380_p7 = por %p16379_p6, %p16378_p5 }
  0x38   : > { %p16381_p10 = pnand %p16380_p7, %p16374_p1 }
  0x3a   : > { %16384 = shalt.err (!%p16381_p10)
}
  0x3b   : > { %s16385_s10 = scalar_lea.vmem %s16670_s23, 167936  ;;  %s16515_s11 = smov [#allocation4]  }
  0x3c   : > { %p16386_p13 = scmp.ne.s32.totalorder %s16670_s23, %s16385_s10  ;;  %s16389_s18 = sshll.u32 %s16515_s11, 4  ;;  %s16390_s18 = int_to_ptr.vmem [resolvable:$false] %s16389_s18 }
  0x3d   : > { %s16391_s21 = scalar_lea.vmem %s16390_s18, 335872  ;;  %p16392_p11 = scmp.lt.s32.totalorder %s16670_s23, %s16390_s18 }
  0x3e   : > { %p16387_p0 = pnand %p16386_p13, %p16585_p4  ;;  %p16393_p9 = scmp.lt.s32.totalorder %s16391_s21, %s16385_s10 }
  0x40   : > { %p16388_p12 = pneg %p16387_p0  ;;  %p16394_p2 = por %p16393_p9, %p16392_p11 }
  0x42   : > { %p16395_p3 = pnand %p16394_p2, %p16388_p12 }
  0x44   : > { %16398 = shalt.err (!%p16395_p3)
}
  0x45   : > { %s16516_s30 = smov 256   ;;  %s16517_s4 = smov 16  }
  0x46   : > { %14236 = dma.hbm_to_vmem [thread:$0]  (%p16585_p4), %s16668_s19, 167936, %s16670_s23, %s287_s29, %s16516_s30, %s16516_s30, %s16517_s4  }
  0x47   : > { %s13890_s5 = sshll.u32 %s16509_s16, 6  ;;  %s311_s10 = scalar_lea.vmem [#allocation7], %s12350_s28 }
  0x48   : > { %s16701_s9 = scalar_lea.hbm %s18718_s2, %s13890_s5  ;;  %s319_s11 = sshll.u32 %s311_s10, 4  ;;  %s320_s11 = int_to_ptr.vmem [resolvable:$true] %s319_s11 }
  0x49   : > { %s308_s18 = scalar_lea.sflag [#allocation8], %s16661_s8  ;;  %s16399_s21 = scalar_lea.hbm %s16701_s9, 64 }
  0x4a   : > { %p16400_p9 = scmp.ne.s32.totalorder %s16701_s9, %s16399_s21  ;;  %s16403_s29 = scalar_lea.hbm %s18718_s2, 128 }
  0x4b   : > { %p16404_p1 = scmp.lt.u32.totalorder %s16701_s9, %s18718_s2  ;;  %p16405_p5 = scmp.lt.u32.totalorder %s16403_s29, %s16399_s21 }
  0x4c   : > { %p16401_p11 = pnand %p16400_p9, %p16585_p4  ;;  %p16407_p7 = scmp.lt.u32.totalorder %s16399_s21, %s16701_s9 }
  0x4d   : > { %p16406_p6 = por %p16405_p5, %p16404_p1 }
  0x4e   : > { %p16402_p12 = pneg %p16401_p11 }
  0x4f   : > { %p16408_p10 = por %p16407_p7, %p16406_p6 }
  0x51   : > { %p16409_p13 = pnand %p16408_p10, %p16402_p12 }
  0x53   : > { %16412 = shalt.err (!%p16409_p13)
}
  0x54   : > { %s16413_s8 = scalar_lea.vmem %s320_s11, 64  ;;  %s16518_s28 = smov [#allocation7]  }
  0x55   : > { %p16414_p0 = scmp.ne.s32.totalorder %s320_s11, %s16413_s8  ;;  %s16417_s5 = sshll.u32 %s16518_s28, 4  ;;  %s16418_s5 = int_to_ptr.vmem [resolvable:$false] %s16417_s5 }
  0x56   : > { %s16419_s6 = scalar_lea.vmem %s16418_s5, 128  ;;  %p16420_p9 = scmp.lt.s32.totalorder %s320_s11, %s16418_s5 }
  0x57   : > { %p16415_p2 = pnand %p16414_p0, %p16585_p4  ;;  %p16421_p11 = scmp.lt.s32.totalorder %s16419_s6, %s16413_s8 }
  0x59   : > { %p16416_p3 = pneg %p16415_p2  ;;  %p16422_p8 = por %p16421_p11, %p16420_p9 }
  0x5b   : > { %p16423_p1 = pnand %p16422_p8, %p16416_p3 }
  0x5d   : > { %16426 = shalt.err (!%p16423_p1)
}
  0x5e   : > { %14237 = dma.hbm_to_vmem [thread:$0]  (%p16585_p4), %s16701_s9, 64, %s320_s11, %s308_s18  }
  0x5f PF: > { %p12353_p12 = scmp.ge.s32.totalorder %s16513_s17, 1  ;;  %p324_p5 = scmp.lt.s32.totalorder %s16513_s17, 3 }
  0x61   : > { %p325_p6 = pnand %p12353_p12, %p324_p5 }
  0x62   : > { %s16726_s7 = sand.u32 (!%p325_p6), 1, %s16497_s13   ;;  %p18727_p4 = scmp.ne.s32.totalorder (!%p325_p6), %s18724_s24, 0 }
  0x63   : > { %328 = sbr.rel (%p325_p6) target bundleno = 1669 (0x685), region = 69  ;;  %s338_s22 = scalar_lea.sflag (!%p325_p6), [#allocation5], %s16726_s7 }
  0x64   : > { %s14233_s10 = smul.u32 (!%p325_p6), 80, %s16726_s7 }
  0x65   : > { %s14234_s21 = smul.u32 (!%p325_p6), 10496, %s16726_s7 }
  0x66   : > { %s16730_s19 = scalar_lea.vmem (!%p325_p6), [#allocation3], %s14233_s10 }
  0x67   : > { %s16733_s9 = scalar_lea.vmem (!%p325_p6), [#allocation4], %s14234_s21 }
  0x6a   : > { %16480 = dma.done.wait (%p18727_p4), %s338_s22, 167936  }
  0x6b   : > { %16482 = vsyncadd (%p18727_p4), %s338_s22, 4294799360  ;;  %s12354_s11 = sshll.u32 %s16726_s7, 2  ;;  %s347_s18 = scalar_lea.sflag [#allocation8], %s16726_s7 }
  0x6c   : > { %s16741_s23 = scalar_lea.vmem [#allocation7], %s12354_s11 }
  0x6d   : > { %16484 = dma.done.wait (%p18727_p4), %s347_s18, 64  }
  0x6e   : > { %16486 = vsyncadd (%p18727_p4), %s347_s18, 4294967232  ;;  %v14301_v20 = vld [vmem:[%s16733_s9 + $0x4] ss:$16 sps:$4 sm:$0xff]   ;;  %v14303_v21 = vld [vmem:[%s16733_s9 + $0xc] ss:$16 sps:$4 sm:$0xff]   ;;  %vm599_vm3 = vcmask 1042432  }
  0x6f   : > { %9976 = vmatprep.subr.bf16.mxu0 %v14301_v20  ;;  %v14305_v22 = vld [vmem:[%s16733_s9] ss:$16 sps:$4 sm:$0xff]   ;;  %v14306_v23 = vld [vmem:[%s16733_s9 + $0x8] ss:$16 sps:$4 sm:$0xff]   ;;  %11047 = vmatprep.subr.bf16.mxu1 %v14303_v21  ;;  %v14307_v24 = vld [vmem:[%s16733_s9 + $0x24] ss:$16 sps:$4 sm:$0xff]  }
  0x70   : > { %9977 = vmatpush1.bf16.msra.mxu0 %v14305_v22  ;;  %11048 = vmatpush1.bf16.msra.mxu1 %v14306_v23  ;;  %v14309_v25 = vld [vmem:[%s16733_s9 + $0x2c] ss:$16 sps:$4 sm:$0xff]   ;;  %v14311_v26 = vld [vmem:[%s16733_s9 + $0x20] ss:$16 sps:$4 sm:$0xff]   ;;  %v14312_v27 = vld [vmem:[%s16733_s9 + $0x28] ss:$16 sps:$4 sm:$0xff]  }
  0x71   : > { %9978 = vmatprep.subr.bf16.mxu0 %v14307_v24  ;;  %11049 = vmatprep.subr.bf16.mxu1 %v14309_v25  ;;  %v14313_v28 = vld [vmem:[%s16733_s9 + $0x44] ss:$16 sps:$4 sm:$0xff]   ;;  %v14315_v29 = vld [vmem:[%s16733_s9 + $0x4c] ss:$16 sps:$4 sm:$0xff]   ;;  %v14317_v30 = vld [vmem:[%s16733_s9 + $0x40] ss:$16 sps:$4 sm:$0xff]  }
  0x72   : > { %v14318_v31 = vld [vmem:[%s16733_s9 + $0x48] ss:$16 sps:$4 sm:$0xff]   ;;  %v14319_v32 = vld [vmem:[%s16733_s9 + $0x64] ss:$16 sps:$4 sm:$0xff]   ;;  %v14321_v33 = vld [vmem:[%s16733_s9 + $0x6c] ss:$16 sps:$4 sm:$0xff]  }
  0x73   : > { %v14323_v34 = vld [vmem:[%s16733_s9 + $0x60] ss:$16 sps:$4 sm:$0xff]   ;;  %v14324_v35 = vld [vmem:[%s16733_s9 + $0x68] ss:$16 sps:$4 sm:$0xff]   ;;  %v14325_v36 = vld [vmem:[%s16733_s9 + $0x84] ss:$16 sps:$4 sm:$0xff]  }
  0x74   : > { %9979 = vmatpush1.bf16.msra.mxu0 %v14311_v26  ;;  %11050 = vmatpush1.bf16.msra.mxu1 %v14312_v27  ;;  %v14327_v37 = vld [vmem:[%s16733_s9 + $0x8c] ss:$16 sps:$4 sm:$0xff]   ;;  %v14329_v38 = vld [vmem:[%s16733_s9 + $0x80] ss:$16 sps:$4 sm:$0xff]   ;;  %v14330_v39 = vld [vmem:[%s16733_s9 + $0x88] ss:$16 sps:$4 sm:$0xff]  }
  0x75   : > { %9980 = vmatprep.subr.bf16.mxu0 %v14313_v28  ;;  %11051 = vmatprep.subr.bf16.mxu1 %v14315_v29  ;;  %v14331_v40 = vld [vmem:[%s16733_s9 + $0xa4] ss:$16 sps:$4 sm:$0xff]   ;;  %v14333_v41 = vld [vmem:[%s16733_s9 + $0xac] ss:$16 sps:$4 sm:$0xff]   ;;  %v14335_v42 = vld [vmem:[%s16733_s9 + $0xa0] ss:$16 sps:$4 sm:$0xff]  }
  0x76   : > { %v14336_v43 = vld [vmem:[%s16733_s9 + $0xa8] ss:$16 sps:$4 sm:$0xff]   ;;  %v14337_v44 = vld [vmem:[%s16733_s9 + $0xc4] ss:$16 sps:$4 sm:$0xff]   ;;  %v14339_v45 = vld [vmem:[%s16733_s9 + $0xcc] ss:$16 sps:$4 sm:$0xff]  }
  0x77   : > { %v14341_v46 = vld [vmem:[%s16733_s9 + $0xc0] ss:$16 sps:$4 sm:$0xff]   ;;  %v14342_v47 = vld [vmem:[%s16733_s9 + $0xc8] ss:$16 sps:$4 sm:$0xff]   ;;  %v14343_v48 = vld [vmem:[%s16733_s9 + $0xe4] ss:$16 sps:$4 sm:$0xff]  }
  0x78   : > { %9981 = vmatpush1.bf16.msra.mxu0 %v14317_v30  ;;  %11052 = vmatpush1.bf16.msra.mxu1 %v14318_v31  ;;  %v14345_v49 = vld [vmem:[%s16733_s9 + $0xec] ss:$16 sps:$4 sm:$0xff]   ;;  %v14347_v50 = vld [vmem:[%s16733_s9 + $0xe0] ss:$16 sps:$4 sm:$0xff]   ;;  %v14348_v51 = vld [vmem:[%s16733_s9 + $0xe8] ss:$16 sps:$4 sm:$0xff]  }
  0x79   : > { %9982 = vmatprep.subr.bf16.mxu0 %v14319_v32  ;;  %11053 = vmatprep.subr.bf16.mxu1 %v14321_v33  ;;  %v14349_v52 = vld [vmem:[%s16733_s9 + $0x104] ss:$16 sps:$4 sm:$0xff]   ;;  %v14351_v53 = vld [vmem:[%s16733_s9 + $0x10c] ss:$16 sps:$4 sm:$0xff]   ;;  %v14353_v54 = vld [vmem:[%s16733_s9 + $0x100] ss:$16 sps:$4 sm:$0xff]  }
  0x7a   : > { %v14354_v55 = vld [vmem:[%s16733_s9 + $0x108] ss:$16 sps:$4 sm:$0xff]   ;;  %v14355_v56 = vld [vmem:[%s16733_s9 + $0x124] ss:$16 sps:$4 sm:$0xff]   ;;  %v14357_v57 = vld [vmem:[%s16733_s9 + $0x12c] ss:$16 sps:$4 sm:$0xff]  }
  0x7b   : > { %v14359_v58 = vld [vmem:[%s16733_s9 + $0x120] ss:$16 sps:$4 sm:$0xff]   ;;  %v14360_v59 = vld [vmem:[%s16733_s9 + $0x128] ss:$16 sps:$4 sm:$0xff]   ;;  %v14361_v60 = vld [vmem:[%s16733_s9 + $0x144] ss:$16 sps:$4 sm:$0xff]  }
  0x7c   : > { %9983 = vmatpush1.bf16.msra.mxu0 %v14323_v34  ;;  %11054 = vmatpush1.bf16.msra.mxu1 %v14324_v35  ;;  %v14363_v61 = vld [vmem:[%s16733_s9 + $0x14c] ss:$16 sps:$4 sm:$0xff]   ;;  %v14365_v62 = vld [vmem:[%s16733_s9 + $0x140] ss:$16 sps:$4 sm:$0xff]   ;;  %v14366_v63 = vld [vmem:[%s16733_s9 + $0x148] ss:$16 sps:$4 sm:$0xff]  }
  0x7d   : > { %9984 = vmatprep.subr.bf16.mxu0 %v14325_v36  ;;  %11055 = vmatprep.subr.bf16.mxu1 %v14327_v37  ;;  %v14367_v0 = vld [vmem:[%s16733_s9 + $0x164] ss:$16 sps:$4 sm:$0xff]   ;;  %v14369_v1 = vld [vmem:[%s16733_s9 + $0x16c] ss:$16 sps:$4 sm:$0xff]   ;;  %v14371_v2 = vld [vmem:[%s16733_s9 + $0x160] ss:$16 sps:$4 sm:$0xff]  }
  0x7e   : > { %v14372_v3 = vld [vmem:[%s16733_s9 + $0x168] ss:$16 sps:$4 sm:$0xff]   ;;  %v385_v4 = vld [vmem:[%s16730_s19] sm:$0xf]  ;;  %v386_v5 = vld [vmem:[%s16730_s19 + $0x4] sm:$0xf] }
  0x7f   : > { %388 = vst [vmem:[#allocation2] sm:$0xf] %v385_v4  ;;  %v12355_v6 = vld [vmem:[%s16730_s19 + $0x14] sm:$0xf]  ;;  %v12356_v7 = vld [vmem:[%s16730_s19 + $0x18] sm:$0xf] }
  0x80   : > { %9985 = vmatpush1.bf16.msra.mxu0 %v14329_v38  ;;  %11056 = vmatpush1.bf16.msra.mxu1 %v14330_v39  ;;  %v14373_v8 = vld [vmem:[%s16733_s9 + $0x184] ss:$16 sps:$4 sm:$0xff]   ;;  %389 = vst [vmem:[#allocation2 + $0xa4] sm:$0xf] %v386_v5  ;;  %395 = vst [vmem:[#allocation2 + $0x4] sm:$0xf] %v12355_v6 }
  0x81   : > { %9986 = vmatprep.subr.bf16.mxu0 %v14331_v40  ;;  %11057 = vmatprep.subr.bf16.mxu1 %v14333_v41  ;;  %396 = vst [vmem:[#allocation2 + $0xa8] sm:$0xf] %v12356_v7  ;;  %v14375_v9 = vld [vmem:[%s16733_s9 + $0x18c] ss:$16 sps:$4 sm:$0xff]   ;;  %v14377_v10 = vld [vmem:[%s16733_s9 + $0x180] ss:$16 sps:$4 sm:$0xff]  }
  0x82   : > { %v14378_v11 = vld [vmem:[%s16733_s9 + $0x188] ss:$16 sps:$4 sm:$0xff]   ;;  %v14379_v12 = vld [vmem:[%s16733_s9 + $0x1a4] ss:$16 sps:$4 sm:$0xff]   ;;  %v14381_v13 = vld [vmem:[%s16733_s9 + $0x1ac] ss:$16 sps:$4 sm:$0xff]  }
  0x83   : > { %v14383_v14 = vld [vmem:[%s16733_s9 + $0x1a0] ss:$16 sps:$4 sm:$0xff]   ;;  %v14384_v15 = vld [vmem:[%s16733_s9 + $0x1a8] ss:$16 sps:$4 sm:$0xff]   ;;  %v14385_v16 = vld [vmem:[%s16733_s9 + $0x1c4] ss:$16 sps:$4 sm:$0xff]  }
  0x84   : > { %9987 = vmatpush1.bf16.msra.mxu0 %v14335_v42  ;;  %11058 = vmatpush1.bf16.msra.mxu1 %v14336_v43  ;;  %v14387_v18 = vld [vmem:[%s16733_s9 + $0x1cc] ss:$16 sps:$4 sm:$0xff]   ;;  %v14389_v19 = vld [vmem:[%s16733_s9 + $0x1c0] ss:$16 sps:$4 sm:$0xff]   ;;  %v14390_v20 = vld [vmem:[%s16733_s9 + $0x1c8] ss:$16 sps:$4 sm:$0xff]  }
  0x85   : > { %9988 = vmatprep.subr.bf16.mxu0 %v14337_v44  ;;  %11059 = vmatprep.subr.bf16.mxu1 %v14339_v45  ;;  %v14391_v21 = vld [vmem:[%s16733_s9 + $0x1e4] ss:$16 sps:$4 sm:$0xff]   ;;  %v14393_v22 = vld [vmem:[%s16733_s9 + $0x1ec] ss:$16 sps:$4 sm:$0xff]   ;;  %v14395_v23 = vld [vmem:[%s16733_s9 + $0x1e0] ss:$16 sps:$4 sm:$0xff]  }
  0x86   : > { %v14396_v24 = vld [vmem:[%s16733_s9 + $0x1e8] ss:$16 sps:$4 sm:$0xff]   ;;  %v14402_v25 = vld [vmem:[%s16733_s9 + $0x204] ss:$16 sps:$4 sm:$0xff]   ;;  %v14405_v26 = vld [vmem:[%s16733_s9 + $0x20c] ss:$16 sps:$4 sm:$0xff]  }
  0x87   : > { %v14400_v27 = vld [vmem:[%s16733_s9 + $0x200] ss:$16 sps:$4 sm:$0xff]   ;;  %v14397_v28 = vld [vmem:[#allocation2] ss:$164 sps:$4 sm:$0xff]   ;;  %v14411_v31 = vld [vmem:[%s16733_s9 + $0x22c] ss:$16 sps:$4 sm:$0xff]  }
  0x88   : > { %9989 = vmatpush1.bf16.msra.mxu0 %v14341_v46  ;;  %11060 = vmatpush1.bf16.msra.mxu1 %v14342_v47  ;;  %v14399_v17 = vld [vmem:[#allocation2 + $0x4] ss:$164 sps:$4 sm:$0xff]   ;;  %v14408_v30 = vld [vmem:[%s16733_s9 + $0x224] ss:$16 sps:$4 sm:$0xff]   ;;  %v14406_v32 = vld [vmem:[%s16733_s9 + $0x220] ss:$16 sps:$4 sm:$0xff]  }
  0x89   : > { %9990 = vmatprep.subr.bf16.mxu0 %v14343_v48  ;;  %11061 = vmatprep.subr.bf16.mxu1 %v14345_v49  ;;  %v14403_v29 = vld [vmem:[%s16733_s9 + $0x208] ss:$16 sps:$4 sm:$0xff]   ;;  %v14414_v34 = vld [vmem:[%s16733_s9 + $0x244] ss:$16 sps:$4 sm:$0xff]   ;;  %v14417_v35 = vld [vmem:[%s16733_s9 + $0x24c] ss:$16 sps:$4 sm:$0xff]  }
  0x8a   : > { %10008 = vmatprep.mubr.bf16.mxu0 %v14399_v17  ;;  %11079 = vmatprep.mubr.bf16.mxu1 %v14399_v17  ;;  %v14409_v33 = vld [vmem:[%s16733_s9 + $0x228] ss:$16 sps:$4 sm:$0xff]   ;;  %v14412_v36 = vld [vmem:[%s16733_s9 + $0x240] ss:$16 sps:$4 sm:$0xff]   ;;  %v14420_v38 = vld [vmem:[%s16733_s9 + $0x264] ss:$16 sps:$4 sm:$0xff]  }
  0x8b   : > { %v14415_v37 = vld [vmem:[%s16733_s9 + $0x248] ss:$16 sps:$4 sm:$0xff]   ;;  %v14423_v39 = vld [vmem:[%s16733_s9 + $0x26c] ss:$16 sps:$4 sm:$0xff]   ;;  %v14418_v40 = vld [vmem:[%s16733_s9 + $0x260] ss:$16 sps:$4 sm:$0xff]  }
  0x8c   : > { %9991 = vmatpush1.bf16.msra.mxu0 %v14347_v50  ;;  %11062 = vmatpush1.bf16.msra.mxu1 %v14348_v51  ;;  %v14421_v41 = vld [vmem:[%s16733_s9 + $0x268] ss:$16 sps:$4 sm:$0xff]   ;;  %v14426_v42 = vld [vmem:[%s16733_s9 + $0x284] ss:$16 sps:$4 sm:$0xff]   ;;  %v14429_v43 = vld [vmem:[%s16733_s9 + $0x28c] ss:$16 sps:$4 sm:$0xff]  }
  0x8d   : > { %9992 = vmatprep.subr.bf16.mxu0 %v14349_v52  ;;  %11063 = vmatprep.subr.bf16.mxu1 %v14351_v53  ;;  %v14424_v44 = vld [vmem:[%s16733_s9 + $0x280] ss:$16 sps:$4 sm:$0xff]   ;;  %v14427_v45 = vld [vmem:[%s16733_s9 + $0x288] ss:$16 sps:$4 sm:$0xff]   ;;  %v14432_v46 = vld [vmem:[%s16733_s9 + $0x2a4] ss:$16 sps:$4 sm:$0xff]  }
  0x8e   : > { %v14435_v47 = vld [vmem:[%s16733_s9 + $0x2ac] ss:$16 sps:$4 sm:$0xff]   ;;  %v387_v48 = vld [vmem:[%s16730_s19 + $0x8] sm:$0xf]  ;;  %v14430_v50 = vld [vmem:[%s16733_s9 + $0x2a0] ss:$16 sps:$4 sm:$0xff]  }
  0x8f   : > { %390 = vst [vmem:[#allocation2 + $0x148] sm:$0xf] %v387_v48  ;;  %v12357_v49 = vld [vmem:[%s16730_s19 + $0x1c] sm:$0xf]  ;;  %v14433_v51 = vld [vmem:[%s16733_s9 + $0x2a8] ss:$16 sps:$4 sm:$0xff]  }
  0x90   : > { %9993 = vmatpush1.bf16.msra.mxu0 %v14353_v54  ;;  %11064 = vmatpush1.bf16.msra.mxu1 %v14354_v55  ;;  %397 = vst [vmem:[#allocation2 + $0x14c] sm:$0xf] %v12357_v49  ;;  %v14438_v52 = vld [vmem:[%s16733_s9 + $0x2c4] ss:$16 sps:$4 sm:$0xff]   ;;  %v14441_v53 = vld [vmem:[%s16733_s9 + $0x2cc] ss:$16 sps:$4 sm:$0xff]  }
  0x91   : > { %9994 = vmatprep.subr.bf16.mxu0 %v14355_v56  ;;  %11065 = vmatprep.subr.bf16.mxu1 %v14357_v57  ;;  %v14436_v54 = vld [vmem:[%s16733_s9 + $0x2c0] ss:$16 sps:$4 sm:$0xff]   ;;  %v14439_v55 = vld [vmem:[%s16733_s9 + $0x2c8] ss:$16 sps:$4 sm:$0xff]   ;;  %v14444_v56 = vld [vmem:[%s16733_s9 + $0x2e4] ss:$16 sps:$4 sm:$0xff]  }
  0x92   : > { %v14447_v57 = vld [vmem:[%s16733_s9 + $0x2ec] ss:$16 sps:$4 sm:$0xff]   ;;  %v14448_v5 = vld [vmem:[%s16733_s9 + $0x300] ss:$16 sps:$4 sm:$0xff]   ;;  %v14451_v6 = vld [vmem:[%s16733_s9 + $0x308] ss:$16 sps:$4 sm:$0xff]  }
  0x93   : > { %v14453_v4 = vld [vmem:[%s16733_s9 + $0x30c] ss:$16 sps:$4 sm:$0xff]   ;;  %v14456_v7 = vld [vmem:[%s16733_s9 + $0x324] ss:$16 sps:$4 sm:$0xff]   ;;  %vm416_vm0 = vsmask.f32 3328 }
  0x94   : > { %9995 = vmatpush1.bf16.msra.mxu0 %v14359_v58  ;;  %11066 = vmatpush1.bf16.msra.mxu1 %v14360_v59  ;;  %v12358_v58 = vld [vmem:[%s16730_s19 + $0x28] sm:$0xf]  ;;  %v12359_v59 = vld [vmem:[%s16730_s19 + $0x2c] sm:$0xf]  ;;  %vm417_vm1 = vsmask.f32 7440 }
  0x95   : > { %9996 = vmatprep.subr.bf16.mxu0 %v14361_v60  ;;  %11067 = vmatprep.subr.bf16.mxu1 %v14363_v61  ;;  %402 = vst [vmem:[#allocation2 + $0x8] sm:$0xf] %v12358_v58  ;;  %v12361_v60 = vld [vmem:[%s16730_s19 + $0x3c] sm:$0xf]  ;;  %v12362_v61 = vld [vmem:[%s16730_s19 + $0x40] sm:$0xf]  ;;  %vm16918_vm2 = vmor %vm416_vm0, %vm417_vm1 }
  0x96   : > { %403 = vst [vmem:[#allocation2 + $0xac] sm:$0xf] %v12359_v59  ;;  %409 = vst [vmem:[#allocation2 + $0xc] sm:$0xf] %v12361_v60  ;;  %v14471_v17 = vld [vmem:[%s16733_s9 + $0x36c] ss:$16 sps:$4 sm:$0xff]  }
  0x97   : > { %410 = vst [vmem:[#allocation2 + $0xb0] sm:$0xf] %v12362_v61  ;;  %v14518_v48 = vld [vmem:[%s16733_s9 + $0x44c] ss:$16 sps:$4 sm:$0xff]   ;;  %v14513_v49 = vld [vmem:[%s16733_s9 + $0x440] ss:$16 sps:$4 sm:$0xff]  }
  0x98   : > { %9997 = vmatpush1.bf16.msra.mxu0 %v14365_v62  ;;  %11068 = vmatpush1.bf16.msra.mxu1 %v14366_v63  ;;  %v14442_v62 = vld [vmem:[%s16733_s9 + $0x2e0] ss:$16 sps:$4 sm:$0xff]   ;;  %v12364_v60 = vld [vmem:[%s16730_s19 + $0x14] sm:$0xf]  ;;  %vm600_vm4 = vcmask 1046532   ;;  %vm893_vm9 = vcmask 1041408  }
  0x99   : > { %9998 = vmatprep.subr.bf16.mxu0 %v14367_v0  ;;  %11069 = vmatprep.subr.bf16.mxu1 %v14369_v1  ;;  %v1711_v63 = vld [vmem:[#allocation2 + $0x148] sm:$0xff]  ;;  %v14445_v0 = vld [vmem:[%s16733_s9 + $0x2e8] ss:$16 sps:$4 sm:$0xff]   ;;  %v14450_v1 = vld [vmem:[%s16733_s9 + $0x304] ss:$16 sps:$4 sm:$0xff]   ;;  %vm894_vm10 = vcmask 1045508  }
  0x9a   : > { %vm17078_vm5 = vmor %vm599_vm3, %vm600_vm4  ;;  %vm694_vm6 = vsmask.f32 2304  ;;  %vm695_vm7 = vsmask.f32 6416  ;;  %vm988_vm12 = vsmask.f32 1280 }
  0x9b   : > { %vm17259_vm8 = vmor %vm694_vm6, %vm695_vm7  ;;  %vm989_vm13 = vsmask.f32 5392  ;;  %vm1187_vm15 = vcmask 1040384   ;;  %vm1188_vm0 = vcmask 1044484   ;;  %vm1282_vm3 = vsmask.f32 256 }
  0x9c   : > { %9999 = vmatpush1.bf16.msra.mxu0 %v14371_v2  ;;  %11070 = vmatpush1.bf16.msra.mxu1 %v14372_v3  ;;  %v12528_v2 = vcombine.high %v1711_v63, %v1711_v63  ;;  %v12527_v3 = vcombine.low %v1711_v63, %v1711_v63  ;;  %v12365_v63 = vld [vmem:[%s16730_s19 + $0x18] sm:$0xf]  ;;  %vm17429_vm11 = vmor %vm893_vm9, %vm894_vm10  ;;  %vm1283_vm4 = vsmask.f32 4368  ;;  %s14235_s24 = smul.u32 48, %s16726_s7  ;;  %s13897_s4 = sshll.u32 %s16505_s15, 8 }
  0x9d   : > { %10000 = vmatprep.subr.bf16.mxu0 %v14373_v8  ;;  %11071 = vmatprep.subr.bf16.mxu1 %v14375_v9  ;;  %v14459_v8 = vld [vmem:[%s16733_s9 + $0x32c] ss:$16 sps:$4 sm:$0xff]   ;;  %vm17626_vm14 = vmor %vm988_vm12, %vm989_vm13  ;;  %s18665_s28 = scalar_lea.hbm %s18719_s3, %s13897_s4  ;;  %s12201_s5 = scalar_lea.sflag [#allocation6], %s16726_s7 }
  0x9e   : > { %v14500_v9 = vld [vmem:[#allocation2 + $0xc] ss:$164 sps:$4 sm:$0xff]   ;;  %vm17817_vm1 = vmor %vm1187_vm15, %vm1188_vm0  ;;  %s18652_s29 = scalar_lea.vmem [#allocation9], %s14235_s24  ;;  %p18742_p7 = scmp.ne.s32.totalorder %s18725_s25, 0 }
  0x9f   : > { %vm18017_vm6 = vmor %vm1282_vm3, %vm1283_vm4  ;;  %s12217_s30 = sshll.u32 %s18652_s29, 4  ;;  %s16520_s10 = smov [#allocation9]   ;;  %s18660_s30 = int_to_ptr.vmem [resolvable:$true] %s12217_s30 }
  0xa0   : > { %10001 = vmatpush1.bf16.msra.mxu0 %v14377_v10  ;;  %11072 = vmatpush1.bf16.msra.mxu1 %v14378_v11  ;;  %v14454_v10 = vld [vmem:[%s16733_s9 + $0x320] ss:$16 sps:$4 sm:$0xff]   ;;  %v14457_v11 = vld [vmem:[%s16733_s9 + $0x328] ss:$16 sps:$4 sm:$0xff]   ;;  %s16427_s6 = scalar_lea.vmem %s18660_s30, 768  ;;  %s16431_s21 = sshll.u32 %s16520_s10, 4  ;;  %s16432_s21 = int_to_ptr.vmem [resolvable:$false] %s16431_s21 }
  0xa1   : > { %10002 = vmatprep.subr.bf16.mxu0 %v14379_v12  ;;  %11073 = vmatprep.subr.bf16.mxu1 %v14381_v13  ;;  %v14462_v12 = vld [vmem:[%s16733_s9 + $0x344] ss:$16 sps:$4 sm:$0xff]   ;;  %v14465_v13 = vld [vmem:[%s16733_s9 + $0x34c] ss:$16 sps:$4 sm:$0xff]   ;;  %p16428_p8 = scmp.ne.s32.totalorder %s18660_s30, %s16427_s6  ;;  %p16434_p0 = scmp.lt.s32.totalorder %s18660_s30, %s16432_s21 }
  0xa3   : > { %p16429_p10 = pnand %p16428_p8, %p18742_p7 }
  0xa4   : > { %10003 = vmatpush1.bf16.msra.mxu0 %v14383_v14  ;;  %11074 = vmatpush1.bf16.msra.mxu1 %v14384_v15  ;;  %v14460_v14 = vld [vmem:[%s16733_s9 + $0x340] ss:$16 sps:$4 sm:$0xff]   ;;  %v14463_v15 = vld [vmem:[%s16733_s9 + $0x348] ss:$16 sps:$4 sm:$0xff]  }
  0xa5   : > { %10004 = vmatprep.subr.bf16.mxu0 %v14385_v16  ;;  %11075 = vmatprep.subr.bf16.mxu1 %v14387_v18  ;;  %v14468_v16 = vld [vmem:[%s16733_s9 + $0x364] ss:$16 sps:$4 sm:$0xff]   ;;  %v14466_v18 = vld [vmem:[%s16733_s9 + $0x360] ss:$16 sps:$4 sm:$0xff]   ;;  %p16430_p13 = pneg %p16429_p10 }
  0xa8   : > { %10005 = vmatpush1.bf16.msra.mxu0 %v14389_v19  ;;  %11076 = vmatpush1.bf16.msra.mxu1 %v14390_v20  ;;  %v14469_v19 = vld [vmem:[%s16733_s9 + $0x368] ss:$16 sps:$4 sm:$0xff]   ;;  %v14474_v20 = vld [vmem:[%s16733_s9 + $0x384] ss:$16 sps:$4 sm:$0xff]  }
  0xa9   : > { %10006 = vmatprep.subr.bf16.mxu0 %v14391_v21  ;;  %11077 = vmatprep.subr.bf16.mxu1 %v14393_v22  ;;  %v14477_v21 = vld [vmem:[%s16733_s9 + $0x38c] ss:$16 sps:$4 sm:$0xff]   ;;  %v14472_v22 = vld [vmem:[%s16733_s9 + $0x380] ss:$16 sps:$4 sm:$0xff]  }
  0xac   : > { %10007 = vmatpush1.bf16.msra.mxu0 %v14395_v23  ;;  %11078 = vmatpush1.bf16.msra.mxu1 %v14396_v24  ;;  %v14475_v23 = vld [vmem:[%s16733_s9 + $0x388] ss:$16 sps:$4 sm:$0xff]   ;;  %v14480_v24 = vld [vmem:[%s16733_s9 + $0x3a4] ss:$16 sps:$4 sm:$0xff]  }
  0xad   : > { %10027 = vmatprep.subr.bf16.mxu0 %v14402_v25  ;;  %11098 = vmatprep.subr.bf16.mxu1 %v14405_v26  ;;  %v14483_v25 = vld [vmem:[%s16733_s9 + $0x3ac] ss:$16 sps:$4 sm:$0xff]   ;;  %v14478_v26 = vld [vmem:[%s16733_s9 + $0x3a0] ss:$16 sps:$4 sm:$0xff]  }
  0xaf   : > { %10009 = vmatmul.mubr.bf16.vlgmr.msra.gmra.mrb[0].mxu0 %v14397_v28  ;;  %11080 = vmatmul.mubr.bf16.vlgmr.msra.gmra.mrb[0].mxu1 %v14397_v28  ;;  %v14487_v28 = vld [vmem:[%s16733_s9 + $0x3c4] ss:$16 sps:$4 sm:$0xff]  }
  0xb0   : > { %10028 = vmatpush1.bf16.msra.mxu0 %v14400_v27  ;;  %11099 = vmatpush1.bf16.msra.mxu1 %v14403_v29  ;;  %v14481_v27 = vld [vmem:[%s16733_s9 + $0x3a8] ss:$16 sps:$4 sm:$0xff]   ;;  %v14490_v29 = vld [vmem:[%s16733_s9 + $0x3cc] ss:$16 sps:$4 sm:$0xff]  }
  0xb1   : > { %10029 = vmatprep.subr.bf16.mxu0 %v14408_v30  ;;  %11100 = vmatprep.subr.bf16.mxu1 %v14411_v31  ;;  %v14485_v30 = vld [vmem:[%s16733_s9 + $0x3c0] ss:$16 sps:$4 sm:$0xff]   ;;  %v14488_v31 = vld [vmem:[%s16733_s9 + $0x3c8] ss:$16 sps:$4 sm:$0xff]  }
  0xb2   : > { %10018 = vmatprep.mubr.bf16.mxu0 %v12528_v2  ;;  %11089 = vmatprep.mubr.bf16.mxu1 %v12528_v2  ;;  %v14522_v2 = vld [vmem:[%s16733_s9 + $0x468] ss:$16 sps:$4 sm:$0xff]  }
  0xb4   : > { %10030 = vmatpush1.bf16.msra.mxu0 %v14406_v32  ;;  %11101 = vmatpush1.bf16.msra.mxu1 %v14409_v33  ;;  %v14494_v32 = vld [vmem:[%s16733_s9 + $0x3e4] ss:$16 sps:$4 sm:$0xff]   ;;  %v14497_v33 = vld [vmem:[%s16733_s9 + $0x3ec] ss:$16 sps:$4 sm:$0xff]  }
  0xb5   : > { %10031 = vmatprep.subr.bf16.mxu0 %v14414_v34  ;;  %11102 = vmatprep.subr.bf16.mxu1 %v14417_v35  ;;  %v14492_v34 = vld [vmem:[%s16733_s9 + $0x3e0] ss:$16 sps:$4 sm:$0xff]   ;;  %v14495_v35 = vld [vmem:[%s16733_s9 + $0x3e8] ss:$16 sps:$4 sm:$0xff]  }
  0xb7   : > { %10019 = vmatmul.mubr.bf16.gmra.mrb[4].mxu0 %v12527_v3  ;;  %11090 = vmatmul.mubr.bf16.gmra.mrb[4].mxu1 %v12527_v3 }
  0xb8   : > { %10032 = vmatpush1.bf16.msra.mxu0 %v14412_v36  ;;  %11103 = vmatpush1.bf16.msra.mxu1 %v14415_v37  ;;  %v14503_v36 = vld [vmem:[%s16733_s9 + $0x404] ss:$16 sps:$4 sm:$0xff]   ;;  %v14506_v37 = vld [vmem:[%s16733_s9 + $0x40c] ss:$16 sps:$4 sm:$0xff]  }
  0xb9   : > { %10033 = vmatprep.subr.bf16.mxu0 %v14420_v38  ;;  %11104 = vmatprep.subr.bf16.mxu1 %v14423_v39  ;;  %v14501_v38 = vld [vmem:[%s16733_s9 + $0x400] ss:$16 sps:$4 sm:$0xff]  }
  0xba   : > { %10059 = vmatprep.mubr.bf16.mxu0 %v14500_v9  ;;  %11130 = vmatprep.mubr.bf16.mxu1 %v14500_v9  ;;  %v14498_v39 = vld [vmem:[#allocation2 + $0x8] ss:$164 sps:$4 sm:$0xff]  }
  0xbc   : > { %10034 = vmatpush1.bf16.msra.mxu0 %v14418_v40  ;;  %11105 = vmatpush1.bf16.msra.mxu1 %v14421_v41  ;;  %v14504_v40 = vld [vmem:[%s16733_s9 + $0x408] ss:$16 sps:$4 sm:$0xff]   ;;  %v14509_v41 = vld [vmem:[%s16733_s9 + $0x424] ss:$16 sps:$4 sm:$0xff]  }
  0xbd   : > { %10035 = vmatprep.subr.bf16.mxu0 %v14426_v42  ;;  %11106 = vmatprep.subr.bf16.mxu1 %v14429_v43  ;;  %v14512_v42 = vld [vmem:[%s16733_s9 + $0x42c] ss:$16 sps:$4 sm:$0xff]   ;;  %v12360_v43 = vld [vmem:[%s16730_s19 + $0x30] sm:$0xf] }
  0xbe   : > { %404 = vst [vmem:[#allocation2 + $0x150] sm:$0xf] %v12360_v43  ;;  %v14537_v43 = vld [vmem:[%s16733_s9 + $0x4c0] ss:$16 sps:$4 sm:$0xff]  }
  0xc0   : > { %10036 = vmatpush1.bf16.msra.mxu0 %v14424_v44  ;;  %11107 = vmatpush1.bf16.msra.mxu1 %v14427_v45  ;;  %v12363_v44 = vld [vmem:[%s16730_s19 + $0x44] sm:$0xf]  ;;  %v14507_v45 = vld [vmem:[%s16733_s9 + $0x420] ss:$16 sps:$4 sm:$0xff]  }
  0xc1   : > { %10037 = vmatprep.subr.bf16.mxu0 %v14432_v46  ;;  %11108 = vmatprep.subr.bf16.mxu1 %v14435_v47  ;;  %411 = vst [vmem:[#allocation2 + $0x154] sm:$0xf] %v12363_v44  ;;  %v14510_v46 = vld [vmem:[%s16733_s9 + $0x428] ss:$16 sps:$4 sm:$0xff]   ;;  %v14515_v47 = vld [vmem:[%s16733_s9 + $0x444] ss:$16 sps:$4 sm:$0xff]  }
  0xc2   : > { %v14540_v44 = vld [vmem:[%s16733_s9 + $0x4c8] ss:$16 sps:$4 sm:$0xff]  }
  0xc4   : > { %10038 = vmatpush1.bf16.msra.mxu0 %v14430_v50  ;;  %11109 = vmatpush1.bf16.msra.mxu1 %v14433_v51  ;;  %v14516_v50 = vld [vmem:[%s16733_s9 + $0x448] ss:$16 sps:$4 sm:$0xff]   ;;  %v14521_v51 = vld [vmem:[%s16733_s9 + $0x464] ss:$16 sps:$4 sm:$0xff]  }
  0xc5   : > { %10039 = vmatprep.subr.bf16.mxu0 %v14438_v52  ;;  %11110 = vmatprep.subr.bf16.mxu1 %v14441_v53  ;;  %v14524_v52 = vld [vmem:[%s16733_s9 + $0x46c] ss:$16 sps:$4 sm:$0xff]   ;;  %v412_v53 = vld [vmem:[%s16730_s19] sm:$0xf] }
  0xc8   : > { %10040 = vmatpush1.bf16.msra.mxu0 %v14436_v54  ;;  %11111 = vmatpush1.bf16.msra.mxu1 %v14439_v55  ;;  %v413_v54 = vld [vmem:[%s16730_s19 + $0x4] sm:$0xf]  ;;  %v16904_v55 = vld [vmem:[%s16730_s19 + $0x8] sm:$0xf] }
  0xc9   : > { %10041 = vmatprep.subr.bf16.mxu0 %v14444_v56  ;;  %11112 = vmatprep.subr.bf16.mxu1 %v14447_v57  ;;  %v420_v56 = vshrl.u32 %v412_v53, 16  ;;  %v423_v57 = vshll.u32 %v412_v53, 16  ;;  %v429_v58 = vshll.u32 %v413_v54, 16  ;;  %v433_v59 = vshrl.u32 %v413_v54, 16  ;;  %v1712_v61 = vld [vmem:[#allocation2 + $0x150] sm:$0xff] }
  0xca   : > { %v12530_v3 = vcombine.high %v1712_v61, %v1712_v61  ;;  %v14552_v53 = vld [vmem:[%s16733_s9 + $0x508] ss:$16 sps:$4 sm:$0xff]   ;;  %v14557_v54 = vld [vmem:[%s16733_s9 + $0x524] ss:$16 sps:$4 sm:$0xff]  }
  0xcb   : > { %v431_v9 = vrot.slane %v429_v58, 5  ;;  %v14558_v58 = vld [vmem:[%s16733_s9 + $0x528] ss:$16 sps:$4 sm:$0xff]  }
  0xcc   : > { %10042 = vmatpush1.bf16.msra.mxu0 %v14442_v62  ;;  %11113 = vmatpush1.bf16.msra.mxu1 %v14445_v0  ;;  %v439_v62 = vshll.u32 %v16904_v55, 16  ;;  %v464_v0 = vshrl.u32 %v12364_v60, 16 }
  0xcd   : > { %10043 = vmatprep.subr.bf16.mxu0 %v14450_v1  ;;  %11114 = vmatprep.subr.bf16.mxu1 %v14453_v4  ;;  %v14519_v1 = vld [vmem:[%s16733_s9 + $0x460] ss:$16 sps:$4 sm:$0xff]   ;;  %v422_v4 = vrot.slane %v420_v56, 4  ;;  %v14560_v56 = vld [vmem:[%s16733_s9 + $0x52c] ss:$16 sps:$4 sm:$0xff]  }
  0xd0   : > { %10044 = vmatpush1.bf16.msra.mxu0 %v14448_v5  ;;  %11115 = vmatpush1.bf16.msra.mxu1 %v14451_v6  ;;  %v425_v5 = vrot.slane %v423_v57, 5  ;;  %v16912_v6 = vld [vmem:[%s16730_s19 + $0x1c] sm:$0xf]  ;;  %v14555_v57 = vld [vmem:[%s16733_s9 + $0x520] ss:$16 sps:$4 sm:$0xff]  }
  0xd1   : > { %10045 = vmatprep.subr.bf16.mxu0 %v14456_v7  ;;  %11116 = vmatprep.subr.bf16.mxu1 %v14459_v8  ;;  %v14527_v7 = vld [vmem:[%s16733_s9 + $0x484] ss:$16 sps:$4 sm:$0xff]   ;;  %v12529_v8 = vcombine.low %v1712_v61, %v1712_v61  ;;  %v14561_v61 = vld [vmem:[%s16733_s9 + $0x540] ss:$16 sps:$4 sm:$0xff]  }
  0xd4   : > { %10046 = vmatpush1.bf16.msra.mxu0 %v14454_v10  ;;  %11117 = vmatpush1.bf16.msra.mxu1 %v14457_v11  ;;  %v435_v10 = vrot.slane %v433_v59, 4  ;;  %v466_v11 = vrot.slane %v464_v0, 4  ;;  %v14563_v59 = vld [vmem:[%s16733_s9 + $0x544] ss:$16 sps:$4 sm:$0xff]   ;;  %v487_v0 = vshrl.u32 %v16912_v6, 16 }
  0xd5   : > { %10047 = vmatprep.subr.bf16.mxu0 %v14462_v12  ;;  %11118 = vmatprep.subr.bf16.mxu1 %v14465_v13  ;;  %v14530_v12 = vld [vmem:[%s16733_s9 + $0x48c] ss:$16 sps:$4 sm:$0xff]   ;;  %v426_v13 = vor.u32 %v425_v5, %v422_v4  ;;  %v14570_v4 = vld [vmem:[%s16733_s9 + $0x568] ss:$16 sps:$4 sm:$0xff]  }
  0xd8   : > { %10048 = vmatpush1.bf16.msra.mxu0 %v14460_v14  ;;  %11119 = vmatpush1.bf16.msra.mxu1 %v14463_v15  ;;  %v467_v14 = vshll.u32 %v12364_v60, 16  ;;  %v473_v15 = vshll.u32 %v12365_v63, 16  ;;  %v14566_v60 = vld [vmem:[%s16733_s9 + $0x54c] ss:$16 sps:$4 sm:$0xff]  }
  0xd9   : > { %10049 = vmatprep.subr.bf16.mxu0 %v14468_v16  ;;  %11120 = vmatprep.subr.bf16.mxu1 %v14471_v17  ;;  %v477_v16 = vshrl.u32 %v12365_v63, 16  ;;  %v443_v63 = vshrl.u32 %v16904_v55, 16  ;;  %v14575_v55 = vld [vmem:[%s16733_s9 + $0x584] ss:$16 sps:$4 sm:$0xff]  }
  0xda   : > { %v16155_v17 = vld [vmem:[%s16733_s9 + $0x24c4] ss:$16 sps:$4 sm:$0xff]  }
  0xdb   : > { %v445_v5 = vrot.slane %v443_v63, 4 }
  0xdc   : > { %10050 = vmatpush1.bf16.msra.mxu0 %v14466_v18  ;;  %11121 = vmatpush1.bf16.msra.mxu1 %v14469_v19  ;;  %v436_v18 = vor.u32 %v435_v10, %v431_v9  ;;  %v16922_v19 = vrot.slane %v439_v62, 5  ;;  %v14564_v62 = vld [vmem:[%s16733_s9 + $0x548] ss:$16 sps:$4 sm:$0xff]  }
  0xdd   : > { %10051 = vmatprep.subr.bf16.mxu0 %v14474_v20  ;;  %11122 = vmatprep.subr.bf16.mxu1 %v14477_v21  ;;  %v483_v20 = vshll.u32 %v16912_v6, 16  ;;  %v427_v21 = vrot.slane %v426_v13, 4  ;;  %v14578_v6 = vld [vmem:[%s16733_s9 + $0x58c] ss:$16 sps:$4 sm:$0xff]  }
  0xde   : > { %v446_v10 = vor.u32 %v445_v5, %v16922_v19  ;;  %v14584_v13 = vld [vmem:[%s16733_s9 + $0x5ac] ss:$16 sps:$4 sm:$0xff]  }
  0xe0   : > { %10052 = vmatpush1.bf16.msra.mxu0 %v14472_v22  ;;  %11123 = vmatpush1.bf16.msra.mxu1 %v14475_v23  ;;  %v469_v22 = vrot.slane %v467_v14, 5  ;;  %v475_v23 = vrot.slane %v473_v15, 5  ;;  %v14579_v14 = vld [vmem:[%s16733_s9 + $0x5a0] ss:$16 sps:$4 sm:$0xff]   ;;  %v14582_v15 = vld [vmem:[%s16733_s9 + $0x5a8] ss:$16 sps:$4 sm:$0xff]  }
  0xe1   : > { %10053 = vmatprep.subr.bf16.mxu0 %v14480_v24  ;;  %11124 = vmatprep.subr.bf16.mxu1 %v14483_v25  ;;  %v479_v24 = vrot.slane %v477_v16, 4  ;;  %v14525_v25 = vld [vmem:[%s16733_s9 + $0x480] ss:$16 sps:$4 sm:$0xff]   ;;  %v415_v16 = vld [vmem:[%s16730_s19 + $0xc] sm:$0x1] }
  0xe4   : > { %10054 = vmatpush1.bf16.msra.mxu0 %v14478_v26  ;;  %11125 = vmatpush1.bf16.msra.mxu1 %v14481_v27  ;;  %v437_v26 = vrot.slane %v436_v18, 4  ;;  %v14528_v27 = vld [vmem:[%s16733_s9 + $0x488] ss:$16 sps:$4 sm:$0xff]   ;;  %v12367_v18 = vld [vmem:[%s16730_s19 + $0x20] sm:$0x1] }
  0xe5   : > { %10055 = vmatprep.subr.bf16.mxu0 %v14487_v28  ;;  %11126 = vmatprep.subr.bf16.mxu1 %v14490_v29  ;;  %v14533_v28 = vld [vmem:[%s16733_s9 + $0x4a4] ss:$16 sps:$4 sm:$0xff]   ;;  %v432_v29 = vsel %vm16918_vm2, %v427_v21, %v431_v9  ;;  %v14576_v9 = vld [vmem:[%s16733_s9 + $0x588] ss:$16 sps:$4 sm:$0xff]  }
  0xe6   : > { %456 = vst [vmem:[#allocation2 + $0x10] sm:$0xf] %v432_v29  ;;  %v14595_v29 = vld [vmem:[%s16733_s9 + $0x5e4] ss:$16 sps:$4 sm:$0xff]  }
  0xe8   : > { %10056 = vmatpush1.bf16.msra.mxu0 %v14485_v30  ;;  %11127 = vmatpush1.bf16.msra.mxu1 %v14488_v31  ;;  %v470_v30 = vor.u32 %v469_v22, %v466_v11  ;;  %v480_v31 = vor.u32 %v479_v24, %v475_v23  ;;  %v493_v22 = vshll.u32 %v12367_v18, 16  ;;  %v14591_v24 = vld [vmem:[%s16733_s9 + $0x5cc] ss:$16 sps:$4 sm:$0xff]   ;;  %v14616_v18 = vld [vmem:[%s16733_s9 + $0x644] ss:$16 sps:$4 sm:$0xff]  }
  0xe9   : > { %10057 = vmatprep.subr.bf16.mxu0 %v14494_v32  ;;  %11128 = vmatprep.subr.bf16.mxu1 %v14497_v33  ;;  %v16930_v32 = vrot.slane %v483_v20, 5  ;;  %v14536_v33 = vld [vmem:[%s16733_s9 + $0x4ac] ss:$16 sps:$4 sm:$0xff]   ;;  %v447_v20 = vrot.slane %v446_v10, 4 }
  0xec   : > { %10058 = vmatpush1.bf16.msra.mxu0 %v14492_v34  ;;  %11129 = vmatpush1.bf16.msra.mxu1 %v14495_v35  ;;  %v442_v34 = vsel %vm16918_vm2, %v437_v26, %v16922_v19  ;;  %v471_v35 = vrot.slane %v470_v30, 4  ;;  %v449_v19 = vshll.u32 %v415_v16, 16  ;;  %v495_v26 = vrot.slane %v493_v22, 5  ;;  %v14598_v30 = vld [vmem:[%s16733_s9 + $0x5ec] ss:$16 sps:$4 sm:$0xff]  }
  0xed   : > { %10078 = vmatprep.subr.bf16.mxu0 %v14503_v36  ;;  %11149 = vmatprep.subr.bf16.mxu1 %v14506_v37  ;;  %457 = vst [vmem:[#allocation2 + $0xb4] sm:$0xf] %v442_v34  ;;  %v481_v36 = vrot.slane %v480_v31, 4  ;;  %v14531_v37 = vld [vmem:[%s16733_s9 + $0x4a0] ss:$16 sps:$4 sm:$0xff]  }
  0xee   : > { %v12369_v34 = vld [vmem:[%s16730_s19 + $0x2c] sm:$0xf]  ;;  %v14611_v16 = vld [vmem:[%s16733_s9 + $0x628] ss:$16 sps:$4 sm:$0xff]  }
  0xef   : > { %10060 = vmatmul.mubr.bf16.vlgmr.msra.gmra.mrb[0].mxu0 %v14498_v39  ;;  %11131 = vmatmul.mubr.bf16.vlgmr.msra.gmra.mrb[0].mxu1 %v14498_v39  ;;  %v476_v39 = vsel %vm16918_vm2, %v471_v35, %v475_v23  ;;  %v14588_v23 = vld [vmem:[%s16733_s9 + $0x5c4] ss:$16 sps:$4 sm:$0xff]   ;;  %v16994_v35 = vld [vmem:[%s16730_s19 + $0x30] sm:$0xf] }
  0xf0   : > { %10079 = vmatpush1.bf16.msra.mxu0 %v14501_v38  ;;  %11150 = vmatpush1.bf16.msra.mxu1 %v14504_v40  ;;  %v14534_v38 = vld [vmem:[%s16733_s9 + $0x4a8] ss:$16 sps:$4 sm:$0xff]   ;;  %v486_v40 = vsel %vm16918_vm2, %v481_v36, %v16930_v32  ;;  %500 = vst [vmem:[#allocation2 + $0x14] sm:$0xf] %v476_v39  ;;  %v14593_v36 = vld [vmem:[%s16733_s9 + $0x5e0] ss:$16 sps:$4 sm:$0xff]  }
  0xf1   : > { %10080 = vmatprep.subr.bf16.mxu0 %v14509_v41  ;;  %11151 = vmatprep.subr.bf16.mxu1 %v14512_v42  ;;  %v14539_v41 = vld [vmem:[%s16733_s9 + $0x4c4] ss:$16 sps:$4 sm:$0xff]   ;;  %v14542_v42 = vld [vmem:[%s16733_s9 + $0x4cc] ss:$16 sps:$4 sm:$0xff]   ;;  %501 = vst [vmem:[#allocation2 + $0xb8] sm:$0xf] %v486_v40 }
  0xf2   : > { %10069 = vmatprep.mubr.bf16.mxu0 %v12530_v3  ;;  %11140 = vmatprep.mubr.bf16.mxu1 %v12530_v3  ;;  %v14567_v3 = vld [vmem:[%s16733_s9 + $0x560] ss:$16 sps:$4 sm:$0xff]   ;;  %v517_v40 = vshll.u32 %v12369_v34, 16 }
  0xf4   : > { %10081 = vmatpush1.bf16.msra.mxu0 %v14507_v45  ;;  %11152 = vmatpush1.bf16.msra.mxu1 %v14510_v46  ;;  %v14545_v45 = vld [vmem:[%s16733_s9 + $0x4e4] ss:$16 sps:$4 sm:$0xff]   ;;  %v14548_v46 = vld [vmem:[%s16733_s9 + $0x4ec] ss:$16 sps:$4 sm:$0xff]  }
  0xf5   : > { %10082 = vmatprep.subr.bf16.mxu0 %v14515_v47  ;;  %11153 = vmatprep.subr.bf16.mxu1 %v14518_v48  ;;  %v14543_v47 = vld [vmem:[%s16733_s9 + $0x4e0] ss:$16 sps:$4 sm:$0xff]   ;;  %v14546_v48 = vld [vmem:[%s16733_s9 + $0x4e8] ss:$16 sps:$4 sm:$0xff]  }
  0xf6   : > { %v14599_v63 = vld [vmem:[#allocation2 + $0x10] ss:$164 sps:$4 sm:$0xff]  }
  0xf7   : > { %10070 = vmatmul.mubr.bf16.gmra.mrb[4].mxu0 %v12529_v8  ;;  %11141 = vmatmul.mubr.bf16.gmra.mrb[4].mxu1 %v12529_v8  ;;  %v14573_v8 = vld [vmem:[%s16733_s9 + $0x580] ss:$16 sps:$4 sm:$0xff]  }
  0xf8   : > { %10083 = vmatpush1.bf16.msra.mxu0 %v14513_v49  ;;  %11154 = vmatpush1.bf16.msra.mxu1 %v14516_v50  ;;  %v14551_v49 = vld [vmem:[%s16733_s9 + $0x504] ss:$16 sps:$4 sm:$0xff]   ;;  %v14554_v50 = vld [vmem:[%s16733_s9 + $0x50c] ss:$16 sps:$4 sm:$0xff]  }
  0xf9   : > { %10084 = vmatprep.subr.bf16.mxu0 %v14521_v51  ;;  %11155 = vmatprep.subr.bf16.mxu1 %v14524_v52  ;;  %v14601_v51 = vld [vmem:[#allocation2 + $0x14] ss:$164 sps:$4 sm:$0xff]   ;;  %v14549_v52 = vld [vmem:[%s16733_s9 + $0x500] ss:$16 sps:$4 sm:$0xff]  }
  0xfa   : > { %10110 = vmatprep.mubr.bf16.mxu0 %v14601_v51  ;;  %11181 = vmatprep.mubr.bf16.mxu1 %v14601_v51  ;;  %v14607_v51 = vld [vmem:[%s16733_s9 + $0x60c] ss:$16 sps:$4 sm:$0xff]  }
  0xfc   : > { %10085 = vmatpush1.bf16.msra.mxu0 %v14519_v1  ;;  %11156 = vmatpush1.bf16.msra.mxu1 %v14522_v2  ;;  %v14569_v1 = vld [vmem:[%s16733_s9 + $0x564] ss:$16 sps:$4 sm:$0xff]   ;;  %v14572_v2 = vld [vmem:[%s16733_s9 + $0x56c] ss:$16 sps:$4 sm:$0xff]  }
  0xfd   : > { %10086 = vmatprep.subr.bf16.mxu0 %v14527_v7  ;;  %11157 = vmatprep.subr.bf16.mxu1 %v14530_v12  ;;  %v489_v7 = vrot.slane %v487_v0, 4  ;;  %v14581_v12 = vld [vmem:[%s16733_s9 + $0x5a4] ss:$16 sps:$4 sm:$0xff]  }
  0xff   : > { %v490_v11 = vor.u32 %v489_v7, %v16930_v32 }
 0x100   : > { %10087 = vmatpush1.bf16.msra.mxu0 %v14525_v25  ;;  %11158 = vmatpush1.bf16.msra.mxu1 %v14528_v27  ;;  %v451_v25 = vrot.slane %v449_v19, 5  ;;  %v14586_v27 = vld [vmem:[%s16733_s9 + $0x5c0] ss:$16 sps:$4 sm:$0xff]   ;;  %v14619_v19 = vld [vmem:[%s16733_s9 + $0x64c] ss:$16 sps:$4 sm:$0xff]  }
 0x101   : > { %10088 = vmatprep.subr.bf16.mxu0 %v14533_v28  ;;  %11159 = vmatprep.subr.bf16.mxu1 %v14536_v33  ;;  %v491_v21 = vrot.slane %v490_v11, 4  ;;  %v14589_v28 = vld [vmem:[%s16733_s9 + $0x5c8] ss:$16 sps:$4 sm:$0xff]  }
 0x102   : > { %v452_v31 = vsel %vm16918_vm2, %v447_v20, %v451_v25  ;;  %v12368_v33 = vld [vmem:[%s16730_s19 + $0x28] sm:$0xf] }
 0x103   : > { %v496_v32 = vsel %vm16918_vm2, %v491_v21, %v495_v26  ;;  %458 = vst [vmem:[#allocation2 + $0x158] sm:$0xf] %v452_v31  ;;  %v511_v39 = vshll.u32 %v12368_v33, 16  ;;  %v14617_v25 = vld [vmem:[%s16733_s9 + $0x648] ss:$16 sps:$4 sm:$0xff]  }
 0x104   : > { %10089 = vmatpush1.bf16.msra.mxu0 %v14531_v37  ;;  %11160 = vmatpush1.bf16.msra.mxu1 %v14534_v38  ;;  %502 = vst [vmem:[#allocation2 + $0x15c] sm:$0xf] %v496_v32  ;;  %v14596_v37 = vld [vmem:[%s16733_s9 + $0x5e8] ss:$16 sps:$4 sm:$0xff]   ;;  %v508_v38 = vshrl.u32 %v12368_v33, 16 }
 0x105   : > { %10090 = vmatprep.subr.bf16.mxu0 %v14539_v41  ;;  %11161 = vmatprep.subr.bf16.mxu1 %v14542_v42  ;;  %v521_v41 = vshrl.u32 %v12369_v34, 16  ;;  %v12372_v42 = vld [vmem:[%s16730_s19 + $0x3c] sm:$0xf]  ;;  %v14622_v26 = vld [vmem:[%s16733_s9 + $0x664] ss:$16 sps:$4 sm:$0xff]  }
 0x106   : > { %v14631_v31 = vld [vmem:[%s16733_s9 + $0x68c] ss:$16 sps:$4 sm:$0xff]   ;;  %v14626_v33 = vld [vmem:[%s16733_s9 + $0x680] ss:$16 sps:$4 sm:$0xff]   ;;  %v14629_v34 = vld [vmem:[%s16733_s9 + $0x688] ss:$16 sps:$4 sm:$0xff]  }
 0x108   : > { %10091 = vmatpush1.bf16.msra.mxu0 %v14537_v43  ;;  %11162 = vmatpush1.bf16.msra.mxu1 %v14540_v44  ;;  %v14604_v43 = vld [vmem:[%s16733_s9 + $0x604] ss:$16 sps:$4 sm:$0xff]   ;;  %v527_v44 = vshll.u32 %v16994_v35, 16 }
 0x109   : > { %10092 = vmatprep.subr.bf16.mxu0 %v14545_v45  ;;  %11163 = vmatprep.subr.bf16.mxu1 %v14548_v46  ;;  %v12373_v45 = vld [vmem:[%s16730_s19 + $0x40] sm:$0xf]  ;;  %v17003_v46 = vld [vmem:[%s16730_s19 + $0x44] sm:$0xf] }
 0x10c   : > { %10093 = vmatpush1.bf16.msra.mxu0 %v14543_v47  ;;  %11164 = vmatpush1.bf16.msra.mxu1 %v14546_v48  ;;  %v510_v47 = vrot.slane %v508_v38, 4  ;;  %v513_v48 = vrot.slane %v511_v39, 5  ;;  %v14632_v38 = vld [vmem:[%s16733_s9 + $0x6a0] ss:$16 sps:$4 sm:$0xff]   ;;  %v14635_v39 = vld [vmem:[%s16733_s9 + $0x6a8] ss:$16 sps:$4 sm:$0xff]  }
 0x10d   : > { %10094 = vmatprep.subr.bf16.mxu0 %v14551_v49  ;;  %11165 = vmatprep.subr.bf16.mxu1 %v14554_v50  ;;  %v519_v49 = vrot.slane %v517_v40, 5  ;;  %v523_v50 = vrot.slane %v521_v41, 4  ;;  %v14640_v40 = vld [vmem:[%s16733_s9 + $0x6c4] ss:$16 sps:$4 sm:$0xff]   ;;  %v14643_v41 = vld [vmem:[%s16733_s9 + $0x6cc] ss:$16 sps:$4 sm:$0xff]  }
 0x110   : > { %10095 = vmatpush1.bf16.msra.mxu0 %v14549_v52  ;;  %11166 = vmatpush1.bf16.msra.mxu1 %v14552_v53  ;;  %v17006_v52 = vrot.slane %v527_v44, 5  ;;  %v552_v53 = vshrl.u32 %v12372_v42, 16  ;;  %v14646_v44 = vld [vmem:[%s16733_s9 + $0x6e4] ss:$16 sps:$4 sm:$0xff]  }
 0x111   : > { %10096 = vmatprep.subr.bf16.mxu0 %v14557_v54  ;;  %11167 = vmatprep.subr.bf16.mxu1 %v14560_v56  ;;  %v555_v54 = vshll.u32 %v12372_v42, 16  ;;  %v561_v56 = vshll.u32 %v12373_v45, 16  ;;  %v14638_v42 = vld [vmem:[%s16733_s9 + $0x6c0] ss:$16 sps:$4 sm:$0xff]  }
 0x112   : > { %v554_v0 = vrot.slane %v552_v53, 4  ;;  %v14655_v53 = vld [vmem:[%s16733_s9 + $0x70c] ss:$16 sps:$4 sm:$0xff]  }
 0x114   : > { %10097 = vmatpush1.bf16.msra.mxu0 %v14555_v57  ;;  %11168 = vmatpush1.bf16.msra.mxu1 %v14558_v58  ;;  %v14602_v57 = vld [vmem:[%s16733_s9 + $0x600] ss:$16 sps:$4 sm:$0xff]   ;;  %v14605_v58 = vld [vmem:[%s16733_s9 + $0x608] ss:$16 sps:$4 sm:$0xff]  }
 0x115   : > { %10098 = vmatprep.subr.bf16.mxu0 %v14563_v59  ;;  %11169 = vmatprep.subr.bf16.mxu1 %v14566_v60  ;;  %v514_v59 = vor.u32 %v513_v48, %v510_v47  ;;  %v524_v60 = vor.u32 %v523_v50, %v519_v49  ;;  %v531_v47 = vshrl.u32 %v16994_v35, 16  ;;  %v575_v48 = vshrl.u32 %v17003_v46, 16  ;;  %v14647_v50 = vld [vmem:[%s16733_s9 + $0x6e8] ss:$16 sps:$4 sm:$0xff]  }
 0x116   : > { %v14653_v35 = vld [vmem:[%s16733_s9 + $0x708] ss:$16 sps:$4 sm:$0xff]  }
 0x117   : > { %v525_v5 = vrot.slane %v524_v60, 4 }
 0x118   : > { %10099 = vmatpush1.bf16.msra.mxu0 %v14561_v61  ;;  %11170 = vmatpush1.bf16.msra.mxu1 %v14564_v62  ;;  %v565_v61 = vshrl.u32 %v12373_v45, 16  ;;  %v571_v62 = vshll.u32 %v17003_v46, 16  ;;  %v14649_v45 = vld [vmem:[%s16733_s9 + $0x6ec] ss:$16 sps:$4 sm:$0xff]   ;;  %v14658_v46 = vld [vmem:[%s16733_s9 + $0x724] ss:$16 sps:$4 sm:$0xff]  }
 0x119   : > { %10100 = vmatprep.subr.bf16.mxu0 %v14569_v1  ;;  %11171 = vmatprep.subr.bf16.mxu1 %v14572_v2  ;;  %v557_v1 = vrot.slane %v555_v54, 5  ;;  %v563_v2 = vrot.slane %v561_v56, 5  ;;  %v533_v54 = vrot.slane %v531_v47, 4  ;;  %v577_v56 = vrot.slane %v575_v48, 4  ;;  %v14687_v47 = vld [vmem:[%s16733_s9 + $0x7c0] ss:$16 sps:$4 sm:$0xff]  }
 0x11a   : > { %v567_v7 = vrot.slane %v565_v61, 4  ;;  %v14656_v61 = vld [vmem:[%s16733_s9 + $0x720] ss:$16 sps:$4 sm:$0xff]   ;;  %v14690_v48 = vld [vmem:[%s16733_s9 + $0x7c8] ss:$16 sps:$4 sm:$0xff]  }
 0x11c   : > { %10101 = vmatpush1.bf16.msra.mxu0 %v14567_v3  ;;  %11172 = vmatpush1.bf16.msra.mxu1 %v14570_v4  ;;  %v1713_v3 = vld [vmem:[#allocation2 + $0x158] sm:$0xff]  ;;  %v515_v4 = vrot.slane %v514_v59, 4  ;;  %v534_v59 = vor.u32 %v533_v54, %v17006_v52  ;;  %v14705_v54 = vld [vmem:[%s16733_s9 + $0x804] ss:$16 sps:$4 sm:$0xff]  }
 0x11d   : > { %10102 = vmatprep.subr.bf16.mxu0 %v14575_v55  ;;  %11173 = vmatprep.subr.bf16.mxu1 %v14578_v6  ;;  %v14610_v55 = vld [vmem:[%s16733_s9 + $0x624] ss:$16 sps:$4 sm:$0xff]   ;;  %v14613_v6 = vld [vmem:[%s16733_s9 + $0x62c] ss:$16 sps:$4 sm:$0xff]   ;;  %v12532_v10 = vcombine.high %v1713_v3, %v1713_v3 }
 0x11e   : > { %v520_v11 = vsel %vm16918_vm2, %v515_v4, %v519_v49  ;;  %v14644_v49 = vld [vmem:[%s16733_s9 + $0x6e0] ss:$16 sps:$4 sm:$0xff]  }
 0x11f   : > { %544 = vst [vmem:[#allocation2 + $0x18] sm:$0xf] %v520_v11  ;;  %v14668_v11 = vld [vmem:[%s16733_s9 + $0x760] ss:$16 sps:$4 sm:$0xff]  }
 0x120   : > { %10103 = vmatpush1.bf16.msra.mxu0 %v14573_v8  ;;  %11174 = vmatpush1.bf16.msra.mxu1 %v14576_v9  ;;  %v558_v8 = vor.u32 %v557_v1, %v554_v0  ;;  %v17013_v9 = vrot.slane %v571_v62, 5  ;;  %v14659_v62 = vld [vmem:[%s16733_s9 + $0x728] ss:$16 sps:$4 sm:$0xff]   ;;  %v14667_v0 = vld [vmem:[%s16733_s9 + $0x74c] ss:$16 sps:$4 sm:$0xff]  }
 0x121   : > { %10104 = vmatprep.subr.bf16.mxu0 %v14581_v12  ;;  %11175 = vmatprep.subr.bf16.mxu1 %v14584_v13  ;;  %v530_v12 = vsel %vm16918_vm2, %v525_v5, %v17006_v52  ;;  %v568_v13 = vor.u32 %v567_v7, %v563_v2  ;;  %v12371_v1 = vld [vmem:[%s16730_s19 + $0x34] sm:$0x1]  ;;  %v14662_v7 = vld [vmem:[%s16733_s9 + $0x740] ss:$16 sps:$4 sm:$0xff]  }
 0x122   : > { %545 = vst [vmem:[#allocation2 + $0xbc] sm:$0xf] %v530_v12  ;;  %v578_v60 = vor.u32 %v577_v56, %v17013_v9  ;;  %v537_v4 = vshll.u32 %v12371_v1, 16  ;;  %v14671_v12 = vld [vmem:[%s16733_s9 + $0x768] ss:$16 sps:$4 sm:$0xff]  }
 0x123   : > { %v569_v20 = vrot.slane %v568_v13, 4  ;;  %v14708_v56 = vld [vmem:[%s16733_s9 + $0x80c] ss:$16 sps:$4 sm:$0xff]  }
 0x124   : > { %10105 = vmatpush1.bf16.msra.mxu0 %v14579_v14  ;;  %11176 = vmatpush1.bf16.msra.mxu1 %v14582_v15  ;;  %v14608_v14 = vld [vmem:[%s16733_s9 + $0x620] ss:$16 sps:$4 sm:$0xff]   ;;  %v559_v15 = vrot.slane %v558_v8, 4  ;;  %v579_v52 = vrot.slane %v578_v60, 4  ;;  %v14714_v60 = vld [vmem:[%s16733_s9 + $0x82c] ss:$16 sps:$4 sm:$0xff]  }
 0x125   : > { %10106 = vmatprep.subr.bf16.mxu0 %v14588_v23  ;;  %11177 = vmatprep.subr.bf16.mxu1 %v14591_v24  ;;  %v574_v22 = vsel %vm16918_vm2, %v569_v20, %v17013_v9  ;;  %v14614_v23 = vld [vmem:[%s16733_s9 + $0x640] ss:$16 sps:$4 sm:$0xff]   ;;  %v12531_v24 = vcombine.low %v1713_v3, %v1713_v3  ;;  %v535_v3 = vrot.slane %v534_v59, 4  ;;  %v14670_v9 = vld [vmem:[%s16733_s9 + $0x764] ss:$16 sps:$4 sm:$0xff]  }
 0x126   : > { %v564_v21 = vsel %vm16918_vm2, %v559_v15, %v563_v2  ;;  %589 = vst [vmem:[#allocation2 + $0xc0] sm:$0xf] %v574_v22  ;;  %v12375_v2 = vld [vmem:[%s16730_s19 + $0x48] sm:$0x1]  ;;  %v591_v20 = vld [vmem:[%s16730_s19] sm:$0xe] }
 0x127   : > { %588 = vst [vmem:[#allocation2 + $0x1c] sm:$0xf] %v564_v21  ;;  %v581_v5 = vshll.u32 %v12375_v2, 16  ;;  %v17087_v21 = vld [vmem:[%s16730_s19 + $0x8] sm:$0xf]  ;;  %v12376_v22 = vrot.slane %v591_v20, 9 }
 0x128   : > { %10107 = vmatpush1.bf16.msra.mxu0 %v14586_v27  ;;  %11178 = vmatpush1.bf16.msra.mxu1 %v14589_v28  ;;  %v14625_v27 = vld [vmem:[%s16733_s9 + $0x66c] ss:$16 sps:$4 sm:$0xff]   ;;  %v14620_v28 = vld [vmem:[%s16733_s9 + $0x660] ss:$16 sps:$4 sm:$0xff]   ;;  %v14711_v59 = vld [vmem:[%s16733_s9 + $0x824] ss:$16 sps:$4 sm:$0xff]  }
 0x129   : > { %10108 = vmatprep.subr.bf16.mxu0 %v14595_v29  ;;  %11179 = vmatprep.subr.bf16.mxu1 %v14598_v30  ;;  %v14623_v29 = vld [vmem:[%s16733_s9 + $0x668] ss:$16 sps:$4 sm:$0xff]   ;;  %v14628_v30 = vld [vmem:[%s16733_s9 + $0x684] ss:$16 sps:$4 sm:$0xff]   ;;  %v583_v8 = vrot.slane %v581_v5, 5 }
 0x12a   : > { %v14720_v1 = vld [vmem:[%s16733_s9 + $0x84c] ss:$16 sps:$4 sm:$0xff]   ;;  %v16180_v15 = vld [vmem:[%s16733_s9 + $0x2548] ss:$16 sps:$4 sm:$0xff]  }
 0x12b   : > { %v14726_v5 = vld [vmem:[%s16733_s9 + $0x86c] ss:$16 sps:$4 sm:$0xff]  }
 0x12c   : > { %10109 = vmatpush1.bf16.msra.mxu0 %v14593_v36  ;;  %11180 = vmatpush1.bf16.msra.mxu1 %v14596_v37  ;;  %v14634_v36 = vld [vmem:[%s16733_s9 + $0x6a4] ss:$16 sps:$4 sm:$0xff]   ;;  %v14637_v37 = vld [vmem:[%s16733_s9 + $0x6ac] ss:$16 sps:$4 sm:$0xff]  }
 0x12d   : > { %10129 = vmatprep.subr.bf16.mxu0 %v14604_v43  ;;  %11200 = vmatprep.subr.bf16.mxu1 %v14607_v51  ;;  %v14641_v43 = vld [vmem:[%s16733_s9 + $0x6c8] ss:$16 sps:$4 sm:$0xff]   ;;  %v14652_v51 = vld [vmem:[%s16733_s9 + $0x704] ss:$16 sps:$4 sm:$0xff]  }
 0x12e   : > { %v14702_v32 = vld [vmem:[#allocation2 + $0x1c] ss:$164 sps:$4 sm:$0xff]  }
 0x12f   : > { %10111 = vmatmul.mubr.bf16.vlgmr.msra.gmra.mrb[0].mxu0 %v14599_v63  ;;  %11182 = vmatmul.mubr.bf16.vlgmr.msra.gmra.mrb[0].mxu1 %v14599_v63  ;;  %v14664_v63 = vld [vmem:[%s16733_s9 + $0x744] ss:$16 sps:$4 sm:$0xff]  }
 0x130   : > { %10130 = vmatpush1.bf16.msra.mxu0 %v14602_v57  ;;  %11201 = vmatpush1.bf16.msra.mxu1 %v14605_v58  ;;  %v14650_v57 = vld [vmem:[%s16733_s9 + $0x700] ss:$16 sps:$4 sm:$0xff]   ;;  %v14661_v58 = vld [vmem:[%s16733_s9 + $0x72c] ss:$16 sps:$4 sm:$0xff]  }
 0x131   : > { %10131 = vmatprep.subr.bf16.mxu0 %v14610_v55  ;;  %11202 = vmatprep.subr.bf16.mxu1 %v14613_v6  ;;  %v14665_v55 = vld [vmem:[%s16733_s9 + $0x748] ss:$16 sps:$4 sm:$0xff]   ;;  %v539_v6 = vrot.slane %v537_v4, 5 }
 0x132   : > { %10120 = vmatprep.mubr.bf16.mxu0 %v12532_v10  ;;  %11191 = vmatprep.mubr.bf16.mxu1 %v12532_v10  ;;  %v14673_v10 = vld [vmem:[%s16733_s9 + $0x76c] ss:$16 sps:$4 sm:$0xff]   ;;  %v14718_v4 = vld [vmem:[%s16733_s9 + $0x848] ss:$16 sps:$4 sm:$0xff]  }
 0x133   : > { %v540_v13 = vsel %vm16918_vm2, %v535_v3, %v539_v6  ;;  %v14715_v3 = vld [vmem:[%s16733_s9 + $0x840] ss:$16 sps:$4 sm:$0xff]   ;;  %v14724_v6 = vld [vmem:[%s16733_s9 + $0x868] ss:$16 sps:$4 sm:$0xff]  }
 0x134   : > { %10132 = vmatpush1.bf16.msra.mxu0 %v14608_v14  ;;  %11203 = vmatpush1.bf16.msra.mxu1 %v14611_v16  ;;  %v584_v14 = vsel %vm16918_vm2, %v579_v52, %v583_v8  ;;  %v14676_v16 = vld [vmem:[%s16733_s9 + $0x784] ss:$16 sps:$4 sm:$0xff]   ;;  %546 = vst [vmem:[#allocation2 + $0x160] sm:$0xf] %v540_v13  ;;  %v14738_v13 = vld [vmem:[%s16733_s9 + $0x8ac] ss:$16 sps:$4 sm:$0xff]  }
 0x135   : > { %10133 = vmatprep.subr.bf16.mxu0 %v14616_v18  ;;  %11204 = vmatprep.subr.bf16.mxu1 %v14619_v19  ;;  %v14679_v18 = vld [vmem:[%s16733_s9 + $0x78c] ss:$16 sps:$4 sm:$0xff]   ;;  %590 = vst [vmem:[#allocation2 + $0x164] sm:$0xf] %v584_v14  ;;  %v592_v19 = vld [vmem:[%s16730_s19 + $0x4] sm:$0xf] }
 0x136   : > { %v14723_v52 = vld [vmem:[%s16733_s9 + $0x864] ss:$16 sps:$4 sm:$0xff]   ;;  %v14733_v14 = vld [vmem:[%s16733_s9 + $0x8a0] ss:$16 sps:$4 sm:$0xff]  }
 0x137   : > { %10121 = vmatmul.mubr.bf16.gmra.mrb[4].mxu0 %v12531_v24  ;;  %11192 = vmatmul.mubr.bf16.gmra.mrb[4].mxu1 %v12531_v24  ;;  %v607_v24 = vrot.slane %v17087_v21, 5  ;;  %v14729_v8 = vld [vmem:[%s16733_s9 + $0x884] ss:$16 sps:$4 sm:$0xff]   ;;  %v14739_v21 = vld [vmem:[%s16733_s9 + $0x8c0] ss:$16 sps:$4 sm:$0xff]  }
 0x138   : > { %10134 = vmatpush1.bf16.msra.mxu0 %v14614_v23  ;;  %11205 = vmatpush1.bf16.msra.mxu1 %v14617_v25  ;;  %v604_v23 = vrot.slane %v592_v19, 5  ;;  %v12377_v25 = vld [vmem:[%s16730_s19 + $0x14] sm:$0xe]  ;;  %v14744_v19 = vld [vmem:[%s16733_s9 + $0x8cc] ss:$16 sps:$4 sm:$0xff]  }
 0x139   : > { %10135 = vmatprep.subr.bf16.mxu0 %v14622_v26  ;;  %11206 = vmatprep.subr.bf16.mxu1 %v14625_v27  ;;  %v12378_v26 = vld [vmem:[%s16730_s19 + $0x18] sm:$0xf]  ;;  %v17093_v27 = vld [vmem:[%s16730_s19 + $0x1c] sm:$0xf]  ;;  %v609_v20 = vrot.slane %v607_v24, 4 }
 0x13a   : > { %10161 = vmatprep.mubr.bf16.mxu0 %v14702_v32  ;;  %11232 = vmatprep.mubr.bf16.mxu1 %v14702_v32  ;;  %v631_v32 = vrot.slane %v17093_v27, 5  ;;  %v14747_v27 = vld [vmem:[%s16733_s9 + $0x8e4] ss:$16 sps:$4 sm:$0xff]  }
 0x13c   : > { %10136 = vmatpush1.bf16.msra.mxu0 %v14620_v28  ;;  %11207 = vmatpush1.bf16.msra.mxu1 %v14623_v29  ;;  %v12381_v28 = vrot.slane %v12377_v25, 9  ;;  %v605_v29 = vsel %vm17078_vm5, %v12376_v22, %v604_v23  ;;  %v594_v22 = vld [vmem:[%s16730_s19 + $0xc] sm:$0x1] }
 0x13d   : > { %10137 = vmatprep.subr.bf16.mxu0 %v14628_v30  ;;  %11208 = vmatprep.subr.bf16.mxu1 %v14631_v31  ;;  %v606_v30 = vrot.slane %v604_v23, 4  ;;  %v628_v31 = vrot.slane %v12378_v26, 5  ;;  %615 = vst [vmem:[#allocation2 + $0x20] sm:$0xf] %v605_v29  ;;  %v633_v23 = vrot.slane %v631_v32, 4  ;;  %v610_v25 = vrot.slane %v594_v22, 5 }
 0x13e   : > { %v12380_v26 = vld [vmem:[%s16730_s19 + $0x20] sm:$0x1]  ;;  %v14798_v22 = vld [vmem:[%s16733_s9 + $0x9e8] ss:$16 sps:$4 sm:$0xff]  }
 0x13f   : > { %v611_v29 = vsel %vm17078_vm5, %v609_v20, %v610_v25  ;;  %v14800_v20 = vld [vmem:[%s16733_s9 + $0x9ec] ss:$16 sps:$4 sm:$0xff]  }
 0x140   : > { %10138 = vmatpush1.bf16.msra.mxu0 %v14626_v33  ;;  %11209 = vmatpush1.bf16.msra.mxu1 %v14629_v34  ;;  %v14674_v33 = vld [vmem:[%s16733_s9 + $0x780] ss:$16 sps:$4 sm:$0xff]   ;;  %v14677_v34 = vld [vmem:[%s16733_s9 + $0x788] ss:$16 sps:$4 sm:$0xff]   ;;  %617 = vst [vmem:[#allocation2 + $0x168] sm:$0xf] %v611_v29 }
 0x141   : > { %10139 = vmatprep.subr.bf16.mxu0 %v14634_v36  ;;  %11210 = vmatprep.subr.bf16.mxu1 %v14637_v37  ;;  %v608_v36 = vsel %vm17078_vm5, %v606_v30, %v607_v24  ;;  %v629_v37 = vsel %vm17078_vm5, %v12381_v28, %v628_v31  ;;  %v634_v28 = vrot.slane %v12380_v26, 5  ;;  %v14742_v24 = vld [vmem:[%s16733_s9 + $0x8c8] ss:$16 sps:$4 sm:$0xff]   ;;  %v14809_v25 = vld [vmem:[%s16733_s9 + $0xa0c] ss:$16 sps:$4 sm:$0xff]  }
 0x142   : > { %616 = vst [vmem:[#allocation2 + $0xc4] sm:$0xf] %v608_v36  ;;  %639 = vst [vmem:[#allocation2 + $0x24] sm:$0xf] %v629_v37  ;;  %v14753_v36 = vld [vmem:[%s16733_s9 + $0x904] ss:$16 sps:$4 sm:$0xff]  }
 0x143   : > { %v635_v30 = vsel %vm17078_vm5, %v633_v23, %v634_v28  ;;  %v14756_v37 = vld [vmem:[%s16733_s9 + $0x90c] ss:$16 sps:$4 sm:$0xff]   ;;  %v14806_v23 = vld [vmem:[%s16733_s9 + $0xa04] ss:$16 sps:$4 sm:$0xff]   ;;  %v14804_v28 = vld [vmem:[%s16733_s9 + $0xa00] ss:$16 sps:$4 sm:$0xff]  }
 0x144   : > { %10140 = vmatpush1.bf16.msra.mxu0 %v14632_v38  ;;  %11211 = vmatpush1.bf16.msra.mxu1 %v14635_v39  ;;  %v630_v38 = vrot.slane %v628_v31, 4  ;;  %v14682_v39 = vld [vmem:[%s16733_s9 + $0x7a4] ss:$16 sps:$4 sm:$0xff]   ;;  %v14750_v31 = vld [vmem:[%s16733_s9 + $0x8ec] ss:$16 sps:$4 sm:$0xff]  }
 0x145   : > { %10141 = vmatprep.subr.bf16.mxu0 %v14640_v40  ;;  %11212 = vmatprep.subr.bf16.mxu1 %v14643_v41  ;;  %v14685_v40 = vld [vmem:[%s16733_s9 + $0x7ac] ss:$16 sps:$4 sm:$0xff]   ;;  %641 = vst [vmem:[#allocation2 + $0x16c] sm:$0xf] %v635_v30  ;;  %v14812_v29 = vld [vmem:[%s16733_s9 + $0xa24] ss:$16 sps:$4 sm:$0xff]  }
 0x146   : > { %v632_v41 = vsel %vm17078_vm5, %v630_v38, %v631_v32  ;;  %v14745_v32 = vld [vmem:[%s16733_s9 + $0x8e0] ss:$16 sps:$4 sm:$0xff]   ;;  %v12383_v38 = vld [vmem:[%s16730_s19 + $0x2c] sm:$0xf] }
 0x147   : > { %640 = vst [vmem:[#allocation2 + $0xc8] sm:$0xf] %v632_v41  ;;  %v652_v41 = vrot.slane %v12383_v38, 5  ;;  %v14810_v30 = vld [vmem:[%s16733_s9 + $0xa20] ss:$16 sps:$4 sm:$0xff]  }
 0x148   : > { %10142 = vmatpush1.bf16.msra.mxu0 %v14638_v42  ;;  %11213 = vmatpush1.bf16.msra.mxu1 %v14641_v43  ;;  %v14680_v42 = vld [vmem:[%s16733_s9 + $0x7a0] ss:$16 sps:$4 sm:$0xff]   ;;  %v14683_v43 = vld [vmem:[%s16733_s9 + $0x7a8] ss:$16 sps:$4 sm:$0xff]  }
 0x149   : > { %10143 = vmatprep.subr.bf16.mxu0 %v14646_v44  ;;  %11214 = vmatprep.subr.bf16.mxu1 %v14649_v45  ;;  %v14689_v44 = vld [vmem:[%s16733_s9 + $0x7c4] ss:$16 sps:$4 sm:$0xff]   ;;  %v14692_v45 = vld [vmem:[%s16733_s9 + $0x7cc] ss:$16 sps:$4 sm:$0xff]   ;;  %v12390_v38 = vld [vmem:[%s16730_s19 + $0x48] sm:$0x1] }
 0x14a   : > { %v14801_v26 = vld [vmem:[#allocation2 + $0x20] ss:$164 sps:$4 sm:$0xff]  }
 0x14c   : > { %10144 = vmatpush1.bf16.msra.mxu0 %v14644_v49  ;;  %11215 = vmatpush1.bf16.msra.mxu1 %v14647_v50  ;;  %v14696_v49 = vld [vmem:[%s16733_s9 + $0x7e4] ss:$16 sps:$4 sm:$0xff]   ;;  %v14699_v50 = vld [vmem:[%s16733_s9 + $0x7ec] ss:$16 sps:$4 sm:$0xff]  }
 0x14d   : > { %10145 = vmatprep.subr.bf16.mxu0 %v14652_v51  ;;  %11216 = vmatprep.subr.bf16.mxu1 %v14655_v53  ;;  %v14694_v51 = vld [vmem:[%s16733_s9 + $0x7e0] ss:$16 sps:$4 sm:$0xff]   ;;  %v14697_v53 = vld [vmem:[%s16733_s9 + $0x7e8] ss:$16 sps:$4 sm:$0xff]  }
 0x150   : > { %10146 = vmatpush1.bf16.msra.mxu0 %v14650_v57  ;;  %11217 = vmatpush1.bf16.msra.mxu1 %v14653_v35  ;;  %v14700_v57 = vld [vmem:[#allocation2 + $0x18] ss:$164 sps:$4 sm:$0xff]   ;;  %v1714_v35 = vld [vmem:[#allocation2 + $0x160] sm:$0xff] }
 0x151   : > { %10147 = vmatprep.subr.bf16.mxu0 %v14658_v46  ;;  %11218 = vmatprep.subr.bf16.mxu1 %v14661_v58  ;;  %v14703_v46 = vld [vmem:[%s16733_s9 + $0x800] ss:$16 sps:$4 sm:$0xff]   ;;  %v14706_v58 = vld [vmem:[%s16733_s9 + $0x808] ss:$16 sps:$4 sm:$0xff]   ;;  %v12533_v2 = vcombine.low %v1714_v35, %v1714_v35 }
 0x154   : > { %10148 = vmatpush1.bf16.msra.mxu0 %v14656_v61  ;;  %11219 = vmatpush1.bf16.msra.mxu1 %v14659_v62  ;;  %v12534_v61 = vcombine.high %v1714_v35, %v1714_v35  ;;  %v14709_v62 = vld [vmem:[%s16733_s9 + $0x820] ss:$16 sps:$4 sm:$0xff]  }
 0x155   : > { %10149 = vmatprep.subr.bf16.mxu0 %v14664_v63  ;;  %11220 = vmatprep.subr.bf16.mxu1 %v14667_v0  ;;  %v14712_v63 = vld [vmem:[%s16733_s9 + $0x828] ss:$16 sps:$4 sm:$0xff]   ;;  %v14717_v0 = vld [vmem:[%s16733_s9 + $0x844] ss:$16 sps:$4 sm:$0xff]  }
 0x158   : > { %10150 = vmatpush1.bf16.msra.mxu0 %v14662_v7  ;;  %11221 = vmatpush1.bf16.msra.mxu1 %v14665_v55  ;;  %v14803_v7 = vld [vmem:[#allocation2 + $0x24] ss:$164 sps:$4 sm:$0xff]   ;;  %v14721_v55 = vld [vmem:[%s16733_s9 + $0x860] ss:$16 sps:$4 sm:$0xff]  }
 0x159   : > { %10151 = vmatprep.subr.bf16.mxu0 %v14670_v9  ;;  %11222 = vmatprep.subr.bf16.mxu1 %v14673_v10  ;;  %v14732_v9 = vld [vmem:[%s16733_s9 + $0x88c] ss:$16 sps:$4 sm:$0xff]   ;;  %v14727_v10 = vld [vmem:[%s16733_s9 + $0x880] ss:$16 sps:$4 sm:$0xff]  }
 0x15c   : > { %10152 = vmatpush1.bf16.msra.mxu0 %v14668_v11  ;;  %11223 = vmatpush1.bf16.msra.mxu1 %v14671_v12  ;;  %v14730_v11 = vld [vmem:[%s16733_s9 + $0x888] ss:$16 sps:$4 sm:$0xff]   ;;  %v14735_v12 = vld [vmem:[%s16733_s9 + $0x8a4] ss:$16 sps:$4 sm:$0xff]  }
 0x15d   : > { %10153 = vmatprep.subr.bf16.mxu0 %v14676_v16  ;;  %11224 = vmatprep.subr.bf16.mxu1 %v14679_v18  ;;  %v14736_v16 = vld [vmem:[%s16733_s9 + $0x8a8] ss:$16 sps:$4 sm:$0xff]   ;;  %v14741_v18 = vld [vmem:[%s16733_s9 + $0x8c4] ss:$16 sps:$4 sm:$0xff]  }
 0x160   : > { %10154 = vmatpush1.bf16.msra.mxu0 %v14674_v33  ;;  %11225 = vmatpush1.bf16.msra.mxu1 %v14677_v34  ;;  %v14748_v33 = vld [vmem:[%s16733_s9 + $0x8e8] ss:$16 sps:$4 sm:$0xff]  }
 0x161   : > { %10155 = vmatprep.subr.bf16.mxu0 %v14682_v39  ;;  %11226 = vmatprep.subr.bf16.mxu1 %v14685_v40  ;;  %v12382_v34 = vld [vmem:[%s16730_s19 + $0x28] sm:$0xe]  ;;  %v17169_v39 = vld [vmem:[%s16730_s19 + $0x30] sm:$0xf] }
 0x162   : > { %v12386_v40 = vrot.slane %v12382_v34, 9 }
 0x164   : > { %10156 = vmatpush1.bf16.msra.mxu0 %v14680_v42  ;;  %11227 = vmatpush1.bf16.msra.mxu1 %v14683_v43  ;;  %v655_v42 = vrot.slane %v17169_v39, 5  ;;  %v12387_v43 = vld [vmem:[%s16730_s19 + $0x3c] sm:$0xe]  ;;  %v14816_v39 = vld [vmem:[%s16733_s9 + $0xa40] ss:$16 sps:$4 sm:$0xff]  }
 0x165   : > { %10157 = vmatprep.subr.bf16.mxu0 %v14689_v44  ;;  %11228 = vmatprep.subr.bf16.mxu1 %v14692_v45  ;;  %v12388_v44 = vld [vmem:[%s16730_s19 + $0x40] sm:$0xf]  ;;  %v17175_v45 = vld [vmem:[%s16730_s19 + $0x44] sm:$0xf] }
 0x168   : > { %10158 = vmatpush1.bf16.msra.mxu0 %v14687_v47  ;;  %11229 = vmatpush1.bf16.msra.mxu1 %v14690_v48  ;;  %v12391_v47 = vrot.slane %v12387_v43, 9  ;;  %v676_v48 = vrot.slane %v12388_v44, 5  ;;  %v682_v43 = vrot.slane %v12390_v38, 5 }
 0x169   : > { %10159 = vmatprep.subr.bf16.mxu0 %v14696_v49  ;;  %11230 = vmatprep.subr.bf16.mxu1 %v14699_v50  ;;  %v653_v49 = vsel %vm17078_vm5, %v12386_v40, %v652_v41  ;;  %v654_v50 = vrot.slane %v652_v41, 4  ;;  %v14821_v40 = vld [vmem:[%s16733_s9 + $0xa4c] ss:$16 sps:$4 sm:$0xff]  }
 0x16a   : > { %663 = vst [vmem:[#allocation2 + $0x28] sm:$0xf] %v653_v49  ;;  %v14827_v49 = vld [vmem:[%s16733_s9 + $0xa6c] ss:$16 sps:$4 sm:$0xff]  }
 0x16b   : > { %v656_v35 = vsel %vm17078_vm5, %v654_v50, %v655_v42 }
 0x16c   : > { %10160 = vmatpush1.bf16.msra.mxu0 %v14694_v51  ;;  %11231 = vmatpush1.bf16.msra.mxu1 %v14697_v53  ;;  %v679_v51 = vrot.slane %v17175_v45, 5  ;;  %v14751_v53 = vld [vmem:[%s16733_s9 + $0x900] ss:$16 sps:$4 sm:$0xff]   ;;  %664 = vst [vmem:[#allocation2 + $0xcc] sm:$0xf] %v656_v35 }
 0x16d   : > { %10180 = vmatprep.subr.bf16.mxu0 %v14705_v54  ;;  %11251 = vmatprep.subr.bf16.mxu1 %v14708_v56  ;;  %v677_v54 = vsel %vm17078_vm5, %v12391_v47, %v676_v48  ;;  %v678_v56 = vrot.slane %v676_v48, 4  ;;  %v14824_v48 = vld [vmem:[%s16733_s9 + $0xa64] ss:$16 sps:$4 sm:$0xff]   ;;  %v692_v35 = vld [vmem:[%s16730_s19 + $0x8] sm:$0xf] }
 0x16e   : > { %687 = vst [vmem:[#allocation2 + $0x2c] sm:$0xf] %v677_v54  ;;  %v681_v34 = vrot.slane %v679_v51, 4  ;;  %v690_v54 = vld [vmem:[%s16730_s19] sm:$0xe] }
 0x16f   : > { %10162 = vmatmul.mubr.bf16.vlgmr.msra.gmra.mrb[0].mxu0 %v14700_v57  ;;  %11233 = vmatmul.mubr.bf16.vlgmr.msra.gmra.mrb[0].mxu1 %v14700_v57  ;;  %v14754_v57 = vld [vmem:[%s16733_s9 + $0x908] ss:$16 sps:$4 sm:$0xff]  }
 0x170   : > { %10181 = vmatpush1.bf16.msra.mxu0 %v14703_v46  ;;  %11252 = vmatpush1.bf16.msra.mxu1 %v14706_v58  ;;  %v14759_v46 = vld [vmem:[%s16733_s9 + $0x924] ss:$16 sps:$4 sm:$0xff]   ;;  %v14762_v58 = vld [vmem:[%s16733_s9 + $0x92c] ss:$16 sps:$4 sm:$0xff]   ;;  %v683_v47 = vsel %vm17078_vm5, %v681_v34, %v682_v43 }
 0x171   : > { %10182 = vmatprep.subr.bf16.mxu0 %v14711_v59  ;;  %11253 = vmatprep.subr.bf16.mxu1 %v14714_v60  ;;  %v680_v59 = vsel %vm17078_vm5, %v678_v56, %v679_v51  ;;  %v14757_v60 = vld [vmem:[%s16733_s9 + $0x920] ss:$16 sps:$4 sm:$0xff]   ;;  %689 = vst [vmem:[#allocation2 + $0x174] sm:$0xf] %v683_v47  ;;  %v691_v56 = vld [vmem:[%s16730_s19 + $0x4] sm:$0xf] }
 0x172   : > { %10171 = vmatprep.mubr.bf16.mxu0 %v12534_v61  ;;  %11242 = vmatprep.mubr.bf16.mxu1 %v12534_v61  ;;  %688 = vst [vmem:[#allocation2 + $0xd0] sm:$0xf] %v680_v59  ;;  %v14760_v61 = vld [vmem:[%s16733_s9 + $0x928] ss:$16 sps:$4 sm:$0xff]   ;;  %v14822_v51 = vld [vmem:[%s16733_s9 + $0xa60] ss:$16 sps:$4 sm:$0xff]  }
 0x173   : > { %v707_v59 = vshrl.u32 %v691_v56, 16  ;;  %v14842_v34 = vld [vmem:[%s16733_s9 + $0xac4] ss:$16 sps:$4 sm:$0xff]  }
 0x174   : > { %10183 = vmatpush1.bf16.msra.mxu0 %v14709_v62  ;;  %11254 = vmatpush1.bf16.msra.mxu1 %v14712_v63  ;;  %v14765_v62 = vld [vmem:[%s16733_s9 + $0x944] ss:$16 sps:$4 sm:$0xff]   ;;  %v14768_v63 = vld [vmem:[%s16733_s9 + $0x94c] ss:$16 sps:$4 sm:$0xff]  }
 0x175   : > { %10184 = vmatprep.subr.bf16.mxu0 %v14717_v0  ;;  %11255 = vmatprep.subr.bf16.mxu1 %v14720_v1  ;;  %v14763_v0 = vld [vmem:[%s16733_s9 + $0x940] ss:$16 sps:$4 sm:$0xff]   ;;  %v14766_v1 = vld [vmem:[%s16733_s9 + $0x948] ss:$16 sps:$4 sm:$0xff]   ;;  %v14848_v47 = vld [vmem:[%s16733_s9 + $0xae4] ss:$16 sps:$4 sm:$0xff]  }
 0x177   : > { %10172 = vmatmul.mubr.bf16.gmra.mrb[4].mxu0 %v12533_v2  ;;  %11243 = vmatmul.mubr.bf16.gmra.mrb[4].mxu1 %v12533_v2  ;;  %v14771_v2 = vld [vmem:[%s16733_s9 + $0x964] ss:$16 sps:$4 sm:$0xff]  }
 0x178   : > { %10185 = vmatpush1.bf16.msra.mxu0 %v14715_v3  ;;  %11256 = vmatpush1.bf16.msra.mxu1 %v14718_v4  ;;  %v14774_v3 = vld [vmem:[%s16733_s9 + $0x96c] ss:$16 sps:$4 sm:$0xff]   ;;  %v14769_v4 = vld [vmem:[%s16733_s9 + $0x960] ss:$16 sps:$4 sm:$0xff]  }
 0x179   : > { %10186 = vmatprep.subr.bf16.mxu0 %v14723_v52  ;;  %11257 = vmatprep.subr.bf16.mxu1 %v14726_v5  ;;  %v14772_v52 = vld [vmem:[%s16733_s9 + $0x968] ss:$16 sps:$4 sm:$0xff]   ;;  %v14777_v5 = vld [vmem:[%s16733_s9 + $0x984] ss:$16 sps:$4 sm:$0xff]  }
 0x17a   : > { %10212 = vmatprep.mubr.bf16.mxu0 %v14803_v7  ;;  %11283 = vmatprep.mubr.bf16.mxu1 %v14803_v7  ;;  %v14780_v7 = vld [vmem:[%s16733_s9 + $0x98c] ss:$16 sps:$4 sm:$0xff]   ;;  %v14904_v50 = vld [vmem:[#allocation2 + $0x2c] ss:$164 sps:$4 sm:$0xff]  }
 0x17c   : > { %10187 = vmatpush1.bf16.msra.mxu0 %v14721_v55  ;;  %11258 = vmatpush1.bf16.msra.mxu1 %v14724_v6  ;;  %v14775_v55 = vld [vmem:[%s16733_s9 + $0x980] ss:$16 sps:$4 sm:$0xff]   ;;  %v14778_v6 = vld [vmem:[%s16733_s9 + $0x988] ss:$16 sps:$4 sm:$0xff]  }
 0x17d   : > { %10188 = vmatprep.subr.bf16.mxu0 %v14729_v8  ;;  %11259 = vmatprep.subr.bf16.mxu1 %v14732_v9  ;;  %v14783_v8 = vld [vmem:[%s16733_s9 + $0x9a4] ss:$16 sps:$4 sm:$0xff]   ;;  %v14786_v9 = vld [vmem:[%s16733_s9 + $0x9ac] ss:$16 sps:$4 sm:$0xff]  }
 0x180   : > { %10189 = vmatpush1.bf16.msra.mxu0 %v14727_v10  ;;  %11260 = vmatpush1.bf16.msra.mxu1 %v14730_v11  ;;  %v14781_v10 = vld [vmem:[%s16733_s9 + $0x9a0] ss:$16 sps:$4 sm:$0xff]   ;;  %v14784_v11 = vld [vmem:[%s16733_s9 + $0x9a8] ss:$16 sps:$4 sm:$0xff]  }
 0x181   : > { %10190 = vmatprep.subr.bf16.mxu0 %v14735_v12  ;;  %11261 = vmatprep.subr.bf16.mxu1 %v14738_v13  ;;  %v14790_v12 = vld [vmem:[%s16733_s9 + $0x9c4] ss:$16 sps:$4 sm:$0xff]   ;;  %v14793_v13 = vld [vmem:[%s16733_s9 + $0x9cc] ss:$16 sps:$4 sm:$0xff]  }
 0x184   : > { %10191 = vmatpush1.bf16.msra.mxu0 %v14733_v14  ;;  %11262 = vmatpush1.bf16.msra.mxu1 %v14736_v16  ;;  %v14788_v14 = vld [vmem:[%s16733_s9 + $0x9c0] ss:$16 sps:$4 sm:$0xff]   ;;  %v14791_v16 = vld [vmem:[%s16733_s9 + $0x9c8] ss:$16 sps:$4 sm:$0xff]  }
 0x185   : > { %10192 = vmatprep.subr.bf16.mxu0 %v14741_v18  ;;  %11263 = vmatprep.subr.bf16.mxu1 %v14744_v19  ;;  %v14797_v18 = vld [vmem:[%s16733_s9 + $0x9e4] ss:$16 sps:$4 sm:$0xff]   ;;  %v14795_v19 = vld [vmem:[%s16733_s9 + $0x9e0] ss:$16 sps:$4 sm:$0xff]  }
 0x188   : > { %10193 = vmatpush1.bf16.msra.mxu0 %v14739_v21  ;;  %11264 = vmatpush1.bf16.msra.mxu1 %v14742_v24  ;;  %v1715_v21 = vld [vmem:[#allocation2 + $0x168] sm:$0xff]  ;;  %v14807_v24 = vld [vmem:[%s16733_s9 + $0xa08] ss:$16 sps:$4 sm:$0xff]  }
 0x189   : > { %10194 = vmatprep.subr.bf16.mxu0 %v14747_v27  ;;  %11265 = vmatprep.subr.bf16.mxu1 %v14750_v31  ;;  %v14815_v27 = vld [vmem:[%s16733_s9 + $0xa2c] ss:$16 sps:$4 sm:$0xff]   ;;  %v12536_v31 = vcombine.high %v1715_v21, %v1715_v21  ;;  %v12535_v44 = vcombine.low %v1715_v21, %v1715_v21 }
 0x18c   : > { %10195 = vmatpush1.bf16.msra.mxu0 %v14745_v32  ;;  %11266 = vmatpush1.bf16.msra.mxu1 %v14748_v33  ;;  %v14813_v32 = vld [vmem:[%s16733_s9 + $0xa28] ss:$16 sps:$4 sm:$0xff]   ;;  %v657_v33 = vrot.slane %v655_v42, 4 }
 0x18d   : > { %10196 = vmatprep.subr.bf16.mxu0 %v14753_v36  ;;  %11267 = vmatprep.subr.bf16.mxu1 %v14756_v37  ;;  %v14818_v36 = vld [vmem:[%s16733_s9 + $0xa44] ss:$16 sps:$4 sm:$0xff]   ;;  %v14819_v42 = vld [vmem:[%s16733_s9 + $0xa48] ss:$16 sps:$4 sm:$0xff]  }
 0x18e   : > { %v12385_v37 = vld [vmem:[%s16730_s19 + $0x34] sm:$0x1] }
 0x18f   : > { %v658_v41 = vrot.slane %v12385_v37, 5 }
 0x190   : > { %10197 = vmatpush1.bf16.msra.mxu0 %v14751_v53  ;;  %11268 = vmatpush1.bf16.msra.mxu1 %v14754_v57  ;;  %v14825_v53 = vld [vmem:[%s16733_s9 + $0xa68] ss:$16 sps:$4 sm:$0xff]   ;;  %v14830_v57 = vld [vmem:[%s16733_s9 + $0xa84] ss:$16 sps:$4 sm:$0xff]  }
 0x191   : > { %10198 = vmatprep.subr.bf16.mxu0 %v14759_v46  ;;  %11269 = vmatprep.subr.bf16.mxu1 %v14762_v58  ;;  %v659_v45 = vsel %vm17078_vm5, %v657_v33, %v658_v41  ;;  %v698_v46 = vshrl.u32 %v690_v54, 16  ;;  %v701_v58 = vshll.u32 %v690_v54, 16  ;;  %v14837_v33 = vld [vmem:[%s16733_s9 + $0xaa8] ss:$16 sps:$4 sm:$0xff]   ;;  %v14857_v54 = vld [vmem:[%s16733_s9 + $0xb0c] ss:$16 sps:$4 sm:$0xff]  }
 0x192   : > { %665 = vst [vmem:[#allocation2 + $0x170] sm:$0xf] %v659_v45  ;;  %v14843_v45 = vld [vmem:[%s16733_s9 + $0xac8] ss:$16 sps:$4 sm:$0xff]  }
 0x194   : > { %10199 = vmatpush1.bf16.msra.mxu0 %v14757_v60  ;;  %11270 = vmatpush1.bf16.msra.mxu1 %v14760_v61  ;;  %v710_v60 = vshll.u32 %v691_v56, 16  ;;  %v717_v61 = vshrl.u32 %v692_v35, 16  ;;  %v14852_v56 = vld [vmem:[%s16733_s9 + $0xb00] ss:$16 sps:$4 sm:$0xff]  }
 0x195   : > { %10200 = vmatprep.subr.bf16.mxu0 %v14765_v62  ;;  %11271 = vmatprep.subr.bf16.mxu1 %v14768_v63  ;;  %v720_v62 = vshll.u32 %v692_v35, 16  ;;  %v12392_v63 = vld [vmem:[%s16730_s19 + $0x14] sm:$0xe] }
 0x196   : > { %v14860_v35 = vld [vmem:[%s16733_s9 + $0xb24] ss:$16 sps:$4 sm:$0xff]  }
 0x198   : > { %10201 = vmatpush1.bf16.msra.mxu0 %v14763_v0  ;;  %11272 = vmatpush1.bf16.msra.mxu1 %v14766_v1  ;;  %v12393_v0 = vld [vmem:[%s16730_s19 + $0x18] sm:$0xf]  ;;  %v14833_v1 = vld [vmem:[%s16733_s9 + $0xa8c] ss:$16 sps:$4 sm:$0xff]  }
 0x199   : > { %10202 = vmatprep.subr.bf16.mxu0 %v14771_v2  ;;  %11273 = vmatprep.subr.bf16.mxu1 %v14774_v3  ;;  %v700_v2 = vrot.slane %v698_v46, 5  ;;  %v703_v3 = vrot.slane %v701_v58, 6  ;;  %v14863_v46 = vld [vmem:[%s16733_s9 + $0xb2c] ss:$16 sps:$4 sm:$0xff]   ;;  %v14858_v58 = vld [vmem:[%s16733_s9 + $0xb20] ss:$16 sps:$4 sm:$0xff]  }
 0x19c   : > { %10203 = vmatpush1.bf16.msra.mxu0 %v14769_v4  ;;  %11274 = vmatpush1.bf16.msra.mxu1 %v14772_v52  ;;  %v709_v4 = vrot.slane %v707_v59, 5  ;;  %v712_v52 = vrot.slane %v710_v60, 6  ;;  %v14861_v59 = vld [vmem:[%s16733_s9 + $0xb28] ss:$16 sps:$4 sm:$0xff]   ;;  %v14866_v60 = vld [vmem:[%s16733_s9 + $0xb44] ss:$16 sps:$4 sm:$0xff]  }
 0x19d   : > { %10204 = vmatprep.subr.bf16.mxu0 %v14777_v5  ;;  %11275 = vmatprep.subr.bf16.mxu1 %v14780_v7  ;;  %v14828_v5 = vld [vmem:[%s16733_s9 + $0xa80] ss:$16 sps:$4 sm:$0xff]   ;;  %v14831_v7 = vld [vmem:[%s16733_s9 + $0xa88] ss:$16 sps:$4 sm:$0xff]  }
 0x1a0   : > { %10205 = vmatpush1.bf16.msra.mxu0 %v14775_v55  ;;  %11276 = vmatpush1.bf16.msra.mxu1 %v14778_v6  ;;  %v719_v55 = vrot.slane %v717_v61, 5  ;;  %v722_v6 = vrot.slane %v720_v62, 6  ;;  %v14869_v61 = vld [vmem:[%s16733_s9 + $0xb4c] ss:$16 sps:$4 sm:$0xff]   ;;  %v14864_v62 = vld [vmem:[%s16733_s9 + $0xb40] ss:$16 sps:$4 sm:$0xff]  }
 0x1a1   : > { %10206 = vmatprep.subr.bf16.mxu0 %v14783_v8  ;;  %11277 = vmatprep.subr.bf16.mxu1 %v14786_v9  ;;  %v746_v8 = vshrl.u32 %v12392_v63, 16  ;;  %v749_v9 = vshll.u32 %v12392_v63, 16  ;;  %v14867_v63 = vld [vmem:[%s16733_s9 + $0xb48] ss:$16 sps:$4 sm:$0xff]  }
 0x1a4   : > { %10207 = vmatpush1.bf16.msra.mxu0 %v14781_v10  ;;  %11278 = vmatpush1.bf16.msra.mxu1 %v14784_v11  ;;  %v704_v10 = vor.u32 %v703_v3, %v700_v2  ;;  %v713_v11 = vor.u32 %v712_v52, %v709_v4  ;;  %v14870_v2 = vld [vmem:[%s16733_s9 + $0xb60] ss:$16 sps:$4 sm:$0xff]   ;;  %v14873_v3 = vld [vmem:[%s16733_s9 + $0xb68] ss:$16 sps:$4 sm:$0xff]   ;;  %v14878_v4 = vld [vmem:[%s16733_s9 + $0xb84] ss:$16 sps:$4 sm:$0xff]  }
 0x1a5   : > { %10208 = vmatprep.subr.bf16.mxu0 %v14790_v12  ;;  %11279 = vmatprep.subr.bf16.mxu1 %v14793_v13  ;;  %v12394_v12 = vld [vmem:[%s16730_s19 + $0x1c] sm:$0xf]  ;;  %v755_v13 = vshrl.u32 %v12393_v0, 16 }
 0x1a6   : > { %v14881_v52 = vld [vmem:[%s16733_s9 + $0xb8c] ss:$16 sps:$4 sm:$0xff]  }
 0x1a8   : > { %10209 = vmatpush1.bf16.msra.mxu0 %v14788_v14  ;;  %11280 = vmatpush1.bf16.msra.mxu1 %v14791_v16  ;;  %v758_v14 = vshll.u32 %v12393_v0, 16  ;;  %v14836_v16 = vld [vmem:[%s16733_s9 + $0xaa4] ss:$16 sps:$4 sm:$0xff]  }
 0x1a9   : > { %10210 = vmatprep.subr.bf16.mxu0 %v14797_v18  ;;  %11281 = vmatprep.subr.bf16.mxu1 %v14800_v20  ;;  %v17263_v20 = vor.u32 %v722_v6, %v719_v55  ;;  %v14872_v0 = vld [vmem:[%s16733_s9 + $0xb64] ss:$16 sps:$4 sm:$0xff]   ;;  %v14887_v6 = vld [vmem:[%s16733_s9 + $0xbac] ss:$16 sps:$4 sm:$0xff]  }
 0x1aa   : > { %v760_v21 = vrot.slane %v758_v14, 6  ;;  %v14884_v55 = vld [vmem:[%s16733_s9 + $0xba4] ss:$16 sps:$4 sm:$0xff]   ;;  %v693_v14 = vld [vmem:[%s16730_s19 + $0xc] sm:$0x3] }
 0x1ab   : > { %v12405_v18 = vld [vmem:[%s16730_s19 + $0x14] sm:$0xc] }
 0x1ac   : > { %10211 = vmatpush1.bf16.msra.mxu0 %v14795_v19  ;;  %11282 = vmatpush1.bf16.msra.mxu1 %v14798_v22  ;;  %v748_v19 = vrot.slane %v746_v8, 5  ;;  %v14839_v22 = vld [vmem:[%s16733_s9 + $0xaac] ss:$16 sps:$4 sm:$0xff]   ;;  %v14882_v8 = vld [vmem:[%s16733_s9 + $0xba0] ss:$16 sps:$4 sm:$0xff]  }
 0x1ad   : > { %10231 = vmatprep.subr.bf16.mxu0 %v14806_v23  ;;  %11302 = vmatprep.subr.bf16.mxu1 %v14809_v25  ;;  %v705_v23 = vrot.slane %v704_v10, 4  ;;  %v715_v25 = vrot.slane %v713_v11, 4  ;;  %v14891_v10 = vld [vmem:[%s16733_s9 + $0xbc4] ss:$16 sps:$4 sm:$0xff]  }
 0x1af   : > { %10213 = vmatmul.mubr.bf16.vlgmr.msra.gmra.mrb[0].mxu0 %v14801_v26  ;;  %11284 = vmatmul.mubr.bf16.vlgmr.msra.gmra.mrb[0].mxu1 %v14801_v26  ;;  %v751_v26 = vrot.slane %v749_v9, 6  ;;  %v14885_v9 = vld [vmem:[%s16733_s9 + $0xba8] ss:$16 sps:$4 sm:$0xff]  }
 0x1b0   : > { %10232 = vmatpush1.bf16.msra.mxu0 %v14804_v28  ;;  %11303 = vmatpush1.bf16.msra.mxu1 %v14807_v24  ;;  %v757_v28 = vrot.slane %v755_v13, 5  ;;  %v765_v24 = vshrl.u32 %v12394_v12, 16  ;;  %v14892_v13 = vld [vmem:[%s16733_s9 + $0xbc8] ss:$16 sps:$4 sm:$0xff]  }
 0x1b1   : > { %10233 = vmatprep.subr.bf16.mxu0 %v14812_v29  ;;  %11304 = vmatprep.subr.bf16.mxu1 %v14815_v27  ;;  %v768_v29 = vshll.u32 %v12394_v12, 16  ;;  %v14834_v27 = vld [vmem:[%s16733_s9 + $0xaa0] ss:$16 sps:$4 sm:$0xff]  }
 0x1b2   : > { %10222 = vmatprep.mubr.bf16.mxu0 %v12536_v31  ;;  %11293 = vmatprep.mubr.bf16.mxu1 %v12536_v31  ;;  %v724_v31 = vsel %vm17259_vm8, %v715_v25, %v17263_v20  ;;  %v767_v37 = vrot.slane %v765_v24, 5  ;;  %v14889_v12 = vld [vmem:[%s16733_s9 + $0xbc0] ss:$16 sps:$4 sm:$0xff]  }
 0x1b3   : > { %739 = vst [vmem:[#allocation2 + $0xd4] sm:$0xf] %v724_v31  ;;  %v770_v38 = vrot.slane %v768_v29, 6 }
 0x1b4   : > { %10234 = vmatpush1.bf16.msra.mxu0 %v14810_v30  ;;  %11305 = vmatpush1.bf16.msra.mxu1 %v14813_v32  ;;  %v714_v30 = vsel %vm17259_vm8, %v705_v23, %v713_v11  ;;  %v752_v32 = vor.u32 %v751_v26, %v748_v19  ;;  %v14894_v11 = vld [vmem:[%s16733_s9 + $0xbcc] ss:$16 sps:$4 sm:$0xff]   ;;  %v14898_v19 = vld [vmem:[%s16733_s9 + $0xbe4] ss:$16 sps:$4 sm:$0xff]   ;;  %v730_v23 = vshll.u32 %v693_v14, 16 }
 0x1b5   : > { %10235 = vmatprep.subr.bf16.mxu0 %v14818_v36  ;;  %11306 = vmatprep.subr.bf16.mxu1 %v14821_v40  ;;  %738 = vst [vmem:[#allocation2 + $0x30] sm:$0xf] %v714_v30  ;;  %v761_v36 = vor.u32 %v760_v21, %v757_v28  ;;  %v14845_v40 = vld [vmem:[%s16733_s9 + $0xacc] ss:$16 sps:$4 sm:$0xff]   ;;  %v725_v21 = vrot.slane %v17263_v20, 4 }
 0x1b6   : > { %v753_v41 = vrot.slane %v752_v32, 4  ;;  %v14901_v28 = vld [vmem:[%s16733_s9 + $0xbec] ss:$16 sps:$4 sm:$0xff]   ;;  %v14896_v32 = vld [vmem:[%s16733_s9 + $0xbe0] ss:$16 sps:$4 sm:$0xff]  }
 0x1b7   : > { %10223 = vmatmul.mubr.bf16.gmra.mrb[4].mxu0 %v12535_v44  ;;  %11294 = vmatmul.mubr.bf16.gmra.mrb[4].mxu1 %v12535_v44  ;;  %v763_v43 = vrot.slane %v761_v36, 4  ;;  %v14907_v20 = vld [vmem:[%s16733_s9 + $0xc04] ss:$16 sps:$4 sm:$0xff]  }
 0x1b8   : > { %10236 = vmatpush1.bf16.msra.mxu0 %v14816_v39  ;;  %11307 = vmatpush1.bf16.msra.mxu1 %v14819_v42  ;;  %v17275_v39 = vor.u32 %v770_v38, %v767_v37  ;;  %v14840_v42 = vld [vmem:[%s16733_s9 + $0xac0] ss:$16 sps:$4 sm:$0xff]   ;;  %v762_v44 = vsel %vm17259_vm8, %v753_v41, %v761_v36  ;;  %v12396_v37 = vld [vmem:[%s16730_s19 + $0x28] sm:$0xe] }
 0x1b9   : > { %10237 = vmatprep.subr.bf16.mxu0 %v14824_v48  ;;  %11308 = vmatprep.subr.bf16.mxu1 %v14827_v49  ;;  %786 = vst [vmem:[#allocation2 + $0x34] sm:$0xf] %v762_v44  ;;  %v14851_v49 = vld [vmem:[%s16733_s9 + $0xaec] ss:$16 sps:$4 sm:$0xff]   ;;  %v17326_v38 = vld [vmem:[#allocation2 + $0x170] sm:$0xff] }
 0x1ba   : > { %10263 = vmatprep.mubr.bf16.mxu0 %v14904_v50  ;;  %11334 = vmatprep.mubr.bf16.mxu1 %v14904_v50  ;;  %v772_v48 = vsel %vm17259_vm8, %v763_v43, %v17275_v39  ;;  %v14846_v50 = vld [vmem:[%s16733_s9 + $0xae0] ss:$16 sps:$4 sm:$0xff]   ;;  %v773_v24 = vrot.slane %v17275_v39, 4  ;;  %v14910_v43 = vld [vmem:[%s16733_s9 + $0xc0c] ss:$16 sps:$4 sm:$0xff]  }
 0x1bb   : > { %787 = vst [vmem:[#allocation2 + $0xd8] sm:$0xf] %v772_v48  ;;  %v14902_v41 = vld [vmem:[#allocation2 + $0x28] ss:$164 sps:$4 sm:$0xff]   ;;  %v794_v48 = vshrl.u32 %v12396_v37, 16 }
 0x1bc   : > { %10238 = vmatpush1.bf16.msra.mxu0 %v14822_v51  ;;  %11309 = vmatpush1.bf16.msra.mxu1 %v14825_v53  ;;  %v14849_v51 = vld [vmem:[%s16733_s9 + $0xae8] ss:$16 sps:$4 sm:$0xff]   ;;  %v14854_v53 = vld [vmem:[%s16733_s9 + $0xb04] ss:$16 sps:$4 sm:$0xff]   ;;  %v12398_v44 = vld [vmem:[%s16730_s19 + $0x30] sm:$0xf] }
 0x1bd   : > { %10239 = vmatprep.subr.bf16.mxu0 %v14830_v57  ;;  %11310 = vmatprep.subr.bf16.mxu1 %v14833_v1  ;;  %v14855_v57 = vld [vmem:[%s16733_s9 + $0xb08] ss:$16 sps:$4 sm:$0xff]   ;;  %v14875_v1 = vld [vmem:[%s16733_s9 + $0xb6c] ss:$16 sps:$4 sm:$0xff]  }
 0x1c0   : > { %10240 = vmatpush1.bf16.msra.mxu0 %v14828_v5  ;;  %11311 = vmatpush1.bf16.msra.mxu1 %v14831_v7  ;;  %v14876_v5 = vld [vmem:[%s16733_s9 + $0xb80] ss:$16 sps:$4 sm:$0xff]   ;;  %v14879_v7 = vld [vmem:[%s16733_s9 + $0xb88] ss:$16 sps:$4 sm:$0xff]  }
 0x1c1   : > { %10241 = vmatprep.subr.bf16.mxu0 %v14836_v16  ;;  %11312 = vmatprep.subr.bf16.mxu1 %v14839_v22  ;;  %v12395_v16 = vld [vmem:[%s16730_s19 + $0x20] sm:$0x3]  ;;  %v727_v22 = vshrl.u32 %v693_v14, 16 }
 0x1c2   : > { %v775_v25 = vshrl.u32 %v12395_v16, 16  ;;  %v778_v26 = vshll.u32 %v12395_v16, 16 }
 0x1c3   : > { %v729_v29 = vrot.slane %v727_v22, 5  ;;  %v14922_v22 = vld [vmem:[%s16733_s9 + $0xc4c] ss:$16 sps:$4 sm:$0xff]  }
 0x1c4   : > { %10242 = vmatpush1.bf16.msra.mxu0 %v14834_v27  ;;  %11313 = vmatpush1.bf16.msra.mxu1 %v14837_v33  ;;  %v732_v27 = vrot.slane %v730_v23, 6  ;;  %v777_v30 = vrot.slane %v775_v25, 5  ;;  %v780_v31 = vrot.slane %v778_v26, 6  ;;  %v14899_v33 = vld [vmem:[%s16733_s9 + $0xbe8] ss:$16 sps:$4 sm:$0xff]  }
 0x1c5   : > { %10243 = vmatprep.subr.bf16.mxu0 %v14842_v34  ;;  %11314 = vmatprep.subr.bf16.mxu1 %v14845_v40  ;;  %v12397_v40 = vld [vmem:[%s16730_s19 + $0x2c] sm:$0xf] }
 0x1c6   : > { %v733_v34 = vor.u32 %v732_v27, %v729_v29  ;;  %v781_v36 = vor.u32 %v780_v31, %v777_v30  ;;  %v14920_v29 = vld [vmem:[%s16733_s9 + $0xc48] ss:$16 sps:$4 sm:$0xff]  }
 0x1c8   : > { %10244 = vmatpush1.bf16.msra.mxu0 %v14840_v42  ;;  %11315 = vmatpush1.bf16.msra.mxu1 %v14843_v45  ;;  %v734_v39 = vsel %vm17259_vm8, %v725_v21, %v733_v34  ;;  %v782_v42 = vsel %vm17259_vm8, %v773_v24, %v781_v36  ;;  %v14905_v45 = vld [vmem:[%s16733_s9 + $0xc00] ss:$16 sps:$4 sm:$0xff]   ;;  %v14928_v34 = vld [vmem:[%s16733_s9 + $0xc6c] ss:$16 sps:$4 sm:$0xff]  }
 0x1c9   : > { %10245 = vmatprep.subr.bf16.mxu0 %v14848_v47  ;;  %11316 = vmatprep.subr.bf16.mxu1 %v14851_v49  ;;  %v14908_v47 = vld [vmem:[%s16733_s9 + $0xc08] ss:$16 sps:$4 sm:$0xff]   ;;  %740 = vst [vmem:[#allocation2 + $0x178] sm:$0xf] %v734_v39  ;;  %788 = vst [vmem:[#allocation2 + $0x17c] sm:$0xf] %v782_v42 }
 0x1ca   : > { %v797_v49 = vshll.u32 %v12396_v37, 16  ;;  %v14917_v24 = vld [vmem:[%s16733_s9 + $0xc40] ss:$16 sps:$4 sm:$0xff]   ;;  %v14931_v39 = vld [vmem:[%s16733_s9 + $0xc84] ss:$16 sps:$4 sm:$0xff]  }
 0x1cb   : > { %v14934_v42 = vld [vmem:[%s16733_s9 + $0xc8c] ss:$16 sps:$4 sm:$0xff]  }
 0x1cc   : > { %10246 = vmatpush1.bf16.msra.mxu0 %v14846_v50  ;;  %11317 = vmatpush1.bf16.msra.mxu1 %v14849_v51  ;;  %v803_v50 = vshrl.u32 %v12397_v40, 16  ;;  %v806_v51 = vshll.u32 %v12397_v40, 16 }
 0x1cd   : > { %10247 = vmatprep.subr.bf16.mxu0 %v14854_v53  ;;  %11318 = vmatprep.subr.bf16.mxu1 %v14857_v54  ;;  %v12400_v53 = vld [vmem:[%s16730_s19 + $0x3c] sm:$0xe]  ;;  %v14913_v54 = vld [vmem:[%s16733_s9 + $0xc24] ss:$16 sps:$4 sm:$0xff]  }
 0x1d0   : > { %10248 = vmatpush1.bf16.msra.mxu0 %v14852_v56  ;;  %11319 = vmatpush1.bf16.msra.mxu1 %v14855_v57  ;;  %v12538_v56 = vcombine.high %v17326_v38, %v17326_v38  ;;  %v813_v57 = vshrl.u32 %v12398_v44, 16 }
 0x1d1   : > { %10249 = vmatprep.subr.bf16.mxu0 %v14860_v35  ;;  %11320 = vmatprep.subr.bf16.mxu1 %v14863_v46  ;;  %v816_v35 = vshll.u32 %v12398_v44, 16  ;;  %v12401_v46 = vld [vmem:[%s16730_s19 + $0x40] sm:$0xf] }
 0x1d2   : > { %v14929_v44 = vld [vmem:[%s16733_s9 + $0xc80] ss:$16 sps:$4 sm:$0xff]  }
 0x1d4   : > { %10250 = vmatpush1.bf16.msra.mxu0 %v14858_v58  ;;  %11321 = vmatpush1.bf16.msra.mxu1 %v14861_v59  ;;  %v12402_v58 = vld [vmem:[%s16730_s19 + $0x44] sm:$0xf]  ;;  %v796_v59 = vrot.slane %v794_v48, 5  ;;  %v14940_v48 = vld [vmem:[%s16733_s9 + $0xcac] ss:$16 sps:$4 sm:$0xff]  }
 0x1d5   : > { %10251 = vmatprep.subr.bf16.mxu0 %v14866_v60  ;;  %11322 = vmatprep.subr.bf16.mxu1 %v14869_v61  ;;  %v799_v60 = vrot.slane %v797_v49, 6  ;;  %v805_v61 = vrot.slane %v803_v50, 5  ;;  %v864_v26 = vshll.u32 %v12402_v58, 16  ;;  %v14935_v49 = vld [vmem:[%s16733_s9 + $0xca0] ss:$16 sps:$4 sm:$0xff]  }
 0x1d6   : > { %v14938_v50 = vld [vmem:[%s16733_s9 + $0xca8] ss:$16 sps:$4 sm:$0xff]  }
 0x1d8   : > { %10252 = vmatpush1.bf16.msra.mxu0 %v14864_v62  ;;  %11323 = vmatpush1.bf16.msra.mxu1 %v14867_v63  ;;  %v808_v62 = vrot.slane %v806_v51, 6  ;;  %v14916_v63 = vld [vmem:[%s16733_s9 + $0xc2c] ss:$16 sps:$4 sm:$0xff]   ;;  %v14943_v51 = vld [vmem:[%s16733_s9 + $0xcc4] ss:$16 sps:$4 sm:$0xff]  }
 0x1d9   : > { %10253 = vmatprep.subr.bf16.mxu0 %v14872_v0  ;;  %11324 = vmatprep.subr.bf16.mxu1 %v14875_v1  ;;  %v815_v0 = vrot.slane %v813_v57, 5  ;;  %v818_v1 = vrot.slane %v816_v35, 6  ;;  %v14949_v57 = vld [vmem:[%s16733_s9 + $0xce4] ss:$16 sps:$4 sm:$0xff]   ;;  %v14952_v35 = vld [vmem:[%s16733_s9 + $0xcec] ss:$16 sps:$4 sm:$0xff]  }
 0x1dc   : > { %10254 = vmatpush1.bf16.msra.mxu0 %v14870_v2  ;;  %11325 = vmatpush1.bf16.msra.mxu1 %v14873_v3  ;;  %v842_v2 = vshrl.u32 %v12400_v53, 16  ;;  %v845_v3 = vshll.u32 %v12400_v53, 16  ;;  %v14946_v53 = vld [vmem:[%s16733_s9 + $0xccc] ss:$16 sps:$4 sm:$0xff]  }
 0x1dd   : > { %10255 = vmatprep.subr.bf16.mxu0 %v14878_v4  ;;  %11326 = vmatprep.subr.bf16.mxu1 %v14881_v52  ;;  %v14911_v4 = vld [vmem:[%s16733_s9 + $0xc20] ss:$16 sps:$4 sm:$0xff]   ;;  %v800_v52 = vor.u32 %v799_v60, %v796_v59  ;;  %v14955_v59 = vld [vmem:[%s16733_s9 + $0xd04] ss:$16 sps:$4 sm:$0xff]   ;;  %v14958_v60 = vld [vmem:[%s16733_s9 + $0xd0c] ss:$16 sps:$4 sm:$0xff]  }
 0x1e0   : > { %10256 = vmatpush1.bf16.msra.mxu0 %v14876_v5  ;;  %11327 = vmatpush1.bf16.msra.mxu1 %v14879_v7  ;;  %v809_v5 = vor.u32 %v808_v62, %v805_v61  ;;  %v851_v7 = vshrl.u32 %v12401_v46, 16  ;;  %v14953_v61 = vld [vmem:[%s16733_s9 + $0xd00] ss:$16 sps:$4 sm:$0xff]   ;;  %v14956_v62 = vld [vmem:[%s16733_s9 + $0xd08] ss:$16 sps:$4 sm:$0xff]  }
 0x1e1   : > { %10257 = vmatprep.subr.bf16.mxu0 %v14884_v55  ;;  %11328 = vmatprep.subr.bf16.mxu1 %v14887_v6  ;;  %v854_v55 = vshll.u32 %v12401_v46, 16  ;;  %v14914_v6 = vld [vmem:[%s16733_s9 + $0xc28] ss:$16 sps:$4 sm:$0xff]   ;;  %v14947_v46 = vld [vmem:[%s16733_s9 + $0xce0] ss:$16 sps:$4 sm:$0xff]  }
 0x1e2   : > { %v811_v14 = vrot.slane %v809_v5, 4  ;;  %v853_v16 = vrot.slane %v851_v7, 5  ;;  %v14973_v7 = vld [vmem:[%s16733_s9 + $0xd64] ss:$16 sps:$4 sm:$0xff]  }
 0x1e4   : > { %10258 = vmatpush1.bf16.msra.mxu0 %v14882_v8  ;;  %11329 = vmatpush1.bf16.msra.mxu1 %v14885_v9  ;;  %v17346_v8 = vor.u32 %v818_v1, %v815_v0  ;;  %v844_v9 = vrot.slane %v842_v2, 5  ;;  %v14964_v0 = vld [vmem:[%s16733_s9 + $0xd2c] ss:$16 sps:$4 sm:$0xff]   ;;  %v14959_v1 = vld [vmem:[%s16733_s9 + $0xd20] ss:$16 sps:$4 sm:$0xff]  }
 0x1e5   : > { %10259 = vmatprep.subr.bf16.mxu0 %v14891_v10  ;;  %11330 = vmatprep.subr.bf16.mxu1 %v14894_v11  ;;  %v847_v10 = vrot.slane %v845_v3, 6  ;;  %v861_v11 = vshrl.u32 %v12402_v58, 16  ;;  %v14950_v58 = vld [vmem:[%s16733_s9 + $0xce8] ss:$16 sps:$4 sm:$0xff]   ;;  %v14967_v3 = vld [vmem:[%s16733_s9 + $0xd44] ss:$16 sps:$4 sm:$0xff]  }
 0x1e6   : > { %v820_v27 = vsel %vm17259_vm8, %v811_v14, %v17346_v8  ;;  %v14962_v2 = vld [vmem:[%s16733_s9 + $0xd28] ss:$16 sps:$4 sm:$0xff]   ;;  %v14971_v14 = vld [vmem:[%s16733_s9 + $0xd60] ss:$16 sps:$4 sm:$0xff]  }
 0x1e7   : > { %v848_v23 = vor.u32 %v847_v10, %v844_v9  ;;  %v863_v25 = vrot.slane %v861_v11, 5  ;;  %835 = vst [vmem:[#allocation2 + $0xdc] sm:$0xf] %v820_v27  ;;  %v12403_v11 = vld [vmem:[%s16730_s19 + $0x48] sm:$0x3] }
 0x1e8   : > { %10260 = vmatpush1.bf16.msra.mxu0 %v14889_v12  ;;  %11331 = vmatpush1.bf16.msra.mxu1 %v14892_v13  ;;  %v14919_v12 = vld [vmem:[%s16733_s9 + $0xc44] ss:$16 sps:$4 sm:$0xff]   ;;  %v801_v13 = vrot.slane %v800_v52, 4  ;;  %v14965_v52 = vld [vmem:[%s16733_s9 + $0xd40] ss:$16 sps:$4 sm:$0xff]  }
 0x1e9   : > { %10261 = vmatprep.subr.bf16.mxu0 %v14898_v19  ;;  %11332 = vmatprep.subr.bf16.mxu1 %v14901_v28  ;;  %v856_v19 = vrot.slane %v854_v55, 6  ;;  %v12537_v28 = vcombine.low %v17326_v38, %v17326_v38  ;;  %v849_v30 = vrot.slane %v848_v23, 4  ;;  %v15005_v38 = vld [vmem:[#allocation2 + $0x34] ss:$164 sps:$4 sm:$0xff]   ;;  %v14979_v23 = vld [vmem:[%s16733_s9 + $0xd84] ss:$16 sps:$4 sm:$0xff]  }
 0x1ea   : > { %v810_v21 = vsel %vm17259_vm8, %v801_v13, %v809_v5  ;;  %v14968_v5 = vld [vmem:[%s16733_s9 + $0xd48] ss:$16 sps:$4 sm:$0xff]   ;;  %v14976_v55 = vld [vmem:[%s16733_s9 + $0xd6c] ss:$16 sps:$4 sm:$0xff]   ;;  %v874_v13 = vshll.u32 %v12403_v11, 16 }
 0x1eb   : > { %834 = vst [vmem:[#allocation2 + $0x38] sm:$0xf] %v810_v21  ;;  %v857_v31 = vor.u32 %v856_v19, %v853_v16  ;;  %v14974_v16 = vld [vmem:[%s16733_s9 + $0xd68] ss:$16 sps:$4 sm:$0xff]   ;;  %v821_v21 = vrot.slane %v17346_v8, 4 }
 0x1ec   : > { %10262 = vmatpush1.bf16.msra.mxu0 %v14896_v32  ;;  %11333 = vmatpush1.bf16.msra.mxu1 %v14899_v33  ;;  %v866_v32 = vrot.slane %v864_v26, 6  ;;  %v14925_v33 = vld [vmem:[%s16733_s9 + $0xc64] ss:$16 sps:$4 sm:$0xff]  }
 0x1ed   : > { %10282 = vmatprep.subr.bf16.mxu0 %v14907_v20  ;;  %11353 = vmatprep.subr.bf16.mxu1 %v14910_v43  ;;  %v858_v36 = vsel %vm17259_vm8, %v849_v30, %v857_v31  ;;  %v859_v37 = vrot.slane %v857_v31, 4  ;;  %v14926_v43 = vld [vmem:[%s16733_s9 + $0xc68] ss:$16 sps:$4 sm:$0xff]   ;;  %v14977_v30 = vld [vmem:[%s16733_s9 + $0xd80] ss:$16 sps:$4 sm:$0xff]  }
 0x1ee   : > { %v17363_v20 = vor.u32 %v866_v32, %v863_v25  ;;  %882 = vst [vmem:[#allocation2 + $0x3c] sm:$0xf] %v858_v36  ;;  %v14982_v25 = vld [vmem:[%s16733_s9 + $0xd8c] ss:$16 sps:$4 sm:$0xff]   ;;  %v14980_v31 = vld [vmem:[%s16733_s9 + $0xd88] ss:$16 sps:$4 sm:$0xff]  }
 0x1ef   : > { %10264 = vmatmul.mubr.bf16.vlgmr.msra.gmra.mrb[0].mxu0 %v14902_v41  ;;  %11335 = vmatmul.mubr.bf16.vlgmr.msra.gmra.mrb[0].mxu1 %v14902_v41  ;;  %v14923_v41 = vld [vmem:[%s16733_s9 + $0xc60] ss:$16 sps:$4 sm:$0xff]   ;;  %v14985_v8 = vld [vmem:[%s16733_s9 + $0xda4] ss:$16 sps:$4 sm:$0xff]  }
 0x1f0   : > { %10283 = vmatpush1.bf16.msra.mxu0 %v14905_v45  ;;  %11354 = vmatpush1.bf16.msra.mxu1 %v14908_v47  ;;  %v868_v40 = vsel %vm17259_vm8, %v859_v37, %v17363_v20  ;;  %v14932_v45 = vld [vmem:[%s16733_s9 + $0xc88] ss:$16 sps:$4 sm:$0xff]   ;;  %v14937_v47 = vld [vmem:[%s16733_s9 + $0xca4] ss:$16 sps:$4 sm:$0xff]   ;;  %v14983_v36 = vld [vmem:[%s16733_s9 + $0xda0] ss:$16 sps:$4 sm:$0xff]  }
 0x1f1   : > { %10284 = vmatprep.subr.bf16.mxu0 %v14913_v54  ;;  %11355 = vmatprep.subr.bf16.mxu1 %v14916_v63  ;;  %883 = vst [vmem:[#allocation2 + $0xe0] sm:$0xf] %v868_v40  ;;  %v14941_v54 = vld [vmem:[%s16733_s9 + $0xcc0] ss:$16 sps:$4 sm:$0xff]   ;;  %v14961_v63 = vld [vmem:[%s16733_s9 + $0xd24] ss:$16 sps:$4 sm:$0xff]  }
 0x1f2   : > { %10273 = vmatprep.mubr.bf16.mxu0 %v12538_v56  ;;  %11344 = vmatprep.mubr.bf16.mxu1 %v12538_v56  ;;  %v14944_v56 = vld [vmem:[%s16733_s9 + $0xcc8] ss:$16 sps:$4 sm:$0xff]   ;;  %v14995_v40 = vld [vmem:[%s16733_s9 + $0xdcc] ss:$16 sps:$4 sm:$0xff]  }
 0x1f3   : > { %v14986_v37 = vld [vmem:[%s16733_s9 + $0xda8] ss:$16 sps:$4 sm:$0xff]  }
 0x1f4   : > { %10285 = vmatpush1.bf16.msra.mxu0 %v14911_v4  ;;  %11356 = vmatpush1.bf16.msra.mxu1 %v14914_v6  ;;  %v14970_v4 = vld [vmem:[%s16733_s9 + $0xd4c] ss:$16 sps:$4 sm:$0xff]   ;;  %v12399_v6 = vld [vmem:[%s16730_s19 + $0x34] sm:$0x3] }
 0x1f5   : > { %10286 = vmatprep.subr.bf16.mxu0 %v14919_v12  ;;  %11357 = vmatprep.subr.bf16.mxu1 %v14922_v22  ;;  %v823_v9 = vshrl.u32 %v12399_v6, 16  ;;  %v826_v10 = vshll.u32 %v12399_v6, 16  ;;  %v871_v12 = vshrl.u32 %v12403_v11, 16  ;;  %v15012_v6 = vld [vmem:[%s16733_s9 + $0xe20] ss:$16 sps:$4 sm:$0xff]  }
 0x1f6   : > { %v15023_v11 = vld [vmem:[%s16733_s9 + $0xe4c] ss:$16 sps:$4 sm:$0xff]  }
 0x1f7   : > { %10274 = vmatmul.mubr.bf16.gmra.mrb[4].mxu0 %v12537_v28  ;;  %11345 = vmatmul.mubr.bf16.gmra.mrb[4].mxu1 %v12537_v28  ;;  %v825_v19 = vrot.slane %v823_v9, 5  ;;  %v828_v22 = vrot.slane %v826_v10, 6  ;;  %v873_v26 = vrot.slane %v871_v12, 5  ;;  %v876_v28 = vrot.slane %v874_v13, 6  ;;  %v15015_v9 = vld [vmem:[%s16733_s9 + $0xe28] ss:$16 sps:$4 sm:$0xff]  }
 0x1f8   : > { %10287 = vmatpush1.bf16.msra.mxu0 %v14917_v24  ;;  %11358 = vmatpush1.bf16.msra.mxu1 %v14920_v29  ;;  %v869_v29 = vrot.slane %v17363_v20, 4  ;;  %v886_v20 = vld [vmem:[%s16730_s19 + $0x4] sm:$0xf]  ;;  %v15018_v12 = vld [vmem:[%s16733_s9 + $0xe40] ss:$16 sps:$4 sm:$0xff]  }
 0x1f9   : > { %10288 = vmatprep.subr.bf16.mxu0 %v14925_v33  ;;  %11359 = vmatprep.subr.bf16.mxu1 %v14928_v34  ;;  %v829_v24 = vor.u32 %v828_v22, %v825_v19  ;;  %v877_v27 = vor.u32 %v876_v28, %v873_v26  ;;  %v14988_v33 = vld [vmem:[%s16733_s9 + $0xdac] ss:$16 sps:$4 sm:$0xff]   ;;  %v15020_v10 = vld [vmem:[%s16733_s9 + $0xe44] ss:$16 sps:$4 sm:$0xff]  }
 0x1fa   : > { %10314 = vmatprep.mubr.bf16.mxu0 %v15005_v38  ;;  %11385 = vmatprep.mubr.bf16.mxu1 %v15005_v38  ;;  %v14992_v38 = vld [vmem:[%s16733_s9 + $0xdc4] ss:$16 sps:$4 sm:$0xff]   ;;  %v15029_v19 = vld [vmem:[%s16733_s9 + $0xe6c] ss:$16 sps:$4 sm:$0xff]  }
 0x1fb   : > { %v830_v32 = vsel %vm17259_vm8, %v821_v21, %v829_v24  ;;  %v878_v34 = vsel %vm17259_vm8, %v869_v29, %v877_v27  ;;  %v15106_v22 = vld [vmem:[#allocation2 + $0x3c] ss:$164 sps:$4 sm:$0xff]   ;;  %v15035_v28 = vld [vmem:[%s16733_s9 + $0xe8c] ss:$16 sps:$4 sm:$0xff]   ;;  %v15033_v24 = vld [vmem:[%s16733_s9 + $0xe88] ss:$16 sps:$4 sm:$0xff]  }
 0x1fc   : > { %10289 = vmatpush1.bf16.msra.mxu0 %v14923_v41  ;;  %11360 = vmatpush1.bf16.msra.mxu1 %v14926_v43  ;;  %836 = vst [vmem:[#allocation2 + $0x180] sm:$0xf] %v830_v32  ;;  %884 = vst [vmem:[#allocation2 + $0x184] sm:$0xf] %v878_v34  ;;  %v898_v41 = vrot.slane %v886_v20, 6 }
 0x1fd   : > { %10290 = vmatprep.subr.bf16.mxu0 %v14931_v39  ;;  %11361 = vmatprep.subr.bf16.mxu1 %v14934_v42  ;;  %v885_v43 = vld [vmem:[%s16730_s19] sm:$0xc]  ;;  %v17423_v39 = vld [vmem:[%s16730_s19 + $0x8] sm:$0xf]  ;;  %v15032_v26 = vld [vmem:[%s16733_s9 + $0xe84] ss:$16 sps:$4 sm:$0xff]  }
 0x1fe   : > { %v12404_v42 = vrot.slane %v885_v43, 10  ;;  %v15030_v21 = vld [vmem:[%s16733_s9 + $0xe80] ss:$16 sps:$4 sm:$0xff]   ;;  %v15038_v29 = vld [vmem:[%s16733_s9 + $0xea4] ss:$16 sps:$4 sm:$0xff]  }
 0x1ff   : > { %v15041_v27 = vld [vmem:[%s16733_s9 + $0xeac] ss:$16 sps:$4 sm:$0xff]   ;;  %v15044_v32 = vld [vmem:[%s16733_s9 + $0xec4] ss:$16 sps:$4 sm:$0xff]   ;;  %v15045_v34 = vld [vmem:[%s16733_s9 + $0xec8] ss:$16 sps:$4 sm:$0xff]  }
 0x200   : > { %10291 = vmatpush1.bf16.msra.mxu0 %v14929_v44  ;;  %11362 = vmatpush1.bf16.msra.mxu1 %v14932_v45  ;;  %v900_v44 = vrot.slane %v898_v41, 4  ;;  %v12406_v45 = vld [vmem:[%s16730_s19 + $0x18] sm:$0xf]  ;;  %v15048_v20 = vld [vmem:[%s16733_s9 + $0xee0] ss:$16 sps:$4 sm:$0xff]  }
 0x201   : > { %10292 = vmatprep.subr.bf16.mxu0 %v14937_v47  ;;  %11363 = vmatprep.subr.bf16.mxu1 %v14940_v48  ;;  %v14990_v47 = vld [vmem:[%s16733_s9 + $0xdc0] ss:$16 sps:$4 sm:$0xff]   ;;  %v14993_v48 = vld [vmem:[%s16733_s9 + $0xdc8] ss:$16 sps:$4 sm:$0xff]  }
 0x202   : > { %v15054_v43 = vld [vmem:[%s16733_s9 + $0xf00] ss:$16 sps:$4 sm:$0xff]  }
 0x204   : > { %10293 = vmatpush1.bf16.msra.mxu0 %v14935_v49  ;;  %11364 = vmatpush1.bf16.msra.mxu1 %v14938_v50  ;;  %v901_v50 = vrot.slane %v17423_v39, 6  ;;  %v15086_v39 = vld [vmem:[%s16733_s9 + $0xfa4] ss:$16 sps:$4 sm:$0xff]  }
 0x205   : > { %10294 = vmatprep.subr.bf16.mxu0 %v14943_v51  ;;  %11365 = vmatprep.subr.bf16.mxu1 %v14946_v53  ;;  %v12409_v51 = vrot.slane %v12405_v18, 10  ;;  %v14999_v53 = vld [vmem:[%s16733_s9 + $0xde4] ss:$16 sps:$4 sm:$0xff]   ;;  %v15057_v18 = vld [vmem:[%s16733_s9 + $0xf08] ss:$16 sps:$4 sm:$0xff]  }
 0x208   : > { %10295 = vmatpush1.bf16.msra.mxu0 %v14941_v54  ;;  %11366 = vmatpush1.bf16.msra.mxu1 %v14944_v56  ;;  %v15002_v54 = vld [vmem:[%s16733_s9 + $0xdec] ss:$16 sps:$4 sm:$0xff]   ;;  %v899_v56 = vsel %vm17429_vm11, %v12404_v42, %v898_v41  ;;  %v15062_v42 = vld [vmem:[%s16733_s9 + $0xf24] ss:$16 sps:$4 sm:$0xff]  }
 0x209   : > { %10296 = vmatprep.subr.bf16.mxu0 %v14949_v57  ;;  %11367 = vmatprep.subr.bf16.mxu1 %v14952_v35  ;;  %v922_v57 = vrot.slane %v12406_v45, 6  ;;  %v14997_v35 = vld [vmem:[%s16733_s9 + $0xde0] ss:$16 sps:$4 sm:$0xff]   ;;  %909 = vst [vmem:[#allocation2 + $0x40] sm:$0xf] %v899_v56 }
 0x20a   : > { %v15059_v41 = vld [vmem:[%s16733_s9 + $0xf0c] ss:$16 sps:$4 sm:$0xff]   ;;  %v15060_v45 = vld [vmem:[%s16733_s9 + $0xf20] ss:$16 sps:$4 sm:$0xff]   ;;  %v15074_v56 = vld [vmem:[%s16733_s9 + $0xf64] ss:$16 sps:$4 sm:$0xff]  }
 0x20c   : > { %10297 = vmatpush1.bf16.msra.mxu0 %v14947_v46  ;;  %11368 = vmatpush1.bf16.msra.mxu1 %v14950_v58  ;;  %v15000_v46 = vld [vmem:[%s16733_s9 + $0xde8] ss:$16 sps:$4 sm:$0xff]   ;;  %v902_v58 = vsel %vm17429_vm11, %v900_v44, %v901_v50  ;;  %v15065_v44 = vld [vmem:[%s16733_s9 + $0xf2c] ss:$16 sps:$4 sm:$0xff]  }
 0x20d   : > { %10298 = vmatprep.subr.bf16.mxu0 %v14955_v59  ;;  %11369 = vmatprep.subr.bf16.mxu1 %v14958_v60  ;;  %v17445_v59 = vld [vmem:[%s16730_s19 + $0x1c] sm:$0xf]  ;;  %910 = vst [vmem:[#allocation2 + $0xe4] sm:$0xf] %v902_v58  ;;  %v923_v60 = vsel %vm17429_vm11, %v12409_v51, %v922_v57  ;;  %v15080_v58 = vld [vmem:[%s16733_s9 + $0xf84] ss:$16 sps:$4 sm:$0xff]  }
 0x20e   : > { %933 = vst [vmem:[#allocation2 + $0x44] sm:$0xf] %v923_v60  ;;  %v15071_v51 = vld [vmem:[%s16733_s9 + $0xf4c] ss:$16 sps:$4 sm:$0xff]  }
 0x20f   : > { %v15083_v60 = vld [vmem:[%s16733_s9 + $0xf8c] ss:$16 sps:$4 sm:$0xff]  }
 0x210   : > { %10299 = vmatpush1.bf16.msra.mxu0 %v14953_v61  ;;  %11370 = vmatpush1.bf16.msra.mxu1 %v14956_v62  ;;  %v924_v61 = vrot.slane %v922_v57, 4  ;;  %v925_v62 = vrot.slane %v17445_v59, 6  ;;  %v15077_v57 = vld [vmem:[%s16733_s9 + $0xf6c] ss:$16 sps:$4 sm:$0xff]  }
 0x211   : > { %10300 = vmatprep.subr.bf16.mxu0 %v14961_v63  ;;  %11371 = vmatprep.subr.bf16.mxu1 %v14964_v0  ;;  %v15008_v63 = vld [vmem:[%s16733_s9 + $0xe04] ss:$16 sps:$4 sm:$0xff]   ;;  %v15011_v0 = vld [vmem:[%s16733_s9 + $0xe0c] ss:$16 sps:$4 sm:$0xff]  }
 0x214   : > { %10301 = vmatpush1.bf16.msra.mxu0 %v14959_v1  ;;  %11372 = vmatpush1.bf16.msra.mxu1 %v14962_v2  ;;  %v15003_v1 = vld [vmem:[#allocation2 + $0x30] ss:$164 sps:$4 sm:$0xff]   ;;  %v1717_v2 = vld [vmem:[#allocation2 + $0x178] sm:$0xff] }
 0x215   : > { %10302 = vmatprep.subr.bf16.mxu0 %v14967_v3  ;;  %11373 = vmatprep.subr.bf16.mxu1 %v14970_v4  ;;  %v926_v3 = vsel %vm17429_vm11, %v924_v61, %v925_v62  ;;  %v15006_v4 = vld [vmem:[%s16733_s9 + $0xe00] ss:$16 sps:$4 sm:$0xff]   ;;  %v12539_v13 = vcombine.low %v1717_v2, %v1717_v2  ;;  %v888_v61 = vld [vmem:[%s16730_s19 + $0xc] sm:$0x3] }
 0x216   : > { %934 = vst [vmem:[#allocation2 + $0xe8] sm:$0xf] %v926_v3 }
 0x218   : > { %10303 = vmatpush1.bf16.msra.mxu0 %v14965_v52  ;;  %11374 = vmatpush1.bf16.msra.mxu1 %v14968_v5  ;;  %v15009_v52 = vld [vmem:[%s16733_s9 + $0xe08] ss:$16 sps:$4 sm:$0xff]   ;;  %v15014_v5 = vld [vmem:[%s16733_s9 + $0xe24] ss:$16 sps:$4 sm:$0xff]  }
 0x219   : > { %10304 = vmatprep.subr.bf16.mxu0 %v14973_v7  ;;  %11375 = vmatprep.subr.bf16.mxu1 %v14976_v55  ;;  %v15017_v7 = vld [vmem:[%s16733_s9 + $0xe2c] ss:$16 sps:$4 sm:$0xff]   ;;  %v12540_v55 = vcombine.high %v1717_v2, %v1717_v2  ;;  %v927_v2 = vrot.slane %v925_v62, 4  ;;  %v15084_v62 = vld [vmem:[%s16733_s9 + $0xfa0] ss:$16 sps:$4 sm:$0xff]  }
 0x21c   : > { %10305 = vmatpush1.bf16.msra.mxu0 %v14971_v14  ;;  %11376 = vmatpush1.bf16.msra.mxu1 %v14974_v16  ;;  %v15021_v14 = vld [vmem:[%s16733_s9 + $0xe48] ss:$16 sps:$4 sm:$0xff]   ;;  %v15026_v16 = vld [vmem:[%s16733_s9 + $0xe64] ss:$16 sps:$4 sm:$0xff]  }
 0x21d   : > { %10306 = vmatprep.subr.bf16.mxu0 %v14979_v23  ;;  %11377 = vmatprep.subr.bf16.mxu1 %v14982_v25  ;;  %v15024_v23 = vld [vmem:[%s16733_s9 + $0xe60] ss:$16 sps:$4 sm:$0xff]   ;;  %v15027_v25 = vld [vmem:[%s16733_s9 + $0xe68] ss:$16 sps:$4 sm:$0xff]  }
 0x220   : > { %10307 = vmatpush1.bf16.msra.mxu0 %v14977_v30  ;;  %11378 = vmatpush1.bf16.msra.mxu1 %v14980_v31  ;;  %v15036_v30 = vld [vmem:[%s16733_s9 + $0xea0] ss:$16 sps:$4 sm:$0xff]   ;;  %v15039_v31 = vld [vmem:[%s16733_s9 + $0xea8] ss:$16 sps:$4 sm:$0xff]  }
 0x221   : > { %10308 = vmatprep.subr.bf16.mxu0 %v14985_v8  ;;  %11379 = vmatprep.subr.bf16.mxu1 %v14988_v33  ;;  %v15047_v8 = vld [vmem:[%s16733_s9 + $0xecc] ss:$16 sps:$4 sm:$0xff]   ;;  %v15042_v33 = vld [vmem:[%s16733_s9 + $0xec0] ss:$16 sps:$4 sm:$0xff]  }
 0x224   : > { %10309 = vmatpush1.bf16.msra.mxu0 %v14983_v36  ;;  %11380 = vmatpush1.bf16.msra.mxu1 %v14986_v37  ;;  %v15050_v36 = vld [vmem:[%s16733_s9 + $0xee4] ss:$16 sps:$4 sm:$0xff]   ;;  %v15053_v37 = vld [vmem:[%s16733_s9 + $0xeec] ss:$16 sps:$4 sm:$0xff]  }
 0x225   : > { %10310 = vmatprep.subr.bf16.mxu0 %v14992_v38  ;;  %11381 = vmatprep.subr.bf16.mxu1 %v14995_v40  ;;  %v15051_v38 = vld [vmem:[%s16733_s9 + $0xee8] ss:$16 sps:$4 sm:$0xff]   ;;  %v15056_v40 = vld [vmem:[%s16733_s9 + $0xf04] ss:$16 sps:$4 sm:$0xff]  }
 0x228   : > { %10311 = vmatpush1.bf16.msra.mxu0 %v14990_v47  ;;  %11382 = vmatpush1.bf16.msra.mxu1 %v14993_v48  ;;  %v15063_v47 = vld [vmem:[%s16733_s9 + $0xf28] ss:$16 sps:$4 sm:$0xff]   ;;  %v15068_v48 = vld [vmem:[%s16733_s9 + $0xf44] ss:$16 sps:$4 sm:$0xff]  }
 0x229   : > { %10312 = vmatprep.subr.bf16.mxu0 %v14999_v53  ;;  %11383 = vmatprep.subr.bf16.mxu1 %v15002_v54  ;;  %v15066_v53 = vld [vmem:[%s16733_s9 + $0xf40] ss:$16 sps:$4 sm:$0xff]   ;;  %v15069_v54 = vld [vmem:[%s16733_s9 + $0xf48] ss:$16 sps:$4 sm:$0xff]  }
 0x22c   : > { %10313 = vmatpush1.bf16.msra.mxu0 %v14997_v35  ;;  %11384 = vmatpush1.bf16.msra.mxu1 %v15000_v46  ;;  %v15072_v35 = vld [vmem:[%s16733_s9 + $0xf60] ss:$16 sps:$4 sm:$0xff]   ;;  %v15075_v46 = vld [vmem:[%s16733_s9 + $0xf68] ss:$16 sps:$4 sm:$0xff]  }
 0x22d   : > { %10333 = vmatprep.subr.bf16.mxu0 %v15008_v63  ;;  %11404 = vmatprep.subr.bf16.mxu1 %v15011_v0  ;;  %v903_v63 = vrot.slane %v901_v50, 4  ;;  %v904_v0 = vrot.slane %v888_v61, 6  ;;  %v15089_v50 = vld [vmem:[%s16733_s9 + $0xfac] ss:$16 sps:$4 sm:$0xff]   ;;  %v15133_v61 = vld [vmem:[%s16733_s9 + $0x1084] ss:$16 sps:$4 sm:$0xff]  }
 0x22f   : > { %10315 = vmatmul.mubr.bf16.vlgmr.msra.gmra.mrb[0].mxu0 %v15003_v1  ;;  %11386 = vmatmul.mubr.bf16.vlgmr.msra.gmra.mrb[0].mxu1 %v15003_v1  ;;  %v12408_v1 = vld [vmem:[%s16730_s19 + $0x20] sm:$0x3] }
 0x230   : > { %10334 = vmatpush1.bf16.msra.mxu0 %v15006_v4  ;;  %11405 = vmatpush1.bf16.msra.mxu1 %v15009_v52  ;;  %v928_v3 = vrot.slane %v12408_v1, 6  ;;  %v15078_v4 = vld [vmem:[%s16733_s9 + $0xf80] ss:$16 sps:$4 sm:$0xff]   ;;  %v15081_v52 = vld [vmem:[%s16733_s9 + $0xf88] ss:$16 sps:$4 sm:$0xff]  }
 0x231   : > { %10335 = vmatprep.subr.bf16.mxu0 %v15014_v5  ;;  %11406 = vmatprep.subr.bf16.mxu1 %v15017_v7  ;;  %v905_v5 = vsel %vm17429_vm11, %v903_v63, %v904_v0  ;;  %v15087_v7 = vld [vmem:[%s16733_s9 + $0xfa8] ss:$16 sps:$4 sm:$0xff]   ;;  %v15136_v63 = vld [vmem:[%s16733_s9 + $0x108c] ss:$16 sps:$4 sm:$0xff]   ;;  %v15131_v0 = vld [vmem:[%s16733_s9 + $0x1080] ss:$16 sps:$4 sm:$0xff]  }
 0x232   : > { %10324 = vmatprep.mubr.bf16.mxu0 %v12540_v55  ;;  %11395 = vmatprep.mubr.bf16.mxu1 %v12540_v55  ;;  %911 = vst [vmem:[#allocation2 + $0x188] sm:$0xf] %v905_v5  ;;  %v929_v59 = vsel %vm17429_vm11, %v927_v2, %v928_v3  ;;  %v12411_v55 = vld [vmem:[%s16730_s19 + $0x2c] sm:$0xf]  ;;  %v15134_v1 = vld [vmem:[%s16733_s9 + $0x1088] ss:$16 sps:$4 sm:$0xff]  }
 0x233   : > { %935 = vst [vmem:[#allocation2 + $0x18c] sm:$0xf] %v929_v59  ;;  %v15139_v2 = vld [vmem:[%s16733_s9 + $0x10a4] ss:$16 sps:$4 sm:$0xff]   ;;  %v15142_v3 = vld [vmem:[%s16733_s9 + $0x10ac] ss:$16 sps:$4 sm:$0xff]  }
 0x234   : > { %10336 = vmatpush1.bf16.msra.mxu0 %v15012_v6  ;;  %11407 = vmatpush1.bf16.msra.mxu1 %v15015_v9  ;;  %v15093_v6 = vld [vmem:[%s16733_s9 + $0xfc4] ss:$16 sps:$4 sm:$0xff]   ;;  %v15096_v9 = vld [vmem:[%s16733_s9 + $0xfcc] ss:$16 sps:$4 sm:$0xff]   ;;  %v15146_v59 = vld [vmem:[%s16733_s9 + $0x10c8] ss:$16 sps:$4 sm:$0xff]  }
 0x235   : > { %10337 = vmatprep.subr.bf16.mxu0 %v15020_v10  ;;  %11408 = vmatprep.subr.bf16.mxu1 %v15023_v11  ;;  %v946_v10 = vrot.slane %v12411_v55, 6  ;;  %v12410_v11 = vld [vmem:[%s16730_s19 + $0x28] sm:$0xc]  ;;  %v15145_v5 = vld [vmem:[%s16733_s9 + $0x10c4] ss:$16 sps:$4 sm:$0xff]  }
 0x236   : > { %v15149_v55 = vld [vmem:[%s16733_s9 + $0x10e0] ss:$16 sps:$4 sm:$0xff]  }
 0x237   : > { %10325 = vmatmul.mubr.bf16.gmra.mrb[4].mxu0 %v12539_v13  ;;  %11396 = vmatmul.mubr.bf16.gmra.mrb[4].mxu1 %v12539_v13  ;;  %v12415_v13 = vld [vmem:[%s16730_s19 + $0x3c] sm:$0xc] }
 0x238   : > { %10338 = vmatpush1.bf16.msra.mxu0 %v15018_v12  ;;  %11409 = vmatpush1.bf16.msra.mxu1 %v15021_v14  ;;  %v17525_v12 = vld [vmem:[%s16730_s19 + $0x30] sm:$0xf]  ;;  %v12414_v14 = vrot.slane %v12410_v11, 10 }
 0x239   : > { %10339 = vmatprep.subr.bf16.mxu0 %v15026_v16  ;;  %11410 = vmatprep.subr.bf16.mxu1 %v15029_v19  ;;  %v948_v16 = vrot.slane %v946_v10, 4  ;;  %v949_v19 = vrot.slane %v17525_v12, 6  ;;  %v15155_v11 = vld [vmem:[%s16733_s9 + $0x1100] ss:$16 sps:$4 sm:$0xff]   ;;  %v15187_v12 = vld [vmem:[%s16733_s9 + $0x11a4] ss:$16 sps:$4 sm:$0xff]  }
 0x23a   : > { %10365 = vmatprep.mubr.bf16.mxu0 %v15106_v22  ;;  %11436 = vmatprep.mubr.bf16.mxu1 %v15106_v22  ;;  %v12416_v22 = vld [vmem:[%s16730_s19 + $0x40] sm:$0xf] }
 0x23c   : > { %10340 = vmatpush1.bf16.msra.mxu0 %v15024_v23  ;;  %11411 = vmatpush1.bf16.msra.mxu1 %v15027_v25  ;;  %v12419_v23 = vrot.slane %v12415_v13, 10  ;;  %v15091_v25 = vld [vmem:[%s16733_s9 + $0xfc0] ss:$16 sps:$4 sm:$0xff]   ;;  %v15158_v13 = vld [vmem:[%s16733_s9 + $0x1108] ss:$16 sps:$4 sm:$0xff]  }
 0x23d   : > { %10341 = vmatprep.subr.bf16.mxu0 %v15032_v26  ;;  %11412 = vmatprep.subr.bf16.mxu1 %v15035_v28  ;;  %v15094_v26 = vld [vmem:[%s16733_s9 + $0xfc8] ss:$16 sps:$4 sm:$0xff]   ;;  %v17533_v28 = vld [vmem:[%s16730_s19 + $0x44] sm:$0xf] }
 0x240   : > { %10342 = vmatpush1.bf16.msra.mxu0 %v15030_v21  ;;  %11413 = vmatpush1.bf16.msra.mxu1 %v15033_v24  ;;  %v15100_v21 = vld [vmem:[%s16733_s9 + $0xfe4] ss:$16 sps:$4 sm:$0xff]   ;;  %v15103_v24 = vld [vmem:[%s16733_s9 + $0xfec] ss:$16 sps:$4 sm:$0xff]  }
 0x241   : > { %10343 = vmatprep.subr.bf16.mxu0 %v15038_v29  ;;  %11414 = vmatprep.subr.bf16.mxu1 %v15041_v27  ;;  %v947_v29 = vsel %vm17429_vm11, %v12414_v14, %v946_v10  ;;  %v950_v27 = vsel %vm17429_vm11, %v948_v16, %v949_v19  ;;  %v15160_v10 = vld [vmem:[%s16733_s9 + $0x110c] ss:$16 sps:$4 sm:$0xff]   ;;  %v15163_v14 = vld [vmem:[%s16733_s9 + $0x1124] ss:$16 sps:$4 sm:$0xff]  }
 0x242   : > { %957 = vst [vmem:[#allocation2 + $0x48] sm:$0xf] %v947_v29  ;;  %958 = vst [vmem:[#allocation2 + $0xec] sm:$0xf] %v950_v27  ;;  %v15166_v16 = vld [vmem:[%s16733_s9 + $0x112c] ss:$16 sps:$4 sm:$0xff]  }
 0x243   : > { %v15175_v29 = vld [vmem:[%s16733_s9 + $0x1164] ss:$16 sps:$4 sm:$0xff]   ;;  %v15178_v27 = vld [vmem:[%s16733_s9 + $0x116c] ss:$16 sps:$4 sm:$0xff]  }
 0x244   : > { %10344 = vmatpush1.bf16.msra.mxu0 %v15036_v30  ;;  %11415 = vmatpush1.bf16.msra.mxu1 %v15039_v31  ;;  %v970_v30 = vrot.slane %v12416_v22, 6  ;;  %v15098_v31 = vld [vmem:[%s16733_s9 + $0xfe0] ss:$16 sps:$4 sm:$0xff]  }
 0x245   : > { %10345 = vmatprep.subr.bf16.mxu0 %v15044_v32  ;;  %11416 = vmatprep.subr.bf16.mxu1 %v15047_v8  ;;  %v15101_v32 = vld [vmem:[%s16733_s9 + $0xfe8] ss:$16 sps:$4 sm:$0xff]   ;;  %v973_v8 = vrot.slane %v17533_v28, 6  ;;  %v15161_v22 = vld [vmem:[%s16733_s9 + $0x1120] ss:$16 sps:$4 sm:$0xff]  }
 0x248   : > { %10346 = vmatpush1.bf16.msra.mxu0 %v15042_v33  ;;  %11417 = vmatpush1.bf16.msra.mxu1 %v15045_v34  ;;  %v971_v33 = vsel %vm17429_vm11, %v12419_v23, %v970_v30  ;;  %v972_v34 = vrot.slane %v970_v30, 4  ;;  %v15164_v23 = vld [vmem:[%s16733_s9 + $0x1128] ss:$16 sps:$4 sm:$0xff]   ;;  %v15173_v30 = vld [vmem:[%s16733_s9 + $0x1160] ss:$16 sps:$4 sm:$0xff]  }
 0x249   : > { %10347 = vmatprep.subr.bf16.mxu0 %v15050_v36  ;;  %11418 = vmatprep.subr.bf16.mxu1 %v15053_v37  ;;  %v15109_v36 = vld [vmem:[%s16733_s9 + $0x1004] ss:$16 sps:$4 sm:$0xff]   ;;  %v15112_v37 = vld [vmem:[%s16733_s9 + $0x100c] ss:$16 sps:$4 sm:$0xff]   ;;  %981 = vst [vmem:[#allocation2 + $0x4c] sm:$0xf] %v971_v33 }
 0x24a   : > { %v15184_v33 = vld [vmem:[%s16733_s9 + $0x118c] ss:$16 sps:$4 sm:$0xff]  }
 0x24c   : > { %10348 = vmatpush1.bf16.msra.mxu0 %v15048_v20  ;;  %11419 = vmatpush1.bf16.msra.mxu1 %v15051_v38  ;;  %v15104_v20 = vld [vmem:[#allocation2 + $0x38] ss:$164 sps:$4 sm:$0xff]   ;;  %v1718_v38 = vld [vmem:[#allocation2 + $0x180] sm:$0xff] }
 0x24d   : > { %10349 = vmatprep.subr.bf16.mxu0 %v15056_v40  ;;  %11420 = vmatprep.subr.bf16.mxu1 %v15059_v41  ;;  %v974_v40 = vsel %vm17429_vm11, %v972_v34, %v973_v8  ;;  %v15107_v41 = vld [vmem:[%s16733_s9 + $0x1000] ss:$16 sps:$4 sm:$0xff]   ;;  %v12413_v34 = vld [vmem:[%s16730_s19 + $0x34] sm:$0x3] }
 0x24e   : > { %982 = vst [vmem:[#allocation2 + $0xf0] sm:$0xf] %v974_v40 }
 0x250   : > { %10350 = vmatpush1.bf16.msra.mxu0 %v15054_v43  ;;  %11421 = vmatpush1.bf16.msra.mxu1 %v15057_v18  ;;  %v15110_v43 = vld [vmem:[%s16733_s9 + $0x1008] ss:$16 sps:$4 sm:$0xff]   ;;  %v15115_v18 = vld [vmem:[%s16733_s9 + $0x1024] ss:$16 sps:$4 sm:$0xff]  }
 0x251   : > { %10351 = vmatprep.subr.bf16.mxu0 %v15062_v42  ;;  %11422 = vmatprep.subr.bf16.mxu1 %v15065_v44  ;;  %v15118_v42 = vld [vmem:[%s16733_s9 + $0x102c] ss:$16 sps:$4 sm:$0xff]   ;;  %v12542_v44 = vcombine.high %v1718_v38, %v1718_v38 }
 0x254   : > { %10352 = vmatpush1.bf16.msra.mxu0 %v15060_v45  ;;  %11423 = vmatpush1.bf16.msra.mxu1 %v15063_v47  ;;  %v15113_v45 = vld [vmem:[%s16733_s9 + $0x1020] ss:$16 sps:$4 sm:$0xff]   ;;  %v15116_v47 = vld [vmem:[%s16733_s9 + $0x1028] ss:$16 sps:$4 sm:$0xff]  }
 0x255   : > { %10353 = vmatprep.subr.bf16.mxu0 %v15068_v48  ;;  %11424 = vmatprep.subr.bf16.mxu1 %v15071_v51  ;;  %v15121_v48 = vld [vmem:[%s16733_s9 + $0x1044] ss:$16 sps:$4 sm:$0xff]   ;;  %v15124_v51 = vld [vmem:[%s16733_s9 + $0x104c] ss:$16 sps:$4 sm:$0xff]  }
 0x258   : > { %10354 = vmatpush1.bf16.msra.mxu0 %v15066_v53  ;;  %11425 = vmatpush1.bf16.msra.mxu1 %v15069_v54  ;;  %v15119_v53 = vld [vmem:[%s16733_s9 + $0x1040] ss:$16 sps:$4 sm:$0xff]   ;;  %v12541_v54 = vcombine.low %v1718_v38, %v1718_v38  ;;  %v975_v38 = vrot.slane %v973_v8, 4  ;;  %v985_v8 = vld [vmem:[%s16730_s19 + $0x4] sm:$0xf] }
 0x259   : > { %10355 = vmatprep.subr.bf16.mxu0 %v15074_v56  ;;  %11426 = vmatprep.subr.bf16.mxu1 %v15077_v57  ;;  %v15122_v56 = vld [vmem:[%s16733_s9 + $0x1048] ss:$16 sps:$4 sm:$0xff]   ;;  %v15127_v57 = vld [vmem:[%s16733_s9 + $0x1064] ss:$16 sps:$4 sm:$0xff]  }
 0x25c   : > { %10356 = vmatpush1.bf16.msra.mxu0 %v15072_v35  ;;  %11427 = vmatpush1.bf16.msra.mxu1 %v15075_v46  ;;  %v15130_v35 = vld [vmem:[%s16733_s9 + $0x106c] ss:$16 sps:$4 sm:$0xff]  }
 0x25d   : > { %10357 = vmatprep.subr.bf16.mxu0 %v15080_v58  ;;  %11428 = vmatprep.subr.bf16.mxu1 %v15083_v60  ;;  %v15207_v46 = vld [vmem:[#allocation2 + $0x44] ss:$164 sps:$4 sm:$0xff]   ;;  %v15125_v58 = vld [vmem:[%s16733_s9 + $0x1060] ss:$16 sps:$4 sm:$0xff]  }
 0x25e   : > { %v15128_v60 = vld [vmem:[%s16733_s9 + $0x1068] ss:$16 sps:$4 sm:$0xff]  }
 0x260   : > { %10358 = vmatpush1.bf16.msra.mxu0 %v15078_v4  ;;  %11429 = vmatpush1.bf16.msra.mxu1 %v15081_v52  ;;  %v15137_v4 = vld [vmem:[%s16733_s9 + $0x10a0] ss:$16 sps:$4 sm:$0xff]   ;;  %v15140_v52 = vld [vmem:[%s16733_s9 + $0x10a8] ss:$16 sps:$4 sm:$0xff]  }
 0x261   : > { %10359 = vmatprep.subr.bf16.mxu0 %v15086_v39  ;;  %11430 = vmatprep.subr.bf16.mxu1 %v15089_v50  ;;  %v15148_v39 = vld [vmem:[%s16733_s9 + $0x10cc] ss:$16 sps:$4 sm:$0xff]   ;;  %v15143_v50 = vld [vmem:[%s16733_s9 + $0x10c0] ss:$16 sps:$4 sm:$0xff]  }
 0x264   : > { %10360 = vmatpush1.bf16.msra.mxu0 %v15084_v62  ;;  %11431 = vmatpush1.bf16.msra.mxu1 %v15087_v7  ;;  %v15151_v62 = vld [vmem:[%s16733_s9 + $0x10e4] ss:$16 sps:$4 sm:$0xff]   ;;  %v15154_v7 = vld [vmem:[%s16733_s9 + $0x10ec] ss:$16 sps:$4 sm:$0xff]  }
 0x265   : > { %10361 = vmatprep.subr.bf16.mxu0 %v15093_v6  ;;  %11432 = vmatprep.subr.bf16.mxu1 %v15096_v9  ;;  %v15152_v6 = vld [vmem:[%s16733_s9 + $0x10e8] ss:$16 sps:$4 sm:$0xff]   ;;  %v15157_v9 = vld [vmem:[%s16733_s9 + $0x1104] ss:$16 sps:$4 sm:$0xff]  }
 0x268   : > { %10362 = vmatpush1.bf16.msra.mxu0 %v15091_v25  ;;  %11433 = vmatpush1.bf16.msra.mxu1 %v15094_v26  ;;  %v15169_v25 = vld [vmem:[%s16733_s9 + $0x1144] ss:$16 sps:$4 sm:$0xff]   ;;  %v15172_v26 = vld [vmem:[%s16733_s9 + $0x114c] ss:$16 sps:$4 sm:$0xff]  }
 0x269   : > { %10363 = vmatprep.subr.bf16.mxu0 %v15100_v21  ;;  %11434 = vmatprep.subr.bf16.mxu1 %v15103_v24  ;;  %v15167_v21 = vld [vmem:[%s16733_s9 + $0x1140] ss:$16 sps:$4 sm:$0xff]   ;;  %v15170_v24 = vld [vmem:[%s16733_s9 + $0x1148] ss:$16 sps:$4 sm:$0xff]  }
 0x26c   : > { %10364 = vmatpush1.bf16.msra.mxu0 %v15098_v31  ;;  %11435 = vmatpush1.bf16.msra.mxu1 %v15101_v32  ;;  %v15176_v31 = vld [vmem:[%s16733_s9 + $0x1168] ss:$16 sps:$4 sm:$0xff]   ;;  %v15181_v32 = vld [vmem:[%s16733_s9 + $0x1184] ss:$16 sps:$4 sm:$0xff]  }
 0x26d   : > { %10384 = vmatprep.subr.bf16.mxu0 %v15109_v36  ;;  %11455 = vmatprep.subr.bf16.mxu1 %v15112_v37  ;;  %v951_v36 = vrot.slane %v949_v19, 4  ;;  %v952_v37 = vrot.slane %v12413_v34, 6  ;;  %v15190_v19 = vld [vmem:[%s16733_s9 + $0x11ac] ss:$16 sps:$4 sm:$0xff]  }
 0x26f   : > { %10366 = vmatmul.mubr.bf16.vlgmr.msra.gmra.mrb[0].mxu0 %v15104_v20  ;;  %11437 = vmatmul.mubr.bf16.vlgmr.msra.gmra.mrb[0].mxu1 %v15104_v20  ;;  %v12418_v20 = vld [vmem:[%s16730_s19 + $0x48] sm:$0x3] }
 0x270   : > { %10385 = vmatpush1.bf16.msra.mxu0 %v15107_v41  ;;  %11456 = vmatpush1.bf16.msra.mxu1 %v15110_v43  ;;  %v976_v40 = vrot.slane %v12418_v20, 6  ;;  %v15179_v41 = vld [vmem:[%s16733_s9 + $0x1180] ss:$16 sps:$4 sm:$0xff]   ;;  %v15182_v43 = vld [vmem:[%s16733_s9 + $0x1188] ss:$16 sps:$4 sm:$0xff]  }
 0x271   : > { %10386 = vmatprep.subr.bf16.mxu0 %v15115_v18  ;;  %11457 = vmatprep.subr.bf16.mxu1 %v15118_v42  ;;  %v953_v18 = vsel %vm17429_vm11, %v951_v36, %v952_v37  ;;  %v984_v42 = vld [vmem:[%s16730_s19] sm:$0xc] }
 0x272   : > { %10375 = vmatprep.mubr.bf16.mxu0 %v12542_v44  ;;  %11446 = vmatprep.mubr.bf16.mxu1 %v12542_v44  ;;  %959 = vst [vmem:[#allocation2 + $0x190] sm:$0xf] %v953_v18  ;;  %v977_v28 = vsel %vm17429_vm11, %v975_v38, %v976_v40  ;;  %v986_v44 = vld [vmem:[%s16730_s19 + $0x8] sm:$0xf]  ;;  %v15208_v40 = vld [vmem:[%s16733_s9 + $0x1200] ss:$16 sps:$4 sm:$0xff]  }
 0x273   : > { %983 = vst [vmem:[#allocation2 + $0x194] sm:$0xf] %v977_v28  ;;  %v15216_v18 = vld [vmem:[%s16733_s9 + $0x1224] ss:$16 sps:$4 sm:$0xff]  }
 0x274   : > { %10387 = vmatpush1.bf16.msra.mxu0 %v15113_v45  ;;  %11458 = vmatpush1.bf16.msra.mxu1 %v15116_v47  ;;  %v992_v45 = vshrl.u32 %v984_v42, 16  ;;  %v995_v47 = vshll.u32 %v984_v42, 16  ;;  %v15219_v42 = vld [vmem:[%s16733_s9 + $0x122c] ss:$16 sps:$4 sm:$0xff]  }
 0x275   : > { %10388 = vmatprep.subr.bf16.mxu0 %v15121_v48  ;;  %11459 = vmatprep.subr.bf16.mxu1 %v15124_v51  ;;  %v1001_v48 = vshrl.u32 %v985_v8, 16  ;;  %v1004_v51 = vshll.u32 %v985_v8, 16 }
 0x276   : > { %v994_v49 = vrot.slane %v992_v45, 6  ;;  %v15217_v45 = vld [vmem:[%s16733_s9 + $0x1228] ss:$16 sps:$4 sm:$0xff]  }
 0x277   : > { %10376 = vmatmul.mubr.bf16.gmra.mrb[4].mxu0 %v12541_v54  ;;  %11447 = vmatmul.mubr.bf16.gmra.mrb[4].mxu1 %v12541_v54  ;;  %v1014_v54 = vshll.u32 %v986_v44, 16 }
 0x278   : > { %10389 = vmatpush1.bf16.msra.mxu0 %v15119_v53  ;;  %11460 = vmatpush1.bf16.msra.mxu1 %v15122_v56  ;;  %v1011_v53 = vshrl.u32 %v986_v44, 16  ;;  %v12420_v56 = vld [vmem:[%s16730_s19 + $0x14] sm:$0xc]  ;;  %v15214_v44 = vld [vmem:[%s16733_s9 + $0x1220] ss:$16 sps:$4 sm:$0xff]  }
 0x279   : > { %10390 = vmatprep.subr.bf16.mxu0 %v15127_v57  ;;  %11461 = vmatprep.subr.bf16.mxu1 %v15130_v35  ;;  %v15185_v57 = vld [vmem:[%s16733_s9 + $0x11a0] ss:$16 sps:$4 sm:$0xff]   ;;  %v15188_v35 = vld [vmem:[%s16733_s9 + $0x11a8] ss:$16 sps:$4 sm:$0xff]  }
 0x27a   : > { %10416 = vmatprep.mubr.bf16.mxu0 %v15207_v46  ;;  %11487 = vmatprep.mubr.bf16.mxu1 %v15207_v46  ;;  %v997_v46 = vrot.slane %v995_v47, 7  ;;  %v15222_v47 = vld [vmem:[%s16733_s9 + $0x1244] ss:$16 sps:$4 sm:$0xff]  }
 0x27c   : > { %10391 = vmatpush1.bf16.msra.mxu0 %v15125_v58  ;;  %11462 = vmatpush1.bf16.msra.mxu1 %v15128_v60  ;;  %v15194_v58 = vld [vmem:[%s16733_s9 + $0x11c4] ss:$16 sps:$4 sm:$0xff]   ;;  %v15197_v60 = vld [vmem:[%s16733_s9 + $0x11cc] ss:$16 sps:$4 sm:$0xff]  }
 0x27d   : > { %10392 = vmatprep.subr.bf16.mxu0 %v15133_v61  ;;  %11463 = vmatprep.subr.bf16.mxu1 %v15136_v63  ;;  %v1003_v61 = vrot.slane %v1001_v48, 6  ;;  %v1006_v63 = vrot.slane %v1004_v51, 7  ;;  %v15225_v48 = vld [vmem:[%s16733_s9 + $0x124c] ss:$16 sps:$4 sm:$0xff]   ;;  %v15220_v51 = vld [vmem:[%s16733_s9 + $0x1240] ss:$16 sps:$4 sm:$0xff]  }
 0x280   : > { %10393 = vmatpush1.bf16.msra.mxu0 %v15131_v0  ;;  %11464 = vmatpush1.bf16.msra.mxu1 %v15134_v1  ;;  %v15192_v0 = vld [vmem:[%s16733_s9 + $0x11c0] ss:$16 sps:$4 sm:$0xff]   ;;  %v15195_v1 = vld [vmem:[%s16733_s9 + $0x11c8] ss:$16 sps:$4 sm:$0xff]  }
 0x281   : > { %10394 = vmatprep.subr.bf16.mxu0 %v15139_v2  ;;  %11465 = vmatprep.subr.bf16.mxu1 %v15142_v3  ;;  %v998_v2 = vor.u32 %v997_v46, %v994_v49  ;;  %v1013_v3 = vrot.slane %v1011_v53, 6  ;;  %v15226_v49 = vld [vmem:[%s16733_s9 + $0x1260] ss:$16 sps:$4 sm:$0xff]   ;;  %v15229_v46 = vld [vmem:[%s16733_s9 + $0x1268] ss:$16 sps:$4 sm:$0xff]  }
 0x284   : > { %10395 = vmatpush1.bf16.msra.mxu0 %v15137_v4  ;;  %11466 = vmatpush1.bf16.msra.mxu1 %v15140_v52  ;;  %v1016_v4 = vrot.slane %v1014_v54, 7  ;;  %v1040_v52 = vshrl.u32 %v12420_v56, 16  ;;  %v15223_v54 = vld [vmem:[%s16733_s9 + $0x1248] ss:$16 sps:$4 sm:$0xff]  }
 0x285   : > { %10396 = vmatprep.subr.bf16.mxu0 %v15145_v5  ;;  %11467 = vmatprep.subr.bf16.mxu1 %v15148_v39  ;;  %v1007_v5 = vor.u32 %v1006_v63, %v1003_v61  ;;  %v1043_v39 = vshll.u32 %v12420_v56, 16  ;;  %v15228_v56 = vld [vmem:[%s16733_s9 + $0x1264] ss:$16 sps:$4 sm:$0xff]   ;;  %v15232_v61 = vld [vmem:[%s16733_s9 + $0x1280] ss:$16 sps:$4 sm:$0xff]  }
 0x286   : > { %v15235_v63 = vld [vmem:[%s16733_s9 + $0x1288] ss:$16 sps:$4 sm:$0xff]  }
 0x288   : > { %10397 = vmatpush1.bf16.msra.mxu0 %v15143_v50  ;;  %11468 = vmatpush1.bf16.msra.mxu1 %v15146_v59  ;;  %v999_v59 = vrot.slane %v998_v2, 4  ;;  %v15238_v2 = vld [vmem:[%s16733_s9 + $0x12a0] ss:$16 sps:$4 sm:$0xff]   ;;  %v12433_v50 = vld [vmem:[%s16730_s19 + $0x14] sm:$0x8] }
 0x289   : > { %10398 = vmatprep.subr.bf16.mxu0 %v15151_v62  ;;  %11469 = vmatprep.subr.bf16.mxu1 %v15154_v7  ;;  %v17630_v62 = vor.u32 %v1016_v4, %v1013_v3  ;;  %v12421_v7 = vld [vmem:[%s16730_s19 + $0x18] sm:$0xf]  ;;  %v15246_v4 = vld [vmem:[%s16733_s9 + $0x12c4] ss:$16 sps:$4 sm:$0xff]  }
 0x28a   : > { %v15241_v3 = vld [vmem:[%s16733_s9 + $0x12a8] ss:$16 sps:$4 sm:$0xff]  }
 0x28c   : > { %10399 = vmatpush1.bf16.msra.mxu0 %v15149_v55  ;;  %11470 = vmatpush1.bf16.msra.mxu1 %v15152_v6  ;;  %v12422_v55 = vld [vmem:[%s16730_s19 + $0x1c] sm:$0xf]  ;;  %v1042_v6 = vrot.slane %v1040_v52, 6 }
 0x28d   : > { %10400 = vmatprep.subr.bf16.mxu0 %v15157_v9  ;;  %11471 = vmatprep.subr.bf16.mxu1 %v15160_v10  ;;  %v15201_v9 = vld [vmem:[%s16733_s9 + $0x11e4] ss:$16 sps:$4 sm:$0xff]   ;;  %v15204_v10 = vld [vmem:[%s16733_s9 + $0x11ec] ss:$16 sps:$4 sm:$0xff]  }
 0x28e   : > { %v15249_v52 = vld [vmem:[%s16733_s9 + $0x12cc] ss:$16 sps:$4 sm:$0xff]  }
 0x290   : > { %10401 = vmatpush1.bf16.msra.mxu0 %v15155_v11  ;;  %11472 = vmatpush1.bf16.msra.mxu1 %v15158_v13  ;;  %v1009_v11 = vrot.slane %v1007_v5, 4  ;;  %v15199_v13 = vld [vmem:[%s16733_s9 + $0x11e0] ss:$16 sps:$4 sm:$0xff]  }
 0x291   : > { %10402 = vmatprep.subr.bf16.mxu0 %v15163_v14  ;;  %11473 = vmatprep.subr.bf16.mxu1 %v15166_v16  ;;  %v15202_v14 = vld [vmem:[%s16733_s9 + $0x11e8] ss:$16 sps:$4 sm:$0xff]   ;;  %v1008_v16 = vsel %vm17626_vm14, %v999_v59, %v1007_v5  ;;  %v15244_v5 = vld [vmem:[%s16733_s9 + $0x12c0] ss:$16 sps:$4 sm:$0xff]   ;;  %v15252_v59 = vld [vmem:[%s16733_s9 + $0x12e4] ss:$16 sps:$4 sm:$0xff]  }
 0x292   : > { %1032 = vst [vmem:[#allocation2 + $0x50] sm:$0xf] %v1008_v16  ;;  %v15267_v16 = vld [vmem:[%s16733_s9 + $0x132c] ss:$16 sps:$4 sm:$0xff]  }
 0x294   : > { %10403 = vmatpush1.bf16.msra.mxu0 %v15161_v22  ;;  %11474 = vmatpush1.bf16.msra.mxu1 %v15164_v23  ;;  %v1045_v22 = vrot.slane %v1043_v39, 7  ;;  %v1018_v23 = vsel %vm17626_vm14, %v1009_v11, %v17630_v62  ;;  %v15247_v39 = vld [vmem:[%s16733_s9 + $0x12c8] ss:$16 sps:$4 sm:$0xff]   ;;  %v15256_v11 = vld [vmem:[%s16733_s9 + $0x1300] ss:$16 sps:$4 sm:$0xff]  }
 0x295   : > { %10404 = vmatprep.subr.bf16.mxu0 %v15169_v25  ;;  %11475 = vmatprep.subr.bf16.mxu1 %v15172_v26  ;;  %v1049_v25 = vshrl.u32 %v12421_v7, 16  ;;  %v1052_v26 = vshll.u32 %v12421_v7, 16  ;;  %1033 = vst [vmem:[#allocation2 + $0xf4] sm:$0xf] %v1018_v23  ;;  %v15255_v7 = vld [vmem:[%s16733_s9 + $0x12ec] ss:$16 sps:$4 sm:$0xff]  }
 0x296   : > { %v15265_v23 = vld [vmem:[%s16733_s9 + $0x1328] ss:$16 sps:$4 sm:$0xff]  }
 0x297   : > { %v1054_v34 = vrot.slane %v1052_v26, 7  ;;  %v15273_v26 = vld [vmem:[%s16733_s9 + $0x134c] ss:$16 sps:$4 sm:$0xff]  }
 0x298   : > { %10405 = vmatpush1.bf16.msra.mxu0 %v15167_v21  ;;  %11476 = vmatpush1.bf16.msra.mxu1 %v15170_v24  ;;  %v1059_v21 = vshrl.u32 %v12422_v55, 16  ;;  %v15210_v24 = vld [vmem:[%s16733_s9 + $0x1204] ss:$16 sps:$4 sm:$0xff]  }
 0x299   : > { %10406 = vmatprep.subr.bf16.mxu0 %v15175_v29  ;;  %11477 = vmatprep.subr.bf16.mxu1 %v15178_v27  ;;  %v15213_v29 = vld [vmem:[%s16733_s9 + $0x120c] ss:$16 sps:$4 sm:$0xff]   ;;  %v1046_v27 = vor.u32 %v1045_v22, %v1042_v6  ;;  %v15253_v6 = vld [vmem:[%s16733_s9 + $0x12e8] ss:$16 sps:$4 sm:$0xff]   ;;  %v15262_v22 = vld [vmem:[%s16733_s9 + $0x1320] ss:$16 sps:$4 sm:$0xff]  }
 0x29a   : > { %v1061_v37 = vrot.slane %v1059_v21, 6  ;;  %v15268_v21 = vld [vmem:[%s16733_s9 + $0x1340] ss:$16 sps:$4 sm:$0xff]  }
 0x29b   : > { %v1047_v36 = vrot.slane %v1046_v27, 4  ;;  %v15279_v27 = vld [vmem:[%s16733_s9 + $0x136c] ss:$16 sps:$4 sm:$0xff]  }
 0x29c   : > { %10407 = vmatpush1.bf16.msra.mxu0 %v15173_v30  ;;  %11478 = vmatpush1.bf16.msra.mxu1 %v15176_v31  ;;  %v1062_v30 = vshll.u32 %v12422_v55, 16  ;;  %v15205_v31 = vld [vmem:[#allocation2 + $0x40] ss:$164 sps:$4 sm:$0xff]   ;;  %v15250_v55 = vld [vmem:[%s16733_s9 + $0x12e0] ss:$16 sps:$4 sm:$0xff]  }
 0x29d   : > { %10408 = vmatprep.subr.bf16.mxu0 %v15181_v32  ;;  %11479 = vmatprep.subr.bf16.mxu1 %v15184_v33  ;;  %v1719_v32 = vld [vmem:[#allocation2 + $0x188] sm:$0xff]  ;;  %v1051_v33 = vrot.slane %v1049_v25, 6  ;;  %v15270_v25 = vld [vmem:[%s16733_s9 + $0x1344] ss:$16 sps:$4 sm:$0xff]  }
 0x29e   : > { %v1064_v20 = vrot.slane %v1062_v30, 7  ;;  %v12544_v28 = vcombine.high %v1719_v32, %v1719_v32  ;;  %v12543_v53 = vcombine.low %v1719_v32, %v1719_v32  ;;  %v987_v30 = vld [vmem:[%s16730_s19 + $0xc] sm:$0x7] }
 0x29f   : > { %v1055_v38 = vor.u32 %v1054_v34, %v1051_v33  ;;  %v1024_v32 = vshll.u32 %v987_v30, 16  ;;  %v12423_v33 = vld [vmem:[%s16730_s19 + $0x20] sm:$0x7] }
 0x2a0   : > { %10409 = vmatpush1.bf16.msra.mxu0 %v15179_v41  ;;  %11480 = vmatpush1.bf16.msra.mxu1 %v15182_v43  ;;  %v15211_v41 = vld [vmem:[%s16733_s9 + $0x1208] ss:$16 sps:$4 sm:$0xff]   ;;  %v17647_v43 = vor.u32 %v1064_v20, %v1061_v37  ;;  %v1069_v34 = vshrl.u32 %v12423_v33, 16  ;;  %v15274_v37 = vld [vmem:[%s16733_s9 + $0x1360] ss:$16 sps:$4 sm:$0xff]  }
 0x2a1   : > { %10410 = vmatprep.subr.bf16.mxu0 %v15187_v12  ;;  %11481 = vmatprep.subr.bf16.mxu1 %v15190_v19  ;;  %v1056_v12 = vsel %vm17626_vm14, %v1047_v36, %v1055_v38  ;;  %v1057_v19 = vrot.slane %v1055_v38, 4  ;;  %v1072_v36 = vshll.u32 %v12423_v33, 16  ;;  %v15277_v20 = vld [vmem:[%s16733_s9 + $0x1368] ss:$16 sps:$4 sm:$0xff]  }
 0x2a2   : > { %1080 = vst [vmem:[#allocation2 + $0x54] sm:$0xf] %v1056_v12 }
 0x2a3   : > { %v1066_v8 = vsel %vm17626_vm14, %v1057_v19, %v17647_v43  ;;  %v1074_v12 = vrot.slane %v1072_v36, 7  ;;  %v1019_v19 = vrot.slane %v17630_v62, 4  ;;  %v15291_v62 = vld [vmem:[%s16733_s9 + $0x13ac] ss:$16 sps:$4 sm:$0xff]  }
 0x2a4   : > { %10411 = vmatpush1.bf16.msra.mxu0 %v15185_v57  ;;  %11482 = vmatpush1.bf16.msra.mxu1 %v15188_v35  ;;  %1081 = vst [vmem:[#allocation2 + $0xf8] sm:$0xf] %v1066_v8  ;;  %v15231_v57 = vld [vmem:[%s16733_s9 + $0x126c] ss:$16 sps:$4 sm:$0xff]   ;;  %v15308_v35 = vld [vmem:[#allocation2 + $0x4c] ss:$164 sps:$4 sm:$0xff]  }
 0x2a5   : > { %10412 = vmatprep.subr.bf16.mxu0 %v15194_v58  ;;  %11483 = vmatprep.subr.bf16.mxu1 %v15197_v60  ;;  %v15234_v58 = vld [vmem:[%s16733_s9 + $0x1284] ss:$16 sps:$4 sm:$0xff]   ;;  %v15237_v60 = vld [vmem:[%s16733_s9 + $0x128c] ss:$16 sps:$4 sm:$0xff]   ;;  %v1067_v8 = vrot.slane %v17647_v43, 4 }
 0x2a8   : > { %10413 = vmatpush1.bf16.msra.mxu0 %v15192_v0  ;;  %11484 = vmatpush1.bf16.msra.mxu1 %v15195_v1  ;;  %v15240_v0 = vld [vmem:[%s16733_s9 + $0x12a4] ss:$16 sps:$4 sm:$0xff]   ;;  %v15243_v1 = vld [vmem:[%s16733_s9 + $0x12ac] ss:$16 sps:$4 sm:$0xff]  }
 0x2a9   : > { %10414 = vmatprep.subr.bf16.mxu0 %v15201_v9  ;;  %11485 = vmatprep.subr.bf16.mxu1 %v15204_v10  ;;  %v15258_v9 = vld [vmem:[%s16733_s9 + $0x1304] ss:$16 sps:$4 sm:$0xff]   ;;  %v15261_v10 = vld [vmem:[%s16733_s9 + $0x130c] ss:$16 sps:$4 sm:$0xff]  }
 0x2ac   : > { %10415 = vmatpush1.bf16.msra.mxu0 %v15199_v13  ;;  %11486 = vmatpush1.bf16.msra.mxu1 %v15202_v14  ;;  %v15259_v13 = vld [vmem:[%s16733_s9 + $0x1308] ss:$16 sps:$4 sm:$0xff]   ;;  %v15264_v14 = vld [vmem:[%s16733_s9 + $0x1324] ss:$16 sps:$4 sm:$0xff]  }
 0x2ad   : > { %10435 = vmatprep.subr.bf16.mxu0 %v15210_v24  ;;  %11506 = vmatprep.subr.bf16.mxu1 %v15213_v29  ;;  %v15271_v24 = vld [vmem:[%s16733_s9 + $0x1348] ss:$16 sps:$4 sm:$0xff]   ;;  %v15276_v29 = vld [vmem:[%s16733_s9 + $0x1364] ss:$16 sps:$4 sm:$0xff]  }
 0x2af   : > { %10417 = vmatmul.mubr.bf16.vlgmr.msra.gmra.mrb[0].mxu0 %v15205_v31  ;;  %11488 = vmatmul.mubr.bf16.vlgmr.msra.gmra.mrb[0].mxu1 %v15205_v31  ;;  %v1021_v31 = vshrl.u32 %v987_v30, 16  ;;  %v15303_v30 = vld [vmem:[%s16733_s9 + $0x13e8] ss:$16 sps:$4 sm:$0xff]  }
 0x2b0   : > { %10436 = vmatpush1.bf16.msra.mxu0 %v15208_v40  ;;  %11507 = vmatpush1.bf16.msra.mxu1 %v15211_v41  ;;  %v1026_v40 = vrot.slane %v1024_v32, 7  ;;  %v15282_v41 = vld [vmem:[%s16733_s9 + $0x1384] ss:$16 sps:$4 sm:$0xff]  }
 0x2b1   : > { %10437 = vmatprep.subr.bf16.mxu0 %v15216_v18  ;;  %11508 = vmatprep.subr.bf16.mxu1 %v15219_v42  ;;  %v1023_v38 = vrot.slane %v1021_v31, 6  ;;  %v15285_v18 = vld [vmem:[%s16733_s9 + $0x138c] ss:$16 sps:$4 sm:$0xff]   ;;  %v1071_v42 = vrot.slane %v1069_v34, 6 }
 0x2b2   : > { %10426 = vmatprep.mubr.bf16.mxu0 %v12544_v28  ;;  %11497 = vmatprep.mubr.bf16.mxu1 %v12544_v28 }
 0x2b3   : > { %v1027_v28 = vor.u32 %v1026_v40, %v1023_v38  ;;  %v15314_v38 = vld [vmem:[%s16733_s9 + $0x140c] ss:$16 sps:$4 sm:$0xff]  }
 0x2b4   : > { %10438 = vmatpush1.bf16.msra.mxu0 %v15214_v44  ;;  %11509 = vmatpush1.bf16.msra.mxu1 %v15217_v45  ;;  %v1075_v44 = vor.u32 %v1074_v12, %v1071_v42  ;;  %v15280_v45 = vld [vmem:[%s16733_s9 + $0x1380] ss:$16 sps:$4 sm:$0xff]   ;;  %v1720_v42 = vld [vmem:[#allocation2 + $0x190] sm:$0xff] }
 0x2b5   : > { %10439 = vmatprep.subr.bf16.mxu0 %v15222_v47  ;;  %11510 = vmatprep.subr.bf16.mxu1 %v15225_v48  ;;  %v15283_v47 = vld [vmem:[%s16733_s9 + $0x1388] ss:$16 sps:$4 sm:$0xff]   ;;  %v1028_v48 = vsel %vm17626_vm14, %v1019_v19, %v1027_v28 }
 0x2b6   : > { %1034 = vst [vmem:[#allocation2 + $0x198] sm:$0xf] %v1028_v48  ;;  %v1076_v43 = vsel %vm17626_vm14, %v1067_v8, %v1075_v44 }
 0x2b7   : > { %10427 = vmatmul.mubr.bf16.gmra.mrb[4].mxu0 %v12543_v53  ;;  %11498 = vmatmul.mubr.bf16.gmra.mrb[4].mxu1 %v12543_v53  ;;  %v15288_v53 = vld [vmem:[%s16733_s9 + $0x13a4] ss:$16 sps:$4 sm:$0xff]   ;;  %1082 = vst [vmem:[#allocation2 + $0x19c] sm:$0xf] %v1076_v43  ;;  %v12546_v43 = vcombine.high %v1720_v42, %v1720_v42 }
 0x2b8   : > { %10440 = vmatpush1.bf16.msra.mxu0 %v15220_v51  ;;  %11511 = vmatpush1.bf16.msra.mxu1 %v15223_v54  ;;  %v12424_v51 = vld [vmem:[%s16730_s19 + $0x28] sm:$0xc]  ;;  %v12425_v54 = vld [vmem:[%s16730_s19 + $0x2c] sm:$0xf] }
 0x2b9   : > { %10441 = vmatprep.subr.bf16.mxu0 %v15228_v56  ;;  %11512 = vmatprep.subr.bf16.mxu1 %v15231_v57  ;;  %v12426_v56 = vld [vmem:[%s16730_s19 + $0x30] sm:$0xf]  ;;  %v1088_v57 = vshrl.u32 %v12424_v51, 16 }
 0x2ba   : > { %10467 = vmatprep.mubr.bf16.mxu0 %v15308_v35  ;;  %11538 = vmatprep.mubr.bf16.mxu1 %v15308_v35  ;;  %v1091_v35 = vshll.u32 %v12424_v51, 16 }
 0x2bc   : > { %10442 = vmatpush1.bf16.msra.mxu0 %v15226_v49  ;;  %11513 = vmatpush1.bf16.msra.mxu1 %v15229_v46  ;;  %v1097_v49 = vshrl.u32 %v12425_v54, 16  ;;  %v1100_v46 = vshll.u32 %v12425_v54, 16 }
 0x2bd   : > { %10443 = vmatprep.subr.bf16.mxu0 %v15234_v58  ;;  %11514 = vmatprep.subr.bf16.mxu1 %v15237_v60  ;;  %v15286_v58 = vld [vmem:[%s16733_s9 + $0x13a0] ss:$16 sps:$4 sm:$0xff]   ;;  %v1107_v60 = vshrl.u32 %v12426_v56, 16 }
 0x2c0   : > { %10444 = vmatpush1.bf16.msra.mxu0 %v15232_v61  ;;  %11515 = vmatpush1.bf16.msra.mxu1 %v15235_v63  ;;  %v1110_v61 = vshll.u32 %v12426_v56, 16  ;;  %v12428_v63 = vld [vmem:[%s16730_s19 + $0x3c] sm:$0xc]  ;;  %v15315_v56 = vld [vmem:[%s16733_s9 + $0x1420] ss:$16 sps:$4 sm:$0xff]  }
 0x2c1   : > { %10445 = vmatprep.subr.bf16.mxu0 %v15240_v0  ;;  %11516 = vmatprep.subr.bf16.mxu1 %v15243_v1  ;;  %v15289_v0 = vld [vmem:[%s16733_s9 + $0x13a8] ss:$16 sps:$4 sm:$0xff]   ;;  %v1090_v1 = vrot.slane %v1088_v57, 6 }
 0x2c2   : > { %v15318_v57 = vld [vmem:[%s16733_s9 + $0x1428] ss:$16 sps:$4 sm:$0xff]  }
 0x2c4   : > { %10446 = vmatpush1.bf16.msra.mxu0 %v15238_v2  ;;  %11517 = vmatpush1.bf16.msra.mxu1 %v15241_v3  ;;  %v1093_v2 = vrot.slane %v1091_v35, 7  ;;  %v12429_v3 = vld [vmem:[%s16730_s19 + $0x40] sm:$0xf]  ;;  %v15323_v35 = vld [vmem:[%s16733_s9 + $0x1444] ss:$16 sps:$4 sm:$0xff]  }
 0x2c5   : > { %10447 = vmatprep.subr.bf16.mxu0 %v15246_v4  ;;  %11518 = vmatprep.subr.bf16.mxu1 %v15249_v52  ;;  %v15295_v4 = vld [vmem:[%s16733_s9 + $0x13c4] ss:$16 sps:$4 sm:$0xff]   ;;  %v15298_v52 = vld [vmem:[%s16733_s9 + $0x13cc] ss:$16 sps:$4 sm:$0xff]  }
 0x2c8   : > { %10448 = vmatpush1.bf16.msra.mxu0 %v15244_v5  ;;  %11519 = vmatpush1.bf16.msra.mxu1 %v15247_v39  ;;  %v1099_v5 = vrot.slane %v1097_v49, 6  ;;  %v1102_v39 = vrot.slane %v1100_v46, 7  ;;  %v15326_v49 = vld [vmem:[%s16733_s9 + $0x144c] ss:$16 sps:$4 sm:$0xff]   ;;  %v12545_v46 = vcombine.low %v1720_v42, %v1720_v42 }
 0x2c9   : > { %10449 = vmatprep.subr.bf16.mxu0 %v15252_v59  ;;  %11520 = vmatprep.subr.bf16.mxu1 %v15255_v7  ;;  %v15293_v59 = vld [vmem:[%s16733_s9 + $0x13c0] ss:$16 sps:$4 sm:$0xff]   ;;  %v1094_v7 = vor.u32 %v1093_v2, %v1090_v1  ;;  %v15330_v2 = vld [vmem:[%s16733_s9 + $0x1468] ss:$16 sps:$4 sm:$0xff]  }
 0x2ca   : > { %v15327_v1 = vld [vmem:[%s16733_s9 + $0x1460] ss:$16 sps:$4 sm:$0xff]  }
 0x2cc   : > { %10450 = vmatpush1.bf16.msra.mxu0 %v15250_v55  ;;  %11521 = vmatpush1.bf16.msra.mxu1 %v15253_v6  ;;  %v1109_v55 = vrot.slane %v1107_v60, 6  ;;  %v1112_v6 = vrot.slane %v1110_v61, 7  ;;  %v15324_v60 = vld [vmem:[%s16733_s9 + $0x1448] ss:$16 sps:$4 sm:$0xff]   ;;  %v15329_v61 = vld [vmem:[%s16733_s9 + $0x1464] ss:$16 sps:$4 sm:$0xff]  }
 0x2cd   : > { %10451 = vmatprep.subr.bf16.mxu0 %v15258_v9  ;;  %11522 = vmatprep.subr.bf16.mxu1 %v15261_v10  ;;  %v1136_v9 = vshrl.u32 %v12428_v63, 16  ;;  %v1103_v10 = vor.u32 %v1102_v39, %v1099_v5  ;;  %v15336_v5 = vld [vmem:[%s16733_s9 + $0x1488] ss:$16 sps:$4 sm:$0xff]   ;;  %v15341_v39 = vld [vmem:[%s16733_s9 + $0x14a4] ss:$16 sps:$4 sm:$0xff]  }
 0x2d0   : > { %10452 = vmatpush1.bf16.msra.mxu0 %v15256_v11  ;;  %11523 = vmatpush1.bf16.msra.mxu1 %v15259_v13  ;;  %v1139_v11 = vshll.u32 %v12428_v63, 16  ;;  %v1145_v13 = vshrl.u32 %v12429_v3, 16  ;;  %v15332_v63 = vld [vmem:[%s16733_s9 + $0x146c] ss:$16 sps:$4 sm:$0xff]  }
 0x2d1   : > { %10453 = vmatprep.subr.bf16.mxu0 %v15264_v14  ;;  %11524 = vmatprep.subr.bf16.mxu1 %v15267_v16  ;;  %v1148_v14 = vshll.u32 %v12429_v3, 16  ;;  %v15296_v16 = vld [vmem:[%s16733_s9 + $0x13c8] ss:$16 sps:$4 sm:$0xff]   ;;  %v15335_v3 = vld [vmem:[%s16733_s9 + $0x1484] ss:$16 sps:$4 sm:$0xff]  }
 0x2d2   : > { %v1141_v32 = vrot.slane %v1139_v11, 7  ;;  %v1147_v34 = vrot.slane %v1145_v13, 6  ;;  %v15348_v11 = vld [vmem:[%s16733_s9 + $0x14c8] ss:$16 sps:$4 sm:$0xff]   ;;  %v15353_v13 = vld [vmem:[%s16733_s9 + $0x14e4] ss:$16 sps:$4 sm:$0xff]  }
 0x2d3   : > { %v1150_v36 = vrot.slane %v1148_v14, 7  ;;  %v15356_v14 = vld [vmem:[%s16733_s9 + $0x14ec] ss:$16 sps:$4 sm:$0xff]  }
 0x2d4   : > { %10454 = vmatpush1.bf16.msra.mxu0 %v15262_v22  ;;  %11525 = vmatpush1.bf16.msra.mxu1 %v15265_v23  ;;  %v1095_v22 = vrot.slane %v1094_v7, 4  ;;  %v17723_v23 = vor.u32 %v1112_v6, %v1109_v55  ;;  %v15339_v7 = vld [vmem:[%s16733_s9 + $0x14a0] ss:$16 sps:$4 sm:$0xff]   ;;  %v15342_v55 = vld [vmem:[%s16733_s9 + $0x14a8] ss:$16 sps:$4 sm:$0xff]  }
 0x2d5   : > { %10455 = vmatprep.subr.bf16.mxu0 %v15270_v25  ;;  %11526 = vmatprep.subr.bf16.mxu1 %v15273_v26  ;;  %v12430_v25 = vld [vmem:[%s16730_s19 + $0x44] sm:$0xf]  ;;  %v1138_v26 = vrot.slane %v1136_v9, 6  ;;  %v1151_v12 = vor.u32 %v1150_v36, %v1147_v34  ;;  %v15350_v9 = vld [vmem:[%s16733_s9 + $0x14cc] ss:$16 sps:$4 sm:$0xff]  }
 0x2d6   : > { %v1104_v31 = vsel %vm17626_vm14, %v1095_v22, %v1103_v10  ;;  %v15347_v6 = vld [vmem:[%s16733_s9 + $0x14c4] ss:$16 sps:$4 sm:$0xff]   ;;  %v15354_v22 = vld [vmem:[%s16733_s9 + $0x14e8] ss:$16 sps:$4 sm:$0xff]   ;;  %v15369_v34 = vld [vmem:[%s16733_s9 + $0x1540] ss:$16 sps:$4 sm:$0xff]  }
 0x2d7   : > { %1128 = vst [vmem:[#allocation2 + $0x58] sm:$0xf] %v1104_v31  ;;  %v1142_v40 = vor.u32 %v1141_v32, %v1138_v26  ;;  %v1153_v44 = vrot.slane %v1151_v12, 4  ;;  %v15362_v26 = vld [vmem:[%s16733_s9 + $0x150c] ss:$16 sps:$4 sm:$0xff]  }
 0x2d8   : > { %10456 = vmatpush1.bf16.msra.mxu0 %v15268_v21  ;;  %11527 = vmatpush1.bf16.msra.mxu1 %v15271_v24  ;;  %v15302_v21 = vld [vmem:[%s16733_s9 + $0x13e4] ss:$16 sps:$4 sm:$0xff]   ;;  %v15305_v24 = vld [vmem:[%s16733_s9 + $0x13ec] ss:$16 sps:$4 sm:$0xff]   ;;  %v15366_v31 = vld [vmem:[%s16733_s9 + $0x1528] ss:$16 sps:$4 sm:$0xff]  }
 0x2d9   : > { %10457 = vmatprep.subr.bf16.mxu0 %v15276_v29  ;;  %11528 = vmatprep.subr.bf16.mxu1 %v15279_v27  ;;  %v1105_v29 = vrot.slane %v1103_v10, 4  ;;  %v15300_v27 = vld [vmem:[%s16733_s9 + $0x13e0] ss:$16 sps:$4 sm:$0xff]   ;;  %v1143_v28 = vrot.slane %v1142_v40, 4  ;;  %v15371_v32 = vld [vmem:[%s16733_s9 + $0x1544] ss:$16 sps:$4 sm:$0xff]  }
 0x2da   : > { %v15345_v10 = vld [vmem:[%s16733_s9 + $0x14c0] ss:$16 sps:$4 sm:$0xff]   ;;  %v15372_v36 = vld [vmem:[%s16733_s9 + $0x1548] ss:$16 sps:$4 sm:$0xff]  }
 0x2db   : > { %v1114_v33 = vsel %vm17626_vm14, %v1105_v29, %v17723_v23  ;;  %v1152_v48 = vsel %vm17626_vm14, %v1143_v28, %v1151_v12  ;;  %v15365_v29 = vld [vmem:[%s16733_s9 + $0x1524] ss:$16 sps:$4 sm:$0xff]   ;;  %v15378_v28 = vld [vmem:[%s16733_s9 + $0x1568] ss:$16 sps:$4 sm:$0xff]  }
 0x2dc   : > { %10458 = vmatpush1.bf16.msra.mxu0 %v15274_v37  ;;  %11529 = vmatpush1.bf16.msra.mxu1 %v15277_v20  ;;  %v1155_v37 = vshrl.u32 %v12430_v25, 16  ;;  %v15311_v20 = vld [vmem:[%s16733_s9 + $0x1404] ss:$16 sps:$4 sm:$0xff]   ;;  %1129 = vst [vmem:[#allocation2 + $0xfc] sm:$0xf] %v1114_v33 }
 0x2dd   : > { %10459 = vmatprep.subr.bf16.mxu0 %v15282_v41  ;;  %11530 = vmatprep.subr.bf16.mxu1 %v15285_v18  ;;  %v1158_v41 = vshll.u32 %v12430_v25, 16  ;;  %v15306_v18 = vld [vmem:[#allocation2 + $0x48] ss:$164 sps:$4 sm:$0xff]   ;;  %1176 = vst [vmem:[#allocation2 + $0x5c] sm:$0xf] %v1152_v48 }
 0x2de   : > { %v1157_v19 = vrot.slane %v1155_v37, 6  ;;  %v15359_v25 = vld [vmem:[%s16733_s9 + $0x1504] ss:$16 sps:$4 sm:$0xff]   ;;  %v15374_v33 = vld [vmem:[%s16733_s9 + $0x154c] ss:$16 sps:$4 sm:$0xff]  }
 0x2df   : > { %v1160_v8 = vrot.slane %v1158_v41, 7  ;;  %v15377_v37 = vld [vmem:[%s16733_s9 + $0x1564] ss:$16 sps:$4 sm:$0xff]  }
 0x2e0   : > { %10460 = vmatpush1.bf16.msra.mxu0 %v15280_v45  ;;  %11531 = vmatpush1.bf16.msra.mxu1 %v15283_v47  ;;  %v15309_v45 = vld [vmem:[%s16733_s9 + $0x1400] ss:$16 sps:$4 sm:$0xff]   ;;  %v15312_v47 = vld [vmem:[%s16733_s9 + $0x1408] ss:$16 sps:$4 sm:$0xff]  }
 0x2e1   : > { %10461 = vmatprep.subr.bf16.mxu0 %v15288_v53  ;;  %11532 = vmatprep.subr.bf16.mxu1 %v15291_v62  ;;  %v17741_v51 = vor.u32 %v1160_v8, %v1157_v19  ;;  %v15317_v53 = vld [vmem:[%s16733_s9 + $0x1424] ss:$16 sps:$4 sm:$0xff]   ;;  %v15320_v62 = vld [vmem:[%s16733_s9 + $0x142c] ss:$16 sps:$4 sm:$0xff]   ;;  %v15375_v19 = vld [vmem:[%s16733_s9 + $0x1560] ss:$16 sps:$4 sm:$0xff]  }
 0x2e3   : > { %v1162_v54 = vsel %vm17626_vm14, %v1153_v44, %v17741_v51 }
 0x2e4   : > { %10462 = vmatpush1.bf16.msra.mxu0 %v15286_v58  ;;  %11533 = vmatpush1.bf16.msra.mxu1 %v15289_v0  ;;  %1177 = vst [vmem:[#allocation2 + $0x100] sm:$0xf] %v1162_v54  ;;  %v15321_v58 = vld [vmem:[%s16733_s9 + $0x1440] ss:$16 sps:$4 sm:$0xff]   ;;  %v15409_v0 = vld [vmem:[#allocation2 + $0x54] ss:$164 sps:$4 sm:$0xff]  }
 0x2e5   : > { %10463 = vmatprep.subr.bf16.mxu0 %v15295_v4  ;;  %11534 = vmatprep.subr.bf16.mxu1 %v15298_v52  ;;  %v15338_v4 = vld [vmem:[%s16733_s9 + $0x148c] ss:$16 sps:$4 sm:$0xff]   ;;  %v15333_v52 = vld [vmem:[%s16733_s9 + $0x1480] ss:$16 sps:$4 sm:$0xff]   ;;  %v1163_v54 = vrot.slane %v17741_v51, 4 }
 0x2e8   : > { %10464 = vmatpush1.bf16.msra.mxu0 %v15293_v59  ;;  %11535 = vmatpush1.bf16.msra.mxu1 %v15296_v16  ;;  %v15344_v59 = vld [vmem:[%s16733_s9 + $0x14ac] ss:$16 sps:$4 sm:$0xff]   ;;  %v15351_v16 = vld [vmem:[%s16733_s9 + $0x14e0] ss:$16 sps:$4 sm:$0xff]  }
 0x2e9   : > { %10465 = vmatprep.subr.bf16.mxu0 %v15302_v21  ;;  %11536 = vmatprep.subr.bf16.mxu1 %v15305_v24  ;;  %v15357_v21 = vld [vmem:[%s16733_s9 + $0x1500] ss:$16 sps:$4 sm:$0xff]   ;;  %v15360_v24 = vld [vmem:[%s16733_s9 + $0x1508] ss:$16 sps:$4 sm:$0xff]  }
 0x2ec   : > { %10466 = vmatpush1.bf16.msra.mxu0 %v15300_v27  ;;  %11537 = vmatpush1.bf16.msra.mxu1 %v15303_v30  ;;  %v15368_v27 = vld [vmem:[%s16733_s9 + $0x152c] ss:$16 sps:$4 sm:$0xff]   ;;  %v15363_v30 = vld [vmem:[%s16733_s9 + $0x1520] ss:$16 sps:$4 sm:$0xff]  }
 0x2ed   : > { %10486 = vmatprep.subr.bf16.mxu0 %v15311_v20  ;;  %11557 = vmatprep.subr.bf16.mxu1 %v15314_v38  ;;  %v15380_v20 = vld [vmem:[%s16733_s9 + $0x156c] ss:$16 sps:$4 sm:$0xff]   ;;  %v12427_v38 = vld [vmem:[%s16730_s19 + $0x34] sm:$0x7] }
 0x2ee   : > { %v1117_v40 = vshrl.u32 %v12427_v38, 16  ;;  %v1120_v41 = vshll.u32 %v12427_v38, 16  ;;  %v15416_v38 = vld [vmem:[%s16733_s9 + $0x1620] ss:$16 sps:$4 sm:$0xff]  }
 0x2ef   : > { %10468 = vmatmul.mubr.bf16.vlgmr.msra.gmra.mrb[0].mxu0 %v15306_v18  ;;  %11539 = vmatmul.mubr.bf16.vlgmr.msra.gmra.mrb[0].mxu1 %v15306_v18  ;;  %v12431_v18 = vld [vmem:[%s16730_s19 + $0x48] sm:$0x7] }
 0x2f0   : > { %10487 = vmatpush1.bf16.msra.mxu0 %v15309_v45  ;;  %11558 = vmatpush1.bf16.msra.mxu1 %v15312_v47  ;;  %v1165_v42 = vshrl.u32 %v12431_v18, 16  ;;  %v1168_v12 = vshll.u32 %v12431_v18, 16  ;;  %v1119_v8 = vrot.slane %v1117_v40, 6  ;;  %v1122_v44 = vrot.slane %v1120_v41, 7  ;;  %v15383_v45 = vld [vmem:[%s16733_s9 + $0x1584] ss:$16 sps:$4 sm:$0xff]  }
 0x2f1   : > { %10488 = vmatprep.subr.bf16.mxu0 %v15317_v53  ;;  %11559 = vmatprep.subr.bf16.mxu1 %v15320_v62  ;;  %v15386_v47 = vld [vmem:[%s16733_s9 + $0x158c] ss:$16 sps:$4 sm:$0xff]   ;;  %v1115_v62 = vrot.slane %v17723_v23, 4  ;;  %v15389_v23 = vld [vmem:[%s16733_s9 + $0x15a4] ss:$16 sps:$4 sm:$0xff]  }
 0x2f2   : > { %10477 = vmatprep.mubr.bf16.mxu0 %v12546_v43  ;;  %11548 = vmatprep.mubr.bf16.mxu1 %v12546_v43  ;;  %v1167_v48 = vrot.slane %v1165_v42, 6  ;;  %v1170_v53 = vrot.slane %v1168_v12, 7  ;;  %v1123_v43 = vor.u32 %v1122_v44, %v1119_v8  ;;  %v15419_v40 = vld [vmem:[%s16733_s9 + $0x1628] ss:$16 sps:$4 sm:$0xff]   ;;  %v15424_v41 = vld [vmem:[%s16733_s9 + $0x1644] ss:$16 sps:$4 sm:$0xff]  }
 0x2f3   : > { %v15427_v18 = vld [vmem:[%s16733_s9 + $0x164c] ss:$16 sps:$4 sm:$0xff]   ;;  %v15422_v42 = vld [vmem:[%s16733_s9 + $0x1640] ss:$16 sps:$4 sm:$0xff]  }
 0x2f4   : > { %10489 = vmatpush1.bf16.msra.mxu0 %v15315_v56  ;;  %11560 = vmatpush1.bf16.msra.mxu1 %v15318_v57  ;;  %v1171_v56 = vor.u32 %v1170_v53, %v1167_v48  ;;  %v15381_v57 = vld [vmem:[%s16733_s9 + $0x1580] ss:$16 sps:$4 sm:$0xff]   ;;  %v15433_v8 = vld [vmem:[%s16733_s9 + $0x166c] ss:$16 sps:$4 sm:$0xff]   ;;  %v15436_v48 = vld [vmem:[%s16733_s9 + $0x1684] ss:$16 sps:$4 sm:$0xff]  }
 0x2f5   : > { %10490 = vmatprep.subr.bf16.mxu0 %v15323_v35  ;;  %11561 = vmatprep.subr.bf16.mxu1 %v15326_v49  ;;  %v15384_v35 = vld [vmem:[%s16733_s9 + $0x1588] ss:$16 sps:$4 sm:$0xff]   ;;  %v1124_v49 = vsel %vm17626_vm14, %v1115_v62, %v1123_v43  ;;  %v15510_v44 = vld [vmem:[#allocation2 + $0x5c] ss:$164 sps:$4 sm:$0xff]   ;;  %v15439_v53 = vld [vmem:[%s16733_s9 + $0x168c] ss:$16 sps:$4 sm:$0xff]  }
 0x2f6   : > { %1130 = vst [vmem:[#allocation2 + $0x1a0] sm:$0xf] %v1124_v49  ;;  %v1172_v51 = vsel %vm17626_vm14, %v1163_v54, %v1171_v56  ;;  %v15434_v62 = vld [vmem:[%s16733_s9 + $0x1680] ss:$16 sps:$4 sm:$0xff]   ;;  %v15437_v43 = vld [vmem:[%s16733_s9 + $0x1688] ss:$16 sps:$4 sm:$0xff]  }
 0x2f7   : > { %10478 = vmatmul.mubr.bf16.gmra.mrb[4].mxu0 %v12545_v46  ;;  %11549 = vmatmul.mubr.bf16.gmra.mrb[4].mxu1 %v12545_v46  ;;  %v15392_v46 = vld [vmem:[%s16733_s9 + $0x15ac] ss:$16 sps:$4 sm:$0xff]   ;;  %1178 = vst [vmem:[#allocation2 + $0x1a4] sm:$0xf] %v1172_v51  ;;  %v15442_v54 = vld [vmem:[%s16733_s9 + $0x16a4] ss:$16 sps:$4 sm:$0xff]  }
 0x2f8   : > { %10491 = vmatpush1.bf16.msra.mxu0 %v15321_v58  ;;  %11562 = vmatpush1.bf16.msra.mxu1 %v15324_v60  ;;  %v15387_v58 = vld [vmem:[%s16733_s9 + $0x15a0] ss:$16 sps:$4 sm:$0xff]   ;;  %v15390_v60 = vld [vmem:[%s16733_s9 + $0x15a8] ss:$16 sps:$4 sm:$0xff]   ;;  %v15445_v56 = vld [vmem:[%s16733_s9 + $0x16ac] ss:$16 sps:$4 sm:$0xff]  }
 0x2f9   : > { %10492 = vmatprep.subr.bf16.mxu0 %v15329_v61  ;;  %11563 = vmatprep.subr.bf16.mxu1 %v15332_v63  ;;  %v1180_v61 = vld [vmem:[%s16730_s19 + $0x4] sm:$0xf]  ;;  %v15449_v51 = vld [vmem:[%s16733_s9 + $0x16c8] ss:$16 sps:$4 sm:$0xff]  }
 0x2fa   : > { %10518 = vmatprep.mubr.bf16.mxu0 %v15409_v0  ;;  %11589 = vmatprep.mubr.bf16.mxu1 %v15409_v0  ;;  %v15396_v63 = vld [vmem:[%s16733_s9 + $0x15c4] ss:$16 sps:$4 sm:$0xff]   ;;  %v15399_v0 = vld [vmem:[%s16733_s9 + $0x15cc] ss:$16 sps:$4 sm:$0xff]  }
 0x2fb   : > { %v15448_v49 = vld [vmem:[%s16733_s9 + $0x16c4] ss:$16 sps:$4 sm:$0xff]  }
 0x2fc   : > { %10493 = vmatpush1.bf16.msra.mxu0 %v15327_v1  ;;  %11564 = vmatpush1.bf16.msra.mxu1 %v15330_v2  ;;  %v1192_v1 = vrot.slane %v1180_v61, 7  ;;  %v1179_v2 = vld [vmem:[%s16730_s19] sm:$0x8] }
 0x2fd   : > { %10494 = vmatprep.subr.bf16.mxu0 %v15335_v3  ;;  %11565 = vmatprep.subr.bf16.mxu1 %v15338_v4  ;;  %v17811_v3 = vld [vmem:[%s16730_s19 + $0x8] sm:$0xf]  ;;  %v12432_v4 = vrot.slane %v1179_v2, 11  ;;  %v15452_v61 = vld [vmem:[%s16733_s9 + $0x16e0] ss:$16 sps:$4 sm:$0xff]  }
 0x2fe   : > { %v15458_v2 = vld [vmem:[%s16733_s9 + $0x1700] ss:$16 sps:$4 sm:$0xff]  }
 0x300   : > { %10495 = vmatpush1.bf16.msra.mxu0 %v15333_v52  ;;  %11566 = vmatpush1.bf16.msra.mxu1 %v15336_v5  ;;  %v1194_v52 = vrot.slane %v1192_v1, 4  ;;  %v12434_v5 = vld [vmem:[%s16730_s19 + $0x18] sm:$0xf] }
 0x301   : > { %10496 = vmatprep.subr.bf16.mxu0 %v15341_v39  ;;  %11567 = vmatprep.subr.bf16.mxu1 %v15344_v59  ;;  %v15394_v39 = vld [vmem:[%s16733_s9 + $0x15c0] ss:$16 sps:$4 sm:$0xff]   ;;  %v15397_v59 = vld [vmem:[%s16733_s9 + $0x15c8] ss:$16 sps:$4 sm:$0xff]  }
 0x304   : > { %10497 = vmatpush1.bf16.msra.mxu0 %v15339_v7  ;;  %11568 = vmatpush1.bf16.msra.mxu1 %v15342_v55  ;;  %v1195_v55 = vrot.slane %v17811_v3, 7  ;;  %v15490_v3 = vld [vmem:[%s16733_s9 + $0x17a4] ss:$16 sps:$4 sm:$0xff]  }
 0x305   : > { %10498 = vmatprep.subr.bf16.mxu0 %v15347_v6  ;;  %11569 = vmatprep.subr.bf16.mxu1 %v15350_v9  ;;  %v12437_v6 = vrot.slane %v12433_v50, 11  ;;  %v15403_v9 = vld [vmem:[%s16733_s9 + $0x15e4] ss:$16 sps:$4 sm:$0xff]   ;;  %v15461_v50 = vld [vmem:[%s16733_s9 + $0x1708] ss:$16 sps:$4 sm:$0xff]  }
 0x306   : > { %v15598_v7 = vld [vmem:[%s16733_s9 + $0x19c4] ss:$16 sps:$4 sm:$0xff]  }
 0x308   : > { %10499 = vmatpush1.bf16.msra.mxu0 %v15345_v10  ;;  %11570 = vmatpush1.bf16.msra.mxu1 %v15348_v11  ;;  %v15406_v10 = vld [vmem:[%s16733_s9 + $0x15ec] ss:$16 sps:$4 sm:$0xff]   ;;  %v1193_v11 = vsel %vm17817_vm1, %v12432_v4, %v1192_v1  ;;  %v15466_v4 = vld [vmem:[%s16733_s9 + $0x1724] ss:$16 sps:$4 sm:$0xff]  }
 0x309   : > { %10500 = vmatprep.subr.bf16.mxu0 %v15353_v13  ;;  %11571 = vmatprep.subr.bf16.mxu1 %v15356_v14  ;;  %v1216_v13 = vrot.slane %v12434_v5, 7  ;;  %v15401_v14 = vld [vmem:[%s16733_s9 + $0x15e0] ss:$16 sps:$4 sm:$0xff]   ;;  %1203 = vst [vmem:[#allocation2 + $0x60] sm:$0xf] %v1193_v11 }
 0x30a   : > { %v15463_v1 = vld [vmem:[%s16733_s9 + $0x170c] ss:$16 sps:$4 sm:$0xff]   ;;  %v15464_v5 = vld [vmem:[%s16733_s9 + $0x1720] ss:$16 sps:$4 sm:$0xff]   ;;  %v15478_v11 = vld [vmem:[%s16733_s9 + $0x1764] ss:$16 sps:$4 sm:$0xff]  }
 0x30c   : > { %10501 = vmatpush1.bf16.msra.mxu0 %v15351_v16  ;;  %11572 = vmatpush1.bf16.msra.mxu1 %v15354_v22  ;;  %v15404_v16 = vld [vmem:[%s16733_s9 + $0x15e8] ss:$16 sps:$4 sm:$0xff]   ;;  %v1196_v22 = vsel %vm17817_vm1, %v1194_v52, %v1195_v55  ;;  %v15469_v52 = vld [vmem:[%s16733_s9 + $0x172c] ss:$16 sps:$4 sm:$0xff]  }
 0x30d   : > { %10502 = vmatprep.subr.bf16.mxu0 %v15359_v25  ;;  %11573 = vmatprep.subr.bf16.mxu1 %v15362_v26  ;;  %v17833_v25 = vld [vmem:[%s16730_s19 + $0x1c] sm:$0xf]  ;;  %1204 = vst [vmem:[#allocation2 + $0x104] sm:$0xf] %v1196_v22  ;;  %v1217_v26 = vsel %vm17817_vm1, %v12437_v6, %v1216_v13  ;;  %v15484_v22 = vld [vmem:[%s16733_s9 + $0x1784] ss:$16 sps:$4 sm:$0xff]  }
 0x30e   : > { %1227 = vst [vmem:[#allocation2 + $0x64] sm:$0xf] %v1217_v26  ;;  %v15475_v6 = vld [vmem:[%s16733_s9 + $0x174c] ss:$16 sps:$4 sm:$0xff]  }
 0x30f   : > { %v15487_v26 = vld [vmem:[%s16733_s9 + $0x178c] ss:$16 sps:$4 sm:$0xff]  }
 0x310   : > { %10503 = vmatpush1.bf16.msra.mxu0 %v15357_v21  ;;  %11574 = vmatpush1.bf16.msra.mxu1 %v15360_v24  ;;  %v1218_v21 = vrot.slane %v1216_v13, 4  ;;  %v1219_v24 = vrot.slane %v17833_v25, 7  ;;  %v15481_v13 = vld [vmem:[%s16733_s9 + $0x176c] ss:$16 sps:$4 sm:$0xff]  }
 0x311   : > { %10504 = vmatprep.subr.bf16.mxu0 %v15365_v29  ;;  %11575 = vmatprep.subr.bf16.mxu1 %v15368_v27  ;;  %v15412_v29 = vld [vmem:[%s16733_s9 + $0x1604] ss:$16 sps:$4 sm:$0xff]   ;;  %v15415_v27 = vld [vmem:[%s16733_s9 + $0x160c] ss:$16 sps:$4 sm:$0xff]  }
 0x314   : > { %10505 = vmatpush1.bf16.msra.mxu0 %v15363_v30  ;;  %11576 = vmatpush1.bf16.msra.mxu1 %v15366_v31  ;;  %v15407_v30 = vld [vmem:[#allocation2 + $0x50] ss:$164 sps:$4 sm:$0xff]   ;;  %v1721_v31 = vld [vmem:[#allocation2 + $0x198] sm:$0xff] }
 0x315   : > { %10506 = vmatprep.subr.bf16.mxu0 %v15371_v32  ;;  %11577 = vmatprep.subr.bf16.mxu1 %v15374_v33  ;;  %v1220_v32 = vsel %vm17817_vm1, %v1218_v21, %v1219_v24  ;;  %v15410_v33 = vld [vmem:[%s16733_s9 + $0x1600] ss:$16 sps:$4 sm:$0xff]   ;;  %v12547_v12 = vcombine.low %v1721_v31, %v1721_v31  ;;  %v1182_v21 = vld [vmem:[%s16730_s19 + $0xc] sm:$0x7] }
 0x316   : > { %1228 = vst [vmem:[#allocation2 + $0x108] sm:$0xf] %v1220_v32 }
 0x318   : > { %10507 = vmatpush1.bf16.msra.mxu0 %v15369_v34  ;;  %11578 = vmatpush1.bf16.msra.mxu1 %v15372_v36  ;;  %v15413_v34 = vld [vmem:[%s16733_s9 + $0x1608] ss:$16 sps:$4 sm:$0xff]   ;;  %v15418_v36 = vld [vmem:[%s16733_s9 + $0x1624] ss:$16 sps:$4 sm:$0xff]  }
 0x319   : > { %10508 = vmatprep.subr.bf16.mxu0 %v15377_v37  ;;  %11579 = vmatprep.subr.bf16.mxu1 %v15380_v20  ;;  %v15421_v37 = vld [vmem:[%s16733_s9 + $0x162c] ss:$16 sps:$4 sm:$0xff]   ;;  %v12548_v20 = vcombine.high %v1721_v31, %v1721_v31  ;;  %v1221_v31 = vrot.slane %v1219_v24, 4  ;;  %v15488_v24 = vld [vmem:[%s16733_s9 + $0x17a0] ss:$16 sps:$4 sm:$0xff]  }
 0x31c   : > { %10509 = vmatpush1.bf16.msra.mxu0 %v15375_v19  ;;  %11580 = vmatpush1.bf16.msra.mxu1 %v15378_v28  ;;  %v15425_v19 = vld [vmem:[%s16733_s9 + $0x1648] ss:$16 sps:$4 sm:$0xff]   ;;  %v15430_v28 = vld [vmem:[%s16733_s9 + $0x1664] ss:$16 sps:$4 sm:$0xff]  }
 0x31d   : > { %10510 = vmatprep.subr.bf16.mxu0 %v15383_v45  ;;  %11581 = vmatprep.subr.bf16.mxu1 %v15386_v47  ;;  %v15428_v45 = vld [vmem:[%s16733_s9 + $0x1660] ss:$16 sps:$4 sm:$0xff]   ;;  %v15431_v47 = vld [vmem:[%s16733_s9 + $0x1668] ss:$16 sps:$4 sm:$0xff]  }
 0x320   : > { %10511 = vmatpush1.bf16.msra.mxu0 %v15381_v57  ;;  %11582 = vmatpush1.bf16.msra.mxu1 %v15384_v35  ;;  %v15440_v57 = vld [vmem:[%s16733_s9 + $0x16a0] ss:$16 sps:$4 sm:$0xff]   ;;  %v15443_v35 = vld [vmem:[%s16733_s9 + $0x16a8] ss:$16 sps:$4 sm:$0xff]  }
 0x321   : > { %10512 = vmatprep.subr.bf16.mxu0 %v15389_v23  ;;  %11583 = vmatprep.subr.bf16.mxu1 %v15392_v46  ;;  %v15451_v23 = vld [vmem:[%s16733_s9 + $0x16cc] ss:$16 sps:$4 sm:$0xff]   ;;  %v15446_v46 = vld [vmem:[%s16733_s9 + $0x16c0] ss:$16 sps:$4 sm:$0xff]  }
 0x324   : > { %10513 = vmatpush1.bf16.msra.mxu0 %v15387_v58  ;;  %11584 = vmatpush1.bf16.msra.mxu1 %v15390_v60  ;;  %v15454_v58 = vld [vmem:[%s16733_s9 + $0x16e4] ss:$16 sps:$4 sm:$0xff]   ;;  %v15457_v60 = vld [vmem:[%s16733_s9 + $0x16ec] ss:$16 sps:$4 sm:$0xff]  }
 0x325   : > { %10514 = vmatprep.subr.bf16.mxu0 %v15396_v63  ;;  %11585 = vmatprep.subr.bf16.mxu1 %v15399_v0  ;;  %v15455_v63 = vld [vmem:[%s16733_s9 + $0x16e8] ss:$16 sps:$4 sm:$0xff]   ;;  %v15460_v0 = vld [vmem:[%s16733_s9 + $0x1704] ss:$16 sps:$4 sm:$0xff]  }
 0x328   : > { %10515 = vmatpush1.bf16.msra.mxu0 %v15394_v39  ;;  %11586 = vmatpush1.bf16.msra.mxu1 %v15397_v59  ;;  %v15467_v39 = vld [vmem:[%s16733_s9 + $0x1728] ss:$16 sps:$4 sm:$0xff]   ;;  %v15472_v59 = vld [vmem:[%s16733_s9 + $0x1744] ss:$16 sps:$4 sm:$0xff]  }
 0x329   : > { %10516 = vmatprep.subr.bf16.mxu0 %v15403_v9  ;;  %11587 = vmatprep.subr.bf16.mxu1 %v15406_v10  ;;  %v15470_v9 = vld [vmem:[%s16733_s9 + $0x1740] ss:$16 sps:$4 sm:$0xff]   ;;  %v15473_v10 = vld [vmem:[%s16733_s9 + $0x1748] ss:$16 sps:$4 sm:$0xff]  }
 0x32c   : > { %10517 = vmatpush1.bf16.msra.mxu0 %v15401_v14  ;;  %11588 = vmatpush1.bf16.msra.mxu1 %v15404_v16  ;;  %v15476_v14 = vld [vmem:[%s16733_s9 + $0x1760] ss:$16 sps:$4 sm:$0xff]   ;;  %v15479_v16 = vld [vmem:[%s16733_s9 + $0x1768] ss:$16 sps:$4 sm:$0xff]  }
 0x32d   : > { %10537 = vmatprep.subr.bf16.mxu0 %v15412_v29  ;;  %11608 = vmatprep.subr.bf16.mxu1 %v15415_v27  ;;  %v1197_v29 = vrot.slane %v1195_v55, 4  ;;  %v1198_v27 = vrot.slane %v1182_v21, 7  ;;  %v15493_v55 = vld [vmem:[%s16733_s9 + $0x17ac] ss:$16 sps:$4 sm:$0xff]   ;;  %v15537_v21 = vld [vmem:[%s16733_s9 + $0x1884] ss:$16 sps:$4 sm:$0xff]  }
 0x32f   : > { %10519 = vmatmul.mubr.bf16.vlgmr.msra.gmra.mrb[0].mxu0 %v15407_v30  ;;  %11590 = vmatmul.mubr.bf16.vlgmr.msra.gmra.mrb[0].mxu1 %v15407_v30  ;;  %v12436_v30 = vld [vmem:[%s16730_s19 + $0x20] sm:$0x7] }
 0x330   : > { %10538 = vmatpush1.bf16.msra.mxu0 %v15410_v33  ;;  %11609 = vmatpush1.bf16.msra.mxu1 %v15413_v34  ;;  %v1222_v32 = vrot.slane %v12436_v30, 7  ;;  %v15482_v33 = vld [vmem:[%s16733_s9 + $0x1780] ss:$16 sps:$4 sm:$0xff]   ;;  %v15485_v34 = vld [vmem:[%s16733_s9 + $0x1788] ss:$16 sps:$4 sm:$0xff]  }
 0x331   : > { %10539 = vmatprep.subr.bf16.mxu0 %v15418_v36  ;;  %11610 = vmatprep.subr.bf16.mxu1 %v15421_v37  ;;  %v1199_v36 = vsel %vm17817_vm1, %v1197_v29, %v1198_v27  ;;  %v15491_v37 = vld [vmem:[%s16733_s9 + $0x17a8] ss:$16 sps:$4 sm:$0xff]   ;;  %v15540_v29 = vld [vmem:[%s16733_s9 + $0x188c] ss:$16 sps:$4 sm:$0xff]   ;;  %v15535_v27 = vld [vmem:[%s16733_s9 + $0x1880] ss:$16 sps:$4 sm:$0xff]  }
 0x332   : > { %10528 = vmatprep.mubr.bf16.mxu0 %v12548_v20  ;;  %11599 = vmatprep.mubr.bf16.mxu1 %v12548_v20  ;;  %1205 = vst [vmem:[#allocation2 + $0x1a8] sm:$0xf] %v1199_v36  ;;  %v1223_v25 = vsel %vm17817_vm1, %v1221_v31, %v1222_v32  ;;  %v12439_v20 = vld [vmem:[%s16730_s19 + $0x2c] sm:$0xf]  ;;  %v15538_v30 = vld [vmem:[%s16733_s9 + $0x1888] ss:$16 sps:$4 sm:$0xff]  }
 0x333   : > { %1229 = vst [vmem:[#allocation2 + $0x1ac] sm:$0xf] %v1223_v25  ;;  %v15543_v31 = vld [vmem:[%s16733_s9 + $0x18a4] ss:$16 sps:$4 sm:$0xff]   ;;  %v15546_v32 = vld [vmem:[%s16733_s9 + $0x18ac] ss:$16 sps:$4 sm:$0xff]  }
 0x334   : > { %10540 = vmatpush1.bf16.msra.mxu0 %v15416_v38  ;;  %11611 = vmatpush1.bf16.msra.mxu1 %v15419_v40  ;;  %v15497_v38 = vld [vmem:[%s16733_s9 + $0x17c4] ss:$16 sps:$4 sm:$0xff]   ;;  %v15500_v40 = vld [vmem:[%s16733_s9 + $0x17cc] ss:$16 sps:$4 sm:$0xff]   ;;  %v15550_v25 = vld [vmem:[%s16733_s9 + $0x18c8] ss:$16 sps:$4 sm:$0xff]  }
 0x335   : > { %10541 = vmatprep.subr.bf16.mxu0 %v15424_v41  ;;  %11612 = vmatprep.subr.bf16.mxu1 %v15427_v18  ;;  %v1240_v41 = vrot.slane %v12439_v20, 7  ;;  %v12438_v18 = vld [vmem:[%s16730_s19 + $0x28] sm:$0x8]  ;;  %v15549_v36 = vld [vmem:[%s16733_s9 + $0x18c4] ss:$16 sps:$4 sm:$0xff]  }
 0x336   : > { %v15553_v20 = vld [vmem:[%s16733_s9 + $0x18e0] ss:$16 sps:$4 sm:$0xff]  }
 0x337   : > { %10529 = vmatmul.mubr.bf16.gmra.mrb[4].mxu0 %v12547_v12  ;;  %11600 = vmatmul.mubr.bf16.gmra.mrb[4].mxu1 %v12547_v12  ;;  %v12443_v12 = vld [vmem:[%s16730_s19 + $0x3c] sm:$0x8] }
 0x338   : > { %10542 = vmatpush1.bf16.msra.mxu0 %v15422_v42  ;;  %11613 = vmatpush1.bf16.msra.mxu1 %v15425_v19  ;;  %v17913_v42 = vld [vmem:[%s16730_s19 + $0x30] sm:$0xf]  ;;  %v12442_v19 = vrot.slane %v12438_v18, 11 }
 0x339   : > { %10543 = vmatprep.subr.bf16.mxu0 %v15430_v28  ;;  %11614 = vmatprep.subr.bf16.mxu1 %v15433_v8  ;;  %v1242_v28 = vrot.slane %v1240_v41, 4  ;;  %v1243_v8 = vrot.slane %v17913_v42, 7  ;;  %v15559_v18 = vld [vmem:[%s16733_s9 + $0x1900] ss:$16 sps:$4 sm:$0xff]   ;;  %v15591_v42 = vld [vmem:[%s16733_s9 + $0x19a4] ss:$16 sps:$4 sm:$0xff]  }
 0x33a   : > { %10569 = vmatprep.mubr.bf16.mxu0 %v15510_v44  ;;  %11640 = vmatprep.mubr.bf16.mxu1 %v15510_v44  ;;  %v12444_v44 = vld [vmem:[%s16730_s19 + $0x40] sm:$0xf] }
 0x33c   : > { %10544 = vmatpush1.bf16.msra.mxu0 %v15428_v45  ;;  %11615 = vmatpush1.bf16.msra.mxu1 %v15431_v47  ;;  %v12447_v45 = vrot.slane %v12443_v12, 11  ;;  %v15495_v47 = vld [vmem:[%s16733_s9 + $0x17c0] ss:$16 sps:$4 sm:$0xff]   ;;  %v15562_v12 = vld [vmem:[%s16733_s9 + $0x1908] ss:$16 sps:$4 sm:$0xff]  }
 0x33d   : > { %10545 = vmatprep.subr.bf16.mxu0 %v15436_v48  ;;  %11616 = vmatprep.subr.bf16.mxu1 %v15439_v53  ;;  %v15498_v48 = vld [vmem:[%s16733_s9 + $0x17c8] ss:$16 sps:$4 sm:$0xff]   ;;  %v17921_v53 = vld [vmem:[%s16730_s19 + $0x44] sm:$0xf] }
 0x340   : > { %10546 = vmatpush1.bf16.msra.mxu0 %v15434_v62  ;;  %11617 = vmatpush1.bf16.msra.mxu1 %v15437_v43  ;;  %v15504_v62 = vld [vmem:[%s16733_s9 + $0x17e4] ss:$16 sps:$4 sm:$0xff]   ;;  %v15507_v43 = vld [vmem:[%s16733_s9 + $0x17ec] ss:$16 sps:$4 sm:$0xff]  }
 0x341   : > { %10547 = vmatprep.subr.bf16.mxu0 %v15442_v54  ;;  %11618 = vmatprep.subr.bf16.mxu1 %v15445_v56  ;;  %v1241_v54 = vsel %vm17817_vm1, %v12442_v19, %v1240_v41  ;;  %v1244_v56 = vsel %vm17817_vm1, %v1242_v28, %v1243_v8  ;;  %v15564_v41 = vld [vmem:[%s16733_s9 + $0x190c] ss:$16 sps:$4 sm:$0xff]   ;;  %v15567_v19 = vld [vmem:[%s16733_s9 + $0x1924] ss:$16 sps:$4 sm:$0xff]  }
 0x342   : > { %1251 = vst [vmem:[#allocation2 + $0x68] sm:$0xf] %v1241_v54  ;;  %1252 = vst [vmem:[#allocation2 + $0x10c] sm:$0xf] %v1244_v56  ;;  %v15570_v28 = vld [vmem:[%s16733_s9 + $0x192c] ss:$16 sps:$4 sm:$0xff]  }
 0x343   : > { %v15579_v54 = vld [vmem:[%s16733_s9 + $0x1964] ss:$16 sps:$4 sm:$0xff]   ;;  %v15582_v56 = vld [vmem:[%s16733_s9 + $0x196c] ss:$16 sps:$4 sm:$0xff]  }
 0x344   : > { %10548 = vmatpush1.bf16.msra.mxu0 %v15440_v57  ;;  %11619 = vmatpush1.bf16.msra.mxu1 %v15443_v35  ;;  %v1264_v57 = vrot.slane %v12444_v44, 7  ;;  %v15502_v35 = vld [vmem:[%s16733_s9 + $0x17e0] ss:$16 sps:$4 sm:$0xff]  }
 0x345   : > { %10549 = vmatprep.subr.bf16.mxu0 %v15448_v49  ;;  %11620 = vmatprep.subr.bf16.mxu1 %v15451_v23  ;;  %v15505_v49 = vld [vmem:[%s16733_s9 + $0x17e8] ss:$16 sps:$4 sm:$0xff]   ;;  %v1267_v23 = vrot.slane %v17921_v53, 7  ;;  %v15565_v44 = vld [vmem:[%s16733_s9 + $0x1920] ss:$16 sps:$4 sm:$0xff]  }
 0x348   : > { %10550 = vmatpush1.bf16.msra.mxu0 %v15446_v46  ;;  %11621 = vmatpush1.bf16.msra.mxu1 %v15449_v51  ;;  %v1265_v46 = vsel %vm17817_vm1, %v12447_v45, %v1264_v57  ;;  %v1266_v51 = vrot.slane %v1264_v57, 4  ;;  %v15568_v45 = vld [vmem:[%s16733_s9 + $0x1928] ss:$16 sps:$4 sm:$0xff]   ;;  %v15577_v57 = vld [vmem:[%s16733_s9 + $0x1960] ss:$16 sps:$4 sm:$0xff]  }
 0x349   : > { %10551 = vmatprep.subr.bf16.mxu0 %v15454_v58  ;;  %11622 = vmatprep.subr.bf16.mxu1 %v15457_v60  ;;  %v15513_v58 = vld [vmem:[%s16733_s9 + $0x1804] ss:$16 sps:$4 sm:$0xff]   ;;  %v15516_v60 = vld [vmem:[%s16733_s9 + $0x180c] ss:$16 sps:$4 sm:$0xff]   ;;  %1275 = vst [vmem:[#allocation2 + $0x6c] sm:$0xf] %v1265_v46 }
 0x34a   : > { %v15588_v46 = vld [vmem:[%s16733_s9 + $0x198c] ss:$16 sps:$4 sm:$0xff]  }
 0x34c   : > { %10552 = vmatpush1.bf16.msra.mxu0 %v15452_v61  ;;  %11623 = vmatpush1.bf16.msra.mxu1 %v15455_v63  ;;  %v15508_v61 = vld [vmem:[#allocation2 + $0x58] ss:$164 sps:$4 sm:$0xff]   ;;  %v1722_v63 = vld [vmem:[#allocation2 + $0x1a0] sm:$0xff] }
 0x34d   : > { %10553 = vmatprep.subr.bf16.mxu0 %v15460_v0  ;;  %11624 = vmatprep.subr.bf16.mxu1 %v15463_v1  ;;  %v1268_v0 = vsel %vm17817_vm1, %v1266_v51, %v1267_v23  ;;  %v15511_v1 = vld [vmem:[%s16733_s9 + $0x1800] ss:$16 sps:$4 sm:$0xff]   ;;  %v12441_v51 = vld [vmem:[%s16730_s19 + $0x34] sm:$0x7] }
 0x34e   : > { %1276 = vst [vmem:[#allocation2 + $0x110] sm:$0xf] %v1268_v0 }
 0x350   : > { %10554 = vmatpush1.bf16.msra.mxu0 %v15458_v2  ;;  %11625 = vmatpush1.bf16.msra.mxu1 %v15461_v50  ;;  %v15514_v2 = vld [vmem:[%s16733_s9 + $0x1808] ss:$16 sps:$4 sm:$0xff]   ;;  %v15519_v50 = vld [vmem:[%s16733_s9 + $0x1824] ss:$16 sps:$4 sm:$0xff]  }
 0x351   : > { %10555 = vmatprep.subr.bf16.mxu0 %v15466_v4  ;;  %11626 = vmatprep.subr.bf16.mxu1 %v15469_v52  ;;  %v15522_v4 = vld [vmem:[%s16733_s9 + $0x182c] ss:$16 sps:$4 sm:$0xff]   ;;  %v12550_v52 = vcombine.high %v1722_v63, %v1722_v63 }
 0x354   : > { %10556 = vmatpush1.bf16.msra.mxu0 %v15464_v5  ;;  %11627 = vmatpush1.bf16.msra.mxu1 %v15467_v39  ;;  %v15517_v5 = vld [vmem:[%s16733_s9 + $0x1820] ss:$16 sps:$4 sm:$0xff]   ;;  %v15520_v39 = vld [vmem:[%s16733_s9 + $0x1828] ss:$16 sps:$4 sm:$0xff]  }
 0x355   : > { %10557 = vmatprep.subr.bf16.mxu0 %v15472_v59  ;;  %11628 = vmatprep.subr.bf16.mxu1 %v15475_v6  ;;  %v15525_v59 = vld [vmem:[%s16733_s9 + $0x1844] ss:$16 sps:$4 sm:$0xff]   ;;  %v15528_v6 = vld [vmem:[%s16733_s9 + $0x184c] ss:$16 sps:$4 sm:$0xff]  }
 0x358   : > { %10558 = vmatpush1.bf16.msra.mxu0 %v15470_v9  ;;  %11629 = vmatpush1.bf16.msra.mxu1 %v15473_v10  ;;  %v15523_v9 = vld [vmem:[%s16733_s9 + $0x1840] ss:$16 sps:$4 sm:$0xff]   ;;  %v12549_v10 = vcombine.low %v1722_v63, %v1722_v63  ;;  %v1269_v63 = vrot.slane %v1267_v23, 4  ;;  %v1279_v23 = vld [vmem:[%s16730_s19 + $0x4] sm:$0xf] }
 0x359   : > { %10559 = vmatprep.subr.bf16.mxu0 %v15478_v11  ;;  %11630 = vmatprep.subr.bf16.mxu1 %v15481_v13  ;;  %v15526_v11 = vld [vmem:[%s16733_s9 + $0x1848] ss:$16 sps:$4 sm:$0xff]   ;;  %v15531_v13 = vld [vmem:[%s16733_s9 + $0x1864] ss:$16 sps:$4 sm:$0xff]  }
 0x35c   : > { %10560 = vmatpush1.bf16.msra.mxu0 %v15476_v14  ;;  %11631 = vmatpush1.bf16.msra.mxu1 %v15479_v16  ;;  %v15534_v14 = vld [vmem:[%s16733_s9 + $0x186c] ss:$16 sps:$4 sm:$0xff]  }
 0x35d   : > { %10561 = vmatprep.subr.bf16.mxu0 %v15484_v22  ;;  %11632 = vmatprep.subr.bf16.mxu1 %v15487_v26  ;;  %v15611_v16 = vld [vmem:[#allocation2 + $0x64] ss:$164 sps:$4 sm:$0xff]   ;;  %v15529_v22 = vld [vmem:[%s16733_s9 + $0x1860] ss:$16 sps:$4 sm:$0xff]  }
 0x35e   : > { %v15532_v26 = vld [vmem:[%s16733_s9 + $0x1868] ss:$16 sps:$4 sm:$0xff]  }
 0x360   : > { %10562 = vmatpush1.bf16.msra.mxu0 %v15482_v33  ;;  %11633 = vmatpush1.bf16.msra.mxu1 %v15485_v34  ;;  %v15541_v33 = vld [vmem:[%s16733_s9 + $0x18a0] ss:$16 sps:$4 sm:$0xff]   ;;  %v15544_v34 = vld [vmem:[%s16733_s9 + $0x18a8] ss:$16 sps:$4 sm:$0xff]  }
 0x361   : > { %10563 = vmatprep.subr.bf16.mxu0 %v15490_v3  ;;  %11634 = vmatprep.subr.bf16.mxu1 %v15493_v55  ;;  %v15552_v3 = vld [vmem:[%s16733_s9 + $0x18cc] ss:$16 sps:$4 sm:$0xff]   ;;  %v15547_v55 = vld [vmem:[%s16733_s9 + $0x18c0] ss:$16 sps:$4 sm:$0xff]  }
 0x364   : > { %10564 = vmatpush1.bf16.msra.mxu0 %v15488_v24  ;;  %11635 = vmatpush1.bf16.msra.mxu1 %v15491_v37  ;;  %v15555_v24 = vld [vmem:[%s16733_s9 + $0x18e4] ss:$16 sps:$4 sm:$0xff]   ;;  %v15558_v37 = vld [vmem:[%s16733_s9 + $0x18ec] ss:$16 sps:$4 sm:$0xff]  }
 0x365   : > { %10565 = vmatprep.subr.bf16.mxu0 %v15497_v38  ;;  %11636 = vmatprep.subr.bf16.mxu1 %v15500_v40  ;;  %v15556_v38 = vld [vmem:[%s16733_s9 + $0x18e8] ss:$16 sps:$4 sm:$0xff]   ;;  %v15561_v40 = vld [vmem:[%s16733_s9 + $0x1904] ss:$16 sps:$4 sm:$0xff]  }
 0x368   : > { %10566 = vmatpush1.bf16.msra.mxu0 %v15495_v47  ;;  %11637 = vmatpush1.bf16.msra.mxu1 %v15498_v48  ;;  %v15573_v47 = vld [vmem:[%s16733_s9 + $0x1944] ss:$16 sps:$4 sm:$0xff]   ;;  %v15576_v48 = vld [vmem:[%s16733_s9 + $0x194c] ss:$16 sps:$4 sm:$0xff]  }
 0x369   : > { %10567 = vmatprep.subr.bf16.mxu0 %v15504_v62  ;;  %11638 = vmatprep.subr.bf16.mxu1 %v15507_v43  ;;  %v15571_v62 = vld [vmem:[%s16733_s9 + $0x1940] ss:$16 sps:$4 sm:$0xff]   ;;  %v15574_v43 = vld [vmem:[%s16733_s9 + $0x1948] ss:$16 sps:$4 sm:$0xff]  }
 0x36c   : > { %10568 = vmatpush1.bf16.msra.mxu0 %v15502_v35  ;;  %11639 = vmatpush1.bf16.msra.mxu1 %v15505_v49  ;;  %v15580_v35 = vld [vmem:[%s16733_s9 + $0x1968] ss:$16 sps:$4 sm:$0xff]   ;;  %v15585_v49 = vld [vmem:[%s16733_s9 + $0x1984] ss:$16 sps:$4 sm:$0xff]  }
 0x36d   : > { %10588 = vmatprep.subr.bf16.mxu0 %v15513_v58  ;;  %11659 = vmatprep.subr.bf16.mxu1 %v15516_v60  ;;  %v1245_v58 = vrot.slane %v1243_v8, 4  ;;  %v1246_v60 = vrot.slane %v12441_v51, 7  ;;  %v15594_v8 = vld [vmem:[%s16733_s9 + $0x19ac] ss:$16 sps:$4 sm:$0xff]  }
 0x36f   : > { %10570 = vmatmul.mubr.bf16.vlgmr.msra.gmra.mrb[0].mxu0 %v15508_v61  ;;  %11641 = vmatmul.mubr.bf16.vlgmr.msra.gmra.mrb[0].mxu1 %v15508_v61  ;;  %v12446_v61 = vld [vmem:[%s16730_s19 + $0x48] sm:$0x7] }
 0x370   : > { %10589 = vmatpush1.bf16.msra.mxu0 %v15511_v1  ;;  %11660 = vmatpush1.bf16.msra.mxu1 %v15514_v2  ;;  %v1270_v0 = vrot.slane %v12446_v61, 7  ;;  %v15583_v1 = vld [vmem:[%s16733_s9 + $0x1980] ss:$16 sps:$4 sm:$0xff]   ;;  %v15586_v2 = vld [vmem:[%s16733_s9 + $0x1988] ss:$16 sps:$4 sm:$0xff]  }
 0x371   : > { %10590 = vmatprep.subr.bf16.mxu0 %v15519_v50  ;;  %11661 = vmatprep.subr.bf16.mxu1 %v15522_v4  ;;  %v1247_v50 = vsel %vm17817_vm1, %v1245_v58, %v1246_v60  ;;  %v1280_v4 = vld [vmem:[%s16730_s19 + $0x8] sm:$0xf]  ;;  %v15618_v60 = vld [vmem:[%s16733_s9 + $0x1a20] ss:$16 sps:$4 sm:$0xff]  }
 0x372   : > { %10579 = vmatprep.mubr.bf16.mxu0 %v12550_v52  ;;  %11650 = vmatprep.mubr.bf16.mxu1 %v12550_v52  ;;  %1253 = vst [vmem:[#allocation2 + $0x1b0] sm:$0xf] %v1247_v50  ;;  %v1271_v53 = vsel %vm17817_vm1, %v1269_v63, %v1270_v0  ;;  %v12450_v52 = vld [vmem:[%s16730_s19 + $0x18] sm:$0xf]  ;;  %v15626_v63 = vld [vmem:[%s16733_s9 + $0x1a44] ss:$16 sps:$4 sm:$0xff]  }
 0x373   : > { %1277 = vst [vmem:[#allocation2 + $0x1b4] sm:$0xf] %v1271_v53  ;;  %v15621_v61 = vld [vmem:[%s16733_s9 + $0x1a28] ss:$16 sps:$4 sm:$0xff]   ;;  %v15629_v0 = vld [vmem:[%s16733_s9 + $0x1a4c] ss:$16 sps:$4 sm:$0xff]  }
 0x374   : > { %10591 = vmatpush1.bf16.msra.mxu0 %v15517_v5  ;;  %11662 = vmatpush1.bf16.msra.mxu1 %v15520_v39  ;;  %v1291_v5 = vshrl.u32 %v1279_v23, 16  ;;  %v1300_v39 = vshrl.u32 %v1280_v4, 16  ;;  %v15627_v50 = vld [vmem:[%s16733_s9 + $0x1a48] ss:$16 sps:$4 sm:$0xff]   ;;  %v15712_v53 = vld [vmem:[#allocation2 + $0x6c] ss:$164 sps:$4 sm:$0xff]  }
 0x375   : > { %10592 = vmatprep.subr.bf16.mxu0 %v15525_v59  ;;  %11663 = vmatprep.subr.bf16.mxu1 %v15528_v6  ;;  %v1332_v59 = vshrl.u32 %v12450_v52, 16  ;;  %v15589_v6 = vld [vmem:[%s16733_s9 + $0x19a0] ss:$16 sps:$4 sm:$0xff]  }
 0x377   : > { %10580 = vmatmul.mubr.bf16.gmra.mrb[4].mxu0 %v12549_v10  ;;  %11651 = vmatmul.mubr.bf16.gmra.mrb[4].mxu1 %v12549_v10  ;;  %v1278_v10 = vld [vmem:[%s16730_s19] sm:$0x8] }
 0x378   : > { %10593 = vmatpush1.bf16.msra.mxu0 %v15523_v9  ;;  %11664 = vmatpush1.bf16.msra.mxu1 %v15526_v11  ;;  %v15592_v9 = vld [vmem:[%s16733_s9 + $0x19a8] ss:$16 sps:$4 sm:$0xff]   ;;  %v15601_v11 = vld [vmem:[%s16733_s9 + $0x19cc] ss:$16 sps:$4 sm:$0xff]  }
 0x379   : > { %10594 = vmatprep.subr.bf16.mxu0 %v15531_v13  ;;  %11665 = vmatprep.subr.bf16.mxu1 %v15534_v14  ;;  %v1286_v13 = vshrl.u32 %v1278_v10, 16  ;;  %v1293_v14 = vrot.slane %v1291_v5, 7  ;;  %v15641_v5 = vld [vmem:[%s16733_s9 + $0x1a8c] ss:$16 sps:$4 sm:$0xff]   ;;  %v15642_v10 = vld [vmem:[%s16733_s9 + $0x1aa0] ss:$16 sps:$4 sm:$0xff]  }
 0x37a   : > { %10620 = vmatprep.mubr.bf16.mxu0 %v15611_v16  ;;  %11691 = vmatprep.mubr.bf16.mxu1 %v15611_v16  ;;  %v15596_v16 = vld [vmem:[%s16733_s9 + $0x19c0] ss:$16 sps:$4 sm:$0xff]  }
 0x37c   : > { %10595 = vmatpush1.bf16.msra.mxu0 %v15529_v22  ;;  %11666 = vmatpush1.bf16.msra.mxu1 %v15532_v26  ;;  %v1294_v22 = vshll.u32 %v1279_v23, 16  ;;  %v18013_v26 = vrot.slane %v1300_v39, 7  ;;  %v15630_v23 = vld [vmem:[%s16733_s9 + $0x1a60] ss:$16 sps:$4 sm:$0xff]  }
 0x37d   : > { %10596 = vmatprep.subr.bf16.mxu0 %v15537_v21  ;;  %11667 = vmatprep.subr.bf16.mxu1 %v15540_v29  ;;  %v1303_v21 = vshll.u32 %v1280_v4, 16  ;;  %v12449_v29 = vld [vmem:[%s16730_s19 + $0x14] sm:$0x8]  ;;  %v15633_v4 = vld [vmem:[%s16733_s9 + $0x1a68] ss:$16 sps:$4 sm:$0xff]  }
 0x37e   : > { %v15636_v39 = vld [vmem:[%s16733_s9 + $0x1a80] ss:$16 sps:$4 sm:$0xff]  }
 0x380   : > { %10597 = vmatpush1.bf16.msra.mxu0 %v15535_v27  ;;  %11668 = vmatpush1.bf16.msra.mxu1 %v15538_v30  ;;  %v1334_v27 = vrot.slane %v1332_v59, 7  ;;  %v12448_v30 = vrot.slane %v1286_v13, 11  ;;  %v15639_v59 = vld [vmem:[%s16733_s9 + $0x1a88] ss:$16 sps:$4 sm:$0xff]   ;;  %v15653_v13 = vld [vmem:[%s16733_s9 + $0x1acc] ss:$16 sps:$4 sm:$0xff]  }
 0x381   : > { %10598 = vmatprep.subr.bf16.mxu0 %v15543_v31  ;;  %11669 = vmatprep.subr.bf16.mxu1 %v15546_v32  ;;  %v1298_v31 = vrot.slane %v1293_v14, 4  ;;  %v15599_v32 = vld [vmem:[%s16733_s9 + $0x19c8] ss:$16 sps:$4 sm:$0xff]  }
 0x384   : > { %10599 = vmatpush1.bf16.msra.mxu0 %v15541_v33  ;;  %11670 = vmatpush1.bf16.msra.mxu1 %v15544_v34  ;;  %v1296_v34 = vor.u32 %v1294_v22, %v1293_v14  ;;  %v15648_v14 = vld [vmem:[%s16733_s9 + $0x1ac0] ss:$16 sps:$4 sm:$0xff]   ;;  %v15656_v22 = vld [vmem:[%s16733_s9 + $0x1ae4] ss:$16 sps:$4 sm:$0xff]  }
 0x385   : > { %10600 = vmatprep.subr.bf16.mxu0 %v15549_v36  ;;  %11671 = vmatprep.subr.bf16.mxu1 %v15552_v3  ;;  %v1305_v36 = vor.u32 %v1303_v21, %v18013_v26  ;;  %v12451_v3 = vld [vmem:[%s16730_s19 + $0x1c] sm:$0xf]  ;;  %v15798_v33 = vld [vmem:[%s16733_s9 + $0x1dc0] ss:$16 sps:$4 sm:$0xff]  }
 0x386   : > { %v15659_v21 = vld [vmem:[%s16733_s9 + $0x1aec] ss:$16 sps:$4 sm:$0xff]  }
 0x388   : > { %10601 = vmatpush1.bf16.msra.mxu0 %v15547_v55  ;;  %11672 = vmatpush1.bf16.msra.mxu1 %v15550_v25  ;;  %v1327_v55 = vshrl.u32 %v12449_v29, 16  ;;  %v1335_v25 = vshll.u32 %v12450_v52, 16  ;;  %v15638_v52 = vld [vmem:[%s16733_s9 + $0x1a84] ss:$16 sps:$4 sm:$0xff]   ;;  %v15654_v29 = vld [vmem:[%s16733_s9 + $0x1ae0] ss:$16 sps:$4 sm:$0xff]  }
 0x389   : > { %10602 = vmatprep.subr.bf16.mxu0 %v15555_v24  ;;  %11673 = vmatprep.subr.bf16.mxu1 %v15558_v37  ;;  %v15605_v24 = vld [vmem:[%s16733_s9 + $0x19e4] ss:$16 sps:$4 sm:$0xff]   ;;  %v15608_v37 = vld [vmem:[%s16733_s9 + $0x19ec] ss:$16 sps:$4 sm:$0xff]  }
 0x38c   : > { %10603 = vmatpush1.bf16.msra.mxu0 %v15553_v20  ;;  %11674 = vmatpush1.bf16.msra.mxu1 %v15556_v38  ;;  %v15603_v20 = vld [vmem:[%s16733_s9 + $0x19e0] ss:$16 sps:$4 sm:$0xff]   ;;  %v15606_v38 = vld [vmem:[%s16733_s9 + $0x19e8] ss:$16 sps:$4 sm:$0xff]  }
 0x38d   : > { %10604 = vmatprep.subr.bf16.mxu0 %v15561_v40  ;;  %11675 = vmatprep.subr.bf16.mxu1 %v15564_v41  ;;  %v1297_v40 = vsel %vm18017_vm6, %v12448_v30, %v1296_v34  ;;  %v1306_v41 = vsel %vm18017_vm6, %v1298_v31, %v1305_v36  ;;  %v15662_v30 = vld [vmem:[%s16733_s9 + $0x1b04] ss:$16 sps:$4 sm:$0xff]   ;;  %v15665_v31 = vld [vmem:[%s16733_s9 + $0x1b0c] ss:$16 sps:$4 sm:$0xff]   ;;  %v15663_v34 = vld [vmem:[%s16733_s9 + $0x1b08] ss:$16 sps:$4 sm:$0xff]  }
 0x38e   : > { %1319 = vst [vmem:[#allocation2 + $0x70] sm:$0xf] %v1297_v40  ;;  %1320 = vst [vmem:[#allocation2 + $0x114] sm:$0xf] %v1306_v41  ;;  %v15668_v36 = vld [vmem:[%s16733_s9 + $0x1b24] ss:$16 sps:$4 sm:$0xff]  }
 0x38f   : > { %v15680_v40 = vld [vmem:[%s16733_s9 + $0x1b64] ss:$16 sps:$4 sm:$0xff]   ;;  %v15683_v41 = vld [vmem:[%s16733_s9 + $0x1b6c] ss:$16 sps:$4 sm:$0xff]  }
 0x390   : > { %10605 = vmatpush1.bf16.msra.mxu0 %v15559_v18  ;;  %11676 = vmatpush1.bf16.msra.mxu1 %v15562_v12  ;;  %v12453_v18 = vrot.slane %v1327_v55, 11  ;;  %v1337_v12 = vor.u32 %v1335_v25, %v1334_v27  ;;  %v15666_v55 = vld [vmem:[%s16733_s9 + $0x1b20] ss:$16 sps:$4 sm:$0xff]   ;;  %v15669_v25 = vld [vmem:[%s16733_s9 + $0x1b28] ss:$16 sps:$4 sm:$0xff]  }
 0x391   : > { %10606 = vmatprep.subr.bf16.mxu0 %v15567_v19  ;;  %11677 = vmatprep.subr.bf16.mxu1 %v15570_v28  ;;  %v1341_v19 = vshrl.u32 %v12451_v3, 16  ;;  %v1344_v28 = vshll.u32 %v12451_v3, 16  ;;  %v15671_v3 = vld [vmem:[%s16733_s9 + $0x1b2c] ss:$16 sps:$4 sm:$0xff]  }
 0x394   : > { %10607 = vmatpush1.bf16.msra.mxu0 %v15565_v44  ;;  %11678 = vmatpush1.bf16.msra.mxu1 %v15568_v45  ;;  %v15614_v44 = vld [vmem:[%s16733_s9 + $0x1a04] ss:$16 sps:$4 sm:$0xff]   ;;  %v15617_v45 = vld [vmem:[%s16733_s9 + $0x1a0c] ss:$16 sps:$4 sm:$0xff]  }
 0x395   : > { %10608 = vmatprep.subr.bf16.mxu0 %v15573_v47  ;;  %11679 = vmatprep.subr.bf16.mxu1 %v15576_v48  ;;  %v15609_v47 = vld [vmem:[#allocation2 + $0x60] ss:$164 sps:$4 sm:$0xff]   ;;  %v1723_v48 = vld [vmem:[#allocation2 + $0x1a8] sm:$0xff] }
 0x396   : > { %v12552_v58 = vcombine.high %v1723_v48, %v1723_v48 }
 0x398   : > { %10609 = vmatpush1.bf16.msra.mxu0 %v15571_v62  ;;  %11680 = vmatpush1.bf16.msra.mxu1 %v15574_v43  ;;  %v1338_v62 = vsel %vm18017_vm6, %v12453_v18, %v1337_v12  ;;  %v1339_v43 = vrot.slane %v1334_v27, 4  ;;  %v15657_v27 = vld [vmem:[%s16733_s9 + $0x1ae8] ss:$16 sps:$4 sm:$0xff]   ;;  %v1281_v18 = vld [vmem:[%s16730_s19 + $0xc] sm:$0xf] }
 0x399   : > { %10610 = vmatprep.subr.bf16.mxu0 %v15579_v54  ;;  %11681 = vmatprep.subr.bf16.mxu1 %v15582_v56  ;;  %v18035_v54 = vrot.slane %v1341_v19, 7  ;;  %1360 = vst [vmem:[#allocation2 + $0x74] sm:$0xf] %v1338_v62  ;;  %v1309_v12 = vshrl.u32 %v1281_v18, 16  ;;  %v12452_v19 = vld [vmem:[%s16730_s19 + $0x20] sm:$0xf] }
 0x39a   : > { %v15686_v62 = vld [vmem:[%s16733_s9 + $0x1b84] ss:$16 sps:$4 sm:$0xff]  }
 0x39b   : > { %v1346_v56 = vor.u32 %v1344_v28, %v18035_v54  ;;  %v1350_v28 = vshrl.u32 %v12452_v19, 16 }
 0x39c   : > { %10611 = vmatpush1.bf16.msra.mxu0 %v15577_v57  ;;  %11682 = vmatpush1.bf16.msra.mxu1 %v15580_v35  ;;  %v15612_v57 = vld [vmem:[%s16733_s9 + $0x1a00] ss:$16 sps:$4 sm:$0xff]   ;;  %v15615_v35 = vld [vmem:[%s16733_s9 + $0x1a08] ss:$16 sps:$4 sm:$0xff]  }
 0x39d   : > { %10612 = vmatprep.subr.bf16.mxu0 %v15585_v49  ;;  %11683 = vmatprep.subr.bf16.mxu1 %v15588_v46  ;;  %v15620_v49 = vld [vmem:[%s16733_s9 + $0x1a24] ss:$16 sps:$4 sm:$0xff]   ;;  %v15623_v46 = vld [vmem:[%s16733_s9 + $0x1a2c] ss:$16 sps:$4 sm:$0xff]   ;;  %v1347_v51 = vsel %vm18017_vm6, %v1339_v43, %v1346_v56  ;;  %v1352_v56 = vrot.slane %v1350_v28, 7 }
 0x39e   : > { %1361 = vst [vmem:[#allocation2 + $0x118] sm:$0xf] %v1347_v51  ;;  %v15689_v43 = vld [vmem:[%s16733_s9 + $0x1b8c] ss:$16 sps:$4 sm:$0xff]  }
 0x3a0   : > { %10613 = vmatpush1.bf16.msra.mxu0 %v15583_v1  ;;  %11684 = vmatpush1.bf16.msra.mxu1 %v15586_v2  ;;  %v12551_v1 = vcombine.low %v1723_v48, %v1723_v48  ;;  %v15624_v2 = vld [vmem:[%s16733_s9 + $0x1a40] ss:$16 sps:$4 sm:$0xff]   ;;  %v1312_v48 = vshll.u32 %v1281_v18, 16  ;;  %v15707_v18 = vld [vmem:[%s16733_s9 + $0x1be8] ss:$16 sps:$4 sm:$0xff]  }
 0x3a1   : > { %10614 = vmatprep.subr.bf16.mxu0 %v15591_v42  ;;  %11685 = vmatprep.subr.bf16.mxu1 %v15594_v8  ;;  %v15632_v42 = vld [vmem:[%s16733_s9 + $0x1a64] ss:$16 sps:$4 sm:$0xff]   ;;  %v15635_v8 = vld [vmem:[%s16733_s9 + $0x1a6c] ss:$16 sps:$4 sm:$0xff]  }
 0x3a4   : > { %10615 = vmatpush1.bf16.msra.mxu0 %v15589_v6  ;;  %11686 = vmatpush1.bf16.msra.mxu1 %v15592_v9  ;;  %v15644_v6 = vld [vmem:[%s16733_s9 + $0x1aa4] ss:$16 sps:$4 sm:$0xff]   ;;  %v15647_v9 = vld [vmem:[%s16733_s9 + $0x1aac] ss:$16 sps:$4 sm:$0xff]  }
 0x3a5   : > { %10616 = vmatprep.subr.bf16.mxu0 %v15598_v7  ;;  %11687 = vmatprep.subr.bf16.mxu1 %v15601_v11  ;;  %v15645_v7 = vld [vmem:[%s16733_s9 + $0x1aa8] ss:$16 sps:$4 sm:$0xff]   ;;  %v15650_v11 = vld [vmem:[%s16733_s9 + $0x1ac4] ss:$16 sps:$4 sm:$0xff]  }
 0x3a8   : > { %10617 = vmatpush1.bf16.msra.mxu0 %v15596_v16  ;;  %11688 = vmatpush1.bf16.msra.mxu1 %v15599_v32  ;;  %v15651_v16 = vld [vmem:[%s16733_s9 + $0x1ac8] ss:$16 sps:$4 sm:$0xff]   ;;  %v15660_v32 = vld [vmem:[%s16733_s9 + $0x1b00] ss:$16 sps:$4 sm:$0xff]  }
 0x3a9   : > { %10618 = vmatprep.subr.bf16.mxu0 %v15605_v24  ;;  %11689 = vmatprep.subr.bf16.mxu1 %v15608_v37  ;;  %v15674_v24 = vld [vmem:[%s16733_s9 + $0x1b44] ss:$16 sps:$4 sm:$0xff]   ;;  %v15677_v37 = vld [vmem:[%s16733_s9 + $0x1b4c] ss:$16 sps:$4 sm:$0xff]  }
 0x3ac   : > { %10619 = vmatpush1.bf16.msra.mxu0 %v15603_v20  ;;  %11690 = vmatpush1.bf16.msra.mxu1 %v15606_v38  ;;  %v15672_v20 = vld [vmem:[%s16733_s9 + $0x1b40] ss:$16 sps:$4 sm:$0xff]   ;;  %v15675_v38 = vld [vmem:[%s16733_s9 + $0x1b48] ss:$16 sps:$4 sm:$0xff]  }
 0x3ad   : > { %10639 = vmatprep.subr.bf16.mxu0 %v15614_v44  ;;  %11710 = vmatprep.subr.bf16.mxu1 %v15617_v45  ;;  %v15678_v44 = vld [vmem:[%s16733_s9 + $0x1b60] ss:$16 sps:$4 sm:$0xff]   ;;  %v15681_v45 = vld [vmem:[%s16733_s9 + $0x1b68] ss:$16 sps:$4 sm:$0xff]  }
 0x3af   : > { %10621 = vmatmul.mubr.bf16.vlgmr.msra.gmra.mrb[0].mxu0 %v15609_v47  ;;  %11692 = vmatmul.mubr.bf16.vlgmr.msra.gmra.mrb[0].mxu1 %v15609_v47  ;;  %v1311_v47 = vrot.slane %v1309_v12, 7  ;;  %v15715_v12 = vld [vmem:[%s16733_s9 + $0x1c04] ss:$16 sps:$4 sm:$0xff]  }
 0x3b0   : > { %10640 = vmatpush1.bf16.msra.mxu0 %v15612_v57  ;;  %11711 = vmatpush1.bf16.msra.mxu1 %v15615_v35  ;;  %v1353_v57 = vshll.u32 %v12452_v19, 16  ;;  %v1307_v35 = vrot.slane %v18013_v26, 4  ;;  %v15692_v26 = vld [vmem:[%s16733_s9 + $0x1ba4] ss:$16 sps:$4 sm:$0xff]   ;;  %v15718_v19 = vld [vmem:[%s16733_s9 + $0x1c0c] ss:$16 sps:$4 sm:$0xff]  }
 0x3b1   : > { %10641 = vmatprep.subr.bf16.mxu0 %v15620_v49  ;;  %11712 = vmatprep.subr.bf16.mxu1 %v15623_v46  ;;  %v1314_v49 = vor.u32 %v1312_v48, %v1311_v47  ;;  %v1348_v46 = vrot.slane %v18035_v54, 4  ;;  %v15713_v48 = vld [vmem:[%s16733_s9 + $0x1c00] ss:$16 sps:$4 sm:$0xff]  }
 0x3b2   : > { %10630 = vmatprep.mubr.bf16.mxu0 %v12552_v58  ;;  %11701 = vmatprep.mubr.bf16.mxu1 %v12552_v58  ;;  %v1355_v51 = vor.u32 %v1353_v57, %v1352_v56  ;;  %v15684_v58 = vld [vmem:[%s16733_s9 + $0x1b80] ss:$16 sps:$4 sm:$0xff]   ;;  %v15724_v56 = vld [vmem:[%s16733_s9 + $0x1c2c] ss:$16 sps:$4 sm:$0xff]  }
 0x3b4   : > { %10642 = vmatpush1.bf16.msra.mxu0 %v15618_v60  ;;  %11713 = vmatpush1.bf16.msra.mxu1 %v15621_v61  ;;  %v15687_v60 = vld [vmem:[%s16733_s9 + $0x1b88] ss:$16 sps:$4 sm:$0xff]   ;;  %v1315_v61 = vsel %vm18017_vm6, %v1307_v35, %v1314_v49  ;;  %v1356_v54 = vsel %vm18017_vm6, %v1348_v46, %v1355_v51  ;;  %v15719_v35 = vld [vmem:[%s16733_s9 + $0x1c20] ss:$16 sps:$4 sm:$0xff]   ;;  %v15727_v46 = vld [vmem:[%s16733_s9 + $0x1c44] ss:$16 sps:$4 sm:$0xff]  }
 0x3b5   : > { %10643 = vmatprep.subr.bf16.mxu0 %v15626_v63  ;;  %11714 = vmatprep.subr.bf16.mxu1 %v15629_v0  ;;  %v15695_v63 = vld [vmem:[%s16733_s9 + $0x1bac] ss:$16 sps:$4 sm:$0xff]   ;;  %1321 = vst [vmem:[#allocation2 + $0x1b8] sm:$0xf] %v1315_v61  ;;  %1362 = vst [vmem:[#allocation2 + $0x1bc] sm:$0xf] %v1356_v54 }
 0x3b6   : > { %v12455_v0 = vld [vmem:[%s16730_s19 + $0x2c] sm:$0xf]  ;;  %v15722_v49 = vld [vmem:[%s16733_s9 + $0x1c28] ss:$16 sps:$4 sm:$0xff]  }
 0x3b7   : > { %10631 = vmatmul.mubr.bf16.gmra.mrb[4].mxu0 %v12551_v1  ;;  %11702 = vmatmul.mubr.bf16.gmra.mrb[4].mxu1 %v12551_v1  ;;  %v12456_v1 = vld [vmem:[%s16730_s19 + $0x30] sm:$0xf]  ;;  %v15730_v51 = vld [vmem:[%s16733_s9 + $0x1c4c] ss:$16 sps:$4 sm:$0xff]   ;;  %v15728_v61 = vld [vmem:[%s16733_s9 + $0x1c48] ss:$16 sps:$4 sm:$0xff]  }
 0x3b8   : > { %10644 = vmatpush1.bf16.msra.mxu0 %v15624_v2  ;;  %11715 = vmatpush1.bf16.msra.mxu1 %v15627_v50  ;;  %v12460_v2 = vld [vmem:[%s16730_s19 + $0x40] sm:$0xf]  ;;  %v15813_v54 = vld [vmem:[#allocation2 + $0x74] ss:$164 sps:$4 sm:$0xff]  }
 0x3b9   : > { %10645 = vmatprep.subr.bf16.mxu0 %v15632_v42  ;;  %11716 = vmatprep.subr.bf16.mxu1 %v15635_v8  ;;  %v15690_v50 = vld [vmem:[%s16733_s9 + $0x1ba0] ss:$16 sps:$4 sm:$0xff]   ;;  %v1373_v42 = vshrl.u32 %v12455_v0, 16  ;;  %v1382_v8 = vshrl.u32 %v12456_v1, 16 }
 0x3ba   : > { %10671 = vmatprep.mubr.bf16.mxu0 %v15712_v53  ;;  %11742 = vmatprep.mubr.bf16.mxu1 %v15712_v53  ;;  %v1414_v53 = vshrl.u32 %v12460_v2, 16 }
 0x3bc   : > { %10646 = vmatpush1.bf16.msra.mxu0 %v15630_v23  ;;  %11717 = vmatpush1.bf16.msra.mxu1 %v15633_v4  ;;  %v15693_v23 = vld [vmem:[%s16733_s9 + $0x1ba8] ss:$16 sps:$4 sm:$0xff]   ;;  %v15699_v4 = vld [vmem:[%s16733_s9 + $0x1bc4] ss:$16 sps:$4 sm:$0xff]  }
 0x3bd   : > { %10647 = vmatprep.subr.bf16.mxu0 %v15638_v52  ;;  %11718 = vmatprep.subr.bf16.mxu1 %v15641_v5  ;;  %v12454_v52 = vld [vmem:[%s16730_s19 + $0x28] sm:$0x8]  ;;  %v15702_v5 = vld [vmem:[%s16733_s9 + $0x1bcc] ss:$16 sps:$4 sm:$0xff]  }
 0x3c0   : > { %10648 = vmatpush1.bf16.msra.mxu0 %v15636_v39  ;;  %11719 = vmatpush1.bf16.msra.mxu1 %v15639_v59  ;;  %v1368_v39 = vshrl.u32 %v12454_v52, 16  ;;  %v1375_v59 = vrot.slane %v1373_v42, 7  ;;  %v15737_v42 = vld [vmem:[%s16733_s9 + $0x1c80] ss:$16 sps:$4 sm:$0xff]   ;;  %v15746_v52 = vld [vmem:[%s16733_s9 + $0x1ca8] ss:$16 sps:$4 sm:$0xff]  }
 0x3c1   : > { %10649 = vmatprep.subr.bf16.mxu0 %v15644_v6  ;;  %11720 = vmatprep.subr.bf16.mxu1 %v15647_v9  ;;  %v12461_v6 = vld [vmem:[%s16730_s19 + $0x44] sm:$0xf]  ;;  %v1376_v9 = vshll.u32 %v12455_v0, 16  ;;  %v15731_v0 = vld [vmem:[%s16733_s9 + $0x1c60] ss:$16 sps:$4 sm:$0xff]  }
 0x3c4   : > { %10650 = vmatpush1.bf16.msra.mxu0 %v15642_v10  ;;  %11721 = vmatpush1.bf16.msra.mxu1 %v15645_v7  ;;  %v18109_v10 = vrot.slane %v1382_v8, 7  ;;  %v1385_v7 = vshll.u32 %v12456_v1, 16  ;;  %v15734_v1 = vld [vmem:[%s16733_s9 + $0x1c68] ss:$16 sps:$4 sm:$0xff]  }
 0x3c5   : > { %10651 = vmatprep.subr.bf16.mxu0 %v15650_v11  ;;  %11722 = vmatprep.subr.bf16.mxu1 %v15653_v13  ;;  %v12459_v11 = vld [vmem:[%s16730_s19 + $0x3c] sm:$0x8]  ;;  %v1416_v13 = vrot.slane %v1414_v53, 7  ;;  %v15740_v8 = vld [vmem:[%s16733_s9 + $0x1c88] ss:$16 sps:$4 sm:$0xff]  }
 0x3c6   : > { %v15745_v53 = vld [vmem:[%s16733_s9 + $0x1ca4] ss:$16 sps:$4 sm:$0xff]  }
 0x3c8   : > { %10652 = vmatpush1.bf16.msra.mxu0 %v15648_v14  ;;  %11723 = vmatpush1.bf16.msra.mxu1 %v15651_v16  ;;  %v12458_v14 = vrot.slane %v1368_v39, 11  ;;  %v1380_v16 = vrot.slane %v1375_v59, 4  ;;  %v15754_v39 = vld [vmem:[%s16733_s9 + $0x1ccc] ss:$16 sps:$4 sm:$0xff]  }
 0x3c9   : > { %10653 = vmatprep.subr.bf16.mxu0 %v15656_v22  ;;  %11724 = vmatprep.subr.bf16.mxu1 %v15659_v21  ;;  %v1409_v22 = vshrl.u32 %v12459_v11, 16  ;;  %v1417_v21 = vshll.u32 %v12460_v2, 16  ;;  %v15739_v2 = vld [vmem:[%s16733_s9 + $0x1c84] ss:$16 sps:$4 sm:$0xff]   ;;  %v15755_v11 = vld [vmem:[%s16733_s9 + $0x1ce0] ss:$16 sps:$4 sm:$0xff]  }
 0x3cc   : > { %10654 = vmatpush1.bf16.msra.mxu0 %v15654_v29  ;;  %11725 = vmatpush1.bf16.msra.mxu1 %v15657_v27  ;;  %v15697_v29 = vld [vmem:[%s16733_s9 + $0x1bc0] ss:$16 sps:$4 sm:$0xff]   ;;  %v15700_v27 = vld [vmem:[%s16733_s9 + $0x1bc8] ss:$16 sps:$4 sm:$0xff]  }
 0x3cd   : > { %10655 = vmatprep.subr.bf16.mxu0 %v15662_v30  ;;  %11726 = vmatprep.subr.bf16.mxu1 %v15665_v31  ;;  %v1378_v30 = vor.u32 %v1376_v9, %v1375_v59  ;;  %v1387_v31 = vor.u32 %v1385_v7, %v18109_v10  ;;  %v15749_v59 = vld [vmem:[%s16733_s9 + $0x1cc0] ss:$16 sps:$4 sm:$0xff]   ;;  %v15757_v9 = vld [vmem:[%s16733_s9 + $0x1ce4] ss:$16 sps:$4 sm:$0xff]   ;;  %v15760_v7 = vld [vmem:[%s16733_s9 + $0x1cec] ss:$16 sps:$4 sm:$0xff]  }
 0x3d0   : > { %10656 = vmatpush1.bf16.msra.mxu0 %v15660_v32  ;;  %11727 = vmatpush1.bf16.msra.mxu1 %v15663_v34  ;;  %v1423_v32 = vshrl.u32 %v12461_v6, 16  ;;  %v15706_v34 = vld [vmem:[%s16733_s9 + $0x1be4] ss:$16 sps:$4 sm:$0xff]  }
 0x3d1   : > { %10657 = vmatprep.subr.bf16.mxu0 %v15668_v36  ;;  %11728 = vmatprep.subr.bf16.mxu1 %v15671_v3  ;;  %v15709_v36 = vld [vmem:[%s16733_s9 + $0x1bec] ss:$16 sps:$4 sm:$0xff]   ;;  %v12463_v3 = vrot.slane %v1409_v22, 11  ;;  %v15761_v22 = vld [vmem:[%s16733_s9 + $0x1d00] ss:$16 sps:$4 sm:$0xff]  }
 0x3d4   : > { %10658 = vmatpush1.bf16.msra.mxu0 %v15666_v55  ;;  %11729 = vmatpush1.bf16.msra.mxu1 %v15669_v25  ;;  %v1419_v55 = vor.u32 %v1417_v21, %v1416_v13  ;;  %v1379_v25 = vsel %vm18017_vm6, %v12458_v14, %v1378_v30  ;;  %v15763_v14 = vld [vmem:[%s16733_s9 + $0x1d04] ss:$16 sps:$4 sm:$0xff]   ;;  %v15764_v21 = vld [vmem:[%s16733_s9 + $0x1d08] ss:$16 sps:$4 sm:$0xff]   ;;  %v15767_v30 = vld [vmem:[%s16733_s9 + $0x1d20] ss:$16 sps:$4 sm:$0xff]  }
 0x3d5   : > { %10659 = vmatprep.subr.bf16.mxu0 %v15674_v24  ;;  %11730 = vmatprep.subr.bf16.mxu1 %v15677_v37  ;;  %v1388_v24 = vsel %vm18017_vm6, %v1380_v16, %v1387_v31  ;;  %1401 = vst [vmem:[#allocation2 + $0x78] sm:$0xf] %v1379_v25  ;;  %v15766_v16 = vld [vmem:[%s16733_s9 + $0x1d0c] ss:$16 sps:$4 sm:$0xff]   ;;  %v15770_v31 = vld [vmem:[%s16733_s9 + $0x1d28] ss:$16 sps:$4 sm:$0xff]  }
 0x3d6   : > { %1402 = vst [vmem:[#allocation2 + $0x11c] sm:$0xf] %v1388_v24  ;;  %v1420_v37 = vsel %vm18017_vm6, %v12463_v3, %v1419_v55  ;;  %v15776_v3 = vld [vmem:[%s16733_s9 + $0x1d48] ss:$16 sps:$4 sm:$0xff]   ;;  %v15781_v55 = vld [vmem:[%s16733_s9 + $0x1d64] ss:$16 sps:$4 sm:$0xff]  }
 0x3d7   : > { %1442 = vst [vmem:[#allocation2 + $0x7c] sm:$0xf] %v1420_v37  ;;  %v15784_v25 = vld [vmem:[%s16733_s9 + $0x1d6c] ss:$16 sps:$4 sm:$0xff]   ;;  %v12457_v24 = vld [vmem:[%s16730_s19 + $0x34] sm:$0xf] }
 0x3d8   : > { %10660 = vmatpush1.bf16.msra.mxu0 %v15672_v20  ;;  %11731 = vmatpush1.bf16.msra.mxu1 %v15675_v38  ;;  %v1421_v20 = vrot.slane %v1416_v13, 4  ;;  %v18123_v38 = vrot.slane %v1423_v32, 7  ;;  %v15758_v13 = vld [vmem:[%s16733_s9 + $0x1ce8] ss:$16 sps:$4 sm:$0xff]   ;;  %v15775_v32 = vld [vmem:[%s16733_s9 + $0x1d44] ss:$16 sps:$4 sm:$0xff]  }
 0x3d9   : > { %10661 = vmatprep.subr.bf16.mxu0 %v15680_v40  ;;  %11732 = vmatprep.subr.bf16.mxu1 %v15683_v41  ;;  %v1426_v40 = vshll.u32 %v12461_v6, 16  ;;  %v15704_v41 = vld [vmem:[%s16733_s9 + $0x1be0] ss:$16 sps:$4 sm:$0xff]   ;;  %v15752_v6 = vld [vmem:[%s16733_s9 + $0x1cc8] ss:$16 sps:$4 sm:$0xff]   ;;  %v1391_v37 = vshrl.u32 %v12457_v24, 16 }
 0x3db   : > { %v1428_v28 = vor.u32 %v1426_v40, %v18123_v38 }
 0x3dc   : > { %10662 = vmatpush1.bf16.msra.mxu0 %v15678_v44  ;;  %11733 = vmatpush1.bf16.msra.mxu1 %v15681_v45  ;;  %v15710_v44 = vld [vmem:[#allocation2 + $0x68] ss:$164 sps:$4 sm:$0xff]   ;;  %v1724_v45 = vld [vmem:[#allocation2 + $0x1b0] sm:$0xff] }
 0x3dd   : > { %10663 = vmatprep.subr.bf16.mxu0 %v15686_v62  ;;  %11734 = vmatprep.subr.bf16.mxu1 %v15689_v43  ;;  %v1429_v47 = vsel %vm18017_vm6, %v1421_v20, %v1428_v28  ;;  %v15716_v62 = vld [vmem:[%s16733_s9 + $0x1c08] ss:$16 sps:$4 sm:$0xff]   ;;  %v15721_v43 = vld [vmem:[%s16733_s9 + $0x1c24] ss:$16 sps:$4 sm:$0xff]   ;;  %v12554_v57 = vcombine.high %v1724_v45, %v1724_v45 }
 0x3de   : > { %1443 = vst [vmem:[#allocation2 + $0x120] sm:$0xf] %v1429_v47  ;;  %v12462_v20 = vld [vmem:[%s16730_s19 + $0x48] sm:$0xf]  ;;  %v15787_v28 = vld [vmem:[%s16733_s9 + $0x1d84] ss:$16 sps:$4 sm:$0xff]  }
 0x3df   : > { %v1432_v40 = vshrl.u32 %v12462_v20, 16  ;;  %v1435_v47 = vshll.u32 %v12462_v20, 16  ;;  %v15847_v20 = vld [vmem:[%s16733_s9 + $0x1ea8] ss:$16 sps:$4 sm:$0xff]  }
 0x3e0   : > { %10664 = vmatpush1.bf16.msra.mxu0 %v15684_v58  ;;  %11735 = vmatpush1.bf16.msra.mxu1 %v15687_v60  ;;  %v12553_v58 = vcombine.low %v1724_v45, %v1724_v45  ;;  %v15725_v60 = vld [vmem:[%s16733_s9 + $0x1c40] ss:$16 sps:$4 sm:$0xff]  }
 0x3e1   : > { %10665 = vmatprep.subr.bf16.mxu0 %v15692_v26  ;;  %11736 = vmatprep.subr.bf16.mxu1 %v15695_v63  ;;  %v15733_v26 = vld [vmem:[%s16733_s9 + $0x1c64] ss:$16 sps:$4 sm:$0xff]   ;;  %v15736_v63 = vld [vmem:[%s16733_s9 + $0x1c6c] ss:$16 sps:$4 sm:$0xff]   ;;  %v1434_v45 = vrot.slane %v1432_v40, 7 }
 0x3e2   : > { %v15852_v40 = vld [vmem:[%s16733_s9 + $0x1ec4] ss:$16 sps:$4 sm:$0xff]  }
 0x3e4   : > { %10666 = vmatpush1.bf16.msra.mxu0 %v15690_v50  ;;  %11737 = vmatpush1.bf16.msra.mxu1 %v15693_v23  ;;  %v15742_v50 = vld [vmem:[%s16733_s9 + $0x1c8c] ss:$16 sps:$4 sm:$0xff]  }
 0x3e5   : > { %10667 = vmatprep.subr.bf16.mxu0 %v15699_v4  ;;  %11738 = vmatprep.subr.bf16.mxu1 %v15702_v5  ;;  %v15748_v23 = vld [vmem:[%s16733_s9 + $0x1cac] ss:$16 sps:$4 sm:$0xff]   ;;  %v15743_v4 = vld [vmem:[%s16733_s9 + $0x1ca0] ss:$16 sps:$4 sm:$0xff]   ;;  %v15751_v5 = vld [vmem:[%s16733_s9 + $0x1cc4] ss:$16 sps:$4 sm:$0xff]  }
 0x3e8   : > { %10668 = vmatpush1.bf16.msra.mxu0 %v15697_v29  ;;  %11739 = vmatpush1.bf16.msra.mxu1 %v15700_v27  ;;  %v15769_v29 = vld [vmem:[%s16733_s9 + $0x1d24] ss:$16 sps:$4 sm:$0xff]   ;;  %v15772_v27 = vld [vmem:[%s16733_s9 + $0x1d2c] ss:$16 sps:$4 sm:$0xff]  }
 0x3e9   : > { %10669 = vmatprep.subr.bf16.mxu0 %v15706_v34  ;;  %11740 = vmatprep.subr.bf16.mxu1 %v15709_v36  ;;  %v15778_v34 = vld [vmem:[%s16733_s9 + $0x1d4c] ss:$16 sps:$4 sm:$0xff]   ;;  %v15773_v36 = vld [vmem:[%s16733_s9 + $0x1d40] ss:$16 sps:$4 sm:$0xff]  }
 0x3ec   : > { %10670 = vmatpush1.bf16.msra.mxu0 %v15704_v41  ;;  %11741 = vmatpush1.bf16.msra.mxu1 %v15707_v18  ;;  %v15779_v41 = vld [vmem:[%s16733_s9 + $0x1d60] ss:$16 sps:$4 sm:$0xff]   ;;  %v15782_v18 = vld [vmem:[%s16733_s9 + $0x1d68] ss:$16 sps:$4 sm:$0xff]  }
 0x3ed   : > { %10690 = vmatprep.subr.bf16.mxu0 %v15715_v12  ;;  %11761 = vmatprep.subr.bf16.mxu1 %v15718_v19  ;;  %v1393_v12 = vrot.slane %v1391_v37, 7  ;;  %v1394_v19 = vshll.u32 %v12457_v24, 16  ;;  %v15849_v24 = vld [vmem:[%s16733_s9 + $0x1eac] ss:$16 sps:$4 sm:$0xff]   ;;  %v15844_v37 = vld [vmem:[%s16733_s9 + $0x1ea0] ss:$16 sps:$4 sm:$0xff]  }
 0x3ef   : > { %10672 = vmatmul.mubr.bf16.vlgmr.msra.gmra.mrb[0].mxu0 %v15710_v44  ;;  %11743 = vmatmul.mubr.bf16.vlgmr.msra.gmra.mrb[0].mxu1 %v15710_v44  ;;  %v15790_v44 = vld [vmem:[%s16733_s9 + $0x1d8c] ss:$16 sps:$4 sm:$0xff]  }
 0x3f0   : > { %10691 = vmatpush1.bf16.msra.mxu0 %v15713_v48  ;;  %11762 = vmatpush1.bf16.msra.mxu1 %v15716_v62  ;;  %v1389_v48 = vrot.slane %v18109_v10, 4  ;;  %v1396_v62 = vor.u32 %v1394_v19, %v1393_v12  ;;  %v15796_v10 = vld [vmem:[%s16733_s9 + $0x1dac] ss:$16 sps:$4 sm:$0xff]   ;;  %v15853_v12 = vld [vmem:[%s16733_s9 + $0x1ec8] ss:$16 sps:$4 sm:$0xff]  }
 0x3f1   : > { %10692 = vmatprep.subr.bf16.mxu0 %v15721_v43  ;;  %11763 = vmatprep.subr.bf16.mxu1 %v15724_v56  ;;  %v1430_v43 = vrot.slane %v18123_v38, 4  ;;  %v1437_v56 = vor.u32 %v1435_v47, %v1434_v45  ;;  %v15858_v19 = vld [vmem:[%s16733_s9 + $0x1ee4] ss:$16 sps:$4 sm:$0xff]   ;;  %v15859_v45 = vld [vmem:[%s16733_s9 + $0x1ee8] ss:$16 sps:$4 sm:$0xff]  }
 0x3f2   : > { %10681 = vmatprep.mubr.bf16.mxu0 %v12554_v57  ;;  %11752 = vmatprep.mubr.bf16.mxu1 %v12554_v57  ;;  %v15785_v57 = vld [vmem:[%s16733_s9 + $0x1d80] ss:$16 sps:$4 sm:$0xff]   ;;  %v15864_v47 = vld [vmem:[%s16733_s9 + $0x1f04] ss:$16 sps:$4 sm:$0xff]  }
 0x3f3   : > { %v1438_v38 = vsel %vm18017_vm6, %v1430_v43, %v1437_v56  ;;  %v15865_v43 = vld [vmem:[%s16733_s9 + $0x1f08] ss:$16 sps:$4 sm:$0xff]   ;;  %v15870_v56 = vld [vmem:[%s16733_s9 + $0x1f24] ss:$16 sps:$4 sm:$0xff]  }
 0x3f4   : > { %10693 = vmatpush1.bf16.msra.mxu0 %v15719_v35  ;;  %11764 = vmatpush1.bf16.msra.mxu1 %v15722_v49  ;;  %v15788_v35 = vld [vmem:[%s16733_s9 + $0x1d88] ss:$16 sps:$4 sm:$0xff]   ;;  %v1397_v49 = vsel %vm18017_vm6, %v1389_v48, %v1396_v62  ;;  %1444 = vst [vmem:[#allocation2 + $0x1c4] sm:$0xf] %v1438_v38  ;;  %v15867_v48 = vld [vmem:[%s16733_s9 + $0x1f0c] ss:$16 sps:$4 sm:$0xff]  }
 0x3f5   : > { %10694 = vmatprep.subr.bf16.mxu0 %v15727_v46  ;;  %11765 = vmatprep.subr.bf16.mxu1 %v15730_v51  ;;  %v15793_v46 = vld [vmem:[%s16733_s9 + $0x1da4] ss:$16 sps:$4 sm:$0xff]   ;;  %1403 = vst [vmem:[#allocation2 + $0x1c0] sm:$0xf] %v1397_v49  ;;  %v15791_v51 = vld [vmem:[%s16733_s9 + $0x1da0] ss:$16 sps:$4 sm:$0xff]  }
 0x3f6   : > { %v15862_v62 = vld [vmem:[%s16733_s9 + $0x1f00] ss:$16 sps:$4 sm:$0xff]   ;;  %v15871_v49 = vld [vmem:[%s16733_s9 + $0x1f28] ss:$16 sps:$4 sm:$0xff]  }
 0x3f7   : > { %10682 = vmatmul.mubr.bf16.gmra.mrb[4].mxu0 %v12553_v58  ;;  %11753 = vmatmul.mubr.bf16.gmra.mrb[4].mxu1 %v12553_v58  ;;  %v15794_v58 = vld [vmem:[%s16733_s9 + $0x1da8] ss:$16 sps:$4 sm:$0xff]   ;;  %v15874_v38 = vld [vmem:[%s16733_s9 + $0x1f40] ss:$16 sps:$4 sm:$0xff]  }
 0x3f8   : > { %10695 = vmatpush1.bf16.msra.mxu0 %v15725_v60  ;;  %11766 = vmatpush1.bf16.msra.mxu1 %v15728_v61  ;;  %v15800_v60 = vld [vmem:[%s16733_s9 + $0x1dc4] ss:$16 sps:$4 sm:$0xff]   ;;  %v15803_v61 = vld [vmem:[%s16733_s9 + $0x1dcc] ss:$16 sps:$4 sm:$0xff]  }
 0x3f9   : > { %10696 = vmatprep.subr.bf16.mxu0 %v15733_v26  ;;  %11767 = vmatprep.subr.bf16.mxu1 %v15736_v63  ;;  %v15801_v26 = vld [vmem:[%s16733_s9 + $0x1dc8] ss:$16 sps:$4 sm:$0xff]   ;;  %v15807_v63 = vld [vmem:[%s16733_s9 + $0x1de4] ss:$16 sps:$4 sm:$0xff]  }
 0x3fa   : > { %10722 = vmatprep.mubr.bf16.mxu0 %v15813_v54  ;;  %11793 = vmatprep.mubr.bf16.mxu1 %v15813_v54  ;;  %v15810_v54 = vld [vmem:[%s16733_s9 + $0x1dec] ss:$16 sps:$4 sm:$0xff]  }
 0x3fc   : > { %10697 = vmatpush1.bf16.msra.mxu0 %v15731_v0  ;;  %11768 = vmatpush1.bf16.msra.mxu1 %v15734_v1  ;;  %v1445_v0 = vld [vmem:[%s16730_s19 + $0x4] sm:$0xf]  ;;  %v1446_v1 = vld [vmem:[%s16730_s19 + $0x8] sm:$0xf] }
 0x3fd   : > { %10698 = vmatprep.subr.bf16.mxu0 %v15739_v2  ;;  %11769 = vmatprep.subr.bf16.mxu1 %v15742_v50  ;;  %v12464_v2 = vld [vmem:[%s16730_s19 + $0x18] sm:$0xf]  ;;  %1448 = vst [vmem:[#allocation2 + $0x80] sm:$0xf] %v1445_v0  ;;  %1449 = vst [vmem:[#allocation2 + $0x124] sm:$0xf] %v1446_v1 }
 0x3fe   : > { %v12465_v50 = vld [vmem:[%s16730_s19 + $0x1c] sm:$0xf]  ;;  %1454 = vst [vmem:[#allocation2 + $0x84] sm:$0xf] %v12464_v2  ;;  %v15889_v0 = vld [vmem:[%s16733_s9 + $0x1f88] ss:$16 sps:$4 sm:$0xff]  }
 0x3ff   : > { %1455 = vst [vmem:[#allocation2 + $0x128] sm:$0xf] %v12465_v50  ;;  %v1447_v1 = vld [vmem:[%s16730_s19 + $0xc] sm:$0xf]  ;;  %v15894_v2 = vld [vmem:[%s16733_s9 + $0x1fa4] ss:$16 sps:$4 sm:$0xff]  }
 0x400   : > { %10699 = vmatpush1.bf16.msra.mxu0 %v15737_v42  ;;  %11770 = vmatpush1.bf16.msra.mxu1 %v15740_v8  ;;  %v15805_v42 = vld [vmem:[%s16733_s9 + $0x1de0] ss:$16 sps:$4 sm:$0xff]   ;;  %v15808_v8 = vld [vmem:[%s16733_s9 + $0x1de8] ss:$16 sps:$4 sm:$0xff]   ;;  %v15897_v50 = vld [vmem:[%s16733_s9 + $0x1fac] ss:$16 sps:$4 sm:$0xff]  }
 0x401   : > { %10700 = vmatprep.subr.bf16.mxu0 %v15745_v53  ;;  %11771 = vmatprep.subr.bf16.mxu1 %v15748_v23  ;;  %v15816_v53 = vld [vmem:[%s16733_s9 + $0x1e04] ss:$16 sps:$4 sm:$0xff]   ;;  %v15819_v23 = vld [vmem:[%s16733_s9 + $0x1e0c] ss:$16 sps:$4 sm:$0xff]   ;;  %1450 = vst [vmem:[#allocation2 + $0x1c8] sm:$0xf] %v1447_v1 }
 0x402   : > { %v15972_v1 = vld [vmem:[%s16733_s9 + $0x2128] ss:$16 sps:$4 sm:$0xff]  }
 0x404   : > { %10701 = vmatpush1.bf16.msra.mxu0 %v15743_v4  ;;  %11772 = vmatpush1.bf16.msra.mxu1 %v15746_v52  ;;  %v15811_v4 = vld [vmem:[#allocation2 + $0x70] ss:$164 sps:$4 sm:$0xff]   ;;  %v1725_v52 = vld [vmem:[#allocation2 + $0x1b8] sm:$0xff] }
 0x405   : > { %10702 = vmatprep.subr.bf16.mxu0 %v15751_v5  ;;  %11773 = vmatprep.subr.bf16.mxu1 %v15754_v39  ;;  %v15814_v5 = vld [vmem:[%s16733_s9 + $0x1e00] ss:$16 sps:$4 sm:$0xff]   ;;  %v15817_v39 = vld [vmem:[%s16733_s9 + $0x1e08] ss:$16 sps:$4 sm:$0xff]  }
 0x408   : > { %10703 = vmatpush1.bf16.msra.mxu0 %v15749_v59  ;;  %11774 = vmatpush1.bf16.msra.mxu1 %v15752_v6  ;;  %v15822_v59 = vld [vmem:[%s16733_s9 + $0x1e24] ss:$16 sps:$4 sm:$0xff]   ;;  %v15825_v6 = vld [vmem:[%s16733_s9 + $0x1e2c] ss:$16 sps:$4 sm:$0xff]  }
 0x409   : > { %10704 = vmatprep.subr.bf16.mxu0 %v15757_v9  ;;  %11775 = vmatprep.subr.bf16.mxu1 %v15760_v7  ;;  %v12556_v9 = vcombine.high %v1725_v52, %v1725_v52  ;;  %v15820_v7 = vld [vmem:[%s16733_s9 + $0x1e20] ss:$16 sps:$4 sm:$0xff]  }
 0x40c   : > { %10705 = vmatpush1.bf16.msra.mxu0 %v15755_v11  ;;  %11776 = vmatpush1.bf16.msra.mxu1 %v15758_v13  ;;  %v15823_v11 = vld [vmem:[%s16733_s9 + $0x1e28] ss:$16 sps:$4 sm:$0xff]   ;;  %v15828_v13 = vld [vmem:[%s16733_s9 + $0x1e44] ss:$16 sps:$4 sm:$0xff]  }
 0x40d   : > { %10706 = vmatprep.subr.bf16.mxu0 %v15763_v14  ;;  %11777 = vmatprep.subr.bf16.mxu1 %v15766_v16  ;;  %v15831_v14 = vld [vmem:[%s16733_s9 + $0x1e4c] ss:$16 sps:$4 sm:$0xff]   ;;  %v12555_v16 = vcombine.low %v1725_v52, %v1725_v52  ;;  %v15899_v52 = vld [vmem:[%s16733_s9 + $0x1fc0] ss:$16 sps:$4 sm:$0xff]  }
 0x410   : > { %10707 = vmatpush1.bf16.msra.mxu0 %v15761_v22  ;;  %11778 = vmatpush1.bf16.msra.mxu1 %v15764_v21  ;;  %v15826_v22 = vld [vmem:[%s16733_s9 + $0x1e40] ss:$16 sps:$4 sm:$0xff]   ;;  %v15829_v21 = vld [vmem:[%s16733_s9 + $0x1e48] ss:$16 sps:$4 sm:$0xff]  }
 0x411   : > { %10708 = vmatprep.subr.bf16.mxu0 %v15769_v29  ;;  %11779 = vmatprep.subr.bf16.mxu1 %v15772_v27  ;;  %v15834_v29 = vld [vmem:[%s16733_s9 + $0x1e64] ss:$16 sps:$4 sm:$0xff]   ;;  %v15837_v27 = vld [vmem:[%s16733_s9 + $0x1e6c] ss:$16 sps:$4 sm:$0xff]  }
 0x414   : > { %10709 = vmatpush1.bf16.msra.mxu0 %v15767_v30  ;;  %11780 = vmatpush1.bf16.msra.mxu1 %v15770_v31  ;;  %v15914_v30 = vld [vmem:[#allocation2 + $0x7c] ss:$164 sps:$4 sm:$0xff]  }
 0x415   : > { %10710 = vmatprep.subr.bf16.mxu0 %v15775_v32  ;;  %11781 = vmatprep.subr.bf16.mxu1 %v15778_v34  ;;  %v15832_v31 = vld [vmem:[%s16733_s9 + $0x1e60] ss:$16 sps:$4 sm:$0xff]   ;;  %v15835_v32 = vld [vmem:[%s16733_s9 + $0x1e68] ss:$16 sps:$4 sm:$0xff]   ;;  %v15840_v34 = vld [vmem:[%s16733_s9 + $0x1e84] ss:$16 sps:$4 sm:$0xff]  }
 0x418   : > { %10711 = vmatpush1.bf16.msra.mxu0 %v15773_v36  ;;  %11782 = vmatpush1.bf16.msra.mxu1 %v15776_v3  ;;  %v15843_v36 = vld [vmem:[%s16733_s9 + $0x1e8c] ss:$16 sps:$4 sm:$0xff]   ;;  %v15838_v3 = vld [vmem:[%s16733_s9 + $0x1e80] ss:$16 sps:$4 sm:$0xff]  }
 0x419   : > { %10712 = vmatprep.subr.bf16.mxu0 %v15781_v55  ;;  %11783 = vmatprep.subr.bf16.mxu1 %v15784_v25  ;;  %v15841_v55 = vld [vmem:[%s16733_s9 + $0x1e88] ss:$16 sps:$4 sm:$0xff]   ;;  %v15846_v25 = vld [vmem:[%s16733_s9 + $0x1ea4] ss:$16 sps:$4 sm:$0xff]  }
 0x41c   : > { %10713 = vmatpush1.bf16.msra.mxu0 %v15779_v41  ;;  %11784 = vmatpush1.bf16.msra.mxu1 %v15782_v18  ;;  %v15855_v41 = vld [vmem:[%s16733_s9 + $0x1ecc] ss:$16 sps:$4 sm:$0xff]   ;;  %v15850_v18 = vld [vmem:[%s16733_s9 + $0x1ec0] ss:$16 sps:$4 sm:$0xff]  }
 0x41d   : > { %10714 = vmatprep.subr.bf16.mxu0 %v15787_v28  ;;  %11785 = vmatprep.subr.bf16.mxu1 %v15790_v44  ;;  %v15861_v28 = vld [vmem:[%s16733_s9 + $0x1eec] ss:$16 sps:$4 sm:$0xff]   ;;  %v15856_v44 = vld [vmem:[%s16733_s9 + $0x1ee0] ss:$16 sps:$4 sm:$0xff]  }
 0x420   : > { %10715 = vmatpush1.bf16.msra.mxu0 %v15785_v57  ;;  %11786 = vmatpush1.bf16.msra.mxu1 %v15788_v35  ;;  %v15873_v57 = vld [vmem:[%s16733_s9 + $0x1f2c] ss:$16 sps:$4 sm:$0xff]   ;;  %v15868_v35 = vld [vmem:[%s16733_s9 + $0x1f20] ss:$16 sps:$4 sm:$0xff]  }
 0x421   : > { %10716 = vmatprep.subr.bf16.mxu0 %v15793_v46  ;;  %11787 = vmatprep.subr.bf16.mxu1 %v15796_v10  ;;  %v15876_v46 = vld [vmem:[%s16733_s9 + $0x1f44] ss:$16 sps:$4 sm:$0xff]   ;;  %v15879_v10 = vld [vmem:[%s16733_s9 + $0x1f4c] ss:$16 sps:$4 sm:$0xff]  }
 0x424   : > { %10717 = vmatpush1.bf16.msra.mxu0 %v15791_v51  ;;  %11788 = vmatpush1.bf16.msra.mxu1 %v15794_v58  ;;  %v15877_v51 = vld [vmem:[%s16733_s9 + $0x1f48] ss:$16 sps:$4 sm:$0xff]   ;;  %v15882_v58 = vld [vmem:[%s16733_s9 + $0x1f64] ss:$16 sps:$4 sm:$0xff]  }
 0x425   : > { %10718 = vmatprep.subr.bf16.mxu0 %v15800_v60  ;;  %11789 = vmatprep.subr.bf16.mxu1 %v15803_v61  ;;  %v15885_v60 = vld [vmem:[%s16733_s9 + $0x1f6c] ss:$16 sps:$4 sm:$0xff]   ;;  %v15880_v61 = vld [vmem:[%s16733_s9 + $0x1f60] ss:$16 sps:$4 sm:$0xff]  }
 0x428   : > { %10719 = vmatpush1.bf16.msra.mxu0 %v15798_v33  ;;  %11790 = vmatpush1.bf16.msra.mxu1 %v15801_v26  ;;  %v15883_v33 = vld [vmem:[%s16733_s9 + $0x1f68] ss:$16 sps:$4 sm:$0xff]   ;;  %v15888_v26 = vld [vmem:[%s16733_s9 + $0x1f84] ss:$16 sps:$4 sm:$0xff]  }
 0x429   : > { %10720 = vmatprep.subr.bf16.mxu0 %v15807_v63  ;;  %11791 = vmatprep.subr.bf16.mxu1 %v15810_v54  ;;  %v15891_v63 = vld [vmem:[%s16733_s9 + $0x1f8c] ss:$16 sps:$4 sm:$0xff]   ;;  %v15886_v54 = vld [vmem:[%s16733_s9 + $0x1f80] ss:$16 sps:$4 sm:$0xff]  }
 0x42c   : > { %10721 = vmatpush1.bf16.msra.mxu0 %v15805_v42  ;;  %11792 = vmatpush1.bf16.msra.mxu1 %v15808_v8  ;;  %v12466_v42 = vld [vmem:[%s16730_s19 + $0x20] sm:$0xf] }
 0x42d   : > { %10741 = vmatprep.subr.bf16.mxu0 %v15816_v53  ;;  %11812 = vmatprep.subr.bf16.mxu1 %v15819_v23  ;;  %1456 = vst [vmem:[#allocation2 + $0x1cc] sm:$0xf] %v12466_v42  ;;  %v15892_v8 = vld [vmem:[%s16733_s9 + $0x1fa0] ss:$16 sps:$4 sm:$0xff]   ;;  %v15895_v53 = vld [vmem:[%s16733_s9 + $0x1fa8] ss:$16 sps:$4 sm:$0xff]  }
 0x42e   : > { %v15901_v23 = vld [vmem:[%s16733_s9 + $0x1fc4] ss:$16 sps:$4 sm:$0xff]   ;;  %v15975_v42 = vld [vmem:[%s16733_s9 + $0x2140] ss:$16 sps:$4 sm:$0xff]  }
 0x42f   : > { %10723 = vmatmul.mubr.bf16.vlgmr.msra.gmra.mrb[0].mxu0 %v15811_v4  ;;  %11794 = vmatmul.mubr.bf16.vlgmr.msra.gmra.mrb[0].mxu1 %v15811_v4  ;;  %v15904_v4 = vld [vmem:[%s16733_s9 + $0x1fcc] ss:$16 sps:$4 sm:$0xff]  }
 0x430   : > { %10742 = vmatpush1.bf16.msra.mxu0 %v15814_v5  ;;  %11813 = vmatpush1.bf16.msra.mxu1 %v15817_v39  ;;  %v15902_v5 = vld [vmem:[%s16733_s9 + $0x1fc8] ss:$16 sps:$4 sm:$0xff]   ;;  %v15908_v39 = vld [vmem:[%s16733_s9 + $0x1fe4] ss:$16 sps:$4 sm:$0xff]  }
 0x431   : > { %10743 = vmatprep.subr.bf16.mxu0 %v15822_v59  ;;  %11814 = vmatprep.subr.bf16.mxu1 %v15825_v6  ;;  %v15911_v59 = vld [vmem:[%s16733_s9 + $0x1fec] ss:$16 sps:$4 sm:$0xff]  }
 0x432   : > { %10732 = vmatprep.mubr.bf16.mxu0 %v12556_v9  ;;  %11803 = vmatprep.mubr.bf16.mxu1 %v12556_v9  ;;  %v12467_v6 = vld [vmem:[%s16730_s19 + $0x2c] sm:$0xf]  ;;  %v12468_v9 = vld [vmem:[%s16730_s19 + $0x30] sm:$0xf] }
 0x433   : > { %1460 = vst [vmem:[#allocation2 + $0x88] sm:$0xf] %v12467_v6  ;;  %1461 = vst [vmem:[#allocation2 + $0x12c] sm:$0xf] %v12468_v9  ;;  %v15990_v6 = vld [vmem:[%s16733_s9 + $0x2188] ss:$16 sps:$4 sm:$0xff]  }
 0x434   : > { %10744 = vmatpush1.bf16.msra.mxu0 %v15820_v7  ;;  %11815 = vmatpush1.bf16.msra.mxu1 %v15823_v11  ;;  %v12470_v7 = vld [vmem:[%s16730_s19 + $0x40] sm:$0xf]  ;;  %v12471_v11 = vld [vmem:[%s16730_s19 + $0x44] sm:$0xf]  ;;  %v12469_v9 = vld [vmem:[%s16730_s19 + $0x34] sm:$0xf] }
 0x435   : > { %10745 = vmatprep.subr.bf16.mxu0 %v15828_v13  ;;  %11816 = vmatprep.subr.bf16.mxu1 %v15831_v14  ;;  %1466 = vst [vmem:[#allocation2 + $0x8c] sm:$0xf] %v12470_v7  ;;  %v15906_v13 = vld [vmem:[%s16733_s9 + $0x1fe0] ss:$16 sps:$4 sm:$0xff]   ;;  %v15909_v14 = vld [vmem:[%s16733_s9 + $0x1fe8] ss:$16 sps:$4 sm:$0xff]  }
 0x436   : > { %1467 = vst [vmem:[#allocation2 + $0x130] sm:$0xf] %v12471_v11  ;;  %v15995_v7 = vld [vmem:[%s16733_s9 + $0x21a4] ss:$16 sps:$4 sm:$0xff]   ;;  %v15998_v11 = vld [vmem:[%s16733_s9 + $0x21ac] ss:$16 sps:$4 sm:$0xff]  }
 0x437   : > { %10733 = vmatmul.mubr.bf16.gmra.mrb[4].mxu0 %v12555_v16  ;;  %11804 = vmatmul.mubr.bf16.gmra.mrb[4].mxu1 %v12555_v16  ;;  %v15917_v16 = vld [vmem:[%s16733_s9 + $0x2004] ss:$16 sps:$4 sm:$0xff]   ;;  %1462 = vst [vmem:[#allocation2 + $0x1d0] sm:$0xf] %v12469_v9  ;;  %v16025_v9 = vld [vmem:[%s16733_s9 + $0x2228] ss:$16 sps:$4 sm:$0xff]  }
 0x438   : > { %10746 = vmatpush1.bf16.msra.mxu0 %v15826_v22  ;;  %11817 = vmatpush1.bf16.msra.mxu1 %v15829_v21  ;;  %v15920_v22 = vld [vmem:[%s16733_s9 + $0x200c] ss:$16 sps:$4 sm:$0xff]  }
 0x439   : > { %10747 = vmatprep.subr.bf16.mxu0 %v15834_v29  ;;  %11818 = vmatprep.subr.bf16.mxu1 %v15837_v27  ;;  %v15912_v21 = vld [vmem:[#allocation2 + $0x78] ss:$164 sps:$4 sm:$0xff]   ;;  %v1726_v29 = vld [vmem:[#allocation2 + $0x1c0] sm:$0xff] }
 0x43a   : > { %10773 = vmatprep.mubr.bf16.mxu0 %v15914_v30  ;;  %11844 = vmatprep.mubr.bf16.mxu1 %v15914_v30  ;;  %v15915_v27 = vld [vmem:[%s16733_s9 + $0x2000] ss:$16 sps:$4 sm:$0xff]   ;;  %v15918_v30 = vld [vmem:[%s16733_s9 + $0x2008] ss:$16 sps:$4 sm:$0xff]  }
 0x43c   : > { %10748 = vmatpush1.bf16.msra.mxu0 %v15832_v31  ;;  %11819 = vmatpush1.bf16.msra.mxu1 %v15835_v32  ;;  %v15923_v31 = vld [vmem:[%s16733_s9 + $0x2024] ss:$16 sps:$4 sm:$0xff]   ;;  %v15926_v32 = vld [vmem:[%s16733_s9 + $0x202c] ss:$16 sps:$4 sm:$0xff]  }
 0x43d   : > { %10749 = vmatprep.subr.bf16.mxu0 %v15840_v34  ;;  %11820 = vmatprep.subr.bf16.mxu1 %v15843_v36  ;;  %v12558_v34 = vcombine.high %v1726_v29, %v1726_v29  ;;  %v15921_v36 = vld [vmem:[%s16733_s9 + $0x2020] ss:$16 sps:$4 sm:$0xff]  }
 0x440   : > { %10750 = vmatpush1.bf16.msra.mxu0 %v15838_v3  ;;  %11821 = vmatpush1.bf16.msra.mxu1 %v15841_v55  ;;  %v15924_v3 = vld [vmem:[%s16733_s9 + $0x2028] ss:$16 sps:$4 sm:$0xff]   ;;  %v15929_v55 = vld [vmem:[%s16733_s9 + $0x2044] ss:$16 sps:$4 sm:$0xff]  }
 0x441   : > { %10751 = vmatprep.subr.bf16.mxu0 %v15846_v25  ;;  %11822 = vmatprep.subr.bf16.mxu1 %v15849_v24  ;;  %v15932_v25 = vld [vmem:[%s16733_s9 + $0x204c] ss:$16 sps:$4 sm:$0xff]   ;;  %v12557_v24 = vcombine.low %v1726_v29, %v1726_v29 }
 0x444   : > { %10752 = vmatpush1.bf16.msra.mxu0 %v15844_v37  ;;  %11823 = vmatpush1.bf16.msra.mxu1 %v15847_v20  ;;  %v15927_v37 = vld [vmem:[%s16733_s9 + $0x2040] ss:$16 sps:$4 sm:$0xff]   ;;  %v15930_v20 = vld [vmem:[%s16733_s9 + $0x2048] ss:$16 sps:$4 sm:$0xff]  }
 0x445   : > { %10753 = vmatprep.subr.bf16.mxu0 %v15852_v40  ;;  %11824 = vmatprep.subr.bf16.mxu1 %v15855_v41  ;;  %v15935_v40 = vld [vmem:[%s16733_s9 + $0x2064] ss:$16 sps:$4 sm:$0xff]   ;;  %v15938_v41 = vld [vmem:[%s16733_s9 + $0x206c] ss:$16 sps:$4 sm:$0xff]  }
 0x448   : > { %10754 = vmatpush1.bf16.msra.mxu0 %v15850_v18  ;;  %11825 = vmatpush1.bf16.msra.mxu1 %v15853_v12  ;;  %v16015_v18 = vld [vmem:[#allocation2 + $0x84] ss:$164 sps:$4 sm:$0xff]   ;;  %v15933_v12 = vld [vmem:[%s16733_s9 + $0x2060] ss:$16 sps:$4 sm:$0xff]  }
 0x449   : > { %10755 = vmatprep.subr.bf16.mxu0 %v15858_v19  ;;  %11826 = vmatprep.subr.bf16.mxu1 %v15861_v28  ;;  %v15936_v19 = vld [vmem:[%s16733_s9 + $0x2068] ss:$16 sps:$4 sm:$0xff]   ;;  %v15941_v28 = vld [vmem:[%s16733_s9 + $0x2084] ss:$16 sps:$4 sm:$0xff]  }
 0x44c   : > { %10756 = vmatpush1.bf16.msra.mxu0 %v15856_v44  ;;  %11827 = vmatpush1.bf16.msra.mxu1 %v15859_v45  ;;  %v15944_v44 = vld [vmem:[%s16733_s9 + $0x208c] ss:$16 sps:$4 sm:$0xff]   ;;  %v15939_v45 = vld [vmem:[%s16733_s9 + $0x2080] ss:$16 sps:$4 sm:$0xff]  }
 0x44d   : > { %10757 = vmatprep.subr.bf16.mxu0 %v15864_v47  ;;  %11828 = vmatprep.subr.bf16.mxu1 %v15867_v48  ;;  %v15942_v47 = vld [vmem:[%s16733_s9 + $0x2088] ss:$16 sps:$4 sm:$0xff]   ;;  %v15947_v48 = vld [vmem:[%s16733_s9 + $0x20a4] ss:$16 sps:$4 sm:$0xff]  }
 0x450   : > { %10758 = vmatpush1.bf16.msra.mxu0 %v15862_v62  ;;  %11829 = vmatpush1.bf16.msra.mxu1 %v15865_v43  ;;  %v15950_v62 = vld [vmem:[%s16733_s9 + $0x20ac] ss:$16 sps:$4 sm:$0xff]   ;;  %v15945_v43 = vld [vmem:[%s16733_s9 + $0x20a0] ss:$16 sps:$4 sm:$0xff]  }
 0x451   : > { %10759 = vmatprep.subr.bf16.mxu0 %v15870_v56  ;;  %11830 = vmatprep.subr.bf16.mxu1 %v15873_v57  ;;  %v15948_v56 = vld [vmem:[%s16733_s9 + $0x20a8] ss:$16 sps:$4 sm:$0xff]   ;;  %v15953_v57 = vld [vmem:[%s16733_s9 + $0x20c4] ss:$16 sps:$4 sm:$0xff]  }
 0x454   : > { %10760 = vmatpush1.bf16.msra.mxu0 %v15868_v35  ;;  %11831 = vmatpush1.bf16.msra.mxu1 %v15871_v49  ;;  %v15956_v35 = vld [vmem:[%s16733_s9 + $0x20cc] ss:$16 sps:$4 sm:$0xff]   ;;  %v15951_v49 = vld [vmem:[%s16733_s9 + $0x20c0] ss:$16 sps:$4 sm:$0xff]  }
 0x455   : > { %10761 = vmatprep.subr.bf16.mxu0 %v15876_v46  ;;  %11832 = vmatprep.subr.bf16.mxu1 %v15879_v10  ;;  %v15954_v46 = vld [vmem:[%s16733_s9 + $0x20c8] ss:$16 sps:$4 sm:$0xff]   ;;  %v15959_v10 = vld [vmem:[%s16733_s9 + $0x20e4] ss:$16 sps:$4 sm:$0xff]  }
 0x458   : > { %10762 = vmatpush1.bf16.msra.mxu0 %v15874_v38  ;;  %11833 = vmatpush1.bf16.msra.mxu1 %v15877_v51  ;;  %v15962_v38 = vld [vmem:[%s16733_s9 + $0x20ec] ss:$16 sps:$4 sm:$0xff]   ;;  %v15957_v51 = vld [vmem:[%s16733_s9 + $0x20e0] ss:$16 sps:$4 sm:$0xff]  }
 0x459   : > { %10763 = vmatprep.subr.bf16.mxu0 %v15882_v58  ;;  %11834 = vmatprep.subr.bf16.mxu1 %v15885_v60  ;;  %v15960_v58 = vld [vmem:[%s16733_s9 + $0x20e8] ss:$16 sps:$4 sm:$0xff]   ;;  %v15965_v60 = vld [vmem:[%s16733_s9 + $0x2104] ss:$16 sps:$4 sm:$0xff]  }
 0x45c   : > { %10764 = vmatpush1.bf16.msra.mxu0 %v15880_v61  ;;  %11835 = vmatpush1.bf16.msra.mxu1 %v15883_v33  ;;  %v15968_v61 = vld [vmem:[%s16733_s9 + $0x210c] ss:$16 sps:$4 sm:$0xff]   ;;  %v15963_v33 = vld [vmem:[%s16733_s9 + $0x2100] ss:$16 sps:$4 sm:$0xff]  }
 0x45d   : > { %10765 = vmatprep.subr.bf16.mxu0 %v15888_v26  ;;  %11836 = vmatprep.subr.bf16.mxu1 %v15891_v63  ;;  %v15966_v26 = vld [vmem:[%s16733_s9 + $0x2108] ss:$16 sps:$4 sm:$0xff]   ;;  %v15971_v63 = vld [vmem:[%s16733_s9 + $0x2124] ss:$16 sps:$4 sm:$0xff]  }
 0x460   : > { %10766 = vmatpush1.bf16.msra.mxu0 %v15886_v54  ;;  %11837 = vmatpush1.bf16.msra.mxu1 %v15889_v0  ;;  %v15974_v54 = vld [vmem:[%s16733_s9 + $0x212c] ss:$16 sps:$4 sm:$0xff]   ;;  %v15969_v0 = vld [vmem:[%s16733_s9 + $0x2120] ss:$16 sps:$4 sm:$0xff]  }
 0x461   : > { %10767 = vmatprep.subr.bf16.mxu0 %v15894_v2  ;;  %11838 = vmatprep.subr.bf16.mxu1 %v15897_v50  ;;  %v15977_v2 = vld [vmem:[%s16733_s9 + $0x2144] ss:$16 sps:$4 sm:$0xff]   ;;  %v15980_v50 = vld [vmem:[%s16733_s9 + $0x214c] ss:$16 sps:$4 sm:$0xff]  }
 0x464   : > { %10768 = vmatpush1.bf16.msra.mxu0 %v15892_v8  ;;  %11839 = vmatpush1.bf16.msra.mxu1 %v15895_v53  ;;  %v15978_v8 = vld [vmem:[%s16733_s9 + $0x2148] ss:$16 sps:$4 sm:$0xff]   ;;  %v15983_v53 = vld [vmem:[%s16733_s9 + $0x2164] ss:$16 sps:$4 sm:$0xff]  }
 0x465   : > { %10769 = vmatprep.subr.bf16.mxu0 %v15901_v23  ;;  %11840 = vmatprep.subr.bf16.mxu1 %v15904_v4  ;;  %v15986_v23 = vld [vmem:[%s16733_s9 + $0x216c] ss:$16 sps:$4 sm:$0xff]   ;;  %v15981_v4 = vld [vmem:[%s16733_s9 + $0x2160] ss:$16 sps:$4 sm:$0xff]  }
 0x468   : > { %10770 = vmatpush1.bf16.msra.mxu0 %v15899_v52  ;;  %11841 = vmatpush1.bf16.msra.mxu1 %v15902_v5  ;;  %v15984_v52 = vld [vmem:[%s16733_s9 + $0x2168] ss:$16 sps:$4 sm:$0xff]   ;;  %v15989_v5 = vld [vmem:[%s16733_s9 + $0x2184] ss:$16 sps:$4 sm:$0xff]  }
 0x469   : > { %10771 = vmatprep.subr.bf16.mxu0 %v15908_v39  ;;  %11842 = vmatprep.subr.bf16.mxu1 %v15911_v59  ;;  %v15992_v39 = vld [vmem:[%s16733_s9 + $0x218c] ss:$16 sps:$4 sm:$0xff]   ;;  %v15987_v59 = vld [vmem:[%s16733_s9 + $0x2180] ss:$16 sps:$4 sm:$0xff]  }
 0x46c   : > { %10772 = vmatpush1.bf16.msra.mxu0 %v15906_v13  ;;  %11843 = vmatpush1.bf16.msra.mxu1 %v15909_v14  ;;  %v12472_v13 = vld [vmem:[%s16730_s19 + $0x48] sm:$0xf]  ;;  %v15993_v14 = vld [vmem:[%s16733_s9 + $0x21a0] ss:$16 sps:$4 sm:$0xff]  }
 0x46d   : > { %10792 = vmatprep.subr.bf16.mxu0 %v15917_v16  ;;  %11863 = vmatprep.subr.bf16.mxu1 %v15920_v22  ;;  %1468 = vst [vmem:[#allocation2 + $0x1d4] sm:$0xf] %v12472_v13  ;;  %v1469_v16 = vld [vmem:[%s16730_s19 + $0x4] sm:$0xf]  ;;  %v1470_v22 = vld [vmem:[%s16730_s19 + $0x8] sm:$0xf] }
 0x46e   : > { %v1477_v29 = vshll.u32 %v1469_v16, 16 }
 0x46f   : > { %10774 = vmatmul.mubr.bf16.vlgmr.msra.gmra.mrb[0].mxu0 %v15912_v21  ;;  %11845 = vmatmul.mubr.bf16.vlgmr.msra.gmra.mrb[0].mxu1 %v15912_v21  ;;  %v1474_v21 = vshrl.u32 %v1469_v16, 16  ;;  %v16031_v16 = vld [vmem:[%s16733_s9 + $0x2248] ss:$16 sps:$4 sm:$0xff]  }
 0x470   : > { %10793 = vmatpush1.bf16.msra.mxu0 %v15915_v27  ;;  %11864 = vmatpush1.bf16.msra.mxu1 %v15918_v30  ;;  %v1483_v27 = vshll.u32 %v1470_v22, 16  ;;  %v1487_v30 = vshrl.u32 %v1470_v22, 16  ;;  %v16036_v22 = vld [vmem:[%s16733_s9 + $0x2264] ss:$16 sps:$4 sm:$0xff]  }
 0x471   : > { %10794 = vmatprep.subr.bf16.mxu0 %v15923_v31  ;;  %11865 = vmatprep.subr.bf16.mxu1 %v15926_v32  ;;  %v12473_v31 = vld [vmem:[%s16730_s19 + $0x18] sm:$0xf] }
 0x472   : > { %10783 = vmatprep.mubr.bf16.mxu0 %v12558_v34  ;;  %11854 = vmatprep.mubr.bf16.mxu1 %v12558_v34  ;;  %v15996_v32 = vld [vmem:[%s16733_s9 + $0x21a8] ss:$16 sps:$4 sm:$0xff]   ;;  %v18338_v34 = vld [vmem:[%s16730_s19 + $0xc] sm:$0xf] }
 0x474   : > { %10795 = vmatpush1.bf16.msra.mxu0 %v15921_v36  ;;  %11866 = vmatpush1.bf16.msra.mxu1 %v15924_v3  ;;  %v12474_v36 = vld [vmem:[%s16730_s19 + $0x1c] sm:$0xf]  ;;  %v16002_v3 = vld [vmem:[%s16733_s9 + $0x21c4] ss:$16 sps:$4 sm:$0xff]  }
 0x475   : > { %10796 = vmatprep.subr.bf16.mxu0 %v15929_v55  ;;  %11867 = vmatprep.subr.bf16.mxu1 %v15932_v25  ;;  %v16005_v55 = vld [vmem:[%s16733_s9 + $0x21cc] ss:$16 sps:$4 sm:$0xff]   ;;  %v1476_v25 = vrot.slane %v1474_v21, 4 }
 0x476   : > { %v16039_v21 = vld [vmem:[%s16733_s9 + $0x226c] ss:$16 sps:$4 sm:$0xff]  }
 0x477   : > { %10784 = vmatmul.mubr.bf16.gmra.mrb[4].mxu0 %v12557_v24  ;;  %11855 = vmatmul.mubr.bf16.gmra.mrb[4].mxu1 %v12557_v24  ;;  %v1479_v24 = vrot.slane %v1477_v29, 5  ;;  %v16116_v29 = vld [vmem:[#allocation2 + $0x8c] ss:$164 sps:$4 sm:$0xff]  }
 0x478   : > { %10797 = vmatpush1.bf16.msra.mxu0 %v15927_v37  ;;  %11868 = vmatpush1.bf16.msra.mxu1 %v15930_v20  ;;  %v1485_v37 = vrot.slane %v1483_v27, 5  ;;  %v1489_v20 = vrot.slane %v1487_v30, 4  ;;  %v16034_v27 = vld [vmem:[%s16733_s9 + $0x2260] ss:$16 sps:$4 sm:$0xff]   ;;  %v16037_v30 = vld [vmem:[%s16733_s9 + $0x2268] ss:$16 sps:$4 sm:$0xff]  }
 0x479   : > { %10798 = vmatprep.subr.bf16.mxu0 %v15935_v40  ;;  %11869 = vmatprep.subr.bf16.mxu1 %v15938_v41  ;;  %v1493_v40 = vshll.u32 %v18338_v34, 16  ;;  %v1518_v41 = vshrl.u32 %v12473_v31, 16 }
 0x47a   : > { %10824 = vmatprep.mubr.bf16.mxu0 %v16015_v18  ;;  %11895 = vmatprep.mubr.bf16.mxu1 %v16015_v18  ;;  %v16000_v18 = vld [vmem:[%s16733_s9 + $0x21c0] ss:$16 sps:$4 sm:$0xff]  }
 0x47c   : > { %10799 = vmatpush1.bf16.msra.mxu0 %v15933_v12  ;;  %11870 = vmatpush1.bf16.msra.mxu1 %v15936_v19  ;;  %v1480_v12 = vor.u32 %v1479_v24, %v1476_v25  ;;  %v1521_v19 = vshll.u32 %v12473_v31, 16  ;;  %v16042_v31 = vld [vmem:[%s16733_s9 + $0x2284] ss:$16 sps:$4 sm:$0xff]   ;;  %v16051_v25 = vld [vmem:[%s16733_s9 + $0x22ac] ss:$16 sps:$4 sm:$0xff]  }
 0x47d   : > { %10800 = vmatprep.subr.bf16.mxu0 %v15941_v28  ;;  %11871 = vmatprep.subr.bf16.mxu1 %v15944_v44  ;;  %v1527_v28 = vshll.u32 %v12474_v36, 16  ;;  %v1531_v44 = vshrl.u32 %v12474_v36, 16  ;;  %v16040_v36 = vld [vmem:[%s16733_s9 + $0x2280] ss:$16 sps:$4 sm:$0xff]  }
 0x47e   : > { %v16046_v24 = vld [vmem:[%s16733_s9 + $0x22a0] ss:$16 sps:$4 sm:$0xff]  }
 0x480   : > { %10801 = vmatpush1.bf16.msra.mxu0 %v15939_v45  ;;  %11872 = vmatpush1.bf16.msra.mxu1 %v15942_v47  ;;  %v16003_v45 = vld [vmem:[%s16733_s9 + $0x21c8] ss:$16 sps:$4 sm:$0xff]   ;;  %v1490_v47 = vor.u32 %v1489_v20, %v1485_v37  ;;  %v16054_v20 = vld [vmem:[%s16733_s9 + $0x22c4] ss:$16 sps:$4 sm:$0xff]  }
 0x481   : > { %10802 = vmatprep.subr.bf16.mxu0 %v15947_v48  ;;  %11873 = vmatprep.subr.bf16.mxu1 %v15950_v62  ;;  %v18346_v48 = vrot.slane %v1493_v40, 5  ;;  %v18349_v62 = vld [vmem:[%s16730_s19 + $0x20] sm:$0xf]  ;;  %v16057_v40 = vld [vmem:[%s16733_s9 + $0x22cc] ss:$16 sps:$4 sm:$0xff]  }
 0x484   : > { %10803 = vmatpush1.bf16.msra.mxu0 %v15945_v43  ;;  %11874 = vmatpush1.bf16.msra.mxu1 %v15948_v56  ;;  %v1520_v43 = vrot.slane %v1518_v41, 4  ;;  %v16009_v56 = vld [vmem:[%s16733_s9 + $0x21e4] ss:$16 sps:$4 sm:$0xff]   ;;  %v16052_v41 = vld [vmem:[%s16733_s9 + $0x22c0] ss:$16 sps:$4 sm:$0xff]  }
 0x485   : > { %10804 = vmatprep.subr.bf16.mxu0 %v15953_v57  ;;  %11875 = vmatprep.subr.bf16.mxu1 %v15956_v35  ;;  %v16012_v57 = vld [vmem:[%s16733_s9 + $0x21ec] ss:$16 sps:$4 sm:$0xff]   ;;  %v1481_v35 = vrot.slane %v1480_v12, 4  ;;  %v16060_v12 = vld [vmem:[%s16733_s9 + $0x22e4] ss:$16 sps:$4 sm:$0xff]  }
 0x488   : > { %10805 = vmatpush1.bf16.msra.mxu0 %v15951_v49  ;;  %11876 = vmatpush1.bf16.msra.mxu1 %v15954_v46  ;;  %v1491_v49 = vrot.slane %v1490_v47, 4  ;;  %v1523_v46 = vrot.slane %v1521_v19, 5  ;;  %v16063_v19 = vld [vmem:[%s16733_s9 + $0x22ec] ss:$16 sps:$4 sm:$0xff]  }
 0x489   : > { %10806 = vmatprep.subr.bf16.mxu0 %v15959_v10  ;;  %11877 = vmatprep.subr.bf16.mxu1 %v15962_v38  ;;  %v1486_v10 = vsel %vm16918_vm2, %v1481_v35, %v1485_v37  ;;  %v1529_v38 = vrot.slane %v1527_v28, 5  ;;  %v16049_v37 = vld [vmem:[%s16733_s9 + $0x22a8] ss:$16 sps:$4 sm:$0xff]   ;;  %v16058_v28 = vld [vmem:[%s16733_s9 + $0x22e0] ss:$16 sps:$4 sm:$0xff]  }
 0x48a   : > { %1510 = vst [vmem:[#allocation2 + $0x90] sm:$0xf] %v1486_v10  ;;  %v16069_v47 = vld [vmem:[%s16733_s9 + $0x230c] ss:$16 sps:$4 sm:$0xff]   ;;  %v16078_v10 = vld [vmem:[%s16733_s9 + $0x2344] ss:$16 sps:$4 sm:$0xff]  }
 0x48b   : > { %v16075_v35 = vld [vmem:[%s16733_s9 + $0x232c] ss:$16 sps:$4 sm:$0xff]  }
 0x48c   : > { %10807 = vmatpush1.bf16.msra.mxu0 %v15957_v51  ;;  %11878 = vmatpush1.bf16.msra.mxu1 %v15960_v58  ;;  %v1533_v51 = vrot.slane %v1531_v44, 4  ;;  %v1537_v58 = vshll.u32 %v18349_v62, 16  ;;  %v16061_v44 = vld [vmem:[%s16733_s9 + $0x22e8] ss:$16 sps:$4 sm:$0xff]  }
 0x48d   : > { %10808 = vmatprep.subr.bf16.mxu0 %v15965_v60  ;;  %11879 = vmatprep.subr.bf16.mxu1 %v15968_v61  ;;  %v16007_v60 = vld [vmem:[%s16733_s9 + $0x21e0] ss:$16 sps:$4 sm:$0xff]   ;;  %v16010_v61 = vld [vmem:[%s16733_s9 + $0x21e8] ss:$16 sps:$4 sm:$0xff]  }
 0x490   : > { %10809 = vmatpush1.bf16.msra.mxu0 %v15963_v33  ;;  %11880 = vmatpush1.bf16.msra.mxu1 %v15966_v26  ;;  %v1496_v33 = vsel %vm16918_vm2, %v1491_v49, %v18346_v48  ;;  %v1524_v26 = vor.u32 %v1523_v46, %v1520_v43  ;;  %v16064_v43 = vld [vmem:[%s16733_s9 + $0x2300] ss:$16 sps:$4 sm:$0xff]   ;;  %v16073_v46 = vld [vmem:[%s16733_s9 + $0x2328] ss:$16 sps:$4 sm:$0xff]  }
 0x491   : > { %10810 = vmatprep.subr.bf16.mxu0 %v15971_v63  ;;  %11881 = vmatprep.subr.bf16.mxu1 %v15974_v54  ;;  %v16018_v63 = vld [vmem:[%s16733_s9 + $0x2204] ss:$16 sps:$4 sm:$0xff]   ;;  %v16021_v54 = vld [vmem:[%s16733_s9 + $0x220c] ss:$16 sps:$4 sm:$0xff]   ;;  %1511 = vst [vmem:[#allocation2 + $0x134] sm:$0xf] %v1496_v33 }
 0x492   : > { %v16070_v49 = vld [vmem:[%s16733_s9 + $0x2320] ss:$16 sps:$4 sm:$0xff]   ;;  %v16084_v33 = vld [vmem:[%s16733_s9 + $0x2364] ss:$16 sps:$4 sm:$0xff]  }
 0x494   : > { %10811 = vmatpush1.bf16.msra.mxu0 %v15969_v0  ;;  %11882 = vmatpush1.bf16.msra.mxu1 %v15972_v1  ;;  %v1534_v0 = vor.u32 %v1533_v51, %v1529_v38  ;;  %v18363_v1 = vrot.slane %v1537_v58, 5  ;;  %v1497_v51 = vshrl.u32 %v18338_v34, 16  ;;  %v1541_v58 = vshrl.u32 %v18349_v62, 16  ;;  %v16082_v34 = vld [vmem:[%s16733_s9 + $0x2360] ss:$16 sps:$4 sm:$0xff]  }
 0x495   : > { %10812 = vmatprep.subr.bf16.mxu0 %v15977_v2  ;;  %11883 = vmatprep.subr.bf16.mxu1 %v15980_v50  ;;  %v1525_v2 = vrot.slane %v1524_v26, 4  ;;  %v16013_v50 = vld [vmem:[#allocation2 + $0x80] ss:$164 sps:$4 sm:$0xff]   ;;  %v16087_v26 = vld [vmem:[%s16733_s9 + $0x236c] ss:$16 sps:$4 sm:$0xff]  }
 0x496   : > { %v16085_v62 = vld [vmem:[%s16733_s9 + $0x2368] ss:$16 sps:$4 sm:$0xff]  }
 0x498   : > { %10813 = vmatpush1.bf16.msra.mxu0 %v15975_v42  ;;  %11884 = vmatpush1.bf16.msra.mxu1 %v15978_v8  ;;  %v1727_v42 = vld [vmem:[#allocation2 + $0x1c8] sm:$0xff]  ;;  %v1535_v8 = vrot.slane %v1534_v0, 4 }
 0x499   : > { %10814 = vmatprep.subr.bf16.mxu0 %v15983_v53  ;;  %11885 = vmatprep.subr.bf16.mxu1 %v15986_v23  ;;  %v16016_v53 = vld [vmem:[%s16733_s9 + $0x2200] ss:$16 sps:$4 sm:$0xff]   ;;  %v16019_v23 = vld [vmem:[%s16733_s9 + $0x2208] ss:$16 sps:$4 sm:$0xff]   ;;  %v12559_v13 = vcombine.low %v1727_v42, %v1727_v42 }
 0x49a   : > { %v1472_v0 = vld [vmem:[%s16730_s19 + $0x10] sm:$0x1] }
 0x49c   : > { %10815 = vmatpush1.bf16.msra.mxu0 %v15981_v4  ;;  %11886 = vmatpush1.bf16.msra.mxu1 %v15984_v52  ;;  %v1530_v4 = vsel %vm16918_vm2, %v1525_v2, %v1529_v38  ;;  %v16024_v52 = vld [vmem:[%s16733_s9 + $0x2224] ss:$16 sps:$4 sm:$0xff]   ;;  %v16081_v38 = vld [vmem:[%s16733_s9 + $0x234c] ss:$16 sps:$4 sm:$0xff]  }
 0x49d   : > { %10816 = vmatprep.subr.bf16.mxu0 %v15989_v5  ;;  %11887 = vmatprep.subr.bf16.mxu1 %v15992_v39  ;;  %v16027_v5 = vld [vmem:[%s16733_s9 + $0x222c] ss:$16 sps:$4 sm:$0xff]   ;;  %v1540_v39 = vsel %vm16918_vm2, %v1535_v8, %v18363_v1  ;;  %1554 = vst [vmem:[#allocation2 + $0x94] sm:$0xf] %v1530_v4  ;;  %v12476_v2 = vld [vmem:[%s16730_s19 + $0x24] sm:$0x1] }
 0x49e   : > { %1555 = vst [vmem:[#allocation2 + $0x138] sm:$0xf] %v1540_v39  ;;  %v16093_v4 = vld [vmem:[%s16733_s9 + $0x238c] ss:$16 sps:$4 sm:$0xff]  }
 0x4a0   : > { %10817 = vmatpush1.bf16.msra.mxu0 %v15987_v59  ;;  %11888 = vmatpush1.bf16.msra.mxu1 %v15990_v6  ;;  %v12560_v59 = vcombine.high %v1727_v42, %v1727_v42  ;;  %v16022_v6 = vld [vmem:[%s16733_s9 + $0x2220] ss:$16 sps:$4 sm:$0xff]   ;;  %v1503_v42 = vshll.u32 %v1472_v0, 16 }
 0x4a1   : > { %10818 = vmatprep.subr.bf16.mxu0 %v15995_v7  ;;  %11889 = vmatprep.subr.bf16.mxu1 %v15998_v11  ;;  %v16030_v7 = vld [vmem:[%s16733_s9 + $0x2244] ss:$16 sps:$4 sm:$0xff]   ;;  %v16033_v11 = vld [vmem:[%s16733_s9 + $0x224c] ss:$16 sps:$4 sm:$0xff]  }
 0x4a4   : > { %10819 = vmatpush1.bf16.msra.mxu0 %v15993_v14  ;;  %11890 = vmatpush1.bf16.msra.mxu1 %v15996_v32  ;;  %v16028_v14 = vld [vmem:[%s16733_s9 + $0x2240] ss:$16 sps:$4 sm:$0xff]   ;;  %v16045_v32 = vld [vmem:[%s16733_s9 + $0x228c] ss:$16 sps:$4 sm:$0xff]  }
 0x4a5   : > { %10820 = vmatprep.subr.bf16.mxu0 %v16002_v3  ;;  %11891 = vmatprep.subr.bf16.mxu1 %v16005_v55  ;;  %v16043_v3 = vld [vmem:[%s16733_s9 + $0x2288] ss:$16 sps:$4 sm:$0xff]   ;;  %v16048_v55 = vld [vmem:[%s16733_s9 + $0x22a4] ss:$16 sps:$4 sm:$0xff]  }
 0x4a8   : > { %10821 = vmatpush1.bf16.msra.mxu0 %v16000_v18  ;;  %11892 = vmatpush1.bf16.msra.mxu1 %v16003_v45  ;;  %v16055_v18 = vld [vmem:[%s16733_s9 + $0x22c8] ss:$16 sps:$4 sm:$0xff]   ;;  %v16066_v45 = vld [vmem:[%s16733_s9 + $0x2304] ss:$16 sps:$4 sm:$0xff]  }
 0x4a9   : > { %10822 = vmatprep.subr.bf16.mxu0 %v16009_v56  ;;  %11893 = vmatprep.subr.bf16.mxu1 %v16012_v57  ;;  %v16067_v56 = vld [vmem:[%s16733_s9 + $0x2308] ss:$16 sps:$4 sm:$0xff]   ;;  %v16072_v57 = vld [vmem:[%s16733_s9 + $0x2324] ss:$16 sps:$4 sm:$0xff]  }
 0x4ac   : > { %10823 = vmatpush1.bf16.msra.mxu0 %v16007_v60  ;;  %11894 = vmatpush1.bf16.msra.mxu1 %v16010_v61  ;;  %v16076_v60 = vld [vmem:[%s16733_s9 + $0x2340] ss:$16 sps:$4 sm:$0xff]   ;;  %v16079_v61 = vld [vmem:[%s16733_s9 + $0x2348] ss:$16 sps:$4 sm:$0xff]  }
 0x4ad   : > { %10843 = vmatprep.subr.bf16.mxu0 %v16018_v63  ;;  %11914 = vmatprep.subr.bf16.mxu1 %v16021_v54  ;;  %v1499_v63 = vrot.slane %v1497_v51, 4  ;;  %v1543_v54 = vrot.slane %v1541_v58, 4 }
 0x4af   : > { %10825 = vmatmul.mubr.bf16.vlgmr.msra.gmra.mrb[0].mxu0 %v16013_v50  ;;  %11896 = vmatmul.mubr.bf16.vlgmr.msra.gmra.mrb[0].mxu1 %v16013_v50  ;;  %v1500_v50 = vor.u32 %v1499_v63, %v18346_v48  ;;  %v1544_v8 = vor.u32 %v1543_v54, %v18363_v1  ;;  %v16091_v48 = vld [vmem:[%s16733_s9 + $0x2388] ss:$16 sps:$4 sm:$0xff]   ;;  %v16108_v63 = vld [vmem:[%s16733_s9 + $0x23e0] ss:$16 sps:$4 sm:$0xff]  }
 0x4b0   : > { %10844 = vmatpush1.bf16.msra.mxu0 %v16016_v53  ;;  %11915 = vmatpush1.bf16.msra.mxu1 %v16019_v23  ;;  %v1547_v53 = vshll.u32 %v12476_v2, 16  ;;  %v16090_v23 = vld [vmem:[%s16733_s9 + $0x2384] ss:$16 sps:$4 sm:$0xff]   ;;  %v16111_v54 = vld [vmem:[%s16733_s9 + $0x23e8] ss:$16 sps:$4 sm:$0xff]  }
 0x4b1   : > { %10845 = vmatprep.subr.bf16.mxu0 %v16024_v52  ;;  %11916 = vmatprep.subr.bf16.mxu1 %v16027_v5  ;;  %v1501_v52 = vrot.slane %v1500_v50, 4  ;;  %v1505_v5 = vrot.slane %v1503_v42, 5  ;;  %v1545_v39 = vrot.slane %v1544_v8, 4  ;;  %v16122_v50 = vld [vmem:[%s16733_s9 + $0x240c] ss:$16 sps:$4 sm:$0xff]  }
 0x4b2   : > { %10834 = vmatprep.mubr.bf16.mxu0 %v12560_v59  ;;  %11905 = vmatprep.mubr.bf16.mxu1 %v12560_v59  ;;  %v1549_v59 = vrot.slane %v1547_v53, 5  ;;  %v16114_v53 = vld [vmem:[#allocation2 + $0x88] ss:$164 sps:$4 sm:$0xff]  }
 0x4b3   : > { %v1506_v1 = vsel %vm16918_vm2, %v1501_v52, %v1505_v5  ;;  %v16120_v52 = vld [vmem:[%s16733_s9 + $0x2408] ss:$16 sps:$4 sm:$0xff]  }
 0x4b4   : > { %10846 = vmatpush1.bf16.msra.mxu0 %v16022_v6  ;;  %11917 = vmatpush1.bf16.msra.mxu1 %v16025_v9  ;;  %v16088_v6 = vld [vmem:[%s16733_s9 + $0x2380] ss:$16 sps:$4 sm:$0xff]   ;;  %v1550_v9 = vsel %vm16918_vm2, %v1545_v39, %v1549_v59  ;;  %1512 = vst [vmem:[#allocation2 + $0x1d8] sm:$0xf] %v1506_v1  ;;  %v16125_v39 = vld [vmem:[%s16733_s9 + $0x2424] ss:$16 sps:$4 sm:$0xff]  }
 0x4b5   : > { %10847 = vmatprep.subr.bf16.mxu0 %v16030_v7  ;;  %11918 = vmatprep.subr.bf16.mxu1 %v16033_v11  ;;  %v12477_v7 = vld [vmem:[%s16730_s19 + $0x2c] sm:$0xf]  ;;  %v16096_v11 = vld [vmem:[%s16733_s9 + $0x23a4] ss:$16 sps:$4 sm:$0xff]   ;;  %1556 = vst [vmem:[#allocation2 + $0x1dc] sm:$0xf] %v1550_v9 }
 0x4b6   : > { %v16128_v59 = vld [vmem:[%s16733_s9 + $0x242c] ss:$16 sps:$4 sm:$0xff]   ;;  %v16126_v1 = vld [vmem:[%s16733_s9 + $0x2428] ss:$16 sps:$4 sm:$0xff]   ;;  %v16131_v9 = vld [vmem:[%s16733_s9 + $0x2444] ss:$16 sps:$4 sm:$0xff]  }
 0x4b7   : > { %10835 = vmatmul.mubr.bf16.gmra.mrb[4].mxu0 %v12559_v13  ;;  %11906 = vmatmul.mubr.bf16.gmra.mrb[4].mxu1 %v12559_v13  ;;  %v16099_v13 = vld [vmem:[%s16733_s9 + $0x23ac] ss:$16 sps:$4 sm:$0xff]  }
 0x4b8   : > { %10848 = vmatpush1.bf16.msra.mxu0 %v16028_v14  ;;  %11919 = vmatpush1.bf16.msra.mxu1 %v16031_v16  ;;  %v12478_v14 = vld [vmem:[%s16730_s19 + $0x30] sm:$0xf]  ;;  %v1562_v16 = vshrl.u32 %v12477_v7, 16 }
 0x4b9   : > { %10849 = vmatprep.subr.bf16.mxu0 %v16036_v22  ;;  %11920 = vmatprep.subr.bf16.mxu1 %v16039_v21  ;;  %v1565_v22 = vshll.u32 %v12477_v7, 16  ;;  %v1571_v21 = vshll.u32 %v12478_v14, 16  ;;  %v16134_v7 = vld [vmem:[%s16733_s9 + $0x244c] ss:$16 sps:$4 sm:$0xff]  }
 0x4ba   : > { %10875 = vmatprep.mubr.bf16.mxu0 %v16116_v29  ;;  %11946 = vmatprep.mubr.bf16.mxu1 %v16116_v29  ;;  %v1575_v29 = vshrl.u32 %v12478_v14, 16 }
 0x4bc   : > { %10850 = vmatpush1.bf16.msra.mxu0 %v16034_v27  ;;  %11921 = vmatpush1.bf16.msra.mxu1 %v16037_v30  ;;  %v12481_v27 = vld [vmem:[%s16730_s19 + $0x40] sm:$0xf] }
 0x4bd   : > { %10851 = vmatprep.subr.bf16.mxu0 %v16042_v31  ;;  %11922 = vmatprep.subr.bf16.mxu1 %v16045_v32  ;;  %v16094_v30 = vld [vmem:[%s16733_s9 + $0x23a0] ss:$16 sps:$4 sm:$0xff]   ;;  %v1606_v31 = vshrl.u32 %v12481_v27, 16  ;;  %v1609_v32 = vshll.u32 %v12481_v27, 16  ;;  %v16217_v27 = vld [vmem:[#allocation2 + $0x94] ss:$164 sps:$4 sm:$0xff]  }
 0x4c0   : > { %10852 = vmatpush1.bf16.msra.mxu0 %v16040_v36  ;;  %11923 = vmatpush1.bf16.msra.mxu1 %v16043_v3  ;;  %v16097_v36 = vld [vmem:[%s16733_s9 + $0x23a8] ss:$16 sps:$4 sm:$0xff]   ;;  %v18438_v3 = vld [vmem:[%s16730_s19 + $0x34] sm:$0xf] }
 0x4c1   : > { %10853 = vmatprep.subr.bf16.mxu0 %v16048_v55  ;;  %11924 = vmatprep.subr.bf16.mxu1 %v16051_v25  ;;  %v12482_v55 = vld [vmem:[%s16730_s19 + $0x44] sm:$0xf] }
 0x4c2   : > { %v16103_v25 = vld [vmem:[%s16733_s9 + $0x23c4] ss:$16 sps:$4 sm:$0xff]  }
 0x4c4   : > { %10854 = vmatpush1.bf16.msra.mxu0 %v16046_v24  ;;  %11925 = vmatpush1.bf16.msra.mxu1 %v16049_v37  ;;  %v16106_v24 = vld [vmem:[%s16733_s9 + $0x23cc] ss:$16 sps:$4 sm:$0xff]   ;;  %v1564_v37 = vrot.slane %v1562_v16, 4  ;;  %v16129_v16 = vld [vmem:[%s16733_s9 + $0x2440] ss:$16 sps:$4 sm:$0xff]  }
 0x4c5   : > { %10855 = vmatprep.subr.bf16.mxu0 %v16054_v20  ;;  %11926 = vmatprep.subr.bf16.mxu1 %v16057_v40  ;;  %v1567_v20 = vrot.slane %v1565_v22, 5  ;;  %v1573_v40 = vrot.slane %v1571_v21, 5  ;;  %v16132_v22 = vld [vmem:[%s16733_s9 + $0x2448] ss:$16 sps:$4 sm:$0xff]   ;;  %v16137_v21 = vld [vmem:[%s16733_s9 + $0x2464] ss:$16 sps:$4 sm:$0xff]  }
 0x4c8   : > { %10856 = vmatpush1.bf16.msra.mxu0 %v16052_v41  ;;  %11927 = vmatpush1.bf16.msra.mxu1 %v16055_v18  ;;  %v1577_v41 = vrot.slane %v1575_v29, 4  ;;  %v1581_v18 = vshll.u32 %v18438_v3, 16  ;;  %v16140_v29 = vld [vmem:[%s16733_s9 + $0x246c] ss:$16 sps:$4 sm:$0xff]  }
 0x4c9   : > { %10857 = vmatprep.subr.bf16.mxu0 %v16060_v12  ;;  %11928 = vmatprep.subr.bf16.mxu1 %v16063_v19  ;;  %v1608_v12 = vrot.slane %v1606_v31, 4  ;;  %v1568_v19 = vor.u32 %v1567_v20, %v1564_v37 }
 0x4cc   : > { %10858 = vmatpush1.bf16.msra.mxu0 %v16058_v28  ;;  %11929 = vmatpush1.bf16.msra.mxu1 %v16061_v44  ;;  %v18445_v28 = vld [vmem:[%s16730_s19 + $0x48] sm:$0xf]  ;;  %v1611_v44 = vrot.slane %v1609_v32, 5 }
 0x4cd   : > { %10859 = vmatprep.subr.bf16.mxu0 %v16066_v45  ;;  %11930 = vmatprep.subr.bf16.mxu1 %v16069_v47  ;;  %v1615_v45 = vshll.u32 %v12482_v55, 16  ;;  %v1619_v47 = vshrl.u32 %v12482_v55, 16  ;;  %v16135_v55 = vld [vmem:[%s16733_s9 + $0x2460] ss:$16 sps:$4 sm:$0xff]  }
 0x4cf   : > { %v1617_v58 = vrot.slane %v1615_v45, 5  ;;  %v16144_v45 = vld [vmem:[%s16733_s9 + $0x2488] ss:$16 sps:$4 sm:$0xff]  }
 0x4d0   : > { %10860 = vmatpush1.bf16.msra.mxu0 %v16064_v43  ;;  %11931 = vmatpush1.bf16.msra.mxu1 %v16067_v56  ;;  %v16101_v43 = vld [vmem:[%s16733_s9 + $0x23c0] ss:$16 sps:$4 sm:$0xff]   ;;  %v16104_v56 = vld [vmem:[%s16733_s9 + $0x23c8] ss:$16 sps:$4 sm:$0xff]  }
 0x4d1   : > { %10861 = vmatprep.subr.bf16.mxu0 %v16072_v57  ;;  %11932 = vmatprep.subr.bf16.mxu1 %v16075_v35  ;;  %v1578_v57 = vor.u32 %v1577_v41, %v1573_v40  ;;  %v18449_v35 = vrot.slane %v1581_v18, 5  ;;  %v16146_v41 = vld [vmem:[%s16733_s9 + $0x248c] ss:$16 sps:$4 sm:$0xff]  }
 0x4d3   : > { %v1579_v51 = vrot.slane %v1578_v57, 4  ;;  %v16152_v57 = vld [vmem:[%s16733_s9 + $0x24ac] ss:$16 sps:$4 sm:$0xff]  }
 0x4d4   : > { %10862 = vmatpush1.bf16.msra.mxu0 %v16070_v49  ;;  %11933 = vmatpush1.bf16.msra.mxu1 %v16073_v46  ;;  %v16110_v49 = vld [vmem:[%s16733_s9 + $0x23e4] ss:$16 sps:$4 sm:$0xff]   ;;  %v16113_v46 = vld [vmem:[%s16733_s9 + $0x23ec] ss:$16 sps:$4 sm:$0xff]  }
 0x4d5   : > { %10863 = vmatprep.subr.bf16.mxu0 %v16078_v10  ;;  %11934 = vmatprep.subr.bf16.mxu1 %v16081_v38  ;;  %v1569_v10 = vrot.slane %v1568_v19, 4  ;;  %v1612_v38 = vor.u32 %v1611_v44, %v1608_v12  ;;  %v1584_v0 = vsel %vm16918_vm2, %v1579_v51, %v18449_v35  ;;  %v16141_v44 = vld [vmem:[%s16733_s9 + $0x2480] ss:$16 sps:$4 sm:$0xff]   ;;  %v1645_v51 = vld [vmem:[%s16730_s19 + $0x4] sm:$0xe] }
 0x4d6   : > { %1599 = vst [vmem:[#allocation2 + $0x13c] sm:$0xf] %v1584_v0  ;;  %v16164_v0 = vld [vmem:[%s16733_s9 + $0x24ec] ss:$16 sps:$4 sm:$0xff]  }
 0x4d8   : > { %10864 = vmatpush1.bf16.msra.mxu0 %v16076_v60  ;;  %11935 = vmatpush1.bf16.msra.mxu1 %v16079_v61  ;;  %v1621_v60 = vrot.slane %v1619_v47, 4  ;;  %v1625_v61 = vshll.u32 %v18445_v28, 16 }
 0x4d9   : > { %10865 = vmatprep.subr.bf16.mxu0 %v16084_v33  ;;  %11936 = vmatprep.subr.bf16.mxu1 %v16087_v26  ;;  %v1574_v33 = vsel %vm16918_vm2, %v1569_v10, %v1573_v40  ;;  %v1613_v26 = vrot.slane %v1612_v38, 4  ;;  %v16143_v40 = vld [vmem:[%s16733_s9 + $0x2484] ss:$16 sps:$4 sm:$0xff]   ;;  %v16158_v10 = vld [vmem:[%s16733_s9 + $0x24cc] ss:$16 sps:$4 sm:$0xff]  }
 0x4da   : > { %1598 = vst [vmem:[#allocation2 + $0x98] sm:$0xf] %v1574_v33  ;;  %v1622_v2 = vor.u32 %v1621_v60, %v1617_v58  ;;  %v12485_v60 = vrot.slane %v1645_v51, 9  ;;  %v16233_v51 = vld [vmem:[%s16733_s9 + $0x2648] ss:$16 sps:$4 sm:$0xff]  }
 0x4db   : > { %v1618_v42 = vsel %vm16918_vm2, %v1613_v26, %v1617_v58  ;;  %v1647_v58 = vld [vmem:[%s16730_s19 + $0xc] sm:$0xf]  ;;  %v16153_v26 = vld [vmem:[%s16733_s9 + $0x24c0] ss:$16 sps:$4 sm:$0xff]  }
 0x4dc   : > { %10866 = vmatpush1.bf16.msra.mxu0 %v16082_v34  ;;  %11937 = vmatpush1.bf16.msra.mxu1 %v16085_v62  ;;  %v18461_v34 = vrot.slane %v1625_v61, 5  ;;  %v16119_v62 = vld [vmem:[%s16733_s9 + $0x2404] ss:$16 sps:$4 sm:$0xff]   ;;  %v1623_v8 = vrot.slane %v1622_v2, 4  ;;  %1642 = vst [vmem:[#allocation2 + $0x9c] sm:$0xf] %v1618_v42 }
 0x4dd   : > { %10867 = vmatprep.subr.bf16.mxu0 %v16090_v23  ;;  %11938 = vmatprep.subr.bf16.mxu1 %v16093_v4  ;;  %v1728_v23 = vld [vmem:[#allocation2 + $0x1d0] sm:$0xff]  ;;  %v16117_v4 = vld [vmem:[%s16733_s9 + $0x2400] ss:$16 sps:$4 sm:$0xff]   ;;  %v1658_v33 = vrot.slane %v1647_v58, 5 }
 0x4de   : > { %v1628_v5 = vsel %vm16918_vm2, %v1623_v8, %v18461_v34  ;;  %v12561_v14 = vcombine.low %v1728_v23, %v1728_v23  ;;  %v16167_v42 = vld [vmem:[%s16733_s9 + $0x2504] ss:$16 sps:$4 sm:$0xff]   ;;  %v16170_v8 = vld [vmem:[%s16733_s9 + $0x250c] ss:$16 sps:$4 sm:$0xff]  }
 0x4df   : > { %1643 = vst [vmem:[#allocation2 + $0x140] sm:$0xf] %v1628_v5  ;;  %v16168_v5 = vld [vmem:[%s16733_s9 + $0x2508] ss:$16 sps:$4 sm:$0xff]   ;;  %v16238_v58 = vld [vmem:[%s16733_s9 + $0x2664] ss:$16 sps:$4 sm:$0xff]  }
 0x4e0   : > { %10868 = vmatpush1.bf16.msra.mxu0 %v16088_v6  ;;  %11939 = vmatpush1.bf16.msra.mxu1 %v16091_v48  ;;  %v12562_v6 = vcombine.high %v1728_v23, %v1728_v23  ;;  %v16123_v48 = vld [vmem:[%s16733_s9 + $0x2420] ss:$16 sps:$4 sm:$0xff]   ;;  %v1660_v23 = vrot.slane %v1658_v33, 4 }
 0x4e1   : > { %10869 = vmatprep.subr.bf16.mxu0 %v16096_v11  ;;  %11940 = vmatprep.subr.bf16.mxu1 %v16099_v13  ;;  %v1585_v11 = vshrl.u32 %v18438_v3, 16  ;;  %v1629_v13 = vshrl.u32 %v18445_v28, 16  ;;  %v12484_v3 = vld [vmem:[%s16730_s19 + $0x4c] sm:$0x1] }
 0x4e2   : > { %v1635_v20 = vshll.u32 %v12484_v3, 16  ;;  %v16198_v3 = vld [vmem:[%s16733_s9 + $0x25a8] ss:$16 sps:$4 sm:$0xff]  }
 0x4e3   : > { %v1587_v31 = vrot.slane %v1585_v11, 4  ;;  %v1631_v32 = vrot.slane %v1629_v13, 4  ;;  %v16177_v11 = vld [vmem:[%s16733_s9 + $0x2540] ss:$16 sps:$4 sm:$0xff]   ;;  %v16185_v13 = vld [vmem:[%s16733_s9 + $0x2564] ss:$16 sps:$4 sm:$0xff]  }
 0x4e4   : > { %10870 = vmatpush1.bf16.msra.mxu0 %v16094_v30  ;;  %11941 = vmatpush1.bf16.msra.mxu1 %v16097_v36  ;;  %v12480_v30 = vld [vmem:[%s16730_s19 + $0x38] sm:$0x1]  ;;  %v1637_v28 = vrot.slane %v1635_v20, 5  ;;  %v16211_v20 = vld [vmem:[%s16733_s9 + $0x25e4] ss:$16 sps:$4 sm:$0xff]  }
 0x4e5   : > { %10871 = vmatprep.subr.bf16.mxu0 %v16103_v25  ;;  %11942 = vmatprep.subr.bf16.mxu1 %v16106_v24  ;;  %v1591_v36 = vshll.u32 %v12480_v30, 16  ;;  %v16138_v25 = vld [vmem:[%s16733_s9 + $0x2468] ss:$16 sps:$4 sm:$0xff]   ;;  %v1588_v24 = vor.u32 %v1587_v31, %v18449_v35  ;;  %v1632_v37 = vor.u32 %v1631_v32, %v18461_v34  ;;  %v16147_v35 = vld [vmem:[%s16733_s9 + $0x24a0] ss:$16 sps:$4 sm:$0xff]  }
 0x4e6   : > { %v16192_v30 = vld [vmem:[%s16733_s9 + $0x2588] ss:$16 sps:$4 sm:$0xff]   ;;  %v16197_v31 = vld [vmem:[%s16733_s9 + $0x25a4] ss:$16 sps:$4 sm:$0xff]   ;;  %v16200_v32 = vld [vmem:[%s16733_s9 + $0x25ac] ss:$16 sps:$4 sm:$0xff]  }
 0x4e7   : > { %v1593_v18 = vrot.slane %v1591_v36, 5  ;;  %v1589_v12 = vrot.slane %v1588_v24, 4  ;;  %v1633_v19 = vrot.slane %v1632_v37, 4  ;;  %v16195_v36 = vld [vmem:[%s16733_s9 + $0x25a0] ss:$16 sps:$4 sm:$0xff]  }
 0x4e8   : > { %10872 = vmatpush1.bf16.msra.mxu0 %v16101_v43  ;;  %11943 = vmatpush1.bf16.msra.mxu1 %v16104_v56  ;;  %v16149_v56 = vld [vmem:[%s16733_s9 + $0x24a4] ss:$16 sps:$4 sm:$0xff]   ;;  %v16202_v24 = vld [vmem:[%s16733_s9 + $0x25c0] ss:$16 sps:$4 sm:$0xff]   ;;  %v16205_v37 = vld [vmem:[%s16733_s9 + $0x25c8] ss:$16 sps:$4 sm:$0xff]  }
 0x4e9   : > { %10873 = vmatprep.subr.bf16.mxu0 %v16110_v49  ;;  %11944 = vmatprep.subr.bf16.mxu1 %v16113_v46  ;;  %v1594_v47 = vsel %vm16918_vm2, %v1589_v12, %v1593_v18  ;;  %v1638_v43 = vsel %vm16918_vm2, %v1633_v19, %v1637_v28  ;;  %v16150_v49 = vld [vmem:[%s16733_s9 + $0x24a8] ss:$16 sps:$4 sm:$0xff]   ;;  %v16220_v12 = vld [vmem:[%s16733_s9 + $0x2604] ss:$16 sps:$4 sm:$0xff]   ;;  %v16223_v19 = vld [vmem:[%s16733_s9 + $0x260c] ss:$16 sps:$4 sm:$0xff]  }
 0x4ea   : > { %1600 = vst [vmem:[#allocation2 + $0x1e0] sm:$0xf] %v1594_v47  ;;  %1644 = vst [vmem:[#allocation2 + $0x1e4] sm:$0xf] %v1638_v43  ;;  %v1646_v46 = vld [vmem:[%s16730_s19 + $0x8] sm:$0xf] }
 0x4eb   : > { %v1655_v38 = vrot.slane %v1646_v46, 5  ;;  %v16212_v18 = vld [vmem:[%s16733_s9 + $0x25e8] ss:$16 sps:$4 sm:$0xff]   ;;  %v16226_v43 = vld [vmem:[%s16733_s9 + $0x2624] ss:$16 sps:$4 sm:$0xff]  }
 0x4ec   : > { %10874 = vmatpush1.bf16.msra.mxu0 %v16108_v63  ;;  %11945 = vmatpush1.bf16.msra.mxu1 %v16111_v54  ;;  %v16156_v63 = vld [vmem:[%s16733_s9 + $0x24c8] ss:$16 sps:$4 sm:$0xff]   ;;  %v16161_v54 = vld [vmem:[%s16733_s9 + $0x24e4] ss:$16 sps:$4 sm:$0xff]  }
 0x4ed   : > { %10894 = vmatprep.subr.bf16.mxu0 %v16119_v62  ;;  %11965 = vmatprep.subr.bf16.mxu1 %v16122_v50  ;;  %v1657_v61 = vrot.slane %v1655_v38, 4  ;;  %v1656_v2 = vsel %vm17078_vm5, %v12485_v60, %v1655_v38  ;;  %v16159_v62 = vld [vmem:[%s16733_s9 + $0x24e0] ss:$16 sps:$4 sm:$0xff]   ;;  %v16162_v50 = vld [vmem:[%s16733_s9 + $0x24e8] ss:$16 sps:$4 sm:$0xff]  }
 0x4ee   : > { %1666 = vst [vmem:[#allocation2 + $0xa0] sm:$0xf] %v1656_v2  ;;  %v16215_v28 = vld [vmem:[#allocation2 + $0x90] ss:$164 sps:$4 sm:$0xff]   ;;  %v16230_v38 = vld [vmem:[%s16733_s9 + $0x2640] ss:$16 sps:$4 sm:$0xff]  }
 0x4ef   : > { %10876 = vmatmul.mubr.bf16.vlgmr.msra.gmra.mrb[0].mxu0 %v16114_v53  ;;  %11947 = vmatmul.mubr.bf16.vlgmr.msra.gmra.mrb[0].mxu1 %v16114_v53  ;;  %v1659_v34 = vsel %vm17078_vm5, %v1657_v61, %v1658_v33  ;;  %v1648_v53 = vld [vmem:[%s16730_s19 + $0x10] sm:$0x1]  ;;  %v16221_v47 = vld [vmem:[%s16733_s9 + $0x2608] ss:$16 sps:$4 sm:$0xff]   ;;  %v16232_v46 = vld [vmem:[%s16733_s9 + $0x2644] ss:$16 sps:$4 sm:$0xff]  }
 0x4f0   : > { %10895 = vmatpush1.bf16.msra.mxu0 %v16117_v4  ;;  %11966 = vmatpush1.bf16.msra.mxu1 %v16120_v52  ;;  %1667 = vst [vmem:[#allocation2 + $0x144] sm:$0xf] %v1659_v34  ;;  %v1661_v4 = vrot.slane %v1648_v53, 5  ;;  %v16165_v52 = vld [vmem:[%s16733_s9 + $0x2500] ss:$16 sps:$4 sm:$0xff]   ;;  %s16433_s19 = scalar_lea.vmem %s16432_s21, 1536 }
 0x4f1   : > { %10896 = vmatprep.subr.bf16.mxu0 %v16125_v39  ;;  %11967 = vmatprep.subr.bf16.mxu1 %v16128_v59  ;;  %v16173_v39 = vld [vmem:[%s16733_s9 + $0x2524] ss:$16 sps:$4 sm:$0xff]   ;;  %v16176_v59 = vld [vmem:[%s16733_s9 + $0x252c] ss:$16 sps:$4 sm:$0xff]   ;;  %v16236_v33 = vld [vmem:[%s16733_s9 + $0x2660] ss:$16 sps:$4 sm:$0xff]   ;;  %p16435_p2 = scmp.lt.s32.totalorder %s16433_s19, %s16427_s6 }
 0x4f2   : > { %10885 = vmatprep.mubr.bf16.mxu0 %v12562_v6  ;;  %11956 = vmatprep.mubr.bf16.mxu1 %v12562_v6  ;;  %v1662_v6 = vsel %vm17078_vm5, %v1660_v23, %v1661_v4  ;;  %v16241_v60 = vld [vmem:[%s16733_s9 + $0x266c] ss:$16 sps:$4 sm:$0xff]   ;;  %v16318_v61 = vld [vmem:[#allocation2 + $0x9c] ss:$164 sps:$4 sm:$0xff]   ;;  %v16245_v2 = vld [vmem:[%s16733_s9 + $0x2688] ss:$16 sps:$4 sm:$0xff]  }
 0x4f3   : > { %1668 = vst [vmem:[#allocation2 + $0x1e8] sm:$0xf] %v1662_v6  ;;  %v16250_v34 = vld [vmem:[%s16733_s9 + $0x26a4] ss:$16 sps:$4 sm:$0xff]   ;;  %v16259_v53 = vld [vmem:[%s16733_s9 + $0x26cc] ss:$16 sps:$4 sm:$0xff]   ;;  %p16436_p3 = por %p16435_p2, %p16434_p0 }
 0x4f4   : > { %10897 = vmatpush1.bf16.msra.mxu0 %v16123_v48  ;;  %11968 = vmatpush1.bf16.msra.mxu1 %v16126_v1  ;;  %v16171_v48 = vld [vmem:[%s16733_s9 + $0x2520] ss:$16 sps:$4 sm:$0xff]   ;;  %v16174_v1 = vld [vmem:[%s16733_s9 + $0x2528] ss:$16 sps:$4 sm:$0xff]   ;;  %v16268_v6 = vld [vmem:[%s16733_s9 + $0x2704] ss:$16 sps:$4 sm:$0xff]  }
 0x4f5   : > { %10898 = vmatprep.subr.bf16.mxu0 %v16131_v9  ;;  %11969 = vmatprep.subr.bf16.mxu1 %v16134_v7  ;;  %v16179_v9 = vld [vmem:[%s16733_s9 + $0x2544] ss:$16 sps:$4 sm:$0xff]   ;;  %v16182_v7 = vld [vmem:[%s16733_s9 + $0x254c] ss:$16 sps:$4 sm:$0xff]   ;;  %v16254_v23 = vld [vmem:[%s16733_s9 + $0x26c0] ss:$16 sps:$4 sm:$0xff]   ;;  %p16437_p9 = pnand %p16436_p3, %p16430_p13 }
 0x4f6   : > { %v16257_v4 = vld [vmem:[%s16733_s9 + $0x26c8] ss:$16 sps:$4 sm:$0xff]  }
 0x4f7   : > { %10886 = vmatmul.mubr.bf16.gmra.mrb[4].mxu0 %v12561_v14  ;;  %11957 = vmatmul.mubr.bf16.gmra.mrb[4].mxu1 %v12561_v14  ;;  %v16188_v14 = vld [vmem:[%s16733_s9 + $0x256c] ss:$16 sps:$4 sm:$0xff]  }
 0x4f8   : > { %10899 = vmatpush1.bf16.msra.mxu0 %v16129_v16  ;;  %11970 = vmatpush1.bf16.msra.mxu1 %v16132_v22  ;;  %v16183_v16 = vld [vmem:[%s16733_s9 + $0x2560] ss:$16 sps:$4 sm:$0xff]   ;;  %v16186_v22 = vld [vmem:[%s16733_s9 + $0x2568] ss:$16 sps:$4 sm:$0xff]  }
 0x4f9   : > { %10900 = vmatprep.subr.bf16.mxu0 %v16137_v21  ;;  %11971 = vmatprep.subr.bf16.mxu1 %v16140_v29  ;;  %v16191_v21 = vld [vmem:[%s16733_s9 + $0x2584] ss:$16 sps:$4 sm:$0xff]   ;;  %v16194_v29 = vld [vmem:[%s16733_s9 + $0x258c] ss:$16 sps:$4 sm:$0xff]  }
 0x4fa   : > { %10926 = vmatprep.mubr.bf16.mxu0 %v16217_v27  ;;  %11997 = vmatprep.mubr.bf16.mxu1 %v16217_v27  ;;  %v16189_v27 = vld [vmem:[%s16733_s9 + $0x2580] ss:$16 sps:$4 sm:$0xff]  }
 0x4fc   : > { %10901 = vmatpush1.bf16.msra.mxu0 %v16135_v55  ;;  %11972 = vmatpush1.bf16.msra.mxu1 %v16138_v25  ;;  %v16204_v55 = vld [vmem:[%s16733_s9 + $0x25c4] ss:$16 sps:$4 sm:$0xff]   ;;  %v16207_v25 = vld [vmem:[%s16733_s9 + $0x25cc] ss:$16 sps:$4 sm:$0xff]  }
 0x4fd   : > { %10902 = vmatprep.subr.bf16.mxu0 %v16143_v40  ;;  %11973 = vmatprep.subr.bf16.mxu1 %v16146_v41  ;;  %v16214_v40 = vld [vmem:[%s16733_s9 + $0x25ec] ss:$16 sps:$4 sm:$0xff]   ;;  %v16209_v41 = vld [vmem:[%s16733_s9 + $0x25e0] ss:$16 sps:$4 sm:$0xff]  }
 0x500   : > { %10903 = vmatpush1.bf16.msra.mxu0 %v16141_v44  ;;  %11974 = vmatpush1.bf16.msra.mxu1 %v16144_v45  ;;  %v1729_v44 = vld [vmem:[#allocation2 + $0x1d8] sm:$0xff] }
 0x501   : > { %10904 = vmatprep.subr.bf16.mxu0 %v16149_v56  ;;  %11975 = vmatprep.subr.bf16.mxu1 %v16152_v57  ;;  %v16218_v45 = vld [vmem:[%s16733_s9 + $0x2600] ss:$16 sps:$4 sm:$0xff]   ;;  %v16229_v56 = vld [vmem:[%s16733_s9 + $0x262c] ss:$16 sps:$4 sm:$0xff]   ;;  %v12564_v57 = vcombine.high %v1729_v44, %v1729_v44 }
 0x504   : > { %10905 = vmatpush1.bf16.msra.mxu0 %v16147_v35  ;;  %11976 = vmatpush1.bf16.msra.mxu1 %v16150_v49  ;;  %v16224_v35 = vld [vmem:[%s16733_s9 + $0x2620] ss:$16 sps:$4 sm:$0xff]   ;;  %v16227_v49 = vld [vmem:[%s16733_s9 + $0x2628] ss:$16 sps:$4 sm:$0xff]  }
 0x505   : > { %10906 = vmatprep.subr.bf16.mxu0 %v16155_v17  ;;  %11977 = vmatprep.subr.bf16.mxu1 %v16158_v10  ;;  %v16235_v17 = vld [vmem:[%s16733_s9 + $0x264c] ss:$16 sps:$4 sm:$0xff]   ;;  %v12563_v10 = vcombine.low %v1729_v44, %v1729_v44  ;;  %v16310_v44 = vld [vmem:[%s16733_s9 + $0x27e0] ss:$16 sps:$4 sm:$0xff]  }
 0x508   : > { %10907 = vmatpush1.bf16.msra.mxu0 %v16153_v26  ;;  %11978 = vmatpush1.bf16.msra.mxu1 %v16156_v63  ;;  %v16239_v26 = vld [vmem:[%s16733_s9 + $0x2668] ss:$16 sps:$4 sm:$0xff]   ;;  %v16244_v63 = vld [vmem:[%s16733_s9 + $0x2684] ss:$16 sps:$4 sm:$0xff]  }
 0x509   : > { %10908 = vmatprep.subr.bf16.mxu0 %v16161_v54  ;;  %11979 = vmatprep.subr.bf16.mxu1 %v16164_v0  ;;  %v16247_v54 = vld [vmem:[%s16733_s9 + $0x268c] ss:$16 sps:$4 sm:$0xff]   ;;  %v16242_v0 = vld [vmem:[%s16733_s9 + $0x2680] ss:$16 sps:$4 sm:$0xff]  }
 0x50c   : > { %10909 = vmatpush1.bf16.msra.mxu0 %v16159_v62  ;;  %11980 = vmatpush1.bf16.msra.mxu1 %v16162_v50  ;;  %v16253_v62 = vld [vmem:[%s16733_s9 + $0x26ac] ss:$16 sps:$4 sm:$0xff]   ;;  %v16248_v50 = vld [vmem:[%s16733_s9 + $0x26a0] ss:$16 sps:$4 sm:$0xff]  }
 0x50d   : > { %10910 = vmatprep.subr.bf16.mxu0 %v16167_v42  ;;  %11981 = vmatprep.subr.bf16.mxu1 %v16170_v8  ;;  %v16251_v42 = vld [vmem:[%s16733_s9 + $0x26a8] ss:$16 sps:$4 sm:$0xff]   ;;  %v16256_v8 = vld [vmem:[%s16733_s9 + $0x26c4] ss:$16 sps:$4 sm:$0xff]  }
 0x510   : > { %10911 = vmatpush1.bf16.msra.mxu0 %v16165_v52  ;;  %11982 = vmatpush1.bf16.msra.mxu1 %v16168_v5  ;;  %v16262_v52 = vld [vmem:[%s16733_s9 + $0x26e4] ss:$16 sps:$4 sm:$0xff]   ;;  %v16265_v5 = vld [vmem:[%s16733_s9 + $0x26ec] ss:$16 sps:$4 sm:$0xff]  }
 0x511   : > { %10912 = vmatprep.subr.bf16.mxu0 %v16173_v39  ;;  %11983 = vmatprep.subr.bf16.mxu1 %v16176_v59  ;;  %v16260_v39 = vld [vmem:[%s16733_s9 + $0x26e0] ss:$16 sps:$4 sm:$0xff]   ;;  %v16263_v59 = vld [vmem:[%s16733_s9 + $0x26e8] ss:$16 sps:$4 sm:$0xff]  }
 0x514   : > { %10913 = vmatpush1.bf16.msra.mxu0 %v16171_v48  ;;  %11984 = vmatpush1.bf16.msra.mxu1 %v16174_v1  ;;  %v16271_v48 = vld [vmem:[%s16733_s9 + $0x270c] ss:$16 sps:$4 sm:$0xff]   ;;  %v16266_v1 = vld [vmem:[%s16733_s9 + $0x2700] ss:$16 sps:$4 sm:$0xff]  }
 0x515   : > { %10914 = vmatprep.subr.bf16.mxu0 %v16179_v9  ;;  %11985 = vmatprep.subr.bf16.mxu1 %v16182_v7  ;;  %v16269_v9 = vld [vmem:[%s16733_s9 + $0x2708] ss:$16 sps:$4 sm:$0xff]   ;;  %v16274_v7 = vld [vmem:[%s16733_s9 + $0x2724] ss:$16 sps:$4 sm:$0xff]  }
 0x518   : > { %10915 = vmatpush1.bf16.msra.mxu0 %v16177_v11  ;;  %11986 = vmatpush1.bf16.msra.mxu1 %v16180_v15  ;;  %v16277_v11 = vld [vmem:[%s16733_s9 + $0x272c] ss:$16 sps:$4 sm:$0xff]   ;;  %v16272_v15 = vld [vmem:[%s16733_s9 + $0x2720] ss:$16 sps:$4 sm:$0xff]  }
 0x519   : > { %10916 = vmatprep.subr.bf16.mxu0 %v16185_v13  ;;  %11987 = vmatprep.subr.bf16.mxu1 %v16188_v14  ;;  %v16275_v13 = vld [vmem:[%s16733_s9 + $0x2728] ss:$16 sps:$4 sm:$0xff]   ;;  %v16280_v14 = vld [vmem:[%s16733_s9 + $0x2744] ss:$16 sps:$4 sm:$0xff]  }
 0x51c   : > { %10917 = vmatpush1.bf16.msra.mxu0 %v16183_v16  ;;  %11988 = vmatpush1.bf16.msra.mxu1 %v16186_v22  ;;  %v16283_v16 = vld [vmem:[%s16733_s9 + $0x274c] ss:$16 sps:$4 sm:$0xff]   ;;  %v16278_v22 = vld [vmem:[%s16733_s9 + $0x2740] ss:$16 sps:$4 sm:$0xff]  }
 0x51d   : > { %10918 = vmatprep.subr.bf16.mxu0 %v16191_v21  ;;  %11989 = vmatprep.subr.bf16.mxu1 %v16194_v29  ;;  %v16281_v21 = vld [vmem:[%s16733_s9 + $0x2748] ss:$16 sps:$4 sm:$0xff]   ;;  %v16286_v29 = vld [vmem:[%s16733_s9 + $0x2764] ss:$16 sps:$4 sm:$0xff]  }
 0x520   : > { %10919 = vmatpush1.bf16.msra.mxu0 %v16189_v27  ;;  %11990 = vmatpush1.bf16.msra.mxu1 %v16192_v30  ;;  %v16289_v27 = vld [vmem:[%s16733_s9 + $0x276c] ss:$16 sps:$4 sm:$0xff]   ;;  %v16284_v30 = vld [vmem:[%s16733_s9 + $0x2760] ss:$16 sps:$4 sm:$0xff]  }
 0x521   : > { %10920 = vmatprep.subr.bf16.mxu0 %v16197_v31  ;;  %11991 = vmatprep.subr.bf16.mxu1 %v16200_v32  ;;  %v16287_v31 = vld [vmem:[%s16733_s9 + $0x2768] ss:$16 sps:$4 sm:$0xff]   ;;  %v16292_v32 = vld [vmem:[%s16733_s9 + $0x2784] ss:$16 sps:$4 sm:$0xff]  }
 0x524   : > { %10921 = vmatpush1.bf16.msra.mxu0 %v16195_v36  ;;  %11992 = vmatpush1.bf16.msra.mxu1 %v16198_v3  ;;  %v16295_v36 = vld [vmem:[%s16733_s9 + $0x278c] ss:$16 sps:$4 sm:$0xff]   ;;  %v16290_v3 = vld [vmem:[%s16733_s9 + $0x2780] ss:$16 sps:$4 sm:$0xff]  }
 0x525   : > { %10922 = vmatprep.subr.bf16.mxu0 %v16204_v55  ;;  %11993 = vmatprep.subr.bf16.mxu1 %v16207_v25  ;;  %v16293_v55 = vld [vmem:[%s16733_s9 + $0x2788] ss:$16 sps:$4 sm:$0xff]   ;;  %v16298_v25 = vld [vmem:[%s16733_s9 + $0x27a4] ss:$16 sps:$4 sm:$0xff]  }
 0x528   : > { %10923 = vmatpush1.bf16.msra.mxu0 %v16202_v24  ;;  %11994 = vmatpush1.bf16.msra.mxu1 %v16205_v37  ;;  %v16301_v24 = vld [vmem:[%s16733_s9 + $0x27ac] ss:$16 sps:$4 sm:$0xff]   ;;  %v16296_v37 = vld [vmem:[%s16733_s9 + $0x27a0] ss:$16 sps:$4 sm:$0xff]  }
 0x529   : > { %10924 = vmatprep.subr.bf16.mxu0 %v16211_v20  ;;  %11995 = vmatprep.subr.bf16.mxu1 %v16214_v40  ;;  %v16299_v20 = vld [vmem:[%s16733_s9 + $0x27a8] ss:$16 sps:$4 sm:$0xff]   ;;  %v16305_v40 = vld [vmem:[%s16733_s9 + $0x27c4] ss:$16 sps:$4 sm:$0xff]  }
 0x52c   : > { %10925 = vmatpush1.bf16.msra.mxu0 %v16209_v41  ;;  %11996 = vmatpush1.bf16.msra.mxu1 %v16212_v18  ;;  %v16308_v41 = vld [vmem:[%s16733_s9 + $0x27cc] ss:$16 sps:$4 sm:$0xff]   ;;  %v16303_v18 = vld [vmem:[%s16733_s9 + $0x27c0] ss:$16 sps:$4 sm:$0xff]  }
 0x52d   : > { %10945 = vmatprep.subr.bf16.mxu0 %v16220_v12  ;;  %12016 = vmatprep.subr.bf16.mxu1 %v16223_v19  ;;  %v16306_v12 = vld [vmem:[%s16733_s9 + $0x27c8] ss:$16 sps:$4 sm:$0xff]   ;;  %v16312_v19 = vld [vmem:[%s16733_s9 + $0x27e4] ss:$16 sps:$4 sm:$0xff]  }
 0x52f   : > { %10927 = vmatmul.mubr.bf16.vlgmr.msra.gmra.mrb[0].mxu0 %v16215_v28  ;;  %11998 = vmatmul.mubr.bf16.vlgmr.msra.gmra.mrb[0].mxu1 %v16215_v28  ;;  %v16315_v28 = vld [vmem:[%s16733_s9 + $0x27ec] ss:$16 sps:$4 sm:$0xff]  }
 0x530   : > { %10946 = vmatpush1.bf16.msra.mxu0 %v16218_v45  ;;  %12017 = vmatpush1.bf16.msra.mxu1 %v16221_v47  ;;  %v16313_v45 = vld [vmem:[%s16733_s9 + $0x27e8] ss:$16 sps:$4 sm:$0xff]   ;;  %v16321_v47 = vld [vmem:[%s16733_s9 + $0x2804] ss:$16 sps:$4 sm:$0xff]  }
 0x531   : > { %10947 = vmatprep.subr.bf16.mxu0 %v16226_v43  ;;  %12018 = vmatprep.subr.bf16.mxu1 %v16229_v56  ;;  %v16324_v43 = vld [vmem:[%s16733_s9 + $0x280c] ss:$16 sps:$4 sm:$0xff]  }
 0x532   : > { %10936 = vmatprep.mubr.bf16.mxu0 %v12564_v57  ;;  %12007 = vmatprep.mubr.bf16.mxu1 %v12564_v57  ;;  %v16316_v56 = vld [vmem:[#allocation2 + $0x98] ss:$164 sps:$4 sm:$0xff]   ;;  %v1730_v57 = vld [vmem:[#allocation2 + $0x1e0] sm:$0xff] }
 0x534   : > { %10948 = vmatpush1.bf16.msra.mxu0 %v16224_v35  ;;  %12019 = vmatpush1.bf16.msra.mxu1 %v16227_v49  ;;  %v16319_v35 = vld [vmem:[%s16733_s9 + $0x2800] ss:$16 sps:$4 sm:$0xff]   ;;  %v16322_v49 = vld [vmem:[%s16733_s9 + $0x2808] ss:$16 sps:$4 sm:$0xff]  }
 0x535   : > { %10949 = vmatprep.subr.bf16.mxu0 %v16232_v46  ;;  %12020 = vmatprep.subr.bf16.mxu1 %v16235_v17  ;;  %v16327_v46 = vld [vmem:[%s16733_s9 + $0x2824] ss:$16 sps:$4 sm:$0xff]   ;;  %v16330_v17 = vld [vmem:[%s16733_s9 + $0x282c] ss:$16 sps:$4 sm:$0xff]  }
 0x537   : > { %10937 = vmatmul.mubr.bf16.gmra.mrb[4].mxu0 %v12563_v10  ;;  %12008 = vmatmul.mubr.bf16.gmra.mrb[4].mxu1 %v12563_v10  ;;  %v12566_v10 = vcombine.high %v1730_v57, %v1730_v57 }
 0x538   : > { %10950 = vmatpush1.bf16.msra.mxu0 %v16230_v38  ;;  %12021 = vmatpush1.bf16.msra.mxu1 %v16233_v51  ;;  %v16325_v38 = vld [vmem:[%s16733_s9 + $0x2820] ss:$16 sps:$4 sm:$0xff]   ;;  %v16328_v51 = vld [vmem:[%s16733_s9 + $0x2828] ss:$16 sps:$4 sm:$0xff]  }
 0x539   : > { %10951 = vmatprep.subr.bf16.mxu0 %v16238_v58  ;;  %12022 = vmatprep.subr.bf16.mxu1 %v16241_v60  ;;  %v16333_v58 = vld [vmem:[%s16733_s9 + $0x2844] ss:$16 sps:$4 sm:$0xff]   ;;  %v16336_v60 = vld [vmem:[%s16733_s9 + $0x284c] ss:$16 sps:$4 sm:$0xff]  }
 0x53a   : > { %10977 = vmatprep.mubr.bf16.mxu0 %v16318_v61  ;;  %12048 = vmatprep.mubr.bf16.mxu1 %v16318_v61  ;;  %v12565_v61 = vcombine.low %v1730_v57, %v1730_v57 }
 0x53c   : > { %10952 = vmatpush1.bf16.msra.mxu0 %v16236_v33  ;;  %12023 = vmatpush1.bf16.msra.mxu1 %v16239_v26  ;;  %v16331_v33 = vld [vmem:[%s16733_s9 + $0x2840] ss:$16 sps:$4 sm:$0xff]   ;;  %v16334_v26 = vld [vmem:[%s16733_s9 + $0x2848] ss:$16 sps:$4 sm:$0xff]  }
 0x53d   : > { %10953 = vmatprep.subr.bf16.mxu0 %v16244_v63  ;;  %12024 = vmatprep.subr.bf16.mxu1 %v16247_v54  ;;  %v16339_v63 = vld [vmem:[%s16733_s9 + $0x2864] ss:$16 sps:$4 sm:$0xff]   ;;  %v16342_v54 = vld [vmem:[%s16733_s9 + $0x286c] ss:$16 sps:$4 sm:$0xff]  }
 0x540   : > { %10954 = vmatpush1.bf16.msra.mxu0 %v16242_v0  ;;  %12025 = vmatpush1.bf16.msra.mxu1 %v16245_v2  ;;  %v16337_v0 = vld [vmem:[%s16733_s9 + $0x2860] ss:$16 sps:$4 sm:$0xff]   ;;  %v16340_v2 = vld [vmem:[%s16733_s9 + $0x2868] ss:$16 sps:$4 sm:$0xff]  }
 0x541   : > { %10955 = vmatprep.subr.bf16.mxu0 %v16250_v34  ;;  %12026 = vmatprep.subr.bf16.mxu1 %v16253_v62  ;;  %v16345_v34 = vld [vmem:[%s16733_s9 + $0x2884] ss:$16 sps:$4 sm:$0xff]   ;;  %v16348_v62 = vld [vmem:[%s16733_s9 + $0x288c] ss:$16 sps:$4 sm:$0xff]  }
 0x544   : > { %10956 = vmatpush1.bf16.msra.mxu0 %v16248_v50  ;;  %12027 = vmatpush1.bf16.msra.mxu1 %v16251_v42  ;;  %v16519_v50 = vmov 0   ;;  %v16343_v42 = vld [vmem:[%s16733_s9 + $0x2880] ss:$16 sps:$4 sm:$0xff]  }
 0x545   : > { %10957 = vmatprep.subr.bf16.mxu0 %v16256_v8  ;;  %12028 = vmatprep.subr.bf16.mxu1 %v16259_v53  ;;  %v16346_v8 = vld [vmem:[%s16733_s9 + $0x2888] ss:$16 sps:$4 sm:$0xff]   ;;  %v16351_v53 = vld [vmem:[%s16733_s9 + $0x28a4] ss:$16 sps:$4 sm:$0xff]  }
 0x548   : > { %10958 = vmatpush1.bf16.msra.mxu0 %v16254_v23  ;;  %12029 = vmatpush1.bf16.msra.mxu1 %v16257_v4  ;;  %v16354_v23 = vld [vmem:[%s16733_s9 + $0x28ac] ss:$16 sps:$4 sm:$0xff]   ;;  %v16349_v4 = vld [vmem:[%s16733_s9 + $0x28a0] ss:$16 sps:$4 sm:$0xff]  }
 0x549   : > { %10959 = vmatprep.subr.bf16.mxu0 %v16262_v52  ;;  %12030 = vmatprep.subr.bf16.mxu1 %v16265_v5  ;;  %v16352_v52 = vld [vmem:[%s16733_s9 + $0x28a8] ss:$16 sps:$4 sm:$0xff]   ;;  %v16359_v5 = vld [vmem:[%s16733_s9 + $0x28c4] ss:$16 sps:$4 sm:$0xff]  }
 0x54c   : > { %10960 = vmatpush1.bf16.msra.mxu0 %v16260_v39  ;;  %12031 = vmatpush1.bf16.msra.mxu1 %v16263_v59  ;;  %v16362_v39 = vld [vmem:[%s16733_s9 + $0x28cc] ss:$16 sps:$4 sm:$0xff]   ;;  %v16357_v59 = vld [vmem:[%s16733_s9 + $0x28c0] ss:$16 sps:$4 sm:$0xff]  }
 0x54d   : > { %10961 = vmatprep.subr.bf16.mxu0 %v16268_v6  ;;  %12032 = vmatprep.subr.bf16.mxu1 %v16271_v48  ;;  %v16360_v6 = vld [vmem:[%s16733_s9 + $0x28c8] ss:$16 sps:$4 sm:$0xff]   ;;  %v16365_v48 = vld [vmem:[%s16733_s9 + $0x28e4] ss:$16 sps:$4 sm:$0xff]  }
 0x550   : > { %10962 = vmatpush1.bf16.msra.mxu0 %v16266_v1  ;;  %12033 = vmatpush1.bf16.msra.mxu1 %v16269_v9  ;;  %v16368_v1 = vld [vmem:[%s16733_s9 + $0x28ec] ss:$16 sps:$4 sm:$0xff]   ;;  %v16363_v9 = vld [vmem:[%s16733_s9 + $0x28e0] ss:$16 sps:$4 sm:$0xff]  }
 0x551   : > { %10963 = vmatprep.subr.bf16.mxu0 %v16274_v7  ;;  %12034 = vmatprep.subr.bf16.mxu1 %v16277_v11  ;;  %v16366_v7 = vld [vmem:[%s16733_s9 + $0x28e8] ss:$16 sps:$4 sm:$0xff]  }
 0x552   : > { %v16369_v11 = vld [vmem:[#allocation2 + $0xa0] ss:$164 sps:$4 sm:$0xff]  }
 0x554   : > { %10964 = vmatpush1.bf16.msra.mxu0 %v16272_v15  ;;  %12035 = vmatpush1.bf16.msra.mxu1 %v16275_v13  ;;  %v16370_v15 = vld [vmem:[#allocation2 + $0x1e8] ss:$0 sps:$4 sm:$0xff]   ;;  %v3046_v13 = vlaneseq }
 0x555   : > { %10965 = vmatprep.subr.bf16.mxu0 %v16280_v14  ;;  %12036 = vmatprep.subr.bf16.mxu1 %v16283_v16 }
 0x556   : > { %v3047_v14 = vshrl.u32 %v3046_v13, 7 }
 0x558   : > { %10966 = vmatpush1.bf16.msra.mxu0 %v16278_v22  ;;  %12037 = vmatpush1.bf16.msra.mxu1 %v16281_v21  ;;  %v3048_v16 = vsub.s32 0, %v3047_v14  ;;  %v3056_v22 = vsub.s32 2, %v3047_v14  ;;  %v3044_v21 = vld [vmem:[%s16741_s23] sm:$0xf] }
 0x559   : > { %10967 = vmatprep.subr.bf16.mxu0 %v16286_v29  ;;  %12038 = vmatprep.subr.bf16.mxu1 %v16289_v27  ;;  %v3052_v29 = vsub.s32 1, %v3047_v14  ;;  %v3060_v27 = vsub.s32 3, %v3047_v14 }
 0x55c   : > { %10968 = vmatpush1.bf16.msra.mxu0 %v16284_v30  ;;  %12039 = vmatpush1.bf16.msra.mxu1 %v16287_v31  ;;  %v3049_v30 = vrot.slane %v3044_v21, %v3048_v16  ;;  %v3057_v31 = vrot.slane %v3044_v21, %v3056_v22 }
 0x55d   : > { %10969 = vmatprep.subr.bf16.mxu0 %v16292_v32  ;;  %12040 = vmatprep.subr.bf16.mxu1 %v16295_v36  ;;  %v3053_v32 = vrot.slane %v3044_v21, %v3052_v29  ;;  %v3061_v36 = vrot.slane %v3044_v21, %v3060_v27 }
 0x560   : > { %10970 = vmatpush1.bf16.msra.mxu0 %v16290_v3  ;;  %12041 = vmatpush1.bf16.msra.mxu1 %v16293_v55 }
 0x561   : > { %10971 = vmatprep.subr.bf16.mxu0 %v16298_v25  ;;  %12042 = vmatprep.subr.bf16.mxu1 %v16301_v24 }
 0x564   : > { %10972 = vmatpush1.bf16.msra.mxu0 %v16296_v37  ;;  %12043 = vmatpush1.bf16.msra.mxu1 %v16299_v20 }
 0x565   : > { %10973 = vmatprep.subr.bf16.mxu0 %v16305_v40  ;;  %12044 = vmatprep.subr.bf16.mxu1 %v16308_v41 }
 0x568   : > { %10974 = vmatpush1.bf16.msra.mxu0 %v16303_v18  ;;  %12045 = vmatpush1.bf16.msra.mxu1 %v16306_v12 }
 0x569   : > { %10975 = vmatprep.subr.bf16.mxu0 %v16312_v19  ;;  %12046 = vmatprep.subr.bf16.mxu1 %v16315_v28 }
 0x56c   : > { %10976 = vmatpush1.bf16.msra.mxu0 %v16310_v44  ;;  %12047 = vmatpush1.bf16.msra.mxu1 %v16313_v45 }
 0x56d   : > { %10996 = vmatprep.subr.bf16.mxu0 %v16321_v47  ;;  %12067 = vmatprep.subr.bf16.mxu1 %v16324_v43 }
 0x56f   : > { %10978 = vmatmul.mubr.bf16.vlgmr.msra.gmra.mrb[0].mxu0 %v16316_v56  ;;  %12049 = vmatmul.mubr.bf16.vlgmr.msra.gmra.mrb[0].mxu1 %v16316_v56 }
 0x570   : > { %10997 = vmatpush1.bf16.msra.mxu0 %v16319_v35  ;;  %12068 = vmatpush1.bf16.msra.mxu1 %v16322_v49 }
 0x571   : > { %10998 = vmatprep.subr.bf16.mxu0 %v16327_v46  ;;  %12069 = vmatprep.subr.bf16.mxu1 %v16330_v17 }
 0x572   : > { %10987 = vmatprep.mubr.bf16.mxu0 %v12566_v10  ;;  %12058 = vmatprep.mubr.bf16.mxu1 %v12566_v10 }
 0x574   : > { %10999 = vmatpush1.bf16.msra.mxu0 %v16325_v38  ;;  %12070 = vmatpush1.bf16.msra.mxu1 %v16328_v51 }
 0x575   : > { %11000 = vmatprep.subr.bf16.mxu0 %v16333_v58  ;;  %12071 = vmatprep.subr.bf16.mxu1 %v16336_v60 }
 0x577   : > { %10988 = vmatmul.mubr.bf16.gmra.mrb[4].mxu0 %v12565_v61  ;;  %12059 = vmatmul.mubr.bf16.gmra.mrb[4].mxu1 %v12565_v61 }
 0x578   : > { %11001 = vmatpush1.bf16.msra.mxu0 %v16331_v33  ;;  %12072 = vmatpush1.bf16.msra.mxu1 %v16334_v26 }
 0x579   : > { %11002 = vmatprep.subr.bf16.mxu0 %v16339_v63  ;;  %12073 = vmatprep.subr.bf16.mxu1 %v16342_v54 }
 0x57a   : > { %11028 = vmatprep.mubr.bf16.mxu0 %v16519_v50  ;;  %12099 = vmatprep.mubr.bf16.mxu1 %v16519_v50 }
 0x57c   : > { %11003 = vmatpush1.bf16.msra.mxu0 %v16337_v0  ;;  %12074 = vmatpush1.bf16.msra.mxu1 %v16340_v2 }
 0x57d   : > { %11004 = vmatprep.subr.bf16.mxu0 %v16345_v34  ;;  %12075 = vmatprep.subr.bf16.mxu1 %v16348_v62 }
 0x580   : > { %11005 = vmatpush1.bf16.msra.mxu0 %v16343_v42  ;;  %12076 = vmatpush1.bf16.msra.mxu1 %v16346_v8 }
 0x581   : > { %11006 = vmatprep.subr.bf16.mxu0 %v16351_v53  ;;  %12077 = vmatprep.subr.bf16.mxu1 %v16354_v23 }
 0x584   : > { %11007 = vmatpush1.bf16.msra.mxu0 %v16349_v4  ;;  %12078 = vmatpush1.bf16.msra.mxu1 %v16352_v52 }
 0x585   : > { %11008 = vmatprep.subr.bf16.mxu0 %v16359_v5  ;;  %12079 = vmatprep.subr.bf16.mxu1 %v16362_v39 }
 0x588   : > { %11009 = vmatpush1.bf16.msra.mxu0 %v16357_v59  ;;  %12080 = vmatpush1.bf16.msra.mxu1 %v16360_v6 }
 0x589   : > { %11010 = vmatprep.subr.bf16.mxu0 %v16365_v48  ;;  %12081 = vmatprep.subr.bf16.mxu1 %v16368_v1 }
 0x58c   : > { %11011 = vmatpush1.bf16.msra.mxu0 %v16363_v9  ;;  %12082 = vmatpush1.bf16.msra.mxu1 %v16366_v7 }
 0x58f   : > { %11029 = vmatmul.mubr.bf16.vlgmr.msra.gmra.mrb[0].mxu0 %v16369_v11  ;;  %12100 = vmatmul.mubr.bf16.vlgmr.msra.gmra.mrb[0].mxu1 %v16369_v11 }
 0x590   : > { %11038 = vmatprep.mubr.bf16.mxu0 %v16519_v50  ;;  %12109 = vmatprep.mubr.bf16.mxu1 %v16519_v50 }
 0x597   : > { %11039 = vmatmul.mubr.bf16.gmra.mrb[4].mxu0 %v16370_v15  ;;  %12110 = vmatmul.mubr.bf16.gmra.mrb[4].mxu1 %v16370_v15 }
 0x662   : > { %v11030_v3 = vpop.f32.mrb[0].mxu0  ;;  %v12101_v55 = vpop.f32.mrb[0].mxu1 }
 0x663   : > { %v13898_v25 = vadd.f32 %v11030_v3, %v3049_v30  ;;  %v13904_v24 = vadd.f32 %v12101_v55, %v3057_v31  ;;  %v11032_v37 = vpop.f32.mrb[1].mxu0  ;;  %v12103_v20 = vpop.f32.mrb[1].mxu1 }
 0x664   : > { %v13899_v40 = vadd.f32 %v11032_v37, %v3053_v32  ;;  %v13905_v41 = vadd.f32 %v12103_v20, %v3061_v36  ;;  %v11034_v18 = vpop.f32.mrb[2].mxu0  ;;  %v12105_v12 = vpop.f32.mrb[2].mxu1 }
 0x665   : > { %vm12118_vm2 = vcmp.ge.f32.partialorder %v13898_v25, 0.0  ;;  %v12130_v19 = vmul.f32 0.1, %v13898_v25  ;;  %vm12120_vm5 = vcmp.ge.f32.partialorder %v13904_v24, 0.0  ;;  %v12132_v28 = vmul.f32 0.1, %v13904_v24 }
 0x666   : > { %vm12119_vm7 = vcmp.ge.f32.partialorder %v13899_v40, 0.0  ;;  %v12131_v44 = vmul.f32 0.1, %v13899_v40  ;;  %vm12121_vm8 = vcmp.ge.f32.partialorder %v13905_v41, 0.0  ;;  %v12133_v45 = vmul.f32 0.1, %v13905_v41 }
 0x667   : > { %v12142_v47 = vsel %vm12118_vm2, %v13898_v25, %v12130_v19  ;;  %v12144_v43 = vsel %vm12120_vm5, %v13904_v24, %v12132_v28  ;;  %v13900_v56 = vadd.f32 %v11034_v18, %v3049_v30  ;;  %v13906_v57 = vadd.f32 %v12105_v12, %v3057_v31  ;;  %v11036_v35 = vpop.f32.mrb[3].mxu0  ;;  %v12107_v49 = vpop.f32.mrb[3].mxu1 }
 0x668   : > { %v12143_v46 = vsel %vm12119_vm7, %v13899_v40, %v12131_v44  ;;  %v12145_v17 = vsel %vm12121_vm8, %v13905_v41, %v12133_v45  ;;  %v13901_v10 = vadd.f32 %v11036_v35, %v3053_v32  ;;  %v13907_v38 = vadd.f32 %v12107_v49, %v3061_v36 }
 0x669   : > { %v13891_v51 = vpack.c.bf16 %v12143_v46, %v12142_v47  ;;  %v13892_v58 = vpack.c.bf16 %v12145_v17, %v12144_v43  ;;  %vm12122_vm9 = vcmp.ge.f32.partialorder %v13900_v56, 0.0  ;;  %v12134_v60 = vmul.f32 0.1, %v13900_v56 }
 0x66a   : > { %vm12124_vm10 = vcmp.ge.f32.partialorder %v13906_v57, 0.0  ;;  %v12136_v61 = vmul.f32 0.1, %v13906_v57  ;;  %vm12123_vm11 = vcmp.ge.f32.partialorder %v13901_v10, 0.0  ;;  %v12135_v33 = vmul.f32 0.1, %v13901_v10 }
 0x66b   : > { %12194 = vst [vmem:[%s18652_s29] sm:$0xff] %v13891_v51  ;;  %12195 = vst [vmem:[%s18652_s29 + $0x8] sm:$0xff] %v13892_v58  ;;  %v12146_v26 = vsel %vm12122_vm9, %v13900_v56, %v12134_v60  ;;  %vm12125_vm12 = vcmp.ge.f32.partialorder %v13907_v38, 0.0  ;;  %v12137_v63 = vmul.f32 0.1, %v13907_v38  ;;  %v11040_v54 = vpop.f32.mrb[4].mxu0  ;;  %v12111_v0 = vpop.f32.mrb[4].mxu1 }
 0x66c   : > { %v12148_v2 = vsel %vm12124_vm10, %v13906_v57, %v12136_v61  ;;  %v12147_v34 = vsel %vm12123_vm11, %v13901_v10, %v12135_v33  ;;  %v13902_v62 = vadd.f32 %v11040_v54, %v3049_v30  ;;  %v13908_v50 = vadd.f32 %v12111_v0, %v3057_v31  ;;  %v11042_v42 = vpop.f32.mrb[5].mxu0  ;;  %v12113_v8 = vpop.f32.mrb[5].mxu1 }
 0x66d   : > { %v13893_v53 = vpack.c.bf16 %v12147_v34, %v12146_v26  ;;  %v12149_v23 = vsel %vm12125_vm12, %v13907_v38, %v12137_v63  ;;  %v13903_v4 = vadd.f32 %v11042_v42, %v3053_v32  ;;  %v13909_v52 = vadd.f32 %v12113_v8, %v3061_v36  ;;  %v11044_v5 = vpop.f32.mrb[6].mxu0  ;;  %v12115_v39 = vpop.f32.mrb[6].mxu1 }
 0x66e   : > { %v13894_v59 = vpack.c.bf16 %v12149_v23, %v12148_v2  ;;  %vm12126_vm13 = vcmp.ge.f32.partialorder %v13902_v62, 0.0  ;;  %v12138_v6 = vmul.f32 0.1, %v13902_v62  ;;  %vm12128_vm14 = vcmp.ge.f32.partialorder %v13908_v50, 0.0  ;;  %v11045_v48 = vpop.f32.mrb[7].mxu0  ;;  %v12116_v1 = vpop.f32.mrb[7].mxu1 }
 0x66f   : > { %12196 = vst [vmem:[%s18652_s29 + $0x10] sm:$0xff] %v13893_v53  ;;  %v12140_v9 = vmul.f32 0.1, %v13908_v50  ;;  %vm12127_vm15 = vcmp.ge.f32.partialorder %v13903_v4, 0.0  ;;  %v12139_v7 = vmul.f32 0.1, %v13903_v4 }
 0x670   : > { %vm12129_vm0 = vcmp.ge.f32.partialorder %v13909_v52, 0.0  ;;  %12197 = vst [vmem:[%s18652_s29 + $0x18] sm:$0xff] %v13894_v59  ;;  %v12150_v11 = vsel %vm12126_vm13, %v13902_v62, %v12138_v6  ;;  %v12141_v15 = vmul.f32 0.1, %v13909_v52 }
 0x671   : > { %v12152_v13 = vsel %vm12128_vm14, %v13908_v50, %v12140_v9  ;;  %v12151_v14 = vsel %vm12127_vm15, %v13903_v4, %v12139_v7 }
 0x672   : > { %v13895_v16 = vpack.c.bf16 %v12151_v14, %v12150_v11  ;;  %v12153_v22 = vsel %vm12129_vm0, %v13909_v52, %v12141_v15 }
 0x673   : > { %v13896_v21 = vpack.c.bf16 %v12153_v22, %v12152_v13 }
 0x674   : > { %12198 = vst [vmem:[%s18652_s29 + $0x20] sm:$0xff] %v13895_v16 }
 0x675   : > { %12199 = vst [vmem:[%s18652_s29 + $0x28] sm:$0xff] %v13896_v21 }
 0x676   : > { %16440 = shalt.err (!%p16437_p9)
}
 0x677   : > { %s16441_s22 = scalar_lea.hbm %s18665_s28, 768  ;;  %s16445_s18 = scalar_lea.hbm %s18719_s3, 1536 }
 0x678   : > { %p16442_p11 = scmp.ne.s32.totalorder %s18665_s28, %s16441_s22  ;;  %p16446_p5 = scmp.lt.u32.totalorder %s18665_s28, %s18719_s3 }
 0x679   : > { %p16447_p6 = scmp.lt.u32.totalorder %s16445_s18, %s16441_s22  ;;  %p16449_p8 = scmp.lt.u32.totalorder %s16441_s22, %s18665_s28 }
 0x67a   : > { %p16443_p1 = pnand %p16442_p11, %p18742_p7 }
 0x67b   : > { %p16448_p4 = por %p16447_p6, %p16446_p5 }
 0x67c   : > { %p16444_p12 = pneg %p16443_p1 }
 0x67d   : > { %p16450_p10 = por %p16449_p8, %p16448_p4 }
 0x67f   : > { %p16451_p13 = pnand %p16450_p10, %p16444_p12 }
 0x681   : > { %16454 = shalt.err (!%p16451_p13)
}
 0x682   : > { %s16521_s29 = smov 256   ;;  %s16522_s4 = smov 512  }
 0x683   : > { %s16523_s15 = smov 16  }
 0x684   : > { %14240 = dma.vmem_to_hbm [thread:$0]  (%p18742_p7), %s18660_s30, 768, %s18665_s28, %s12201_s5, %s16521_s29, %s16522_s4, %s16523_s15  }
 0x685 PF: > { %s12232_s8 = sand.u32 1, %s16493_s12   ;;  %p18743_p0 = scmp.ne.s32.totalorder %s18726_s27, 0 }
 0x686   : > { %p18744_p2 = scmp.ge.s32.totalorder %s16513_s17, 2  ;;  %s12233_s6 = scalar_lea.sflag [#allocation6], %s12232_s8 }
 0x688   : > { %p14243_p3 = pnand %p18744_p2, %p18743_p0 }
 0x68a   : > { %16488 = dma.done.wait (!%p14243_p3), %s12233_s6, 768  }
 0x68b   : > { %16490 = vsyncadd (!%p14243_p3), %s12233_s6, 4294966528  ;;  %s22_s17 = sadd.s32 1, %s16513_s17   ;;  %s18745_s12 = smov %s16497_s13 }
 0x68c   : > { %p19_p9 = scmp.ge.s32.totalorder %s22_s17, 4   ;;  %s18746_s13 = smov %s16501_s14 }
 0x68d   : > { %s18747_s14 = smov %s16600_s26  ;;  %s18748_s15 = smov %s16509_s16 }
 0x68e   : > { %s18749_s16 = smov %s18751_s20  ;;  %21 = sbr.rel (!%p19_p9) target bundleno = 8 (0x8), region = 142 }
 0x695   :  { %12238 = vsyncpa [#allocation5], 1 }
 0x696   :  { %12240 = vsyncpa [#allocation5 + $0x1], 1 }
 0x697   :  { %12241 = vsyncpa [#allocation8], 1 }
 0x698   :  { %12243 = vsyncpa [#allocation8 + $0x1], 1 }
 0x699   :  { %12244 = vsyncpa [#allocation6], 1 }
 0x69a   :  { %12246 = vsyncpa [#allocation6 + $0x1], 1 }

</bundles_post_ra>
